<compile_context>
chip_gen: v7x
topology: tpu7x:2x2x1
jax: 0.10.0
libtpu: 0.0.40
codegen_flags: <defaults>
</compile_context>

<pallas_src>
import numpy as np
import jax
import jax.numpy as jnp
from jax.experimental import pallas as pl
from jax.experimental.pallas import tpu as pltpu

EPS = 1e-10


# ----------------------------------------------------------------------------
# Kernel 1: bidirectional LSTM encoder (both directions fused, one matmul/step)
# ----------------------------------------------------------------------------
def encoder_kernel(xg_ref,      # (Lin, B, 8H)  precomputed x@W_ih^T + b, per-gate
                                #               interleaved [i_f,i_b,f_f,f_b,g_f,g_b,o_f,o_b]
                                #               fwd half at time t, bwd half at time Lin-1-t
                   whh_ref,     # (2H, 8H)      block-diagonal recurrent weights (same layout)
                   xb_ref,      # out (Lin, B, 2H)  bi-LSTM features (fwd | bwd)
                   h0_ref,      # out (B, 2H)       decoder init hidden
                   c0_ref,      # out (B, 2H)       decoder init cell
                   h_enc, c_enc):                  # scratch (B, 2H)
    T = xg_ref.shape[0]
    H2 = h_enc.shape[-1]
    H = H2 // 2
    f32 = jnp.float32

    h_enc[...] = jnp.zeros_like(h_enc)
    c_enc[...] = jnp.zeros_like(c_enc)

    @pl.loop(0, T, unroll=True)
    def _step(t):
        # one recurrent matmul covers both directions (block-diagonal weights)
        gates = xg_ref[t] + jnp.dot(h_enc[...], whh_ref[...],
                                    preferred_element_type=f32)       # (B, 8H)
        i = jax.nn.sigmoid(gates[:, 0:H2])
        f = jax.nn.sigmoid(gates[:, H2:2 * H2])
        g = jnp.tanh(gates[:, 2 * H2:3 * H2])
        o = jax.nn.sigmoid(gates[:, 3 * H2:4 * H2])
        c_new = f * c_enc[...] + i * g
        h_new = o * jnp.tanh(c_new)                                    # (B, 2H)
        h_enc[...] = h_new
        c_enc[...] = c_new
        # fwd half (lanes [0:H]) belongs to timestep t,
        # bwd half (lanes [H:2H]) belongs to timestep T-1-t
        xb_ref[t, :, 0:H] = h_new[:, 0:H]
        xb_ref[T - 1 - t, :, H:H2] = h_new[:, H:H2]

    # decoder init = [fwd final | bwd final] == h_enc layout directly
    h0_ref[...] = h_enc[...]
    c0_ref[...] = c_enc[...]


# ----------------------------------------------------------------------------
# Kernel 2: full decoder (LSTM + attention + pointer + vocab proj + mixture)
#           single no-grid kernel, pl.loop over all output timesteps
# ----------------------------------------------------------------------------
def decoder_kernel(xb_ref,      # (B, Lin, 2H)  encoder features
                   xbT_ref,     # (B, 2H, Lin)  transposed copy (for scores matmul)
                   oh_ref,      # (B, Lin, V)   one_hot(x_ids) (pointer scatter as matmul)
                   ag_ref,      # (Lout, B, 8H) precomputed decoder input gates (+bias)
                   pgw_ref,     # (Lout, B, 1)  precomputed p_gen w-term (+bias)
                   h0_ref, c0_ref,               # (B, 2H) initial decoder state
                   wdhh_ref,    # (2H, 8H)      decoder recurrent weights
                   wpo_ref, wpc_ref, bp_ref,     # vocab proj split: (2H,V),(2H,V),(1,V)
                   wgc_ref, wgo_ref,             # p_gen columns: (2H,1),(2H,1)
                   out_ref,     # out (Lout, B, V) log final distribution
                   h_s, c_s,    # scratch (B, 2H) recurrent state
                   ctx_s,       # scratch (B, 2H) context rows
                   ptr_s):      # scratch (B, V)  pointer rows
    Lout = ag_ref.shape[0]
    B = xb_ref.shape[0]
    H2 = h_s.shape[-1]
    f32 = jnp.float32

    h_s[...] = h0_ref[...]
    c_s[...] = c0_ref[...]

    @pl.loop(0, Lout, unroll=True)
    def _step(t):
        # ---- decoder LSTM cell (input projection precomputed in the wrapper) --
        gates = ag_ref[t] + jnp.dot(h_s[...], wdhh_ref[...],
                                    preferred_element_type=f32)        # (B, 8H)
        ig = jax.nn.sigmoid(gates[:, 0:H2])
        fg = jax.nn.sigmoid(gates[:, H2:2 * H2])
        gg = jnp.tanh(gates[:, 2 * H2:3 * H2])
        og = jax.nn.sigmoid(gates[:, 3 * H2:4 * H2])
        c_new = fg * c_s[...] + ig * gg
        out = og * jnp.tanh(c_new)                                     # (B, 2H)
        h_s[...] = out
        c_s[...] = c_new

        # ---- attention / context / pointer via small MXU matmuls per batch ---
        for b in range(B):                      # B is tiny & static -> unrolled
            out_b = out[b:b + 1, :]                                    # (1, 2H)
            sc = jnp.dot(out_b, xbT_ref[b],
                         preferred_element_type=f32)                   # (1, Lin)
            sc = sc - jnp.max(sc, axis=-1, keepdims=True)
            e = jnp.exp(sc)
            attn = e * pl.reciprocal(jnp.sum(e, axis=-1, keepdims=True),
                                     approx=True)                      # (1, Lin)
            ctx_s[b:b + 1, :] = jnp.dot(attn, xb_ref[b],
                                        preferred_element_type=f32)    # (1, 2H)
            ptr_s[b:b + 1, :] = jnp.dot(attn, oh_ref[b],
                                        preferred_element_type=f32)    # (1, V)

        context = ctx_s[...]                                           # (B, 2H)
        pointer_prob = ptr_s[...]                                      # (B, V)

        # ---- vocab projection + softmax (pro_layer) ---------------------------
        logits = (jnp.dot(out, wpo_ref[...], preferred_element_type=f32)
                  + jnp.dot(context, wpc_ref[...], preferred_element_type=f32)
                  + bp_ref[...])                                       # (B, V)
        logits = logits - jnp.max(logits, axis=-1, keepdims=True)
        ex = jnp.exp(logits)
        distri = ex * pl.reciprocal(jnp.sum(ex, axis=-1, keepdims=True),
                                    approx=True)                       # (B, V)

        # ---- p_gen: two (B,2H)@(2H,1) matmuls + precomputed w-term/bias -------
        pgen_logit = (jnp.dot(context, wgc_ref[...], preferred_element_type=f32)
                      + jnp.dot(out, wgo_ref[...], preferred_element_type=f32)
                      + pgw_ref[t])                                    # (B, 1)
        pgen = jax.nn.sigmoid(pgen_logit)

        final = pgen * distri + (1.0 - pgen) * pointer_prob + EPS
        out_ref[t] = jnp.log(final)


# ----------------------------------------------------------------------------
# Wrapper
# ----------------------------------------------------------------------------
def pointer_generator_forward(params, x_ids, ans_ids):
    emb = params["emb"]
    V, E = emb.shape
    H = params["w_hh_f"].shape[1]
    H2 = 2 * H
    B, Lin = x_ids.shape
    Lout = ans_ids.shape[1]
    f32 = jnp.float32

    # ---- glue: embedding lookups, time-major layout ---------------------------
    x_tm = jnp.transpose(emb[x_ids], (1, 0, 2)).astype(f32)     # (Lin, B, E)
    ans_tm = jnp.transpose(emb[ans_ids], (1, 0, 2)).astype(f32)  # (Lout, B, E)

    # ---- encoder: hoist input projections, interleave fwd/bwd per gate --------
    b_f = (params["b_ih_f"] + params["b_hh_f"]).astype(f32)
    b_b = (params["b_ih_b"] + params["b_hh_b"]).astype(f32)
    xg_f = x_tm @ params["w_ih_f"].T.astype(f32) + b_f           # (Lin, B, 4H)
    xg_b = x_tm @ params["w_ih_b"].T.astype(f32) + b_b           # (Lin, B, 4H)
    # layout: [i_f, i_b, f_f, f_b, g_f, g_b, o_f, o_b]; bwd slot holds time Lin-1-t
    xg_comb = jnp.concatenate(
        [xg_f.reshape(Lin, B, 4, 1, H),
         xg_b[::-1].reshape(Lin, B, 4, 1, H)], axis=3).reshape(Lin, B, 8 * H)

    whh_f_T = params["w_hh_f"].T.astype(f32).reshape(H, 4, H)
    whh_b_T = params["w_hh_b"].T.astype(f32).reshape(H, 4, H)
    whh_comb = jnp.zeros((H2, 4, 2, H), f32)
    whh_comb = whh_comb.at[0:H, :, 0, :].set(whh_f_T)
    whh_comb = whh_comb.at[H:H2, :, 1, :].set(whh_b_T)
    whh_comb = whh_comb.reshape(H2, 8 * H)

    xb_tm, h0, c0 = pl.pallas_call(
        encoder_kernel,
        out_shape=(jax.ShapeDtypeStruct((Lin, B, H2), f32),
                   jax.ShapeDtypeStruct((B, H2), f32),
                   jax.ShapeDtypeStruct((B, H2), f32)),
        scratch_shapes=[pltpu.VMEM((B, H2), f32),
                        pltpu.VMEM((B, H2), f32)],
    )(xg_comb, whh_comb)

    x_bilstm = jnp.transpose(xb_tm, (1, 0, 2))    # (B, Lin, 2H)
    x_bilstm_T = jnp.transpose(xb_tm, (1, 2, 0))  # (B, 2H, Lin)

    # ---- decoder: hoist input projections / one-hot / p_gen w-term ------------
    bd = (params["b_ih_d"] + params["b_hh_d"]).astype(f32)
    ag = ans_tm @ params["w_ih_d"].T.astype(f32) + bd            # (Lout, B, 8H)
    wdhh_T = params["w_hh_d"].T.astype(f32)                      # (2H, 8H)

    w_pro = params["w_pro"].astype(f32)                          # (V, 4H), feat = [out, ctx]
    wp_out = w_pro[:, :H2].T                                     # (2H, V)
    wp_ctx = w_pro[:, H2:].T                                     # (2H, V)
    bp = params["b_pro"].astype(f32).reshape(1, V)

    w_pgen = params["w_pgen"].astype(f32)                        # (1, 4H+E), feat = [ctx, out, w]
    wg_ctx = w_pgen[:, :H2].T                                    # (2H, 1)
    wg_out = w_pgen[:, H2:2 * H2].T                              # (2H, 1)
    pgw = ans_tm @ w_pgen[:, 2 * H2:].T + params["b_pgen"].astype(f32)   # (Lout, B, 1)

    onehot = jax.nn.one_hot(x_ids, V, dtype=f32)                 # (B, Lin, V)

    log_dist_tm = pl.pallas_call(
        decoder_kernel,
        out_shape=jax.ShapeDtypeStruct((Lout, B, V), f32),
        scratch_shapes=[pltpu.VMEM((B, H2), f32),   # h_s
                        pltpu.VMEM((B, H2), f32),   # c_s
                        pltpu.VMEM((B, H2), f32),   # ctx_s
                        pltpu.VMEM((B, V), f32)],   # ptr_s
    )(x_bilstm, x_bilstm_T, onehot, ag, pgw, h0, c0,
      wdhh_T, wp_out, wp_ctx, bp, wg_ctx, wg_out)

    return jnp.transpose(log_dist_tm, (1, 0, 2))                 # (B, Lout, V)


# ----------------------------------------------------------------------------
# Pure-JAX reference (mirrors the PyTorch forward for teacher forcing, no cov)
# ----------------------------------------------------------------------------
def reference_forward(params, x_ids, ans_ids):
    emb = params["emb"]
    V = emb.shape[0]
    H = params["w_hh_f"].shape[1]
    x_emb = emb[x_ids]
    ans_emb = emb[ans_ids]
    B, Lin, _ = x_emb.shape
    Lout = ans_emb.shape[1]

    def lstm_step(x_t, h, c, w_ih, w_hh, b_ih, b_hh):
        gates = x_t @ w_ih.T + h @ w_hh.T + b_ih + b_hh
        hd = h.shape[-1]
        i = jax.nn.sigmoid(gates[:, :hd])
        f = jax.nn.sigmoid(gates[:, hd:2 * hd])
        g = jnp.tanh(gates[:, 2 * hd:3 * hd])
        o = jax.nn.sigmoid(gates[:, 3 * hd:])
        c = f * c + i * g
        return o * jnp.tanh(c), c

    hf = jnp.zeros((B, H)); cf = jnp.zeros((B, H))
    outs_f = []
    for t in range(Lin):
        hf, cf = lstm_step(x_emb[:, t], hf, cf, params["w_ih_f"], params["w_hh_f"],
                           params["b_ih_f"], params["b_hh_f"])
        outs_f.append(hf)
    hb = jnp.zeros((B, H)); cb = jnp.zeros((B, H))
    outs_b = [None] * Lin
    for t in range(Lin - 1, -1, -1):
        hb, cb = lstm_step(x_emb[:, t], hb, cb, params["w_ih_b"], params["w_hh_b"],
                           params["b_ih_b"], params["b_hh_b"])
        outs_b[t] = hb
    x_bilstm = jnp.stack([jnp.concatenate([outs_f[t], outs_b[t]], -1)
                          for t in range(Lin)], axis=1)
    h = jnp.concatenate([hf, hb], -1)
    c = jnp.concatenate([cf, cb], -1)

    onehot = jax.nn.one_hot(x_ids, V, dtype=jnp.float32)
    finals = []
    for t in range(Lout):
        w = ans_emb[:, t]
        h, c = lstm_step(w, h, c, params["w_ih_d"], params["w_hh_d"],
                         params["b_ih_d"], params["b_hh_d"])
        out = h
        scores = jnp.einsum("bld,bd->bl", x_bilstm, out)
        scores = scores - jnp.max(scores, axis=1, keepdims=True)
        e = jnp.exp(scores)
        attn = e / jnp.sum(e, axis=1, keepdims=True)
        pointer = jnp.einsum("bl,blv->bv", attn, onehot)
        context = jnp.einsum("bl,bld->bd", attn, x_bilstm)
        feature = jnp.concatenate([out, context], -1)
        pgen_feat = jnp.concatenate([context, out, w], -1)
        logits = feature @ params["w_pro"].T + params["b_pro"]
        logits = logits - jnp.max(logits, -1, keepdims=True)
        ex = jnp.exp(logits)
        distri = ex / jnp.sum(ex, -1, keepdims=True)
        pgen = jax.nn.sigmoid(pgen_feat @ params["w_pgen"].T + params["b_pgen"])
        finals.append(jnp.log(pgen * distri + (1.0 - pgen) * pointer + EPS))
    return jnp.stack(finals, axis=1)


# ----------------------------------------------------------------------------
def init_params(key, V, E, H):
    ks = jax.random.split(key, 20)
    s = 0.1
    p = {
        "emb": jax.random.normal(ks[0], (V, E), jnp.float32) * s,
        # encoder forward direction
        "w_ih_f": jax.random.normal(ks[1], (4 * H, E), jnp.float32) * s,
        "w_hh_f": jax.random.normal(ks[2], (4 * H, H), jnp.float32) * s,
        "b_ih_f": jax.random.normal(ks[3], (4 * H,), jnp.float32) * s,
        "b_hh_f": jax.random.normal(ks[4], (4 * H,), jnp.float32) * s,
        # encoder backward direction
        "w_ih_b": jax.random.normal(ks[5], (4 * H, E), jnp.float32) * s,
        "w_hh_b": jax.random.normal(ks[6], (4 * H, H), jnp.float32) * s,
        "b_ih_b": jax.random.normal(ks[7], (4 * H,), jnp.float32) * s,
        "b_hh_b": jax.random.normal(ks[8], (4 * H,), jnp.float32) * s,
        # decoder LSTM (hidden = 2H)
        "w_ih_d": jax.random.normal(ks[9], (8 * H, E), jnp.float32) * s,
        "w_hh_d": jax.random.normal(ks[10], (8 * H, 2 * H), jnp.float32) * s,
        "b_ih_d": jax.random.normal(ks[11], (8 * H,), jnp.float32) * s,
        "b_hh_d": jax.random.normal(ks[12], (8 * H,), jnp.float32) * s,
        # pro_layer: Linear(4H -> V)
        "w_pro": jax.random.normal(ks[13], (V, 4 * H), jnp.float32) * s,
        "b_pro": jax.random.normal(ks[14], (V,), jnp.float32) * s,
        # pgen_layer: Linear(4H + E -> 1)
        "w_pgen": jax.random.normal(ks[15], (1, 4 * H + E), jnp.float32) * s,
        "b_pgen": jax.random.normal(ks[16], (1,), jnp.float32) * s,
    }
    return p


if __name__ == "__main__":
    B, Lin, Lout, E, H, V = 2, 8, 8, 32, 32, 128

    key = jax.random.PRNGKey(0)
    k_params, k_x, k_ans = jax.random.split(key, 3)
    params = init_params(k_params, V, E, H)
    x_ids = jax.random.randint(k_x, (B, Lin), 0, V, dtype=jnp.int32)
    ans_ids = jax.random.randint(k_ans, (B, Lout), 0, V, dtype=jnp.int32)

    fwd = jax.jit(pointer_generator_forward)
    out = fwd(params, x_ids, ans_ids)
    out = jax.block_until_ready(out)
    assert out.shape == (B, Lout, V)

    ref = reference_forward(params, x_ids, ans_ids)
    np.testing.assert_allclose(np.asarray(out), np.asarray(ref), rtol=2e-2, atol=2e-2)

    print("KERNEL_OK")
</pallas_src>

<mosaic_0001>
module attributes {stable_mosaic.version = 11 : i64} {
  func.func @encoder_kernel(%arg0: memref<8x2x256xf32, #tpu.memory_space<vmem>>, %arg1: memref<64x256xf32, #tpu.memory_space<vmem>>, %arg2: memref<8x2x64xf32, #tpu.memory_space<vmem>>, %arg3: memref<2x64xf32, #tpu.memory_space<vmem>>, %arg4: memref<2x64xf32, #tpu.memory_space<vmem>>, %arg5: memref<2x64xf32, #tpu.memory_space<vmem>>, %arg6: memref<2x64xf32, #tpu.memory_space<vmem>>) attributes {dimension_semantics = [], scalar_prefetch = 0 : i64, scratch_operands = 2 : i64, tpu.core_type = #tpu.core_type<tc>} {
    %cst = arith.constant 0.000000e+00 : f32
    %0 = vector.broadcast %cst : f32 to vector<2x64xf32>
    %c0 = arith.constant 0 : index
    %c0_0 = arith.constant 0 : index
    %1 = vector.load %arg5[%c0, %c0_0] : memref<2x64xf32, #tpu.memory_space<vmem>>, vector<2x64xf32>
    tpu.vector_store %arg5[%c0, %c0_0], %0 {strides = array<i32>} : memref<2x64xf32, #tpu.memory_space<vmem>>, vector<2x64xf32>,
    %cst_1 = arith.constant 0.000000e+00 : f32
    %2 = vector.broadcast %cst_1 : f32 to vector<2x64xf32>
    %c0_2 = arith.constant 0 : index
    %c0_3 = arith.constant 0 : index
    %3 = vector.load %arg6[%c0_2, %c0_3] : memref<2x64xf32, #tpu.memory_space<vmem>>, vector<2x64xf32>
    tpu.vector_store %arg6[%c0_2, %c0_3], %2 {strides = array<i32>} : memref<2x64xf32, #tpu.memory_space<vmem>>, vector<2x64xf32>,
    %c0_i32 = arith.constant 0 : i32
    %c1_i32 = arith.constant 1 : i32
    %4 = arith.muli %c0_i32, %c1_i32 : i32
    %c0_i32_4 = arith.constant 0 : i32
    %5 = arith.addi %c0_i32_4, %4 : i32
    %6 = arith.index_cast %5 : i32 to index
    %c0_5 = arith.constant 0 : index
    %c0_6 = arith.constant 0 : index
    %7 = vector.load %arg0[%6, %c0_5, %c0_6] : memref<8x2x256xf32, #tpu.memory_space<vmem>>, vector<1x2x256xf32>
    %8 = vector.shape_cast %7 : vector<1x2x256xf32> to vector<2x256xf32>
    %c0_7 = arith.constant 0 : index
    %c0_8 = arith.constant 0 : index
    %9 = vector.load %arg5[%c0_7, %c0_8] : memref<2x64xf32, #tpu.memory_space<vmem>>, vector<2x64xf32>
    %c0_9 = arith.constant 0 : index
    %c0_10 = arith.constant 0 : index
    %10 = vector.load %arg1[%c0_9, %c0_10] : memref<64x256xf32, #tpu.memory_space<vmem>>, vector<64x256xf32>
    %cst_11 = arith.constant dense<0.000000e+00> : vector<2x256xf32>
    %11 = tpu.matmul %9, %10, %cst_11 {dimension_numbers = #tpu.dot_dimension_numbers<[1], [0], [0], [1], [0, 0, 1, 1], [], []>} : vector<2x64xf32>, vector<64x256xf32>, vector<2x256xf32> -> vector<2x256xf32>
    %12 = arith.addf %8, %11 : vector<2x256xf32>
    %13 = vector.extract_strided_slice %12 {offsets = [0, 0], sizes = [2, 64], strides = [1, 1]} : vector<2x256xf32> to vector<2x64xf32>
    %14 = arith.negf %13 : vector<2x64xf32>
    %15 = math.exp %14 : vector<2x64xf32>
    %cst_12 = arith.constant 1.000000e+00 : f32
    %16 = vector.broadcast %cst_12 : f32 to vector<2x64xf32>
    %17 = arith.addf %16, %15 : vector<2x64xf32>
    %18 = arith.divf %16, %17 : vector<2x64xf32>
    %19 = vector.extract_strided_slice %12 {offsets = [0, 64], sizes = [2, 64], strides = [1, 1]} : vector<2x256xf32> to vector<2x64xf32>
    %20 = arith.negf %19 : vector<2x64xf32>
    %21 = math.exp %20 : vector<2x64xf32>
    %cst_13 = arith.constant 1.000000e+00 : f32
    %22 = vector.broadcast %cst_13 : f32 to vector<2x64xf32>
    %23 = arith.addf %22, %21 : vector<2x64xf32>
    %24 = arith.divf %22, %23 : vector<2x64xf32>
    %25 = vector.extract_strided_slice %12 {offsets = [0, 128], sizes = [2, 64], strides = [1, 1]} : vector<2x256xf32> to vector<2x64xf32>
    %26 = math.tanh %25 : vector<2x64xf32>
    %27 = vector.extract_strided_slice %12 {offsets = [0, 192], sizes = [2, 64], strides = [1, 1]} : vector<2x256xf32> to vector<2x64xf32>
    %28 = arith.negf %27 : vector<2x64xf32>
    %29 = math.exp %28 : vector<2x64xf32>
    %cst_14 = arith.constant 1.000000e+00 : f32
    %30 = vector.broadcast %cst_14 : f32 to vector<2x64xf32>
    %31 = arith.addf %30, %29 : vector<2x64xf32>
    %32 = arith.divf %30, %31 : vector<2x64xf32>
    %c0_15 = arith.constant 0 : index
    %c0_16 = arith.constant 0 : index
    %33 = vector.load %arg6[%c0_15, %c0_16] : memref<2x64xf32, #tpu.memory_space<vmem>>, vector<2x64xf32>
    %34 = arith.mulf %24, %33 : vector<2x64xf32>
    %35 = arith.mulf %18, %26 : vector<2x64xf32>
    %36 = arith.addf %34, %35 : vector<2x64xf32>
    %37 = math.tanh %36 : vector<2x64xf32>
    %38 = arith.mulf %32, %37 : vector<2x64xf32>
    %c0_17 = arith.constant 0 : index
    %c0_18 = arith.constant 0 : index
    %39 = vector.load %arg5[%c0_17, %c0_18] : memref<2x64xf32, #tpu.memory_space<vmem>>, vector<2x64xf32>
    tpu.vector_store %arg5[%c0_17, %c0_18], %38 {strides = array<i32>} : memref<2x64xf32, #tpu.memory_space<vmem>>, vector<2x64xf32>,
    %c0_19 = arith.constant 0 : index
    %c0_20 = arith.constant 0 : index
    %40 = vector.load %arg6[%c0_19, %c0_20] : memref<2x64xf32, #tpu.memory_space<vmem>>, vector<2x64xf32>
    tpu.vector_store %arg6[%c0_19, %c0_20], %36 {strides = array<i32>} : memref<2x64xf32, #tpu.memory_space<vmem>>, vector<2x64xf32>,
    %41 = vector.extract_strided_slice %38 {offsets = [0, 0], sizes = [2, 32], strides = [1, 1]} : vector<2x64xf32> to vector<2x32xf32>
    %42 = arith.index_cast %5 : i32 to index
    %c0_21 = arith.constant 0 : index
    %c0_22 = arith.constant 0 : index
    %43 = vector.load %arg2[%42, %c0_21, %c0_22] : memref<8x2x64xf32, #tpu.memory_space<vmem>>, vector<1x2x32xf32>
    %44 = vector.shape_cast %43 : vector<1x2x32xf32> to vector<2x32xf32>
    %45 = vector.shape_cast %41 : vector<2x32xf32> to vector<1x2x32xf32>
    tpu.vector_store %arg2[%42, %c0_21, %c0_22], %45 {strides = array<i32>} : memref<8x2x64xf32, #tpu.memory_space<vmem>>, vector<1x2x32xf32>,
    %46 = vector.extract_strided_slice %38 {offsets = [0, 32], sizes = [2, 32], strides = [1, 1]} : vector<2x64xf32> to vector<2x32xf32>
    %c7_i32 = arith.constant 7 : i32
    %47 = arith.subi %c7_i32, %5 : i32
    %48 = arith.index_cast %47 : i32 to index
    %c0_23 = arith.constant 0 : index
    %c32 = arith.constant 32 : index
    %49 = vector.load %arg2[%48, %c0_23, %c32] : memref<8x2x64xf32, #tpu.memory_space<vmem>>, vector<1x2x32xf32>
    %50 = vector.shape_cast %49 : vector<1x2x32xf32> to vector<2x32xf32>
    %51 = vector.shape_cast %46 : vector<2x32xf32> to vector<1x2x32xf32>
    tpu.vector_store %arg2[%48, %c0_23, %c32], %51 {strides = array<i32>} : memref<8x2x64xf32, #tpu.memory_space<vmem>>, vector<1x2x32xf32>,
    %c1_i32_24 = arith.constant 1 : i32
    %c1_i32_25 = arith.constant 1 : i32
    %52 = arith.muli %c1_i32_24, %c1_i32_25 : i32
    %c0_i32_26 = arith.constant 0 : i32
    %53 = arith.addi %c0_i32_26, %52 : i32
    %54 = arith.index_cast %53 : i32 to index
    %c0_27 = arith.constant 0 : index
    %c0_28 = arith.constant 0 : index
    %55 = vector.load %arg0[%54, %c0_27, %c0_28] : memref<8x2x256xf32, #tpu.memory_space<vmem>>, vector<1x2x256xf32>
    %56 = vector.shape_cast %55 : vector<1x2x256xf32> to vector<2x256xf32>
    %c0_29 = arith.constant 0 : index
    %c0_30 = arith.constant 0 : index
    %57 = vector.load %arg5[%c0_29, %c0_30] : memref<2x64xf32, #tpu.memory_space<vmem>>, vector<2x64xf32>
    %c0_31 = arith.constant 0 : index
    %c0_32 = arith.constant 0 : index
    %58 = vector.load %arg1[%c0_31, %c0_32] : memref<64x256xf32, #tpu.memory_space<vmem>>, vector<64x256xf32>
    %cst_33 = arith.constant dense<0.000000e+00> : vector<2x256xf32>
    %59 = tpu.matmul %57, %58, %cst_33 {dimension_numbers = #tpu.dot_dimension_numbers<[1], [0], [0], [1], [0, 0, 1, 1], [], []>} : vector<2x64xf32>, vector<64x256xf32>, vector<2x256xf32> -> vector<2x256xf32>
    %60 = arith.addf %56, %59 : vector<2x256xf32>
    %61 = vector.extract_strided_slice %60 {offsets = [0, 0], sizes = [2, 64], strides = [1, 1]} : vector<2x256xf32> to vector<2x64xf32>
    %62 = arith.negf %61 : vector<2x64xf32>
    %63 = math.exp %62 : vector<2x64xf32>
    %cst_34 = arith.constant 1.000000e+00 : f32
    %64 = vector.broadcast %cst_34 : f32 to vector<2x64xf32>
    %65 = arith.addf %64, %63 : vector<2x64xf32>
    %66 = arith.divf %64, %65 : vector<2x64xf32>
    %67 = vector.extract_strided_slice %60 {offsets = [0, 64], sizes = [2, 64], strides = [1, 1]} : vector<2x256xf32> to vector<2x64xf32>
    %68 = arith.negf %67 : vector<2x64xf32>
    %69 = math.exp %68 : vector<2x64xf32>
    %cst_35 = arith.constant 1.000000e+00 : f32
    %70 = vector.broadcast %cst_35 : f32 to vector<2x64xf32>
    %71 = arith.addf %70, %69 : vector<2x64xf32>
    %72 = arith.divf %70, %71 : vector<2x64xf32>
    %73 = vector.extract_strided_slice %60 {offsets = [0, 128], sizes = [2, 64], strides = [1, 1]} : vector<2x256xf32> to vector<2x64xf32>
    %74 = math.tanh %73 : vector<2x64xf32>
    %75 = vector.extract_strided_slice %60 {offsets = [0, 192], sizes = [2, 64], strides = [1, 1]} : vector<2x256xf32> to vector<2x64xf32>
    %76 = arith.negf %75 : vector<2x64xf32>
    %77 = math.exp %76 : vector<2x64xf32>
    %cst_36 = arith.constant 1.000000e+00 : f32
    %78 = vector.broadcast %cst_36 : f32 to vector<2x64xf32>
    %79 = arith.addf %78, %77 : vector<2x64xf32>
    %80 = arith.divf %78, %79 : vector<2x64xf32>
    %c0_37 = arith.constant 0 : index
    %c0_38 = arith.constant 0 : index
    %81 = vector.load %arg6[%c0_37, %c0_38] : memref<2x64xf32, #tpu.memory_space<vmem>>, vector<2x64xf32>
    %82 = arith.mulf %72, %81 : vector<2x64xf32>
    %83 = arith.mulf %66, %74 : vector<2x64xf32>
    %84 = arith.addf %82, %83 : vector<2x64xf32>
    %85 = math.tanh %84 : vector<2x64xf32>
    %86 = arith.mulf %80, %85 : vector<2x64xf32>
    %c0_39 = arith.constant 0 : index
    %c0_40 = arith.constant 0 : index
    %87 = vector.load %arg5[%c0_39, %c0_40] : memref<2x64xf32, #tpu.memory_space<vmem>>, vector<2x64xf32>
    tpu.vector_store %arg5[%c0_39, %c0_40], %86 {strides = array<i32>} : memref<2x64xf32, #tpu.memory_space<vmem>>, vector<2x64xf32>,
    %c0_41 = arith.constant 0 : index
    %c0_42 = arith.constant 0 : index
    %88 = vector.load %arg6[%c0_41, %c0_42] : memref<2x64xf32, #tpu.memory_space<vmem>>, vector<2x64xf32>
    tpu.vector_store %arg6[%c0_41, %c0_42], %84 {strides = array<i32>} : memref<2x64xf32, #tpu.memory_space<vmem>>, vector<2x64xf32>,
    %89 = vector.extract_strided_slice %86 {offsets = [0, 0], sizes = [2, 32], strides = [1, 1]} : vector<2x64xf32> to vector<2x32xf32>
    %90 = arith.index_cast %53 : i32 to index
    %c0_43 = arith.constant 0 : index
    %c0_44 = arith.constant 0 : index
    %91 = vector.load %arg2[%90, %c0_43, %c0_44] : memref<8x2x64xf32, #tpu.memory_space<vmem>>, vector<1x2x32xf32>
    %92 = vector.shape_cast %91 : vector<1x2x32xf32> to vector<2x32xf32>
    %93 = vector.shape_cast %89 : vector<2x32xf32> to vector<1x2x32xf32>
    tpu.vector_store %arg2[%90, %c0_43, %c0_44], %93 {strides = array<i32>} : memref<8x2x64xf32, #tpu.memory_space<vmem>>, vector<1x2x32xf32>,
    %94 = vector.extract_strided_slice %86 {offsets = [0, 32], sizes = [2, 32], strides = [1, 1]} : vector<2x64xf32> to vector<2x32xf32>
    %c7_i32_45 = arith.constant 7 : i32
    %95 = arith.subi %c7_i32_45, %53 : i32
    %96 = arith.index_cast %95 : i32 to index
    %c0_46 = arith.constant 0 : index
    %c32_47 = arith.constant 32 : index
    %97 = vector.load %arg2[%96, %c0_46, %c32_47] : memref<8x2x64xf32, #tpu.memory_space<vmem>>, vector<1x2x32xf32>
    %98 = vector.shape_cast %97 : vector<1x2x32xf32> to vector<2x32xf32>
    %99 = vector.shape_cast %94 : vector<2x32xf32> to vector<1x2x32xf32>
    tpu.vector_store %arg2[%96, %c0_46, %c32_47], %99 {strides = array<i32>} : memref<8x2x64xf32, #tpu.memory_space<vmem>>, vector<1x2x32xf32>,
    %c2_i32 = arith.constant 2 : i32
    %c1_i32_48 = arith.constant 1 : i32
    %100 = arith.muli %c2_i32, %c1_i32_48 : i32
    %c0_i32_49 = arith.constant 0 : i32
    %101 = arith.addi %c0_i32_49, %100 : i32
    %102 = arith.index_cast %101 : i32 to index
    %c0_50 = arith.constant 0 : index
    %c0_51 = arith.constant 0 : index
    %103 = vector.load %arg0[%102, %c0_50, %c0_51] : memref<8x2x256xf32, #tpu.memory_space<vmem>>, vector<1x2x256xf32>
    %104 = vector.shape_cast %103 : vector<1x2x256xf32> to vector<2x256xf32>
    %c0_52 = arith.constant 0 : index
    %c0_53 = arith.constant 0 : index
    %105 = vector.load %arg5[%c0_52, %c0_53] : memref<2x64xf32, #tpu.memory_space<vmem>>, vector<2x64xf32>
    %c0_54 = arith.constant 0 : index
    %c0_55 = arith.constant 0 : index
    %106 = vector.load %arg1[%c0_54, %c0_55] : memref<64x256xf32, #tpu.memory_space<vmem>>, vector<64x256xf32>
    %cst_56 = arith.constant dense<0.000000e+00> : vector<2x256xf32>
    %107 = tpu.matmul %105, %106, %cst_56 {dimension_numbers = #tpu.dot_dimension_numbers<[1], [0], [0], [1], [0, 0, 1, 1], [], []>} : vector<2x64xf32>, vector<64x256xf32>, vector<2x256xf32> -> vector<2x256xf32>
    %108 = arith.addf %104, %107 : vector<2x256xf32>
    %109 = vector.extract_strided_slice %108 {offsets = [0, 0], sizes = [2, 64], strides = [1, 1]} : vector<2x256xf32> to vector<2x64xf32>
    %110 = arith.negf %109 : vector<2x64xf32>
    %111 = math.exp %110 : vector<2x64xf32>
    %cst_57 = arith.constant 1.000000e+00 : f32
    %112 = vector.broadcast %cst_57 : f32 to vector<2x64xf32>
    %113 = arith.addf %112, %111 : vector<2x64xf32>
    %114 = arith.divf %112, %113 : vector<2x64xf32>
    %115 = vector.extract_strided_slice %108 {offsets = [0, 64], sizes = [2, 64], strides = [1, 1]} : vector<2x256xf32> to vector<2x64xf32>
    %116 = arith.negf %115 : vector<2x64xf32>
    %117 = math.exp %116 : vector<2x64xf32>
    %cst_58 = arith.constant 1.000000e+00 : f32
    %118 = vector.broadcast %cst_58 : f32 to vector<2x64xf32>
    %119 = arith.addf %118, %117 : vector<2x64xf32>
    %120 = arith.divf %118, %119 : vector<2x64xf32>
    %121 = vector.extract_strided_slice %108 {offsets = [0, 128], sizes = [2, 64], strides = [1, 1]} : vector<2x256xf32> to vector<2x64xf32>
    %122 = math.tanh %121 : vector<2x64xf32>
    %123 = vector.extract_strided_slice %108 {offsets = [0, 192], sizes = [2, 64], strides = [1, 1]} : vector<2x256xf32> to vector<2x64xf32>
    %124 = arith.negf %123 : vector<2x64xf32>
    %125 = math.exp %124 : vector<2x64xf32>
    %cst_59 = arith.constant 1.000000e+00 : f32
    %126 = vector.broadcast %cst_59 : f32 to vector<2x64xf32>
    %127 = arith.addf %126, %125 : vector<2x64xf32>
    %128 = arith.divf %126, %127 : vector<2x64xf32>
    %c0_60 = arith.constant 0 : index
    %c0_61 = arith.constant 0 : index
    %129 = vector.load %arg6[%c0_60, %c0_61] : memref<2x64xf32, #tpu.memory_space<vmem>>, vector<2x64xf32>
    %130 = arith.mulf %120, %129 : vector<2x64xf32>
    %131 = arith.mulf %114, %122 : vector<2x64xf32>
    %132 = arith.addf %130, %131 : vector<2x64xf32>
    %133 = math.tanh %132 : vector<2x64xf32>
    %134 = arith.mulf %128, %133 : vector<2x64xf32>
    %c0_62 = arith.constant 0 : index
    %c0_63 = arith.constant 0 : index
    %135 = vector.load %arg5[%c0_62, %c0_63] : memref<2x64xf32, #tpu.memory_space<vmem>>, vector<2x64xf32>
    tpu.vector_store %arg5[%c0_62, %c0_63], %134 {strides = array<i32>} : memref<2x64xf32, #tpu.memory_space<vmem>>, vector<2x64xf32>,
    %c0_64 = arith.constant 0 : index
    %c0_65 = arith.constant 0 : index
    %136 = vector.load %arg6[%c0_64, %c0_65] : memref<2x64xf32, #tpu.memory_space<vmem>>, vector<2x64xf32>
    tpu.vector_store %arg6[%c0_64, %c0_65], %132 {strides = array<i32>} : memref<2x64xf32, #tpu.memory_space<vmem>>, vector<2x64xf32>,
    %137 = vector.extract_strided_slice %134 {offsets = [0, 0], sizes = [2, 32], strides = [1, 1]} : vector<2x64xf32> to vector<2x32xf32>
    %138 = arith.index_cast %101 : i32 to index
    %c0_66 = arith.constant 0 : index
    %c0_67 = arith.constant 0 : index
    %139 = vector.load %arg2[%138, %c0_66, %c0_67] : memref<8x2x64xf32, #tpu.memory_space<vmem>>, vector<1x2x32xf32>
    %140 = vector.shape_cast %139 : vector<1x2x32xf32> to vector<2x32xf32>
    %141 = vector.shape_cast %137 : vector<2x32xf32> to vector<1x2x32xf32>
    tpu.vector_store %arg2[%138, %c0_66, %c0_67], %141 {strides = array<i32>} : memref<8x2x64xf32, #tpu.memory_space<vmem>>, vector<1x2x32xf32>,
    %142 = vector.extract_strided_slice %134 {offsets = [0, 32], sizes = [2, 32], strides = [1, 1]} : vector<2x64xf32> to vector<2x32xf32>
    %c7_i32_68 = arith.constant 7 : i32
    %143 = arith.subi %c7_i32_68, %101 : i32
    %144 = arith.index_cast %143 : i32 to index
    %c0_69 = arith.constant 0 : index
    %c32_70 = arith.constant 32 : index
    %145 = vector.load %arg2[%144, %c0_69, %c32_70] : memref<8x2x64xf32, #tpu.memory_space<vmem>>, vector<1x2x32xf32>
    %146 = vector.shape_cast %145 : vector<1x2x32xf32> to vector<2x32xf32>
    %147 = vector.shape_cast %142 : vector<2x32xf32> to vector<1x2x32xf32>
    tpu.vector_store %arg2[%144, %c0_69, %c32_70], %147 {strides = array<i32>} : memref<8x2x64xf32, #tpu.memory_space<vmem>>, vector<1x2x32xf32>,
    %c3_i32 = arith.constant 3 : i32
    %c1_i32_71 = arith.constant 1 : i32
    %148 = arith.muli %c3_i32, %c1_i32_71 : i32
    %c0_i32_72 = arith.constant 0 : i32
    %149 = arith.addi %c0_i32_72, %148 : i32
    %150 = arith.index_cast %149 : i32 to index
    %c0_73 = arith.constant 0 : index
    %c0_74 = arith.constant 0 : index
    %151 = vector.load %arg0[%150, %c0_73, %c0_74] : memref<8x2x256xf32, #tpu.memory_space<vmem>>, vector<1x2x256xf32>
    %152 = vector.shape_cast %151 : vector<1x2x256xf32> to vector<2x256xf32>
    %c0_75 = arith.constant 0 : index
    %c0_76 = arith.constant 0 : index
    %153 = vector.load %arg5[%c0_75, %c0_76] : memref<2x64xf32, #tpu.memory_space<vmem>>, vector<2x64xf32>
    %c0_77 = arith.constant 0 : index
    %c0_78 = arith.constant 0 : index
    %154 = vector.load %arg1[%c0_77, %c0_78] : memref<64x256xf32, #tpu.memory_space<vmem>>, vector<64x256xf32>
    %cst_79 = arith.constant dense<0.000000e+00> : vector<2x256xf32>
    %155 = tpu.matmul %153, %154, %cst_79 {dimension_numbers = #tpu.dot_dimension_numbers<[1], [0], [0], [1], [0, 0, 1, 1], [], []>} : vector<2x64xf32>, vector<64x256xf32>, vector<2x256xf32> -> vector<2x256xf32>
    %156 = arith.addf %152, %155 : vector<2x256xf32>
    %157 = vector.extract_strided_slice %156 {offsets = [0, 0], sizes = [2, 64], strides = [1, 1]} : vector<2x256xf32> to vector<2x64xf32>
    %158 = arith.negf %157 : vector<2x64xf32>
    %159 = math.exp %158 : vector<2x64xf32>
    %cst_80 = arith.constant 1.000000e+00 : f32
    %160 = vector.broadcast %cst_80 : f32 to vector<2x64xf32>
    %161 = arith.addf %160, %159 : vector<2x64xf32>
    %162 = arith.divf %160, %161 : vector<2x64xf32>
    %163 = vector.extract_strided_slice %156 {offsets = [0, 64], sizes = [2, 64], strides = [1, 1]} : vector<2x256xf32> to vector<2x64xf32>
    %164 = arith.negf %163 : vector<2x64xf32>
    %165 = math.exp %164 : vector<2x64xf32>
    %cst_81 = arith.constant 1.000000e+00 : f32
    %166 = vector.broadcast %cst_81 : f32 to vector<2x64xf32>
    %167 = arith.addf %166, %165 : vector<2x64xf32>
    %168 = arith.divf %166, %167 : vector<2x64xf32>
    %169 = vector.extract_strided_slice %156 {offsets = [0, 128], sizes = [2, 64], strides = [1, 1]} : vector<2x256xf32> to vector<2x64xf32>
    %170 = math.tanh %169 : vector<2x64xf32>
    %171 = vector.extract_strided_slice %156 {offsets = [0, 192], sizes = [2, 64], strides = [1, 1]} : vector<2x256xf32> to vector<2x64xf32>
    %172 = arith.negf %171 : vector<2x64xf32>
    %173 = math.exp %172 : vector<2x64xf32>
    %cst_82 = arith.constant 1.000000e+00 : f32
    %174 = vector.broadcast %cst_82 : f32 to vector<2x64xf32>
    %175 = arith.addf %174, %173 : vector<2x64xf32>
    %176 = arith.divf %174, %175 : vector<2x64xf32>
    %c0_83 = arith.constant 0 : index
    %c0_84 = arith.constant 0 : index
    %177 = vector.load %arg6[%c0_83, %c0_84] : memref<2x64xf32, #tpu.memory_space<vmem>>, vector<2x64xf32>
    %178 = arith.mulf %168, %177 : vector<2x64xf32>
    %179 = arith.mulf %162, %170 : vector<2x64xf32>
    %180 = arith.addf %178, %179 : vector<2x64xf32>
    %181 = math.tanh %180 : vector<2x64xf32>
    %182 = arith.mulf %176, %181 : vector<2x64xf32>
    %c0_85 = arith.constant 0 : index
    %c0_86 = arith.constant 0 : index
    %183 = vector.load %arg5[%c0_85, %c0_86] : memref<2x64xf32, #tpu.memory_space<vmem>>, vector<2x64xf32>
    tpu.vector_store %arg5[%c0_85, %c0_86], %182 {strides = array<i32>} : memref<2x64xf32, #tpu.memory_space<vmem>>, vector<2x64xf32>,
    %c0_87 = arith.constant 0 : index
    %c0_88 = arith.constant 0 : index
    %184 = vector.load %arg6[%c0_87, %c0_88] : memref<2x64xf32, #tpu.memory_space<vmem>>, vector<2x64xf32>
    tpu.vector_store %arg6[%c0_87, %c0_88], %180 {strides = array<i32>} : memref<2x64xf32, #tpu.memory_space<vmem>>, vector<2x64xf32>,
    %185 = vector.extract_strided_slice %182 {offsets = [0, 0], sizes = [2, 32], strides = [1, 1]} : vector<2x64xf32> to vector<2x32xf32>
    %186 = arith.index_cast %149 : i32 to index
    %c0_89 = arith.constant 0 : index
    %c0_90 = arith.constant 0 : index
    %187 = vector.load %arg2[%186, %c0_89, %c0_90] : memref<8x2x64xf32, #tpu.memory_space<vmem>>, vector<1x2x32xf32>
    %188 = vector.shape_cast %187 : vector<1x2x32xf32> to vector<2x32xf32>
    %189 = vector.shape_cast %185 : vector<2x32xf32> to vector<1x2x32xf32>
    tpu.vector_store %arg2[%186, %c0_89, %c0_90], %189 {strides = array<i32>} : memref<8x2x64xf32, #tpu.memory_space<vmem>>, vector<1x2x32xf32>,
    %190 = vector.extract_strided_slice %182 {offsets = [0, 32], sizes = [2, 32], strides = [1, 1]} : vector<2x64xf32> to vector<2x32xf32>
    %c7_i32_91 = arith.constant 7 : i32
    %191 = arith.subi %c7_i32_91, %149 : i32
    %192 = arith.index_cast %191 : i32 to index
    %c0_92 = arith.constant 0 : index
    %c32_93 = arith.constant 32 : index
    %193 = vector.load %arg2[%192, %c0_92, %c32_93] : memref<8x2x64xf32, #tpu.memory_space<vmem>>, vector<1x2x32xf32>
    %194 = vector.shape_cast %193 : vector<1x2x32xf32> to vector<2x32xf32>
    %195 = vector.shape_cast %190 : vector<2x32xf32> to vector<1x2x32xf32>
    tpu.vector_store %arg2[%192, %c0_92, %c32_93], %195 {strides = array<i32>} : memref<8x2x64xf32, #tpu.memory_space<vmem>>, vector<1x2x32xf32>,
    %c4_i32 = arith.constant 4 : i32
    %c1_i32_94 = arith.constant 1 : i32
    %196 = arith.muli %c4_i32, %c1_i32_94 : i32
    %c0_i32_95 = arith.constant 0 : i32
    %197 = arith.addi %c0_i32_95, %196 : i32
    %198 = arith.index_cast %197 : i32 to index
    %c0_96 = arith.constant 0 : index
    %c0_97 = arith.constant 0 : index
    %199 = vector.load %arg0[%198, %c0_96, %c0_97] : memref<8x2x256xf32, #tpu.memory_space<vmem>>, vector<1x2x256xf32>
    %200 = vector.shape_cast %199 : vector<1x2x256xf32> to vector<2x256xf32>
    %c0_98 = arith.constant 0 : index
    %c0_99 = arith.constant 0 : index
    %201 = vector.load %arg5[%c0_98, %c0_99] : memref<2x64xf32, #tpu.memory_space<vmem>>, vector<2x64xf32>
    %c0_100 = arith.constant 0 : index
    %c0_101 = arith.constant 0 : index
    %202 = vector.load %arg1[%c0_100, %c0_101] : memref<64x256xf32, #tpu.memory_space<vmem>>, vector<64x256xf32>
    %cst_102 = arith.constant dense<0.000000e+00> : vector<2x256xf32>
    %203 = tpu.matmul %201, %202, %cst_102 {dimension_numbers = #tpu.dot_dimension_numbers<[1], [0], [0], [1], [0, 0, 1, 1], [], []>} : vector<2x64xf32>, vector<64x256xf32>, vector<2x256xf32> -> vector<2x256xf32>
    %204 = arith.addf %200, %203 : vector<2x256xf32>
    %205 = vector.extract_strided_slice %204 {offsets = [0, 0], sizes = [2, 64], strides = [1, 1]} : vector<2x256xf32> to vector<2x64xf32>
    %206 = arith.negf %205 : vector<2x64xf32>
    %207 = math.exp %206 : vector<2x64xf32>
    %cst_103 = arith.constant 1.000000e+00 : f32
    %208 = vector.broadcast %cst_103 : f32 to vector<2x64xf32>
    %209 = arith.addf %208, %207 : vector<2x64xf32>
    %210 = arith.divf %208, %209 : vector<2x64xf32>
    %211 = vector.extract_strided_slice %204 {offsets = [0, 64], sizes = [2, 64], strides = [1, 1]} : vector<2x256xf32> to vector<2x64xf32>
    %212 = arith.negf %211 : vector<2x64xf32>
    %213 = math.exp %212 : vector<2x64xf32>
    %cst_104 = arith.constant 1.000000e+00 : f32
    %214 = vector.broadcast %cst_104 : f32 to vector<2x64xf32>
    %215 = arith.addf %214, %213 : vector<2x64xf32>
    %216 = arith.divf %214, %215 : vector<2x64xf32>
    %217 = vector.extract_strided_slice %204 {offsets = [0, 128], sizes = [2, 64], strides = [1, 1]} : vector<2x256xf32> to vector<2x64xf32>
    %218 = math.tanh %217 : vector<2x64xf32>
    %219 = vector.extract_strided_slice %204 {offsets = [0, 192], sizes = [2, 64], strides = [1, 1]} : vector<2x256xf32> to vector<2x64xf32>
    %220 = arith.negf %219 : vector<2x64xf32>
    %221 = math.exp %220 : vector<2x64xf32>
    %cst_105 = arith.constant 1.000000e+00 : f32
    %222 = vector.broadcast %cst_105 : f32 to vector<2x64xf32>
    %223 = arith.addf %222, %221 : vector<2x64xf32>
    %224 = arith.divf %222, %223 : vector<2x64xf32>
    %c0_106 = arith.constant 0 : index
    %c0_107 = arith.constant 0 : index
    %225 = vector.load %arg6[%c0_106, %c0_107] : memref<2x64xf32, #tpu.memory_space<vmem>>, vector<2x64xf32>
    %226 = arith.mulf %216, %225 : vector<2x64xf32>
    %227 = arith.mulf %210, %218 : vector<2x64xf32>
    %228 = arith.addf %226, %227 : vector<2x64xf32>
    %229 = math.tanh %228 : vector<2x64xf32>
    %230 = arith.mulf %224, %229 : vector<2x64xf32>
    %c0_108 = arith.constant 0 : index
    %c0_109 = arith.constant 0 : index
    %231 = vector.load %arg5[%c0_108, %c0_109] : memref<2x64xf32, #tpu.memory_space<vmem>>, vector<2x64xf32>
    tpu.vector_store %arg5[%c0_108, %c0_109], %230 {strides = array<i32>} : memref<2x64xf32, #tpu.memory_space<vmem>>, vector<2x64xf32>,
    %c0_110 = arith.constant 0 : index
    %c0_111 = arith.constant 0 : index
    %232 = vector.load %arg6[%c0_110, %c0_111] : memref<2x64xf32, #tpu.memory_space<vmem>>, vector<2x64xf32>
    tpu.vector_store %arg6[%c0_110, %c0_111], %228 {strides = array<i32>} : memref<2x64xf32, #tpu.memory_space<vmem>>, vector<2x64xf32>,
    %233 = vector.extract_strided_slice %230 {offsets = [0, 0], sizes = [2, 32], strides = [1, 1]} : vector<2x64xf32> to vector<2x32xf32>
    %234 = arith.index_cast %197 : i32 to index
    %c0_112 = arith.constant 0 : index
    %c0_113 = arith.constant 0 : index
    %235 = vector.load %arg2[%234, %c0_112, %c0_113] : memref<8x2x64xf32, #tpu.memory_space<vmem>>, vector<1x2x32xf32>
    %236 = vector.shape_cast %235 : vector<1x2x32xf32> to vector<2x32xf32>
    %237 = vector.shape_cast %233 : vector<2x32xf32> to vector<1x2x32xf32>
    tpu.vector_store %arg2[%234, %c0_112, %c0_113], %237 {strides = array<i32>} : memref<8x2x64xf32, #tpu.memory_space<vmem>>, vector<1x2x32xf32>,
    %238 = vector.extract_strided_slice %230 {offsets = [0, 32], sizes = [2, 32], strides = [1, 1]} : vector<2x64xf32> to vector<2x32xf32>
    %c7_i32_114 = arith.constant 7 : i32
    %239 = arith.subi %c7_i32_114, %197 : i32
    %240 = arith.index_cast %239 : i32 to index
    %c0_115 = arith.constant 0 : index
    %c32_116 = arith.constant 32 : index
    %241 = vector.load %arg2[%240, %c0_115, %c32_116] : memref<8x2x64xf32, #tpu.memory_space<vmem>>, vector<1x2x32xf32>
    %242 = vector.shape_cast %241 : vector<1x2x32xf32> to vector<2x32xf32>
    %243 = vector.shape_cast %238 : vector<2x32xf32> to vector<1x2x32xf32>
    tpu.vector_store %arg2[%240, %c0_115, %c32_116], %243 {strides = array<i32>} : memref<8x2x64xf32, #tpu.memory_space<vmem>>, vector<1x2x32xf32>,
    %c5_i32 = arith.constant 5 : i32
    %c1_i32_117 = arith.constant 1 : i32
    %244 = arith.muli %c5_i32, %c1_i32_117 : i32
    %c0_i32_118 = arith.constant 0 : i32
    %245 = arith.addi %c0_i32_118, %244 : i32
    %246 = arith.index_cast %245 : i32 to index
    %c0_119 = arith.constant 0 : index
    %c0_120 = arith.constant 0 : index
    %247 = vector.load %arg0[%246, %c0_119, %c0_120] : memref<8x2x256xf32, #tpu.memory_space<vmem>>, vector<1x2x256xf32>
    %248 = vector.shape_cast %247 : vector<1x2x256xf32> to vector<2x256xf32>
    %c0_121 = arith.constant 0 : index
    %c0_122 = arith.constant 0 : index
    %249 = vector.load %arg5[%c0_121, %c0_122] : memref<2x64xf32, #tpu.memory_space<vmem>>, vector<2x64xf32>
    %c0_123 = arith.constant 0 : index
    %c0_124 = arith.constant 0 : index
    %250 = vector.load %arg1[%c0_123, %c0_124] : memref<64x256xf32, #tpu.memory_space<vmem>>, vector<64x256xf32>
    %cst_125 = arith.constant dense<0.000000e+00> : vector<2x256xf32>
    %251 = tpu.matmul %249, %250, %cst_125 {dimension_numbers = #tpu.dot_dimension_numbers<[1], [0], [0], [1], [0, 0, 1, 1], [], []>} : vector<2x64xf32>, vector<64x256xf32>, vector<2x256xf32> -> vector<2x256xf32>
    %252 = arith.addf %248, %251 : vector<2x256xf32>
    %253 = vector.extract_strided_slice %252 {offsets = [0, 0], sizes = [2, 64], strides = [1, 1]} : vector<2x256xf32> to vector<2x64xf32>
    %254 = arith.negf %253 : vector<2x64xf32>
    %255 = math.exp %254 : vector<2x64xf32>
    %cst_126 = arith.constant 1.000000e+00 : f32
    %256 = vector.broadcast %cst_126 : f32 to vector<2x64xf32>
    %257 = arith.addf %256, %255 : vector<2x64xf32>
    %258 = arith.divf %256, %257 : vector<2x64xf32>
    %259 = vector.extract_strided_slice %252 {offsets = [0, 64], sizes = [2, 64], strides = [1, 1]} : vector<2x256xf32> to vector<2x64xf32>
    %260 = arith.negf %259 : vector<2x64xf32>
    %261 = math.exp %260 : vector<2x64xf32>
    %cst_127 = arith.constant 1.000000e+00 : f32
    %262 = vector.broadcast %cst_127 : f32 to vector<2x64xf32>
    %263 = arith.addf %262, %261 : vector<2x64xf32>
    %264 = arith.divf %262, %263 : vector<2x64xf32>
    %265 = vector.extract_strided_slice %252 {offsets = [0, 128], sizes = [2, 64], strides = [1, 1]} : vector<2x256xf32> to vector<2x64xf32>
    %266 = math.tanh %265 : vector<2x64xf32>
    %267 = vector.extract_strided_slice %252 {offsets = [0, 192], sizes = [2, 64], strides = [1, 1]} : vector<2x256xf32> to vector<2x64xf32>
    %268 = arith.negf %267 : vector<2x64xf32>
    %269 = math.exp %268 : vector<2x64xf32>
    %cst_128 = arith.constant 1.000000e+00 : f32
    %270 = vector.broadcast %cst_128 : f32 to vector<2x64xf32>
    %271 = arith.addf %270, %269 : vector<2x64xf32>
    %272 = arith.divf %270, %271 : vector<2x64xf32>
    %c0_129 = arith.constant 0 : index
    %c0_130 = arith.constant 0 : index
    %273 = vector.load %arg6[%c0_129, %c0_130] : memref<2x64xf32, #tpu.memory_space<vmem>>, vector<2x64xf32>
    %274 = arith.mulf %264, %273 : vector<2x64xf32>
    %275 = arith.mulf %258, %266 : vector<2x64xf32>
    %276 = arith.addf %274, %275 : vector<2x64xf32>
    %277 = math.tanh %276 : vector<2x64xf32>
    %278 = arith.mulf %272, %277 : vector<2x64xf32>
    %c0_131 = arith.constant 0 : index
    %c0_132 = arith.constant 0 : index
    %279 = vector.load %arg5[%c0_131, %c0_132] : memref<2x64xf32, #tpu.memory_space<vmem>>, vector<2x64xf32>
    tpu.vector_store %arg5[%c0_131, %c0_132], %278 {strides = array<i32>} : memref<2x64xf32, #tpu.memory_space<vmem>>, vector<2x64xf32>,
    %c0_133 = arith.constant 0 : index
    %c0_134 = arith.constant 0 : index
    %280 = vector.load %arg6[%c0_133, %c0_134] : memref<2x64xf32, #tpu.memory_space<vmem>>, vector<2x64xf32>
    tpu.vector_store %arg6[%c0_133, %c0_134], %276 {strides = array<i32>} : memref<2x64xf32, #tpu.memory_space<vmem>>, vector<2x64xf32>,
    %281 = vector.extract_strided_slice %278 {offsets = [0, 0], sizes = [2, 32], strides = [1, 1]} : vector<2x64xf32> to vector<2x32xf32>
    %282 = arith.index_cast %245 : i32 to index
    %c0_135 = arith.constant 0 : index
    %c0_136 = arith.constant 0 : index
    %283 = vector.load %arg2[%282, %c0_135, %c0_136] : memref<8x2x64xf32, #tpu.memory_space<vmem>>, vector<1x2x32xf32>
    %284 = vector.shape_cast %283 : vector<1x2x32xf32> to vector<2x32xf32>
    %285 = vector.shape_cast %281 : vector<2x32xf32> to vector<1x2x32xf32>
    tpu.vector_store %arg2[%282, %c0_135, %c0_136], %285 {strides = array<i32>} : memref<8x2x64xf32, #tpu.memory_space<vmem>>, vector<1x2x32xf32>,
    %286 = vector.extract_strided_slice %278 {offsets = [0, 32], sizes = [2, 32], strides = [1, 1]} : vector<2x64xf32> to vector<2x32xf32>
    %c7_i32_137 = arith.constant 7 : i32
    %287 = arith.subi %c7_i32_137, %245 : i32
    %288 = arith.index_cast %287 : i32 to index
    %c0_138 = arith.constant 0 : index
    %c32_139 = arith.constant 32 : index
    %289 = vector.load %arg2[%288, %c0_138, %c32_139] : memref<8x2x64xf32, #tpu.memory_space<vmem>>, vector<1x2x32xf32>
    %290 = vector.shape_cast %289 : vector<1x2x32xf32> to vector<2x32xf32>
    %291 = vector.shape_cast %286 : vector<2x32xf32> to vector<1x2x32xf32>
    tpu.vector_store %arg2[%288, %c0_138, %c32_139], %291 {strides = array<i32>} : memref<8x2x64xf32, #tpu.memory_space<vmem>>, vector<1x2x32xf32>,
    %c6_i32 = arith.constant 6 : i32
    %c1_i32_140 = arith.constant 1 : i32
    %292 = arith.muli %c6_i32, %c1_i32_140 : i32
    %c0_i32_141 = arith.constant 0 : i32
    %293 = arith.addi %c0_i32_141, %292 : i32
    %294 = arith.index_cast %293 : i32 to index
    %c0_142 = arith.constant 0 : index
    %c0_143 = arith.constant 0 : index
    %295 = vector.load %arg0[%294, %c0_142, %c0_143] : memref<8x2x256xf32, #tpu.memory_space<vmem>>, vector<1x2x256xf32>
    %296 = vector.shape_cast %295 : vector<1x2x256xf32> to vector<2x256xf32>
    %c0_144 = arith.constant 0 : index
    %c0_145 = arith.constant 0 : index
    %297 = vector.load %arg5[%c0_144, %c0_145] : memref<2x64xf32, #tpu.memory_space<vmem>>, vector<2x64xf32>
    %c0_146 = arith.constant 0 : index
    %c0_147 = arith.constant 0 : index
    %298 = vector.load %arg1[%c0_146, %c0_147] : memref<64x256xf32, #tpu.memory_space<vmem>>, vector<64x256xf32>
    %cst_148 = arith.constant dense<0.000000e+00> : vector<2x256xf32>
    %299 = tpu.matmul %297, %298, %cst_148 {dimension_numbers = #tpu.dot_dimension_numbers<[1], [0], [0], [1], [0, 0, 1, 1], [], []>} : vector<2x64xf32>, vector<64x256xf32>, vector<2x256xf32> -> vector<2x256xf32>
    %300 = arith.addf %296, %299 : vector<2x256xf32>
    %301 = vector.extract_strided_slice %300 {offsets = [0, 0], sizes = [2, 64], strides = [1, 1]} : vector<2x256xf32> to vector<2x64xf32>
    %302 = arith.negf %301 : vector<2x64xf32>
    %303 = math.exp %302 : vector<2x64xf32>
    %cst_149 = arith.constant 1.000000e+00 : f32
    %304 = vector.broadcast %cst_149 : f32 to vector<2x64xf32>
    %305 = arith.addf %304, %303 : vector<2x64xf32>
    %306 = arith.divf %304, %305 : vector<2x64xf32>
    %307 = vector.extract_strided_slice %300 {offsets = [0, 64], sizes = [2, 64], strides = [1, 1]} : vector<2x256xf32> to vector<2x64xf32>
    %308 = arith.negf %307 : vector<2x64xf32>
    %309 = math.exp %308 : vector<2x64xf32>
    %cst_150 = arith.constant 1.000000e+00 : f32
    %310 = vector.broadcast %cst_150 : f32 to vector<2x64xf32>
    %311 = arith.addf %310, %309 : vector<2x64xf32>
    %312 = arith.divf %310, %311 : vector<2x64xf32>
    %313 = vector.extract_strided_slice %300 {offsets = [0, 128], sizes = [2, 64], strides = [1, 1]} : vector<2x256xf32> to vector<2x64xf32>
    %314 = math.tanh %313 : vector<2x64xf32>
    %315 = vector.extract_strided_slice %300 {offsets = [0, 192], sizes = [2, 64], strides = [1, 1]} : vector<2x256xf32> to vector<2x64xf32>
    %316 = arith.negf %315 : vector<2x64xf32>
    %317 = math.exp %316 : vector<2x64xf32>
    %cst_151 = arith.constant 1.000000e+00 : f32
    %318 = vector.broadcast %cst_151 : f32 to vector<2x64xf32>
    %319 = arith.addf %318, %317 : vector<2x64xf32>
    %320 = arith.divf %318, %319 : vector<2x64xf32>
    %c0_152 = arith.constant 0 : index
    %c0_153 = arith.constant 0 : index
    %321 = vector.load %arg6[%c0_152, %c0_153] : memref<2x64xf32, #tpu.memory_space<vmem>>, vector<2x64xf32>
    %322 = arith.mulf %312, %321 : vector<2x64xf32>
    %323 = arith.mulf %306, %314 : vector<2x64xf32>
    %324 = arith.addf %322, %323 : vector<2x64xf32>
    %325 = math.tanh %324 : vector<2x64xf32>
    %326 = arith.mulf %320, %325 : vector<2x64xf32>
    %c0_154 = arith.constant 0 : index
    %c0_155 = arith.constant 0 : index
    %327 = vector.load %arg5[%c0_154, %c0_155] : memref<2x64xf32, #tpu.memory_space<vmem>>, vector<2x64xf32>
    tpu.vector_store %arg5[%c0_154, %c0_155], %326 {strides = array<i32>} : memref<2x64xf32, #tpu.memory_space<vmem>>, vector<2x64xf32>,
    %c0_156 = arith.constant 0 : index
    %c0_157 = arith.constant 0 : index
    %328 = vector.load %arg6[%c0_156, %c0_157] : memref<2x64xf32, #tpu.memory_space<vmem>>, vector<2x64xf32>
    tpu.vector_store %arg6[%c0_156, %c0_157], %324 {strides = array<i32>} : memref<2x64xf32, #tpu.memory_space<vmem>>, vector<2x64xf32>,
    %329 = vector.extract_strided_slice %326 {offsets = [0, 0], sizes = [2, 32], strides = [1, 1]} : vector<2x64xf32> to vector<2x32xf32>
    %330 = arith.index_cast %293 : i32 to index
    %c0_158 = arith.constant 0 : index
    %c0_159 = arith.constant 0 : index
    %331 = vector.load %arg2[%330, %c0_158, %c0_159] : memref<8x2x64xf32, #tpu.memory_space<vmem>>, vector<1x2x32xf32>
    %332 = vector.shape_cast %331 : vector<1x2x32xf32> to vector<2x32xf32>
    %333 = vector.shape_cast %329 : vector<2x32xf32> to vector<1x2x32xf32>
    tpu.vector_store %arg2[%330, %c0_158, %c0_159], %333 {strides = array<i32>} : memref<8x2x64xf32, #tpu.memory_space<vmem>>, vector<1x2x32xf32>,
    %334 = vector.extract_strided_slice %326 {offsets = [0, 32], sizes = [2, 32], strides = [1, 1]} : vector<2x64xf32> to vector<2x32xf32>
    %c7_i32_160 = arith.constant 7 : i32
    %335 = arith.subi %c7_i32_160, %293 : i32
    %336 = arith.index_cast %335 : i32 to index
    %c0_161 = arith.constant 0 : index
    %c32_162 = arith.constant 32 : index
    %337 = vector.load %arg2[%336, %c0_161, %c32_162] : memref<8x2x64xf32, #tpu.memory_space<vmem>>, vector<1x2x32xf32>
    %338 = vector.shape_cast %337 : vector<1x2x32xf32> to vector<2x32xf32>
    %339 = vector.shape_cast %334 : vector<2x32xf32> to vector<1x2x32xf32>
    tpu.vector_store %arg2[%336, %c0_161, %c32_162], %339 {strides = array<i32>} : memref<8x2x64xf32, #tpu.memory_space<vmem>>, vector<1x2x32xf32>,
    %c7_i32_163 = arith.constant 7 : i32
    %c1_i32_164 = arith.constant 1 : i32
    %340 = arith.muli %c7_i32_163, %c1_i32_164 : i32
    %c0_i32_165 = arith.constant 0 : i32
    %341 = arith.addi %c0_i32_165, %340 : i32
    %342 = arith.index_cast %341 : i32 to index
    %c0_166 = arith.constant 0 : index
    %c0_167 = arith.constant 0 : index
    %343 = vector.load %arg0[%342, %c0_166, %c0_167] : memref<8x2x256xf32, #tpu.memory_space<vmem>>, vector<1x2x256xf32>
    %344 = vector.shape_cast %343 : vector<1x2x256xf32> to vector<2x256xf32>
    %c0_168 = arith.constant 0 : index
    %c0_169 = arith.constant 0 : index
    %345 = vector.load %arg5[%c0_168, %c0_169] : memref<2x64xf32, #tpu.memory_space<vmem>>, vector<2x64xf32>
    %c0_170 = arith.constant 0 : index
    %c0_171 = arith.constant 0 : index
    %346 = vector.load %arg1[%c0_170, %c0_171] : memref<64x256xf32, #tpu.memory_space<vmem>>, vector<64x256xf32>
    %cst_172 = arith.constant dense<0.000000e+00> : vector<2x256xf32>
    %347 = tpu.matmul %345, %346, %cst_172 {dimension_numbers = #tpu.dot_dimension_numbers<[1], [0], [0], [1], [0, 0, 1, 1], [], []>} : vector<2x64xf32>, vector<64x256xf32>, vector<2x256xf32> -> vector<2x256xf32>
    %348 = arith.addf %344, %347 : vector<2x256xf32>
    %349 = vector.extract_strided_slice %348 {offsets = [0, 0], sizes = [2, 64], strides = [1, 1]} : vector<2x256xf32> to vector<2x64xf32>
    %350 = arith.negf %349 : vector<2x64xf32>
    %351 = math.exp %350 : vector<2x64xf32>
    %cst_173 = arith.constant 1.000000e+00 : f32
    %352 = vector.broadcast %cst_173 : f32 to vector<2x64xf32>
    %353 = arith.addf %352, %351 : vector<2x64xf32>
    %354 = arith.divf %352, %353 : vector<2x64xf32>
    %355 = vector.extract_strided_slice %348 {offsets = [0, 64], sizes = [2, 64], strides = [1, 1]} : vector<2x256xf32> to vector<2x64xf32>
    %356 = arith.negf %355 : vector<2x64xf32>
    %357 = math.exp %356 : vector<2x64xf32>
    %cst_174 = arith.constant 1.000000e+00 : f32
    %358 = vector.broadcast %cst_174 : f32 to vector<2x64xf32>
    %359 = arith.addf %358, %357 : vector<2x64xf32>
    %360 = arith.divf %358, %359 : vector<2x64xf32>
    %361 = vector.extract_strided_slice %348 {offsets = [0, 128], sizes = [2, 64], strides = [1, 1]} : vector<2x256xf32> to vector<2x64xf32>
    %362 = math.tanh %361 : vector<2x64xf32>
    %363 = vector.extract_strided_slice %348 {offsets = [0, 192], sizes = [2, 64], strides = [1, 1]} : vector<2x256xf32> to vector<2x64xf32>
    %364 = arith.negf %363 : vector<2x64xf32>
    %365 = math.exp %364 : vector<2x64xf32>
    %cst_175 = arith.constant 1.000000e+00 : f32
    %366 = vector.broadcast %cst_175 : f32 to vector<2x64xf32>
    %367 = arith.addf %366, %365 : vector<2x64xf32>
    %368 = arith.divf %366, %367 : vector<2x64xf32>
    %c0_176 = arith.constant 0 : index
    %c0_177 = arith.constant 0 : index
    %369 = vector.load %arg6[%c0_176, %c0_177] : memref<2x64xf32, #tpu.memory_space<vmem>>, vector<2x64xf32>
    %370 = arith.mulf %360, %369 : vector<2x64xf32>
    %371 = arith.mulf %354, %362 : vector<2x64xf32>
    %372 = arith.addf %370, %371 : vector<2x64xf32>
    %373 = math.tanh %372 : vector<2x64xf32>
    %374 = arith.mulf %368, %373 : vector<2x64xf32>
    %c0_178 = arith.constant 0 : index
    %c0_179 = arith.constant 0 : index
    %375 = vector.load %arg5[%c0_178, %c0_179] : memref<2x64xf32, #tpu.memory_space<vmem>>, vector<2x64xf32>
    tpu.vector_store %arg5[%c0_178, %c0_179], %374 {strides = array<i32>} : memref<2x64xf32, #tpu.memory_space<vmem>>, vector<2x64xf32>,
    %c0_180 = arith.constant 0 : index
    %c0_181 = arith.constant 0 : index
    %376 = vector.load %arg6[%c0_180, %c0_181] : memref<2x64xf32, #tpu.memory_space<vmem>>, vector<2x64xf32>
    tpu.vector_store %arg6[%c0_180, %c0_181], %372 {strides = array<i32>} : memref<2x64xf32, #tpu.memory_space<vmem>>, vector<2x64xf32>,
    %377 = vector.extract_strided_slice %374 {offsets = [0, 0], sizes = [2, 32], strides = [1, 1]} : vector<2x64xf32> to vector<2x32xf32>
    %378 = arith.index_cast %341 : i32 to index
    %c0_182 = arith.constant 0 : index
    %c0_183 = arith.constant 0 : index
    %379 = vector.load %arg2[%378, %c0_182, %c0_183] : memref<8x2x64xf32, #tpu.memory_space<vmem>>, vector<1x2x32xf32>
    %380 = vector.shape_cast %379 : vector<1x2x32xf32> to vector<2x32xf32>
    %381 = vector.shape_cast %377 : vector<2x32xf32> to vector<1x2x32xf32>
    tpu.vector_store %arg2[%378, %c0_182, %c0_183], %381 {strides = array<i32>} : memref<8x2x64xf32, #tpu.memory_space<vmem>>, vector<1x2x32xf32>,
    %382 = vector.extract_strided_slice %374 {offsets = [0, 32], sizes = [2, 32], strides = [1, 1]} : vector<2x64xf32> to vector<2x32xf32>
    %c7_i32_184 = arith.constant 7 : i32
    %383 = arith.subi %c7_i32_184, %341 : i32
    %384 = arith.index_cast %383 : i32 to index
    %c0_185 = arith.constant 0 : index
    %c32_186 = arith.constant 32 : index
    %385 = vector.load %arg2[%384, %c0_185, %c32_186] : memref<8x2x64xf32, #tpu.memory_space<vmem>>, vector<1x2x32xf32>
    %386 = vector.shape_cast %385 : vector<1x2x32xf32> to vector<2x32xf32>
    %387 = vector.shape_cast %382 : vector<2x32xf32> to vector<1x2x32xf32>
    tpu.vector_store %arg2[%384, %c0_185, %c32_186], %387 {strides = array<i32>} : memref<8x2x64xf32, #tpu.memory_space<vmem>>, vector<1x2x32xf32>,
    %c8_i32 = arith.constant 8 : i32
    %c0_187 = arith.constant 0 : index
    %c0_188 = arith.constant 0 : index
    %388 = vector.load %arg5[%c0_187, %c0_188] : memref<2x64xf32, #tpu.memory_space<vmem>>, vector<2x64xf32>
    %c0_189 = arith.constant 0 : index
    %c0_190 = arith.constant 0 : index
    %389 = vector.load %arg3[%c0_189, %c0_190] : memref<2x64xf32, #tpu.memory_space<vmem>>, vector<2x64xf32>
    tpu.vector_store %arg3[%c0_189, %c0_190], %388 {strides = array<i32>} : memref<2x64xf32, #tpu.memory_space<vmem>>, vector<2x64xf32>,
    %c0_191 = arith.constant 0 : index
    %c0_192 = arith.constant 0 : index
    %390 = vector.load %arg6[%c0_191, %c0_192] : memref<2x64xf32, #tpu.memory_space<vmem>>, vector<2x64xf32>
    %c0_193 = arith.constant 0 : index
    %c0_194 = arith.constant 0 : index
    %391 = vector.load %arg4[%c0_193, %c0_194] : memref<2x64xf32, #tpu.memory_space<vmem>>, vector<2x64xf32>
    tpu.vector_store %arg4[%c0_193, %c0_194], %390 {strides = array<i32>} : memref<2x64xf32, #tpu.memory_space<vmem>>, vector<2x64xf32>,
    return
  }
}

module attributes {stable_mosaic.version = 11 : i64} {
  func.func @decoder_kernel(%arg0: memref<2x8x64xf32, #tpu.memory_space<vmem>>, %arg1: memref<2x64x8xf32, #tpu.memory_space<vmem>>, %arg2: memref<2x8x128xf32, #tpu.memory_space<vmem>>, %arg3: memref<8x2x256xf32, #tpu.memory_space<vmem>>, %arg4: memref<8x2x1xf32, #tpu.memory_space<vmem>>, %arg5: memref<2x64xf32, #tpu.memory_space<vmem>>, %arg6: memref<2x64xf32, #tpu.memory_space<vmem>>, %arg7: memref<64x256xf32, #tpu.memory_space<vmem>>, %arg8: memref<64x128xf32, #tpu.memory_space<vmem>>, %arg9: memref<64x128xf32, #tpu.memory_space<vmem>>, %arg10: memref<1x128xf32, #tpu.memory_space<vmem>>, %arg11: memref<64x1xf32, #tpu.memory_space<vmem>>, %arg12: memref<64x1xf32, #tpu.memory_space<vmem>>, %arg13: memref<8x2x128xf32, #tpu.memory_space<vmem>>, %arg14: memref<2x64xf32, #tpu.memory_space<vmem>>, %arg15: memref<2x64xf32, #tpu.memory_space<vmem>>, %arg16: memref<2x64xf32, #tpu.memory_space<vmem>>, %arg17: memref<2x128xf32, #tpu.memory_space<vmem>>) attributes {dimension_semantics = [], scalar_prefetch = 0 : i64, scratch_operands = 4 : i64, tpu.core_type = #tpu.core_type<tc>} {
    %c0 = arith.constant 0 : index
    %c0_0 = arith.constant 0 : index
    %0 = vector.load %arg5[%c0, %c0_0] : memref<2x64xf32, #tpu.memory_space<vmem>>, vector<2x64xf32>
    %c0_1 = arith.constant 0 : index
    %c0_2 = arith.constant 0 : index
    %1 = vector.load %arg14[%c0_1, %c0_2] : memref<2x64xf32, #tpu.memory_space<vmem>>, vector<2x64xf32>
    tpu.vector_store %arg14[%c0_1, %c0_2], %0 {strides = array<i32>} : memref<2x64xf32, #tpu.memory_space<vmem>>, vector<2x64xf32>,
    %c0_3 = arith.constant 0 : index
    %c0_4 = arith.constant 0 : index
    %2 = vector.load %arg6[%c0_3, %c0_4] : memref<2x64xf32, #tpu.memory_space<vmem>>, vector<2x64xf32>
    %c0_5 = arith.constant 0 : index
    %c0_6 = arith.constant 0 : index
    %3 = vector.load %arg15[%c0_5, %c0_6] : memref<2x64xf32, #tpu.memory_space<vmem>>, vector<2x64xf32>
    tpu.vector_store %arg15[%c0_5, %c0_6], %2 {strides = array<i32>} : memref<2x64xf32, #tpu.memory_space<vmem>>, vector<2x64xf32>,
    %c0_i32 = arith.constant 0 : i32
    %c1_i32 = arith.constant 1 : i32
    %4 = arith.muli %c0_i32, %c1_i32 : i32
    %c0_i32_7 = arith.constant 0 : i32
    %5 = arith.addi %c0_i32_7, %4 : i32
    %6 = arith.index_cast %5 : i32 to index
    %c0_8 = arith.constant 0 : index
    %c0_9 = arith.constant 0 : index
    %7 = vector.load %arg3[%6, %c0_8, %c0_9] : memref<8x2x256xf32, #tpu.memory_space<vmem>>, vector<1x2x256xf32>
    %8 = vector.shape_cast %7 : vector<1x2x256xf32> to vector<2x256xf32>
    %c0_10 = arith.constant 0 : index
    %c0_11 = arith.constant 0 : index
    %9 = vector.load %arg14[%c0_10, %c0_11] : memref<2x64xf32, #tpu.memory_space<vmem>>, vector<2x64xf32>
    %c0_12 = arith.constant 0 : index
    %c0_13 = arith.constant 0 : index
    %10 = vector.load %arg7[%c0_12, %c0_13] : memref<64x256xf32, #tpu.memory_space<vmem>>, vector<64x256xf32>
    %cst = arith.constant dense<0.000000e+00> : vector<2x256xf32>
    %11 = tpu.matmul %9, %10, %cst {dimension_numbers = #tpu.dot_dimension_numbers<[1], [0], [0], [1], [0, 0, 1, 1], [], []>} : vector<2x64xf32>, vector<64x256xf32>, vector<2x256xf32> -> vector<2x256xf32>
    %12 = arith.addf %8, %11 : vector<2x256xf32>
    %13 = vector.extract_strided_slice %12 {offsets = [0, 0], sizes = [2, 64], strides = [1, 1]} : vector<2x256xf32> to vector<2x64xf32>
    %14 = arith.negf %13 : vector<2x64xf32>
    %15 = math.exp %14 : vector<2x64xf32>
    %cst_14 = arith.constant 1.000000e+00 : f32
    %16 = vector.broadcast %cst_14 : f32 to vector<2x64xf32>
    %17 = arith.addf %16, %15 : vector<2x64xf32>
    %18 = arith.divf %16, %17 : vector<2x64xf32>
    %19 = vector.extract_strided_slice %12 {offsets = [0, 64], sizes = [2, 64], strides = [1, 1]} : vector<2x256xf32> to vector<2x64xf32>
    %20 = arith.negf %19 : vector<2x64xf32>
    %21 = math.exp %20 : vector<2x64xf32>
    %cst_15 = arith.constant 1.000000e+00 : f32
    %22 = vector.broadcast %cst_15 : f32 to vector<2x64xf32>
    %23 = arith.addf %22, %21 : vector<2x64xf32>
    %24 = arith.divf %22, %23 : vector<2x64xf32>
    %25 = vector.extract_strided_slice %12 {offsets = [0, 128], sizes = [2, 64], strides = [1, 1]} : vector<2x256xf32> to vector<2x64xf32>
    %26 = math.tanh %25 : vector<2x64xf32>
    %27 = vector.extract_strided_slice %12 {offsets = [0, 192], sizes = [2, 64], strides = [1, 1]} : vector<2x256xf32> to vector<2x64xf32>
    %28 = arith.negf %27 : vector<2x64xf32>
    %29 = math.exp %28 : vector<2x64xf32>
    %cst_16 = arith.constant 1.000000e+00 : f32
    %30 = vector.broadcast %cst_16 : f32 to vector<2x64xf32>
    %31 = arith.addf %30, %29 : vector<2x64xf32>
    %32 = arith.divf %30, %31 : vector<2x64xf32>
    %c0_17 = arith.constant 0 : index
    %c0_18 = arith.constant 0 : index
    %33 = vector.load %arg15[%c0_17, %c0_18] : memref<2x64xf32, #tpu.memory_space<vmem>>, vector<2x64xf32>
    %34 = arith.mulf %24, %33 : vector<2x64xf32>
    %35 = arith.mulf %18, %26 : vector<2x64xf32>
    %36 = arith.addf %34, %35 : vector<2x64xf32>
    %37 = math.tanh %36 : vector<2x64xf32>
    %38 = arith.mulf %32, %37 : vector<2x64xf32>
    %c0_19 = arith.constant 0 : index
    %c0_20 = arith.constant 0 : index
    %39 = vector.load %arg14[%c0_19, %c0_20] : memref<2x64xf32, #tpu.memory_space<vmem>>, vector<2x64xf32>
    tpu.vector_store %arg14[%c0_19, %c0_20], %38 {strides = array<i32>} : memref<2x64xf32, #tpu.memory_space<vmem>>, vector<2x64xf32>,
    %c0_21 = arith.constant 0 : index
    %c0_22 = arith.constant 0 : index
    %40 = vector.load %arg15[%c0_21, %c0_22] : memref<2x64xf32, #tpu.memory_space<vmem>>, vector<2x64xf32>
    tpu.vector_store %arg15[%c0_21, %c0_22], %36 {strides = array<i32>} : memref<2x64xf32, #tpu.memory_space<vmem>>, vector<2x64xf32>,
    %41 = vector.extract_strided_slice %38 {offsets = [0, 0], sizes = [1, 64], strides = [1, 1]} : vector<2x64xf32> to vector<1x64xf32>
    %c0_23 = arith.constant 0 : index
    %c0_24 = arith.constant 0 : index
    %c0_25 = arith.constant 0 : index
    %42 = vector.load %arg1[%c0_23, %c0_24, %c0_25] : memref<2x64x8xf32, #tpu.memory_space<vmem>>, vector<1x64x8xf32>
    %43 = vector.shape_cast %42 : vector<1x64x8xf32> to vector<64x8xf32>
    %cst_26 = arith.constant dense<0.000000e+00> : vector<1x8xf32>
    %44 = tpu.matmul %41, %43, %cst_26 {dimension_numbers = #tpu.dot_dimension_numbers<[1], [0], [0], [1], [0, 0, 1, 1], [], []>} : vector<1x64xf32>, vector<64x8xf32>, vector<1x8xf32> -> vector<1x8xf32>
    %cst_27 = arith.constant dense<0xFF800000> : vector<1xf32>
    %45 = vector.multi_reduction <maximumf>, %44, %cst_27 [1] : vector<1x8xf32> to vector<1xf32>
    %46 = vector.shape_cast %45 : vector<1xf32> to vector<1x1xf32>
    %47 = vector.broadcast %46 : vector<1x1xf32> to vector<1x8xf32>
    %48 = arith.subf %44, %47 : vector<1x8xf32>
    %49 = math.exp %48 : vector<1x8xf32>
    %cst_28 = arith.constant dense<0.000000e+00> : vector<1xf32>
    %50 = vector.multi_reduction <add>, %49, %cst_28 [1] : vector<1x8xf32> to vector<1xf32>
    %51 = vector.shape_cast %50 : vector<1xf32> to vector<1x1xf32>
    %52 = tpu.reciprocal %51 {approx = true} : vector<1x1xf32> -> vector<1x1xf32>
    %53 = vector.broadcast %52 : vector<1x1xf32> to vector<1x8xf32>
    %54 = arith.mulf %49, %53 : vector<1x8xf32>
    %c0_29 = arith.constant 0 : index
    %c0_30 = arith.constant 0 : index
    %c0_31 = arith.constant 0 : index
    %55 = vector.load %arg0[%c0_29, %c0_30, %c0_31] : memref<2x8x64xf32, #tpu.memory_space<vmem>>, vector<1x8x64xf32>
    %56 = vector.shape_cast %55 : vector<1x8x64xf32> to vector<8x64xf32>
    %cst_32 = arith.constant dense<0.000000e+00> : vector<1x64xf32>
    %57 = tpu.matmul %54, %56, %cst_32 {dimension_numbers = #tpu.dot_dimension_numbers<[1], [0], [0], [1], [0, 0, 1, 1], [], []>} : vector<1x8xf32>, vector<8x64xf32>, vector<1x64xf32> -> vector<1x64xf32>
    %c0_33 = arith.constant 0 : index
    %c0_34 = arith.constant 0 : index
    %58 = vector.load %arg16[%c0_33, %c0_34] : memref<2x64xf32, #tpu.memory_space<vmem>>, vector<1x64xf32>
    tpu.vector_store %arg16[%c0_33, %c0_34], %57 {strides = array<i32>} : memref<2x64xf32, #tpu.memory_space<vmem>>, vector<1x64xf32>,
    %c0_35 = arith.constant 0 : index
    %c0_36 = arith.constant 0 : index
    %c0_37 = arith.constant 0 : index
    %59 = vector.load %arg2[%c0_35, %c0_36, %c0_37] : memref<2x8x128xf32, #tpu.memory_space<vmem>>, vector<1x8x128xf32>
    %60 = vector.shape_cast %59 : vector<1x8x128xf32> to vector<8x128xf32>
    %cst_38 = arith.constant dense<0.000000e+00> : vector<1x128xf32>
    %61 = tpu.matmul %54, %60, %cst_38 {dimension_numbers = #tpu.dot_dimension_numbers<[1], [0], [0], [1], [0, 0, 1, 1], [], []>} : vector<1x8xf32>, vector<8x128xf32>, vector<1x128xf32> -> vector<1x128xf32>
    %c0_39 = arith.constant 0 : index
    %c0_40 = arith.constant 0 : index
    %62 = vector.load %arg17[%c0_39, %c0_40] : memref<2x128xf32, #tpu.memory_space<vmem>>, vector<1x128xf32>
    tpu.vector_store %arg17[%c0_39, %c0_40], %61 {strides = array<i32>} : memref<2x128xf32, #tpu.memory_space<vmem>>, vector<1x128xf32>,
    %63 = vector.extract_strided_slice %38 {offsets = [1, 0], sizes = [1, 64], strides = [1, 1]} : vector<2x64xf32> to vector<1x64xf32>
    %c1 = arith.constant 1 : index
    %c0_41 = arith.constant 0 : index
    %c0_42 = arith.constant 0 : index
    %64 = vector.load %arg1[%c1, %c0_41, %c0_42] : memref<2x64x8xf32, #tpu.memory_space<vmem>>, vector<1x64x8xf32>
    %65 = vector.shape_cast %64 : vector<1x64x8xf32> to vector<64x8xf32>
    %cst_43 = arith.constant dense<0.000000e+00> : vector<1x8xf32>
    %66 = tpu.matmul %63, %65, %cst_43 {dimension_numbers = #tpu.dot_dimension_numbers<[1], [0], [0], [1], [0, 0, 1, 1], [], []>} : vector<1x64xf32>, vector<64x8xf32>, vector<1x8xf32> -> vector<1x8xf32>
    %cst_44 = arith.constant dense<0xFF800000> : vector<1xf32>
    %67 = vector.multi_reduction <maximumf>, %66, %cst_44 [1] : vector<1x8xf32> to vector<1xf32>
    %68 = vector.shape_cast %67 : vector<1xf32> to vector<1x1xf32>
    %69 = vector.broadcast %68 : vector<1x1xf32> to vector<1x8xf32>
    %70 = arith.subf %66, %69 : vector<1x8xf32>
    %71 = math.exp %70 : vector<1x8xf32>
    %cst_45 = arith.constant dense<0.000000e+00> : vector<1xf32>
    %72 = vector.multi_reduction <add>, %71, %cst_45 [1] : vector<1x8xf32> to vector<1xf32>
    %73 = vector.shape_cast %72 : vector<1xf32> to vector<1x1xf32>
    %74 = tpu.reciprocal %73 {approx = true} : vector<1x1xf32> -> vector<1x1xf32>
    %75 = vector.broadcast %74 : vector<1x1xf32> to vector<1x8xf32>
    %76 = arith.mulf %71, %75 : vector<1x8xf32>
    %c1_46 = arith.constant 1 : index
    %c0_47 = arith.constant 0 : index
    %c0_48 = arith.constant 0 : index
    %77 = vector.load %arg0[%c1_46, %c0_47, %c0_48] : memref<2x8x64xf32, #tpu.memory_space<vmem>>, vector<1x8x64xf32>
    %78 = vector.shape_cast %77 : vector<1x8x64xf32> to vector<8x64xf32>
    %cst_49 = arith.constant dense<0.000000e+00> : vector<1x64xf32>
    %79 = tpu.matmul %76, %78, %cst_49 {dimension_numbers = #tpu.dot_dimension_numbers<[1], [0], [0], [1], [0, 0, 1, 1], [], []>} : vector<1x8xf32>, vector<8x64xf32>, vector<1x64xf32> -> vector<1x64xf32>
    %c1_50 = arith.constant 1 : index
    %c0_51 = arith.constant 0 : index
    %80 = vector.load %arg16[%c1_50, %c0_51] : memref<2x64xf32, #tpu.memory_space<vmem>>, vector<1x64xf32>
    tpu.vector_store %arg16[%c1_50, %c0_51], %79 {strides = array<i32>} : memref<2x64xf32, #tpu.memory_space<vmem>>, vector<1x64xf32>,
    %c1_52 = arith.constant 1 : index
    %c0_53 = arith.constant 0 : index
    %c0_54 = arith.constant 0 : index
    %81 = vector.load %arg2[%c1_52, %c0_53, %c0_54] : memref<2x8x128xf32, #tpu.memory_space<vmem>>, vector<1x8x128xf32>
    %82 = vector.shape_cast %81 : vector<1x8x128xf32> to vector<8x128xf32>
    %cst_55 = arith.constant dense<0.000000e+00> : vector<1x128xf32>
    %83 = tpu.matmul %76, %82, %cst_55 {dimension_numbers = #tpu.dot_dimension_numbers<[1], [0], [0], [1], [0, 0, 1, 1], [], []>} : vector<1x8xf32>, vector<8x128xf32>, vector<1x128xf32> -> vector<1x128xf32>
    %c1_56 = arith.constant 1 : index
    %c0_57 = arith.constant 0 : index
    %84 = vector.load %arg17[%c1_56, %c0_57] : memref<2x128xf32, #tpu.memory_space<vmem>>, vector<1x128xf32>
    tpu.vector_store %arg17[%c1_56, %c0_57], %83 {strides = array<i32>} : memref<2x128xf32, #tpu.memory_space<vmem>>, vector<1x128xf32>,
    %c0_58 = arith.constant 0 : index
    %c0_59 = arith.constant 0 : index
    %85 = vector.load %arg16[%c0_58, %c0_59] : memref<2x64xf32, #tpu.memory_space<vmem>>, vector<2x64xf32>
    %c0_60 = arith.constant 0 : index
    %c0_61 = arith.constant 0 : index
    %86 = vector.load %arg17[%c0_60, %c0_61] : memref<2x128xf32, #tpu.memory_space<vmem>>, vector<2x128xf32>
    %c0_62 = arith.constant 0 : index
    %c0_63 = arith.constant 0 : index
    %87 = vector.load %arg8[%c0_62, %c0_63] : memref<64x128xf32, #tpu.memory_space<vmem>>, vector<64x128xf32>
    %cst_64 = arith.constant dense<0.000000e+00> : vector<2x128xf32>
    %88 = tpu.matmul %38, %87, %cst_64 {dimension_numbers = #tpu.dot_dimension_numbers<[1], [0], [0], [1], [0, 0, 1, 1], [], []>} : vector<2x64xf32>, vector<64x128xf32>, vector<2x128xf32> -> vector<2x128xf32>
    %c0_65 = arith.constant 0 : index
    %c0_66 = arith.constant 0 : index
    %89 = vector.load %arg9[%c0_65, %c0_66] : memref<64x128xf32, #tpu.memory_space<vmem>>, vector<64x128xf32>
    %cst_67 = arith.constant dense<0.000000e+00> : vector<2x128xf32>
    %90 = tpu.matmul %85, %89, %cst_67 {dimension_numbers = #tpu.dot_dimension_numbers<[1], [0], [0], [1], [0, 0, 1, 1], [], []>} : vector<2x64xf32>, vector<64x128xf32>, vector<2x128xf32> -> vector<2x128xf32>
    %91 = arith.addf %88, %90 : vector<2x128xf32>
    %c0_68 = arith.constant 0 : index
    %c0_69 = arith.constant 0 : index
    %92 = vector.load %arg10[%c0_68, %c0_69] : memref<1x128xf32, #tpu.memory_space<vmem>>, vector<1x128xf32>
    %93 = vector.broadcast %92 : vector<1x128xf32> to vector<2x128xf32>
    %94 = arith.addf %91, %93 : vector<2x128xf32>
    %cst_70 = arith.constant dense<0xFF800000> : vector<2xf32>
    %95 = vector.multi_reduction <maximumf>, %94, %cst_70 [1] : vector<2x128xf32> to vector<2xf32>
    %96 = vector.shape_cast %95 : vector<2xf32> to vector<2x1xf32>
    %97 = vector.broadcast %96 : vector<2x1xf32> to vector<2x128xf32>
    %98 = arith.subf %94, %97 : vector<2x128xf32>
    %99 = math.exp %98 : vector<2x128xf32>
    %cst_71 = arith.constant dense<0.000000e+00> : vector<2xf32>
    %100 = vector.multi_reduction <add>, %99, %cst_71 [1] : vector<2x128xf32> to vector<2xf32>
    %101 = vector.shape_cast %100 : vector<2xf32> to vector<2x1xf32>
    %102 = tpu.reciprocal %101 {approx = true} : vector<2x1xf32> -> vector<2x1xf32>
    %103 = vector.broadcast %102 : vector<2x1xf32> to vector<2x128xf32>
    %104 = arith.mulf %99, %103 : vector<2x128xf32>
    %c0_72 = arith.constant 0 : index
    %c0_73 = arith.constant 0 : index
    %105 = vector.load %arg11[%c0_72, %c0_73] : memref<64x1xf32, #tpu.memory_space<vmem>>, vector<64x1xf32>
    %cst_74 = arith.constant dense<0.000000e+00> : vector<2x1xf32>
    %106 = tpu.matmul %85, %105, %cst_74 {dimension_numbers = #tpu.dot_dimension_numbers<[1], [0], [0], [1], [0, 0, 1, 1], [], []>} : vector<2x64xf32>, vector<64x1xf32>, vector<2x1xf32> -> vector<2x1xf32>
    %c0_75 = arith.constant 0 : index
    %c0_76 = arith.constant 0 : index
    %107 = vector.load %arg12[%c0_75, %c0_76] : memref<64x1xf32, #tpu.memory_space<vmem>>, vector<64x1xf32>
    %cst_77 = arith.constant dense<0.000000e+00> : vector<2x1xf32>
    %108 = tpu.matmul %38, %107, %cst_77 {dimension_numbers = #tpu.dot_dimension_numbers<[1], [0], [0], [1], [0, 0, 1, 1], [], []>} : vector<2x64xf32>, vector<64x1xf32>, vector<2x1xf32> -> vector<2x1xf32>
    %109 = arith.addf %106, %108 : vector<2x1xf32>
    %110 = arith.index_cast %5 : i32 to index
    %c0_78 = arith.constant 0 : index
    %c0_79 = arith.constant 0 : index
    %111 = vector.load %arg4[%110, %c0_78, %c0_79] : memref<8x2x1xf32, #tpu.memory_space<vmem>>, vector<1x2x1xf32>
    %112 = vector.shape_cast %111 : vector<1x2x1xf32> to vector<2x1xf32>
    %113 = arith.addf %109, %112 : vector<2x1xf32>
    %114 = arith.negf %113 : vector<2x1xf32>
    %115 = math.exp %114 : vector<2x1xf32>
    %cst_80 = arith.constant 1.000000e+00 : f32
    %116 = vector.broadcast %cst_80 : f32 to vector<2x1xf32>
    %117 = arith.addf %116, %115 : vector<2x1xf32>
    %118 = arith.divf %116, %117 : vector<2x1xf32>
    %119 = vector.broadcast %118 : vector<2x1xf32> to vector<2x128xf32>
    %120 = arith.mulf %119, %104 : vector<2x128xf32>
    %cst_81 = arith.constant 1.000000e+00 : f32
    %121 = vector.broadcast %cst_81 : f32 to vector<2x1xf32>
    %122 = arith.subf %121, %118 : vector<2x1xf32>
    %123 = vector.broadcast %122 : vector<2x1xf32> to vector<2x128xf32>
    %124 = arith.mulf %123, %86 : vector<2x128xf32>
    %125 = arith.addf %120, %124 : vector<2x128xf32>
    %cst_82 = arith.constant 1.000000e-10 : f32
    %126 = vector.broadcast %cst_82 : f32 to vector<2x128xf32>
    %127 = arith.addf %125, %126 : vector<2x128xf32>
    %128 = math.log %127 : vector<2x128xf32>
    %129 = arith.index_cast %5 : i32 to index
    %c0_83 = arith.constant 0 : index
    %c0_84 = arith.constant 0 : index
    %130 = vector.load %arg13[%129, %c0_83, %c0_84] : memref<8x2x128xf32, #tpu.memory_space<vmem>>, vector<1x2x128xf32>
    %131 = vector.shape_cast %130 : vector<1x2x128xf32> to vector<2x128xf32>
    %132 = vector.shape_cast %128 : vector<2x128xf32> to vector<1x2x128xf32>
    tpu.vector_store %arg13[%129, %c0_83, %c0_84], %132 {strides = array<i32>} : memref<8x2x128xf32, #tpu.memory_space<vmem>>, vector<1x2x128xf32>,
    %c1_i32_85 = arith.constant 1 : i32
    %c1_i32_86 = arith.constant 1 : i32
    %133 = arith.muli %c1_i32_85, %c1_i32_86 : i32
    %c0_i32_87 = arith.constant 0 : i32
    %134 = arith.addi %c0_i32_87, %133 : i32
    %135 = arith.index_cast %134 : i32 to index
    %c0_88 = arith.constant 0 : index
    %c0_89 = arith.constant 0 : index
    %136 = vector.load %arg3[%135, %c0_88, %c0_89] : memref<8x2x256xf32, #tpu.memory_space<vmem>>, vector<1x2x256xf32>
    %137 = vector.shape_cast %136 : vector<1x2x256xf32> to vector<2x256xf32>
    %c0_90 = arith.constant 0 : index
    %c0_91 = arith.constant 0 : index
    %138 = vector.load %arg14[%c0_90, %c0_91] : memref<2x64xf32, #tpu.memory_space<vmem>>, vector<2x64xf32>
    %c0_92 = arith.constant 0 : index
    %c0_93 = arith.constant 0 : index
    %139 = vector.load %arg7[%c0_92, %c0_93] : memref<64x256xf32, #tpu.memory_space<vmem>>, vector<64x256xf32>
    %cst_94 = arith.constant dense<0.000000e+00> : vector<2x256xf32>
    %140 = tpu.matmul %138, %139, %cst_94 {dimension_numbers = #tpu.dot_dimension_numbers<[1], [0], [0], [1], [0, 0, 1, 1], [], []>} : vector<2x64xf32>, vector<64x256xf32>, vector<2x256xf32> -> vector<2x256xf32>
    %141 = arith.addf %137, %140 : vector<2x256xf32>
    %142 = vector.extract_strided_slice %141 {offsets = [0, 0], sizes = [2, 64], strides = [1, 1]} : vector<2x256xf32> to vector<2x64xf32>
    %143 = arith.negf %142 : vector<2x64xf32>
    %144 = math.exp %143 : vector<2x64xf32>
    %cst_95 = arith.constant 1.000000e+00 : f32
    %145 = vector.broadcast %cst_95 : f32 to vector<2x64xf32>
    %146 = arith.addf %145, %144 : vector<2x64xf32>
    %147 = arith.divf %145, %146 : vector<2x64xf32>
    %148 = vector.extract_strided_slice %141 {offsets = [0, 64], sizes = [2, 64], strides = [1, 1]} : vector<2x256xf32> to vector<2x64xf32>
    %149 = arith.negf %148 : vector<2x64xf32>
    %150 = math.exp %149 : vector<2x64xf32>
    %cst_96 = arith.constant 1.000000e+00 : f32
    %151 = vector.broadcast %cst_96 : f32 to vector<2x64xf32>
    %152 = arith.addf %151, %150 : vector<2x64xf32>
    %153 = arith.divf %151, %152 : vector<2x64xf32>
    %154 = vector.extract_strided_slice %141 {offsets = [0, 128], sizes = [2, 64], strides = [1, 1]} : vector<2x256xf32> to vector<2x64xf32>
    %155 = math.tanh %154 : vector<2x64xf32>
    %156 = vector.extract_strided_slice %141 {offsets = [0, 192], sizes = [2, 64], strides = [1, 1]} : vector<2x256xf32> to vector<2x64xf32>
    %157 = arith.negf %156 : vector<2x64xf32>
    %158 = math.exp %157 : vector<2x64xf32>
    %cst_97 = arith.constant 1.000000e+00 : f32
    %159 = vector.broadcast %cst_97 : f32 to vector<2x64xf32>
    %160 = arith.addf %159, %158 : vector<2x64xf32>
    %161 = arith.divf %159, %160 : vector<2x64xf32>
    %c0_98 = arith.constant 0 : index
    %c0_99 = arith.constant 0 : index
    %162 = vector.load %arg15[%c0_98, %c0_99] : memref<2x64xf32, #tpu.memory_space<vmem>>, vector<2x64xf32>
    %163 = arith.mulf %153, %162 : vector<2x64xf32>
    %164 = arith.mulf %147, %155 : vector<2x64xf32>
    %165 = arith.addf %163, %164 : vector<2x64xf32>
    %166 = math.tanh %165 : vector<2x64xf32>
    %167 = arith.mulf %161, %166 : vector<2x64xf32>
    %c0_100 = arith.constant 0 : index
    %c0_101 = arith.constant 0 : index
    %168 = vector.load %arg14[%c0_100, %c0_101] : memref<2x64xf32, #tpu.memory_space<vmem>>, vector<2x64xf32>
    tpu.vector_store %arg14[%c0_100, %c0_101], %167 {strides = array<i32>} : memref<2x64xf32, #tpu.memory_space<vmem>>, vector<2x64xf32>,
    %c0_102 = arith.constant 0 : index
    %c0_103 = arith.constant 0 : index
    %169 = vector.load %arg15[%c0_102, %c0_103] : memref<2x64xf32, #tpu.memory_space<vmem>>, vector<2x64xf32>
    tpu.vector_store %arg15[%c0_102, %c0_103], %165 {strides = array<i32>} : memref<2x64xf32, #tpu.memory_space<vmem>>, vector<2x64xf32>,
    %170 = vector.extract_strided_slice %167 {offsets = [0, 0], sizes = [1, 64], strides = [1, 1]} : vector<2x64xf32> to vector<1x64xf32>
    %c0_104 = arith.constant 0 : index
    %c0_105 = arith.constant 0 : index
    %c0_106 = arith.constant 0 : index
    %171 = vector.load %arg1[%c0_104, %c0_105, %c0_106] : memref<2x64x8xf32, #tpu.memory_space<vmem>>, vector<1x64x8xf32>
    %172 = vector.shape_cast %171 : vector<1x64x8xf32> to vector<64x8xf32>
    %cst_107 = arith.constant dense<0.000000e+00> : vector<1x8xf32>
    %173 = tpu.matmul %170, %172, %cst_107 {dimension_numbers = #tpu.dot_dimension_numbers<[1], [0], [0], [1], [0, 0, 1, 1], [], []>} : vector<1x64xf32>, vector<64x8xf32>, vector<1x8xf32> -> vector<1x8xf32>
    %cst_108 = arith.constant dense<0xFF800000> : vector<1xf32>
    %174 = vector.multi_reduction <maximumf>, %173, %cst_108 [1] : vector<1x8xf32> to vector<1xf32>
    %175 = vector.shape_cast %174 : vector<1xf32> to vector<1x1xf32>
    %176 = vector.broadcast %175 : vector<1x1xf32> to vector<1x8xf32>
    %177 = arith.subf %173, %176 : vector<1x8xf32>
    %178 = math.exp %177 : vector<1x8xf32>
    %cst_109 = arith.constant dense<0.000000e+00> : vector<1xf32>
    %179 = vector.multi_reduction <add>, %178, %cst_109 [1] : vector<1x8xf32> to vector<1xf32>
    %180 = vector.shape_cast %179 : vector<1xf32> to vector<1x1xf32>
    %181 = tpu.reciprocal %180 {approx = true} : vector<1x1xf32> -> vector<1x1xf32>
    %182 = vector.broadcast %181 : vector<1x1xf32> to vector<1x8xf32>
    %183 = arith.mulf %178, %182 : vector<1x8xf32>
    %c0_110 = arith.constant 0 : index
    %c0_111 = arith.constant 0 : index
    %c0_112 = arith.constant 0 : index
    %184 = vector.load %arg0[%c0_110, %c0_111, %c0_112] : memref<2x8x64xf32, #tpu.memory_space<vmem>>, vector<1x8x64xf32>
    %185 = vector.shape_cast %184 : vector<1x8x64xf32> to vector<8x64xf32>
    %cst_113 = arith.constant dense<0.000000e+00> : vector<1x64xf32>
    %186 = tpu.matmul %183, %185, %cst_113 {dimension_numbers = #tpu.dot_dimension_numbers<[1], [0], [0], [1], [0, 0, 1, 1], [], []>} : vector<1x8xf32>, vector<8x64xf32>, vector<1x64xf32> -> vector<1x64xf32>
    %c0_114 = arith.constant 0 : index
    %c0_115 = arith.constant 0 : index
    %187 = vector.load %arg16[%c0_114, %c0_115] : memref<2x64xf32, #tpu.memory_space<vmem>>, vector<1x64xf32>
    tpu.vector_store %arg16[%c0_114, %c0_115], %186 {strides = array<i32>} : memref<2x64xf32, #tpu.memory_space<vmem>>, vector<1x64xf32>,
    %c0_116 = arith.constant 0 : index
    %c0_117 = arith.constant 0 : index
    %c0_118 = arith.constant 0 : index
    %188 = vector.load %arg2[%c0_116, %c0_117, %c0_118] : memref<2x8x128xf32, #tpu.memory_space<vmem>>, vector<1x8x128xf32>
    %189 = vector.shape_cast %188 : vector<1x8x128xf32> to vector<8x128xf32>
    %cst_119 = arith.constant dense<0.000000e+00> : vector<1x128xf32>
    %190 = tpu.matmul %183, %189, %cst_119 {dimension_numbers = #tpu.dot_dimension_numbers<[1], [0], [0], [1], [0, 0, 1, 1], [], []>} : vector<1x8xf32>, vector<8x128xf32>, vector<1x128xf32> -> vector<1x128xf32>
    %c0_120 = arith.constant 0 : index
    %c0_121 = arith.constant 0 : index
    %191 = vector.load %arg17[%c0_120, %c0_121] : memref<2x128xf32, #tpu.memory_space<vmem>>, vector<1x128xf32>
    tpu.vector_store %arg17[%c0_120, %c0_121], %190 {strides = array<i32>} : memref<2x128xf32, #tpu.memory_space<vmem>>, vector<1x128xf32>,
    %192 = vector.extract_strided_slice %167 {offsets = [1, 0], sizes = [1, 64], strides = [1, 1]} : vector<2x64xf32> to vector<1x64xf32>
    %c1_122 = arith.constant 1 : index
    %c0_123 = arith.constant 0 : index
    %c0_124 = arith.constant 0 : index
    %193 = vector.load %arg1[%c1_122, %c0_123, %c0_124] : memref<2x64x8xf32, #tpu.memory_space<vmem>>, vector<1x64x8xf32>
    %194 = vector.shape_cast %193 : vector<1x64x8xf32> to vector<64x8xf32>
    %cst_125 = arith.constant dense<0.000000e+00> : vector<1x8xf32>
    %195 = tpu.matmul %192, %194, %cst_125 {dimension_numbers = #tpu.dot_dimension_numbers<[1], [0], [0], [1], [0, 0, 1, 1], [], []>} : vector<1x64xf32>, vector<64x8xf32>, vector<1x8xf32> -> vector<1x8xf32>
    %cst_126 = arith.constant dense<0xFF800000> : vector<1xf32>
    %196 = vector.multi_reduction <maximumf>, %195, %cst_126 [1] : vector<1x8xf32> to vector<1xf32>
    %197 = vector.shape_cast %196 : vector<1xf32> to vector<1x1xf32>
    %198 = vector.broadcast %197 : vector<1x1xf32> to vector<1x8xf32>
    %199 = arith.subf %195, %198 : vector<1x8xf32>
    %200 = math.exp %199 : vector<1x8xf32>
    %cst_127 = arith.constant dense<0.000000e+00> : vector<1xf32>
    %201 = vector.multi_reduction <add>, %200, %cst_127 [1] : vector<1x8xf32> to vector<1xf32>
    %202 = vector.shape_cast %201 : vector<1xf32> to vector<1x1xf32>
    %203 = tpu.reciprocal %202 {approx = true} : vector<1x1xf32> -> vector<1x1xf32>
    %204 = vector.broadcast %203 : vector<1x1xf32> to vector<1x8xf32>
    %205 = arith.mulf %200, %204 : vector<1x8xf32>
    %c1_128 = arith.constant 1 : index
    %c0_129 = arith.constant 0 : index
    %c0_130 = arith.constant 0 : index
    %206 = vector.load %arg0[%c1_128, %c0_129, %c0_130] : memref<2x8x64xf32, #tpu.memory_space<vmem>>, vector<1x8x64xf32>
    %207 = vector.shape_cast %206 : vector<1x8x64xf32> to vector<8x64xf32>
    %cst_131 = arith.constant dense<0.000000e+00> : vector<1x64xf32>
    %208 = tpu.matmul %205, %207, %cst_131 {dimension_numbers = #tpu.dot_dimension_numbers<[1], [0], [0], [1], [0, 0, 1, 1], [], []>} : vector<1x8xf32>, vector<8x64xf32>, vector<1x64xf32> -> vector<1x64xf32>
    %c1_132 = arith.constant 1 : index
    %c0_133 = arith.constant 0 : index
    %209 = vector.load %arg16[%c1_132, %c0_133] : memref<2x64xf32, #tpu.memory_space<vmem>>, vector<1x64xf32>
    tpu.vector_store %arg16[%c1_132, %c0_133], %208 {strides = array<i32>} : memref<2x64xf32, #tpu.memory_space<vmem>>, vector<1x64xf32>,
    %c1_134 = arith.constant 1 : index
    %c0_135 = arith.constant 0 : index
    %c0_136 = arith.constant 0 : index
    %210 = vector.load %arg2[%c1_134, %c0_135, %c0_136] : memref<2x8x128xf32, #tpu.memory_space<vmem>>, vector<1x8x128xf32>
    %211 = vector.shape_cast %210 : vector<1x8x128xf32> to vector<8x128xf32>
    %cst_137 = arith.constant dense<0.000000e+00> : vector<1x128xf32>
    %212 = tpu.matmul %205, %211, %cst_137 {dimension_numbers = #tpu.dot_dimension_numbers<[1], [0], [0], [1], [0, 0, 1, 1], [], []>} : vector<1x8xf32>, vector<8x128xf32>, vector<1x128xf32> -> vector<1x128xf32>
    %c1_138 = arith.constant 1 : index
    %c0_139 = arith.constant 0 : index
    %213 = vector.load %arg17[%c1_138, %c0_139] : memref<2x128xf32, #tpu.memory_space<vmem>>, vector<1x128xf32>
    tpu.vector_store %arg17[%c1_138, %c0_139], %212 {strides = array<i32>} : memref<2x128xf32, #tpu.memory_space<vmem>>, vector<1x128xf32>,
    %c0_140 = arith.constant 0 : index
    %c0_141 = arith.constant 0 : index
    %214 = vector.load %arg16[%c0_140, %c0_141] : memref<2x64xf32, #tpu.memory_space<vmem>>, vector<2x64xf32>
    %c0_142 = arith.constant 0 : index
    %c0_143 = arith.constant 0 : index
    %215 = vector.load %arg17[%c0_142, %c0_143] : memref<2x128xf32, #tpu.memory_space<vmem>>, vector<2x128xf32>
    %c0_144 = arith.constant 0 : index
    %c0_145 = arith.constant 0 : index
    %216 = vector.load %arg8[%c0_144, %c0_145] : memref<64x128xf32, #tpu.memory_space<vmem>>, vector<64x128xf32>
    %cst_146 = arith.constant dense<0.000000e+00> : vector<2x128xf32>
    %217 = tpu.matmul %167, %216, %cst_146 {dimension_numbers = #tpu.dot_dimension_numbers<[1], [0], [0], [1], [0, 0, 1, 1], [], []>} : vector<2x64xf32>, vector<64x128xf32>, vector<2x128xf32> -> vector<2x128xf32>
    %c0_147 = arith.constant 0 : index
    %c0_148 = arith.constant 0 : index
    %218 = vector.load %arg9[%c0_147, %c0_148] : memref<64x128xf32, #tpu.memory_space<vmem>>, vector<64x128xf32>
    %cst_149 = arith.constant dense<0.000000e+00> : vector<2x128xf32>
    %219 = tpu.matmul %214, %218, %cst_149 {dimension_numbers = #tpu.dot_dimension_numbers<[1], [0], [0], [1], [0, 0, 1, 1], [], []>} : vector<2x64xf32>, vector<64x128xf32>, vector<2x128xf32> -> vector<2x128xf32>
    %220 = arith.addf %217, %219 : vector<2x128xf32>
    %c0_150 = arith.constant 0 : index
    %c0_151 = arith.constant 0 : index
    %221 = vector.load %arg10[%c0_150, %c0_151] : memref<1x128xf32, #tpu.memory_space<vmem>>, vector<1x128xf32>
    %222 = vector.broadcast %221 : vector<1x128xf32> to vector<2x128xf32>
    %223 = arith.addf %220, %222 : vector<2x128xf32>
    %cst_152 = arith.constant dense<0xFF800000> : vector<2xf32>
    %224 = vector.multi_reduction <maximumf>, %223, %cst_152 [1] : vector<2x128xf32> to vector<2xf32>
    %225 = vector.shape_cast %224 : vector<2xf32> to vector<2x1xf32>
    %226 = vector.broadcast %225 : vector<2x1xf32> to vector<2x128xf32>
    %227 = arith.subf %223, %226 : vector<2x128xf32>
    %228 = math.exp %227 : vector<2x128xf32>
    %cst_153 = arith.constant dense<0.000000e+00> : vector<2xf32>
    %229 = vector.multi_reduction <add>, %228, %cst_153 [1] : vector<2x128xf32> to vector<2xf32>
    %230 = vector.shape_cast %229 : vector<2xf32> to vector<2x1xf32>
    %231 = tpu.reciprocal %230 {approx = true} : vector<2x1xf32> -> vector<2x1xf32>
    %232 = vector.broadcast %231 : vector<2x1xf32> to vector<2x128xf32>
    %233 = arith.mulf %228, %232 : vector<2x128xf32>
    %c0_154 = arith.constant 0 : index
    %c0_155 = arith.constant 0 : index
    %234 = vector.load %arg11[%c0_154, %c0_155] : memref<64x1xf32, #tpu.memory_space<vmem>>, vector<64x1xf32>
    %cst_156 = arith.constant dense<0.000000e+00> : vector<2x1xf32>
    %235 = tpu.matmul %214, %234, %cst_156 {dimension_numbers = #tpu.dot_dimension_numbers<[1], [0], [0], [1], [0, 0, 1, 1], [], []>} : vector<2x64xf32>, vector<64x1xf32>, vector<2x1xf32> -> vector<2x1xf32>
    %c0_157 = arith.constant 0 : index
    %c0_158 = arith.constant 0 : index
    %236 = vector.load %arg12[%c0_157, %c0_158] : memref<64x1xf32, #tpu.memory_space<vmem>>, vector<64x1xf32>
    %cst_159 = arith.constant dense<0.000000e+00> : vector<2x1xf32>
    %237 = tpu.matmul %167, %236, %cst_159 {dimension_numbers = #tpu.dot_dimension_numbers<[1], [0], [0], [1], [0, 0, 1, 1], [], []>} : vector<2x64xf32>, vector<64x1xf32>, vector<2x1xf32> -> vector<2x1xf32>
    %238 = arith.addf %235, %237 : vector<2x1xf32>
    %239 = arith.index_cast %134 : i32 to index
    %c0_160 = arith.constant 0 : index
    %c0_161 = arith.constant 0 : index
    %240 = vector.load %arg4[%239, %c0_160, %c0_161] : memref<8x2x1xf32, #tpu.memory_space<vmem>>, vector<1x2x1xf32>
    %241 = vector.shape_cast %240 : vector<1x2x1xf32> to vector<2x1xf32>
    %242 = arith.addf %238, %241 : vector<2x1xf32>
    %243 = arith.negf %242 : vector<2x1xf32>
    %244 = math.exp %243 : vector<2x1xf32>
    %cst_162 = arith.constant 1.000000e+00 : f32
    %245 = vector.broadcast %cst_162 : f32 to vector<2x1xf32>
    %246 = arith.addf %245, %244 : vector<2x1xf32>
    %247 = arith.divf %245, %246 : vector<2x1xf32>
    %248 = vector.broadcast %247 : vector<2x1xf32> to vector<2x128xf32>
    %249 = arith.mulf %248, %233 : vector<2x128xf32>
    %cst_163 = arith.constant 1.000000e+00 : f32
    %250 = vector.broadcast %cst_163 : f32 to vector<2x1xf32>
    %251 = arith.subf %250, %247 : vector<2x1xf32>
    %252 = vector.broadcast %251 : vector<2x1xf32> to vector<2x128xf32>
    %253 = arith.mulf %252, %215 : vector<2x128xf32>
    %254 = arith.addf %249, %253 : vector<2x128xf32>
    %cst_164 = arith.constant 1.000000e-10 : f32
    %255 = vector.broadcast %cst_164 : f32 to vector<2x128xf32>
    %256 = arith.addf %254, %255 : vector<2x128xf32>
    %257 = math.log %256 : vector<2x128xf32>
    %258 = arith.index_cast %134 : i32 to index
    %c0_165 = arith.constant 0 : index
    %c0_166 = arith.constant 0 : index
    %259 = vector.load %arg13[%258, %c0_165, %c0_166] : memref<8x2x128xf32, #tpu.memory_space<vmem>>, vector<1x2x128xf32>
    %260 = vector.shape_cast %259 : vector<1x2x128xf32> to vector<2x128xf32>
    %261 = vector.shape_cast %257 : vector<2x128xf32> to vector<1x2x128xf32>
    tpu.vector_store %arg13[%258, %c0_165, %c0_166], %261 {strides = array<i32>} : memref<8x2x128xf32, #tpu.memory_space<vmem>>, vector<1x2x128xf32>,
    %c2_i32 = arith.constant 2 : i32
    %c1_i32_167 = arith.constant 1 : i32
    %262 = arith.muli %c2_i32, %c1_i32_167 : i32
    %c0_i32_168 = arith.constant 0 : i32
    %263 = arith.addi %c0_i32_168, %262 : i32
    %264 = arith.index_cast %263 : i32 to index
    %c0_169 = arith.constant 0 : index
    %c0_170 = arith.constant 0 : index
    %265 = vector.load %arg3[%264, %c0_169, %c0_170] : memref<8x2x256xf32, #tpu.memory_space<vmem>>, vector<1x2x256xf32>
    %266 = vector.shape_cast %265 : vector<1x2x256xf32> to vector<2x256xf32>
    %c0_171 = arith.constant 0 : index
    %c0_172 = arith.constant 0 : index
    %267 = vector.load %arg14[%c0_171, %c0_172] : memref<2x64xf32, #tpu.memory_space<vmem>>, vector<2x64xf32>
    %c0_173 = arith.constant 0 : index
    %c0_174 = arith.constant 0 : index
    %268 = vector.load %arg7[%c0_173, %c0_174] : memref<64x256xf32, #tpu.memory_space<vmem>>, vector<64x256xf32>
    %cst_175 = arith.constant dense<0.000000e+00> : vector<2x256xf32>
    %269 = tpu.matmul %267, %268, %cst_175 {dimension_numbers = #tpu.dot_dimension_numbers<[1], [0], [0], [1], [0, 0, 1, 1], [], []>} : vector<2x64xf32>, vector<64x256xf32>, vector<2x256xf32> -> vector<2x256xf32>
    %270 = arith.addf %266, %269 : vector<2x256xf32>
    %271 = vector.extract_strided_slice %270 {offsets = [0, 0], sizes = [2, 64], strides = [1, 1]} : vector<2x256xf32> to vector<2x64xf32>
    %272 = arith.negf %271 : vector<2x64xf32>
    %273 = math.exp %272 : vector<2x64xf32>
    %cst_176 = arith.constant 1.000000e+00 : f32
    %274 = vector.broadcast %cst_176 : f32 to vector<2x64xf32>
    %275 = arith.addf %274, %273 : vector<2x64xf32>
    %276 = arith.divf %274, %275 : vector<2x64xf32>
    %277 = vector.extract_strided_slice %270 {offsets = [0, 64], sizes = [2, 64], strides = [1, 1]} : vector<2x256xf32> to vector<2x64xf32>
    %278 = arith.negf %277 : vector<2x64xf32>
    %279 = math.exp %278 : vector<2x64xf32>
    %cst_177 = arith.constant 1.000000e+00 : f32
    %280 = vector.broadcast %cst_177 : f32 to vector<2x64xf32>
    %281 = arith.addf %280, %279 : vector<2x64xf32>
    %282 = arith.divf %280, %281 : vector<2x64xf32>
    %283 = vector.extract_strided_slice %270 {offsets = [0, 128], sizes = [2, 64], strides = [1, 1]} : vector<2x256xf32> to vector<2x64xf32>
    %284 = math.tanh %283 : vector<2x64xf32>
    %285 = vector.extract_strided_slice %270 {offsets = [0, 192], sizes = [2, 64], strides = [1, 1]} : vector<2x256xf32> to vector<2x64xf32>
    %286 = arith.negf %285 : vector<2x64xf32>
    %287 = math.exp %286 : vector<2x64xf32>
    %cst_178 = arith.constant 1.000000e+00 : f32
    %288 = vector.broadcast %cst_178 : f32 to vector<2x64xf32>
    %289 = arith.addf %288, %287 : vector<2x64xf32>
    %290 = arith.divf %288, %289 : vector<2x64xf32>
    %c0_179 = arith.constant 0 : index
    %c0_180 = arith.constant 0 : index
    %291 = vector.load %arg15[%c0_179, %c0_180] : memref<2x64xf32, #tpu.memory_space<vmem>>, vector<2x64xf32>
    %292 = arith.mulf %282, %291 : vector<2x64xf32>
    %293 = arith.mulf %276, %284 : vector<2x64xf32>
    %294 = arith.addf %292, %293 : vector<2x64xf32>
    %295 = math.tanh %294 : vector<2x64xf32>
    %296 = arith.mulf %290, %295 : vector<2x64xf32>
    %c0_181 = arith.constant 0 : index
    %c0_182 = arith.constant 0 : index
    %297 = vector.load %arg14[%c0_181, %c0_182] : memref<2x64xf32, #tpu.memory_space<vmem>>, vector<2x64xf32>
    tpu.vector_store %arg14[%c0_181, %c0_182], %296 {strides = array<i32>} : memref<2x64xf32, #tpu.memory_space<vmem>>, vector<2x64xf32>,
    %c0_183 = arith.constant 0 : index
    %c0_184 = arith.constant 0 : index
    %298 = vector.load %arg15[%c0_183, %c0_184] : memref<2x64xf32, #tpu.memory_space<vmem>>, vector<2x64xf32>
    tpu.vector_store %arg15[%c0_183, %c0_184], %294 {strides = array<i32>} : memref<2x64xf32, #tpu.memory_space<vmem>>, vector<2x64xf32>,
    %299 = vector.extract_strided_slice %296 {offsets = [0, 0], sizes = [1, 64], strides = [1, 1]} : vector<2x64xf32> to vector<1x64xf32>
    %c0_185 = arith.constant 0 : index
    %c0_186 = arith.constant 0 : index
    %c0_187 = arith.constant 0 : index
    %300 = vector.load %arg1[%c0_185, %c0_186, %c0_187] : memref<2x64x8xf32, #tpu.memory_space<vmem>>, vector<1x64x8xf32>
    %301 = vector.shape_cast %300 : vector<1x64x8xf32> to vector<64x8xf32>
    %cst_188 = arith.constant dense<0.000000e+00> : vector<1x8xf32>
    %302 = tpu.matmul %299, %301, %cst_188 {dimension_numbers = #tpu.dot_dimension_numbers<[1], [0], [0], [1], [0, 0, 1, 1], [], []>} : vector<1x64xf32>, vector<64x8xf32>, vector<1x8xf32> -> vector<1x8xf32>
    %cst_189 = arith.constant dense<0xFF800000> : vector<1xf32>
    %303 = vector.multi_reduction <maximumf>, %302, %cst_189 [1] : vector<1x8xf32> to vector<1xf32>
    %304 = vector.shape_cast %303 : vector<1xf32> to vector<1x1xf32>
    %305 = vector.broadcast %304 : vector<1x1xf32> to vector<1x8xf32>
    %306 = arith.subf %302, %305 : vector<1x8xf32>
    %307 = math.exp %306 : vector<1x8xf32>
    %cst_190 = arith.constant dense<0.000000e+00> : vector<1xf32>
    %308 = vector.multi_reduction <add>, %307, %cst_190 [1] : vector<1x8xf32> to vector<1xf32>
    %309 = vector.shape_cast %308 : vector<1xf32> to vector<1x1xf32>
    %310 = tpu.reciprocal %309 {approx = true} : vector<1x1xf32> -> vector<1x1xf32>
    %311 = vector.broadcast %310 : vector<1x1xf32> to vector<1x8xf32>
    %312 = arith.mulf %307, %311 : vector<1x8xf32>
    %c0_191 = arith.constant 0 : index
    %c0_192 = arith.constant 0 : index
    %c0_193 = arith.constant 0 : index
    %313 = vector.load %arg0[%c0_191, %c0_192, %c0_193] : memref<2x8x64xf32, #tpu.memory_space<vmem>>, vector<1x8x64xf32>
    %314 = vector.shape_cast %313 : vector<1x8x64xf32> to vector<8x64xf32>
    %cst_194 = arith.constant dense<0.000000e+00> : vector<1x64xf32>
    %315 = tpu.matmul %312, %314, %cst_194 {dimension_numbers = #tpu.dot_dimension_numbers<[1], [0], [0], [1], [0, 0, 1, 1], [], []>} : vector<1x8xf32>, vector<8x64xf32>, vector<1x64xf32> -> vector<1x64xf32>
    %c0_195 = arith.constant 0 : index
    %c0_196 = arith.constant 0 : index
    %316 = vector.load %arg16[%c0_195, %c0_196] : memref<2x64xf32, #tpu.memory_space<vmem>>, vector<1x64xf32>
    tpu.vector_store %arg16[%c0_195, %c0_196], %315 {strides = array<i32>} : memref<2x64xf32, #tpu.memory_space<vmem>>, vector<1x64xf32>,
    %c0_197 = arith.constant 0 : index
    %c0_198 = arith.constant 0 : index
    %c0_199 = arith.constant 0 : index
    %317 = vector.load %arg2[%c0_197, %c0_198, %c0_199] : memref<2x8x128xf32, #tpu.memory_space<vmem>>, vector<1x8x128xf32>
    %318 = vector.shape_cast %317 : vector<1x8x128xf32> to vector<8x128xf32>
    %cst_200 = arith.constant dense<0.000000e+00> : vector<1x128xf32>
    %319 = tpu.matmul %312, %318, %cst_200 {dimension_numbers = #tpu.dot_dimension_numbers<[1], [0], [0], [1], [0, 0, 1, 1], [], []>} : vector<1x8xf32>, vector<8x128xf32>, vector<1x128xf32> -> vector<1x128xf32>
    %c0_201 = arith.constant 0 : index
    %c0_202 = arith.constant 0 : index
    %320 = vector.load %arg17[%c0_201, %c0_202] : memref<2x128xf32, #tpu.memory_space<vmem>>, vector<1x128xf32>
    tpu.vector_store %arg17[%c0_201, %c0_202], %319 {strides = array<i32>} : memref<2x128xf32, #tpu.memory_space<vmem>>, vector<1x128xf32>,
    %321 = vector.extract_strided_slice %296 {offsets = [1, 0], sizes = [1, 64], strides = [1, 1]} : vector<2x64xf32> to vector<1x64xf32>
    %c1_203 = arith.constant 1 : index
    %c0_204 = arith.constant 0 : index
    %c0_205 = arith.constant 0 : index
    %322 = vector.load %arg1[%c1_203, %c0_204, %c0_205] : memref<2x64x8xf32, #tpu.memory_space<vmem>>, vector<1x64x8xf32>
    %323 = vector.shape_cast %322 : vector<1x64x8xf32> to vector<64x8xf32>
    %cst_206 = arith.constant dense<0.000000e+00> : vector<1x8xf32>
    %324 = tpu.matmul %321, %323, %cst_206 {dimension_numbers = #tpu.dot_dimension_numbers<[1], [0], [0], [1], [0, 0, 1, 1], [], []>} : vector<1x64xf32>, vector<64x8xf32>, vector<1x8xf32> -> vector<1x8xf32>
    %cst_207 = arith.constant dense<0xFF800000> : vector<1xf32>
    %325 = vector.multi_reduction <maximumf>, %324, %cst_207 [1] : vector<1x8xf32> to vector<1xf32>
    %326 = vector.shape_cast %325 : vector<1xf32> to vector<1x1xf32>
    %327 = vector.broadcast %326 : vector<1x1xf32> to vector<1x8xf32>
    %328 = arith.subf %324, %327 : vector<1x8xf32>
    %329 = math.exp %328 : vector<1x8xf32>
    %cst_208 = arith.constant dense<0.000000e+00> : vector<1xf32>
    %330 = vector.multi_reduction <add>, %329, %cst_208 [1] : vector<1x8xf32> to vector<1xf32>
    %331 = vector.shape_cast %330 : vector<1xf32> to vector<1x1xf32>
    %332 = tpu.reciprocal %331 {approx = true} : vector<1x1xf32> -> vector<1x1xf32>
    %333 = vector.broadcast %332 : vector<1x1xf32> to vector<1x8xf32>
    %334 = arith.mulf %329, %333 : vector<1x8xf32>
    %c1_209 = arith.constant 1 : index
    %c0_210 = arith.constant 0 : index
    %c0_211 = arith.constant 0 : index
    %335 = vector.load %arg0[%c1_209, %c0_210, %c0_211] : memref<2x8x64xf32, #tpu.memory_space<vmem>>, vector<1x8x64xf32>
    %336 = vector.shape_cast %335 : vector<1x8x64xf32> to vector<8x64xf32>
    %cst_212 = arith.constant dense<0.000000e+00> : vector<1x64xf32>
    %337 = tpu.matmul %334, %336, %cst_212 {dimension_numbers = #tpu.dot_dimension_numbers<[1], [0], [0], [1], [0, 0, 1, 1], [], []>} : vector<1x8xf32>, vector<8x64xf32>, vector<1x64xf32> -> vector<1x64xf32>
    %c1_213 = arith.constant 1 : index
    %c0_214 = arith.constant 0 : index
    %338 = vector.load %arg16[%c1_213, %c0_214] : memref<2x64xf32, #tpu.memory_space<vmem>>, vector<1x64xf32>
    tpu.vector_store %arg16[%c1_213, %c0_214], %337 {strides = array<i32>} : memref<2x64xf32, #tpu.memory_space<vmem>>, vector<1x64xf32>,
    %c1_215 = arith.constant 1 : index
    %c0_216 = arith.constant 0 : index
    %c0_217 = arith.constant 0 : index
    %339 = vector.load %arg2[%c1_215, %c0_216, %c0_217] : memref<2x8x128xf32, #tpu.memory_space<vmem>>, vector<1x8x128xf32>
    %340 = vector.shape_cast %339 : vector<1x8x128xf32> to vector<8x128xf32>
    %cst_218 = arith.constant dense<0.000000e+00> : vector<1x128xf32>
    %341 = tpu.matmul %334, %340, %cst_218 {dimension_numbers = #tpu.dot_dimension_numbers<[1], [0], [0], [1], [0, 0, 1, 1], [], []>} : vector<1x8xf32>, vector<8x128xf32>, vector<1x128xf32> -> vector<1x128xf32>
    %c1_219 = arith.constant 1 : index
    %c0_220 = arith.constant 0 : index
    %342 = vector.load %arg17[%c1_219, %c0_220] : memref<2x128xf32, #tpu.memory_space<vmem>>, vector<1x128xf32>
    tpu.vector_store %arg17[%c1_219, %c0_220], %341 {strides = array<i32>} : memref<2x128xf32, #tpu.memory_space<vmem>>, vector<1x128xf32>,
    %c0_221 = arith.constant 0 : index
    %c0_222 = arith.constant 0 : index
    %343 = vector.load %arg16[%c0_221, %c0_222] : memref<2x64xf32, #tpu.memory_space<vmem>>, vector<2x64xf32>
    %c0_223 = arith.constant 0 : index
    %c0_224 = arith.constant 0 : index
    %344 = vector.load %arg17[%c0_223, %c0_224] : memref<2x128xf32, #tpu.memory_space<vmem>>, vector<2x128xf32>
    %c0_225 = arith.constant 0 : index
    %c0_226 = arith.constant 0 : index
    %345 = vector.load %arg8[%c0_225, %c0_226] : memref<64x128xf32, #tpu.memory_space<vmem>>, vector<64x128xf32>
    %cst_227 = arith.constant dense<0.000000e+00> : vector<2x128xf32>
    %346 = tpu.matmul %296, %345, %cst_227 {dimension_numbers = #tpu.dot_dimension_numbers<[1], [0], [0], [1], [0, 0, 1, 1], [], []>} : vector<2x64xf32>, vector<64x128xf32>, vector<2x128xf32> -> vector<2x128xf32>
    %c0_228 = arith.constant 0 : index
    %c0_229 = arith.constant 0 : index
    %347 = vector.load %arg9[%c0_228, %c0_229] : memref<64x128xf32, #tpu.memory_space<vmem>>, vector<64x128xf32>
    %cst_230 = arith.constant dense<0.000000e+00> : vector<2x128xf32>
    %348 = tpu.matmul %343, %347, %cst_230 {dimension_numbers = #tpu.dot_dimension_numbers<[1], [0], [0], [1], [0, 0, 1, 1], [], []>} : vector<2x64xf32>, vector<64x128xf32>, vector<2x128xf32> -> vector<2x128xf32>
    %349 = arith.addf %346, %348 : vector<2x128xf32>
    %c0_231 = arith.constant 0 : index
    %c0_232 = arith.constant 0 : index
    %350 = vector.load %arg10[%c0_231, %c0_232] : memref<1x128xf32, #tpu.memory_space<vmem>>, vector<1x128xf32>
    %351 = vector.broadcast %350 : vector<1x128xf32> to vector<2x128xf32>
    %352 = arith.addf %349, %351 : vector<2x128xf32>
    %cst_233 = arith.constant dense<0xFF800000> : vector<2xf32>
    %353 = vector.multi_reduction <maximumf>, %352, %cst_233 [1] : vector<2x128xf32> to vector<2xf32>
    %354 = vector.shape_cast %353 : vector<2xf32> to vector<2x1xf32>
    %355 = vector.broadcast %354 : vector<2x1xf32> to vector<2x128xf32>
    %356 = arith.subf %352, %355 : vector<2x128xf32>
    %357 = math.exp %356 : vector<2x128xf32>
    %cst_234 = arith.constant dense<0.000000e+00> : vector<2xf32>
    %358 = vector.multi_reduction <add>, %357, %cst_234 [1] : vector<2x128xf32> to vector<2xf32>
    %359 = vector.shape_cast %358 : vector<2xf32> to vector<2x1xf32>
    %360 = tpu.reciprocal %359 {approx = true} : vector<2x1xf32> -> vector<2x1xf32>
    %361 = vector.broadcast %360 : vector<2x1xf32> to vector<2x128xf32>
    %362 = arith.mulf %357, %361 : vector<2x128xf32>
    %c0_235 = arith.constant 0 : index
    %c0_236 = arith.constant 0 : index
    %363 = vector.load %arg11[%c0_235, %c0_236] : memref<64x1xf32, #tpu.memory_space<vmem>>, vector<64x1xf32>
    %cst_237 = arith.constant dense<0.000000e+00> : vector<2x1xf32>
    %364 = tpu.matmul %343, %363, %cst_237 {dimension_numbers = #tpu.dot_dimension_numbers<[1], [0], [0], [1], [0, 0, 1, 1], [], []>} : vector<2x64xf32>, vector<64x1xf32>, vector<2x1xf32> -> vector<2x1xf32>
    %c0_238 = arith.constant 0 : index
    %c0_239 = arith.constant 0 : index
    %365 = vector.load %arg12[%c0_238, %c0_239] : memref<64x1xf32, #tpu.memory_space<vmem>>, vector<64x1xf32>
    %cst_240 = arith.constant dense<0.000000e+00> : vector<2x1xf32>
    %366 = tpu.matmul %296, %365, %cst_240 {dimension_numbers = #tpu.dot_dimension_numbers<[1], [0], [0], [1], [0, 0, 1, 1], [], []>} : vector<2x64xf32>, vector<64x1xf32>, vector<2x1xf32> -> vector<2x1xf32>
    %367 = arith.addf %364, %366 : vector<2x1xf32>
    %368 = arith.index_cast %263 : i32 to index
    %c0_241 = arith.constant 0 : index
    %c0_242 = arith.constant 0 : index
    %369 = vector.load %arg4[%368, %c0_241, %c0_242] : memref<8x2x1xf32, #tpu.memory_space<vmem>>, vector<1x2x1xf32>
    %370 = vector.shape_cast %369 : vector<1x2x1xf32> to vector<2x1xf32>
    %371 = arith.addf %367, %370 : vector<2x1xf32>
    %372 = arith.negf %371 : vector<2x1xf32>
    %373 = math.exp %372 : vector<2x1xf32>
    %cst_243 = arith.constant 1.000000e+00 : f32
    %374 = vector.broadcast %cst_243 : f32 to vector<2x1xf32>
    %375 = arith.addf %374, %373 : vector<2x1xf32>
    %376 = arith.divf %374, %375 : vector<2x1xf32>
    %377 = vector.broadcast %376 : vector<2x1xf32> to vector<2x128xf32>
    %378 = arith.mulf %377, %362 : vector<2x128xf32>
    %cst_244 = arith.constant 1.000000e+00 : f32
    %379 = vector.broadcast %cst_244 : f32 to vector<2x1xf32>
    %380 = arith.subf %379, %376 : vector<2x1xf32>
    %381 = vector.broadcast %380 : vector<2x1xf32> to vector<2x128xf32>
    %382 = arith.mulf %381, %344 : vector<2x128xf32>
    %383 = arith.addf %378, %382 : vector<2x128xf32>
    %cst_245 = arith.constant 1.000000e-10 : f32
    %384 = vector.broadcast %cst_245 : f32 to vector<2x128xf32>
    %385 = arith.addf %383, %384 : vector<2x128xf32>
    %386 = math.log %385 : vector<2x128xf32>
    %387 = arith.index_cast %263 : i32 to index
    %c0_246 = arith.constant 0 : index
    %c0_247 = arith.constant 0 : index
    %388 = vector.load %arg13[%387, %c0_246, %c0_247] : memref<8x2x128xf32, #tpu.memory_space<vmem>>, vector<1x2x128xf32>
    %389 = vector.shape_cast %388 : vector<1x2x128xf32> to vector<2x128xf32>
    %390 = vector.shape_cast %386 : vector<2x128xf32> to vector<1x2x128xf32>
    tpu.vector_store %arg13[%387, %c0_246, %c0_247], %390 {strides = array<i32>} : memref<8x2x128xf32, #tpu.memory_space<vmem>>, vector<1x2x128xf32>,
    %c3_i32 = arith.constant 3 : i32
    %c1_i32_248 = arith.constant 1 : i32
    %391 = arith.muli %c3_i32, %c1_i32_248 : i32
    %c0_i32_249 = arith.constant 0 : i32
    %392 = arith.addi %c0_i32_249, %391 : i32
    %393 = arith.index_cast %392 : i32 to index
    %c0_250 = arith.constant 0 : index
    %c0_251 = arith.constant 0 : index
    %394 = vector.load %arg3[%393, %c0_250, %c0_251] : memref<8x2x256xf32, #tpu.memory_space<vmem>>, vector<1x2x256xf32>
    %395 = vector.shape_cast %394 : vector<1x2x256xf32> to vector<2x256xf32>
    %c0_252 = arith.constant 0 : index
    %c0_253 = arith.constant 0 : index
    %396 = vector.load %arg14[%c0_252, %c0_253] : memref<2x64xf32, #tpu.memory_space<vmem>>, vector<2x64xf32>
    %c0_254 = arith.constant 0 : index
    %c0_255 = arith.constant 0 : index
    %397 = vector.load %arg7[%c0_254, %c0_255] : memref<64x256xf32, #tpu.memory_space<vmem>>, vector<64x256xf32>
    %cst_256 = arith.constant dense<0.000000e+00> : vector<2x256xf32>
    %398 = tpu.matmul %396, %397, %cst_256 {dimension_numbers = #tpu.dot_dimension_numbers<[1], [0], [0], [1], [0, 0, 1, 1], [], []>} : vector<2x64xf32>, vector<64x256xf32>, vector<2x256xf32> -> vector<2x256xf32>
    %399 = arith.addf %395, %398 : vector<2x256xf32>
    %400 = vector.extract_strided_slice %399 {offsets = [0, 0], sizes = [2, 64], strides = [1, 1]} : vector<2x256xf32> to vector<2x64xf32>
    %401 = arith.negf %400 : vector<2x64xf32>
    %402 = math.exp %401 : vector<2x64xf32>
    %cst_257 = arith.constant 1.000000e+00 : f32
    %403 = vector.broadcast %cst_257 : f32 to vector<2x64xf32>
    %404 = arith.addf %403, %402 : vector<2x64xf32>
    %405 = arith.divf %403, %404 : vector<2x64xf32>
    %406 = vector.extract_strided_slice %399 {offsets = [0, 64], sizes = [2, 64], strides = [1, 1]} : vector<2x256xf32> to vector<2x64xf32>
    %407 = arith.negf %406 : vector<2x64xf32>
    %408 = math.exp %407 : vector<2x64xf32>
    %cst_258 = arith.constant 1.000000e+00 : f32
    %409 = vector.broadcast %cst_258 : f32 to vector<2x64xf32>
    %410 = arith.addf %409, %408 : vector<2x64xf32>
    %411 = arith.divf %409, %410 : vector<2x64xf32>
    %412 = vector.extract_strided_slice %399 {offsets = [0, 128], sizes = [2, 64], strides = [1, 1]} : vector<2x256xf32> to vector<2x64xf32>
    %413 = math.tanh %412 : vector<2x64xf32>
    %414 = vector.extract_strided_slice %399 {offsets = [0, 192], sizes = [2, 64], strides = [1, 1]} : vector<2x256xf32> to vector<2x64xf32>
    %415 = arith.negf %414 : vector<2x64xf32>
    %416 = math.exp %415 : vector<2x64xf32>
    %cst_259 = arith.constant 1.000000e+00 : f32
    %417 = vector.broadcast %cst_259 : f32 to vector<2x64xf32>
    %418 = arith.addf %417, %416 : vector<2x64xf32>
    %419 = arith.divf %417, %418 : vector<2x64xf32>
    %c0_260 = arith.constant 0 : index
    %c0_261 = arith.constant 0 : index
    %420 = vector.load %arg15[%c0_260, %c0_261] : memref<2x64xf32, #tpu.memory_space<vmem>>, vector<2x64xf32>
    %421 = arith.mulf %411, %420 : vector<2x64xf32>
    %422 = arith.mulf %405, %413 : vector<2x64xf32>
    %423 = arith.addf %421, %422 : vector<2x64xf32>
    %424 = math.tanh %423 : vector<2x64xf32>
    %425 = arith.mulf %419, %424 : vector<2x64xf32>
    %c0_262 = arith.constant 0 : index
    %c0_263 = arith.constant 0 : index
    %426 = vector.load %arg14[%c0_262, %c0_263] : memref<2x64xf32, #tpu.memory_space<vmem>>, vector<2x64xf32>
    tpu.vector_store %arg14[%c0_262, %c0_263], %425 {strides = array<i32>} : memref<2x64xf32, #tpu.memory_space<vmem>>, vector<2x64xf32>,
    %c0_264 = arith.constant 0 : index
    %c0_265 = arith.constant 0 : index
    %427 = vector.load %arg15[%c0_264, %c0_265] : memref<2x64xf32, #tpu.memory_space<vmem>>, vector<2x64xf32>
    tpu.vector_store %arg15[%c0_264, %c0_265], %423 {strides = array<i32>} : memref<2x64xf32, #tpu.memory_space<vmem>>, vector<2x64xf32>,
    %428 = vector.extract_strided_slice %425 {offsets = [0, 0], sizes = [1, 64], strides = [1, 1]} : vector<2x64xf32> to vector<1x64xf32>
    %c0_266 = arith.constant 0 : index
    %c0_267 = arith.constant 0 : index
    %c0_268 = arith.constant 0 : index
    %429 = vector.load %arg1[%c0_266, %c0_267, %c0_268] : memref<2x64x8xf32, #tpu.memory_space<vmem>>, vector<1x64x8xf32>
    %430 = vector.shape_cast %429 : vector<1x64x8xf32> to vector<64x8xf32>
    %cst_269 = arith.constant dense<0.000000e+00> : vector<1x8xf32>
    %431 = tpu.matmul %428, %430, %cst_269 {dimension_numbers = #tpu.dot_dimension_numbers<[1], [0], [0], [1], [0, 0, 1, 1], [], []>} : vector<1x64xf32>, vector<64x8xf32>, vector<1x8xf32> -> vector<1x8xf32>
    %cst_270 = arith.constant dense<0xFF800000> : vector<1xf32>
    %432 = vector.multi_reduction <maximumf>, %431, %cst_270 [1] : vector<1x8xf32> to vector<1xf32>
    %433 = vector.shape_cast %432 : vector<1xf32> to vector<1x1xf32>
    %434 = vector.broadcast %433 : vector<1x1xf32> to vector<1x8xf32>
    %435 = arith.subf %431, %434 : vector<1x8xf32>
    %436 = math.exp %435 : vector<1x8xf32>
    %cst_271 = arith.constant dense<0.000000e+00> : vector<1xf32>
    %437 = vector.multi_reduction <add>, %436, %cst_271 [1] : vector<1x8xf32> to vector<1xf32>
    %438 = vector.shape_cast %437 : vector<1xf32> to vector<1x1xf32>
    %439 = tpu.reciprocal %438 {approx = true} : vector<1x1xf32> -> vector<1x1xf32>
    %440 = vector.broadcast %439 : vector<1x1xf32> to vector<1x8xf32>
    %441 = arith.mulf %436, %440 : vector<1x8xf32>
    %c0_272 = arith.constant 0 : index
    %c0_273 = arith.constant 0 : index
    %c0_274 = arith.constant 0 : index
    %442 = vector.load %arg0[%c0_272, %c0_273, %c0_274] : memref<2x8x64xf32, #tpu.memory_space<vmem>>, vector<1x8x64xf32>
    %443 = vector.shape_cast %442 : vector<1x8x64xf32> to vector<8x64xf32>
    %cst_275 = arith.constant dense<0.000000e+00> : vector<1x64xf32>
    %444 = tpu.matmul %441, %443, %cst_275 {dimension_numbers = #tpu.dot_dimension_numbers<[1], [0], [0], [1], [0, 0, 1, 1], [], []>} : vector<1x8xf32>, vector<8x64xf32>, vector<1x64xf32> -> vector<1x64xf32>
    %c0_276 = arith.constant 0 : index
    %c0_277 = arith.constant 0 : index
    %445 = vector.load %arg16[%c0_276, %c0_277] : memref<2x64xf32, #tpu.memory_space<vmem>>, vector<1x64xf32>
    tpu.vector_store %arg16[%c0_276, %c0_277], %444 {strides = array<i32>} : memref<2x64xf32, #tpu.memory_space<vmem>>, vector<1x64xf32>,
    %c0_278 = arith.constant 0 : index
    %c0_279 = arith.constant 0 : index
    %c0_280 = arith.constant 0 : index
    %446 = vector.load %arg2[%c0_278, %c0_279, %c0_280] : memref<2x8x128xf32, #tpu.memory_space<vmem>>, vector<1x8x128xf32>
    %447 = vector.shape_cast %446 : vector<1x8x128xf32> to vector<8x128xf32>
    %cst_281 = arith.constant dense<0.000000e+00> : vector<1x128xf32>
    %448 = tpu.matmul %441, %447, %cst_281 {dimension_numbers = #tpu.dot_dimension_numbers<[1], [0], [0], [1], [0, 0, 1, 1], [], []>} : vector<1x8xf32>, vector<8x128xf32>, vector<1x128xf32> -> vector<1x128xf32>
    %c0_282 = arith.constant 0 : index
    %c0_283 = arith.constant 0 : index
    %449 = vector.load %arg17[%c0_282, %c0_283] : memref<2x128xf32, #tpu.memory_space<vmem>>, vector<1x128xf32>
    tpu.vector_store %arg17[%c0_282, %c0_283], %448 {strides = array<i32>} : memref<2x128xf32, #tpu.memory_space<vmem>>, vector<1x128xf32>,
    %450 = vector.extract_strided_slice %425 {offsets = [1, 0], sizes = [1, 64], strides = [1, 1]} : vector<2x64xf32> to vector<1x64xf32>
    %c1_284 = arith.constant 1 : index
    %c0_285 = arith.constant 0 : index
    %c0_286 = arith.constant 0 : index
    %451 = vector.load %arg1[%c1_284, %c0_285, %c0_286] : memref<2x64x8xf32, #tpu.memory_space<vmem>>, vector<1x64x8xf32>
    %452 = vector.shape_cast %451 : vector<1x64x8xf32> to vector<64x8xf32>
    %cst_287 = arith.constant dense<0.000000e+00> : vector<1x8xf32>
    %453 = tpu.matmul %450, %452, %cst_287 {dimension_numbers = #tpu.dot_dimension_numbers<[1], [0], [0], [1], [0, 0, 1, 1], [], []>} : vector<1x64xf32>, vector<64x8xf32>, vector<1x8xf32> -> vector<1x8xf32>
    %cst_288 = arith.constant dense<0xFF800000> : vector<1xf32>
    %454 = vector.multi_reduction <maximumf>, %453, %cst_288 [1] : vector<1x8xf32> to vector<1xf32>
    %455 = vector.shape_cast %454 : vector<1xf32> to vector<1x1xf32>
    %456 = vector.broadcast %455 : vector<1x1xf32> to vector<1x8xf32>
    %457 = arith.subf %453, %456 : vector<1x8xf32>
    %458 = math.exp %457 : vector<1x8xf32>
    %cst_289 = arith.constant dense<0.000000e+00> : vector<1xf32>
    %459 = vector.multi_reduction <add>, %458, %cst_289 [1] : vector<1x8xf32> to vector<1xf32>
    %460 = vector.shape_cast %459 : vector<1xf32> to vector<1x1xf32>
    %461 = tpu.reciprocal %460 {approx = true} : vector<1x1xf32> -> vector<1x1xf32>
    %462 = vector.broadcast %461 : vector<1x1xf32> to vector<1x8xf32>
    %463 = arith.mulf %458, %462 : vector<1x8xf32>
    %c1_290 = arith.constant 1 : index
    %c0_291 = arith.constant 0 : index
    %c0_292 = arith.constant 0 : index
    %464 = vector.load %arg0[%c1_290, %c0_291, %c0_292] : memref<2x8x64xf32, #tpu.memory_space<vmem>>, vector<1x8x64xf32>
    %465 = vector.shape_cast %464 : vector<1x8x64xf32> to vector<8x64xf32>
    %cst_293 = arith.constant dense<0.000000e+00> : vector<1x64xf32>
    %466 = tpu.matmul %463, %465, %cst_293 {dimension_numbers = #tpu.dot_dimension_numbers<[1], [0], [0], [1], [0, 0, 1, 1], [], []>} : vector<1x8xf32>, vector<8x64xf32>, vector<1x64xf32> -> vector<1x64xf32>
    %c1_294 = arith.constant 1 : index
    %c0_295 = arith.constant 0 : index
    %467 = vector.load %arg16[%c1_294, %c0_295] : memref<2x64xf32, #tpu.memory_space<vmem>>, vector<1x64xf32>
    tpu.vector_store %arg16[%c1_294, %c0_295], %466 {strides = array<i32>} : memref<2x64xf32, #tpu.memory_space<vmem>>, vector<1x64xf32>,
    %c1_296 = arith.constant 1 : index
    %c0_297 = arith.constant 0 : index
    %c0_298 = arith.constant 0 : index
    %468 = vector.load %arg2[%c1_296, %c0_297, %c0_298] : memref<2x8x128xf32, #tpu.memory_space<vmem>>, vector<1x8x128xf32>
    %469 = vector.shape_cast %468 : vector<1x8x128xf32> to vector<8x128xf32>
    %cst_299 = arith.constant dense<0.000000e+00> : vector<1x128xf32>
    %470 = tpu.matmul %463, %469, %cst_299 {dimension_numbers = #tpu.dot_dimension_numbers<[1], [0], [0], [1], [0, 0, 1, 1], [], []>} : vector<1x8xf32>, vector<8x128xf32>, vector<1x128xf32> -> vector<1x128xf32>
    %c1_300 = arith.constant 1 : index
    %c0_301 = arith.constant 0 : index
    %471 = vector.load %arg17[%c1_300, %c0_301] : memref<2x128xf32, #tpu.memory_space<vmem>>, vector<1x128xf32>
    tpu.vector_store %arg17[%c1_300, %c0_301], %470 {strides = array<i32>} : memref<2x128xf32, #tpu.memory_space<vmem>>, vector<1x128xf32>,
    %c0_302 = arith.constant 0 : index
    %c0_303 = arith.constant 0 : index
    %472 = vector.load %arg16[%c0_302, %c0_303] : memref<2x64xf32, #tpu.memory_space<vmem>>, vector<2x64xf32>
    %c0_304 = arith.constant 0 : index
    %c0_305 = arith.constant 0 : index
    %473 = vector.load %arg17[%c0_304, %c0_305] : memref<2x128xf32, #tpu.memory_space<vmem>>, vector<2x128xf32>
    %c0_306 = arith.constant 0 : index
    %c0_307 = arith.constant 0 : index
    %474 = vector.load %arg8[%c0_306, %c0_307] : memref<64x128xf32, #tpu.memory_space<vmem>>, vector<64x128xf32>
    %cst_308 = arith.constant dense<0.000000e+00> : vector<2x128xf32>
    %475 = tpu.matmul %425, %474, %cst_308 {dimension_numbers = #tpu.dot_dimension_numbers<[1], [0], [0], [1], [0, 0, 1, 1], [], []>} : vector<2x64xf32>, vector<64x128xf32>, vector<2x128xf32> -> vector<2x128xf32>
    %c0_309 = arith.constant 0 : index
    %c0_310 = arith.constant 0 : index
    %476 = vector.load %arg9[%c0_309, %c0_310] : memref<64x128xf32, #tpu.memory_space<vmem>>, vector<64x128xf32>
    %cst_311 = arith.constant dense<0.000000e+00> : vector<2x128xf32>
    %477 = tpu.matmul %472, %476, %cst_311 {dimension_numbers = #tpu.dot_dimension_numbers<[1], [0], [0], [1], [0, 0, 1, 1], [], []>} : vector<2x64xf32>, vector<64x128xf32>, vector<2x128xf32> -> vector<2x128xf32>
    %478 = arith.addf %475, %477 : vector<2x128xf32>
    %c0_312 = arith.constant 0 : index
    %c0_313 = arith.constant 0 : index
    %479 = vector.load %arg10[%c0_312, %c0_313] : memref<1x128xf32, #tpu.memory_space<vmem>>, vector<1x128xf32>
    %480 = vector.broadcast %479 : vector<1x128xf32> to vector<2x128xf32>
    %481 = arith.addf %478, %480 : vector<2x128xf32>
    %cst_314 = arith.constant dense<0xFF800000> : vector<2xf32>
    %482 = vector.multi_reduction <maximumf>, %481, %cst_314 [1] : vector<2x128xf32> to vector<2xf32>
    %483 = vector.shape_cast %482 : vector<2xf32> to vector<2x1xf32>
    %484 = vector.broadcast %483 : vector<2x1xf32> to vector<2x128xf32>
    %485 = arith.subf %481, %484 : vector<2x128xf32>
    %486 = math.exp %485 : vector<2x128xf32>
    %cst_315 = arith.constant dense<0.000000e+00> : vector<2xf32>
    %487 = vector.multi_reduction <add>, %486, %cst_315 [1] : vector<2x128xf32> to vector<2xf32>
    %488 = vector.shape_cast %487 : vector<2xf32> to vector<2x1xf32>
    %489 = tpu.reciprocal %488 {approx = true} : vector<2x1xf32> -> vector<2x1xf32>
    %490 = vector.broadcast %489 : vector<2x1xf32> to vector<2x128xf32>
    %491 = arith.mulf %486, %490 : vector<2x128xf32>
    %c0_316 = arith.constant 0 : index
    %c0_317 = arith.constant 0 : index
    %492 = vector.load %arg11[%c0_316, %c0_317] : memref<64x1xf32, #tpu.memory_space<vmem>>, vector<64x1xf32>
    %cst_318 = arith.constant dense<0.000000e+00> : vector<2x1xf32>
    %493 = tpu.matmul %472, %492, %cst_318 {dimension_numbers = #tpu.dot_dimension_numbers<[1], [0], [0], [1], [0, 0, 1, 1], [], []>} : vector<2x64xf32>, vector<64x1xf32>, vector<2x1xf32> -> vector<2x1xf32>
    %c0_319 = arith.constant 0 : index
    %c0_320 = arith.constant 0 : index
    %494 = vector.load %arg12[%c0_319, %c0_320] : memref<64x1xf32, #tpu.memory_space<vmem>>, vector<64x1xf32>
    %cst_321 = arith.constant dense<0.000000e+00> : vector<2x1xf32>
    %495 = tpu.matmul %425, %494, %cst_321 {dimension_numbers = #tpu.dot_dimension_numbers<[1], [0], [0], [1], [0, 0, 1, 1], [], []>} : vector<2x64xf32>, vector<64x1xf32>, vector<2x1xf32> -> vector<2x1xf32>
    %496 = arith.addf %493, %495 : vector<2x1xf32>
    %497 = arith.index_cast %392 : i32 to index
    %c0_322 = arith.constant 0 : index
    %c0_323 = arith.constant 0 : index
    %498 = vector.load %arg4[%497, %c0_322, %c0_323] : memref<8x2x1xf32, #tpu.memory_space<vmem>>, vector<1x2x1xf32>
    %499 = vector.shape_cast %498 : vector<1x2x1xf32> to vector<2x1xf32>
    %500 = arith.addf %496, %499 : vector<2x1xf32>
    %501 = arith.negf %500 : vector<2x1xf32>
    %502 = math.exp %501 : vector<2x1xf32>
    %cst_324 = arith.constant 1.000000e+00 : f32
    %503 = vector.broadcast %cst_324 : f32 to vector<2x1xf32>
    %504 = arith.addf %503, %502 : vector<2x1xf32>
    %505 = arith.divf %503, %504 : vector<2x1xf32>
    %506 = vector.broadcast %505 : vector<2x1xf32> to vector<2x128xf32>
    %507 = arith.mulf %506, %491 : vector<2x128xf32>
    %cst_325 = arith.constant 1.000000e+00 : f32
    %508 = vector.broadcast %cst_325 : f32 to vector<2x1xf32>
    %509 = arith.subf %508, %505 : vector<2x1xf32>
    %510 = vector.broadcast %509 : vector<2x1xf32> to vector<2x128xf32>
    %511 = arith.mulf %510, %473 : vector<2x128xf32>
    %512 = arith.addf %507, %511 : vector<2x128xf32>
    %cst_326 = arith.constant 1.000000e-10 : f32
    %513 = vector.broadcast %cst_326 : f32 to vector<2x128xf32>
    %514 = arith.addf %512, %513 : vector<2x128xf32>
    %515 = math.log %514 : vector<2x128xf32>
    %516 = arith.index_cast %392 : i32 to index
    %c0_327 = arith.constant 0 : index
    %c0_328 = arith.constant 0 : index
    %517 = vector.load %arg13[%516, %c0_327, %c0_328] : memref<8x2x128xf32, #tpu.memory_space<vmem>>, vector<1x2x128xf32>
    %518 = vector.shape_cast %517 : vector<1x2x128xf32> to vector<2x128xf32>
    %519 = vector.shape_cast %515 : vector<2x128xf32> to vector<1x2x128xf32>
    tpu.vector_store %arg13[%516, %c0_327, %c0_328], %519 {strides = array<i32>} : memref<8x2x128xf32, #tpu.memory_space<vmem>>, vector<1x2x128xf32>,
    %c4_i32 = arith.constant 4 : i32
    %c1_i32_329 = arith.constant 1 : i32
    %520 = arith.muli %c4_i32, %c1_i32_329 : i32
    %c0_i32_330 = arith.constant 0 : i32
    %521 = arith.addi %c0_i32_330, %520 : i32
    %522 = arith.index_cast %521 : i32 to index
    %c0_331 = arith.constant 0 : index
    %c0_332 = arith.constant 0 : index
    %523 = vector.load %arg3[%522, %c0_331, %c0_332] : memref<8x2x256xf32, #tpu.memory_space<vmem>>, vector<1x2x256xf32>
    %524 = vector.shape_cast %523 : vector<1x2x256xf32> to vector<2x256xf32>
    %c0_333 = arith.constant 0 : index
    %c0_334 = arith.constant 0 : index
    %525 = vector.load %arg14[%c0_333, %c0_334] : memref<2x64xf32, #tpu.memory_space<vmem>>, vector<2x64xf32>
    %c0_335 = arith.constant 0 : index
    %c0_336 = arith.constant 0 : index
    %526 = vector.load %arg7[%c0_335, %c0_336] : memref<64x256xf32, #tpu.memory_space<vmem>>, vector<64x256xf32>
    %cst_337 = arith.constant dense<0.000000e+00> : vector<2x256xf32>
    %527 = tpu.matmul %525, %526, %cst_337 {dimension_numbers = #tpu.dot_dimension_numbers<[1], [0], [0], [1], [0, 0, 1, 1], [], []>} : vector<2x64xf32>, vector<64x256xf32>, vector<2x256xf32> -> vector<2x256xf32>
    %528 = arith.addf %524, %527 : vector<2x256xf32>
    %529 = vector.extract_strided_slice %528 {offsets = [0, 0], sizes = [2, 64], strides = [1, 1]} : vector<2x256xf32> to vector<2x64xf32>
    %530 = arith.negf %529 : vector<2x64xf32>
    %531 = math.exp %530 : vector<2x64xf32>
    %cst_338 = arith.constant 1.000000e+00 : f32
    %532 = vector.broadcast %cst_338 : f32 to vector<2x64xf32>
    %533 = arith.addf %532, %531 : vector<2x64xf32>
    %534 = arith.divf %532, %533 : vector<2x64xf32>
    %535 = vector.extract_strided_slice %528 {offsets = [0, 64], sizes = [2, 64], strides = [1, 1]} : vector<2x256xf32> to vector<2x64xf32>
    %536 = arith.negf %535 : vector<2x64xf32>
    %537 = math.exp %536 : vector<2x64xf32>
    %cst_339 = arith.constant 1.000000e+00 : f32
    %538 = vector.broadcast %cst_339 : f32 to vector<2x64xf32>
    %539 = arith.addf %538, %537 : vector<2x64xf32>
    %540 = arith.divf %538, %539 : vector<2x64xf32>
    %541 = vector.extract_strided_slice %528 {offsets = [0, 128], sizes = [2, 64], strides = [1, 1]} : vector<2x256xf32> to vector<2x64xf32>
    %542 = math.tanh %541 : vector<2x64xf32>
    %543 = vector.extract_strided_slice %528 {offsets = [0, 192], sizes = [2, 64], strides = [1, 1]} : vector<2x256xf32> to vector<2x64xf32>
    %544 = arith.negf %543 : vector<2x64xf32>
    %545 = math.exp %544 : vector<2x64xf32>
    %cst_340 = arith.constant 1.000000e+00 : f32
    %546 = vector.broadcast %cst_340 : f32 to vector<2x64xf32>
    %547 = arith.addf %546, %545 : vector<2x64xf32>
    %548 = arith.divf %546, %547 : vector<2x64xf32>
    %c0_341 = arith.constant 0 : index
    %c0_342 = arith.constant 0 : index
    %549 = vector.load %arg15[%c0_341, %c0_342] : memref<2x64xf32, #tpu.memory_space<vmem>>, vector<2x64xf32>
    %550 = arith.mulf %540, %549 : vector<2x64xf32>
    %551 = arith.mulf %534, %542 : vector<2x64xf32>
    %552 = arith.addf %550, %551 : vector<2x64xf32>
    %553 = math.tanh %552 : vector<2x64xf32>
    %554 = arith.mulf %548, %553 : vector<2x64xf32>
    %c0_343 = arith.constant 0 : index
    %c0_344 = arith.constant 0 : index
    %555 = vector.load %arg14[%c0_343, %c0_344] : memref<2x64xf32, #tpu.memory_space<vmem>>, vector<2x64xf32>
    tpu.vector_store %arg14[%c0_343, %c0_344], %554 {strides = array<i32>} : memref<2x64xf32, #tpu.memory_space<vmem>>, vector<2x64xf32>,
    %c0_345 = arith.constant 0 : index
    %c0_346 = arith.constant 0 : index
    %556 = vector.load %arg15[%c0_345, %c0_346] : memref<2x64xf32, #tpu.memory_space<vmem>>, vector<2x64xf32>
    tpu.vector_store %arg15[%c0_345, %c0_346], %552 {strides = array<i32>} : memref<2x64xf32, #tpu.memory_space<vmem>>, vector<2x64xf32>,
    %557 = vector.extract_strided_slice %554 {offsets = [0, 0], sizes = [1, 64], strides = [1, 1]} : vector<2x64xf32> to vector<1x64xf32>
    %c0_347 = arith.constant 0 : index
    %c0_348 = arith.constant 0 : index
    %c0_349 = arith.constant 0 : index
    %558 = vector.load %arg1[%c0_347, %c0_348, %c0_349] : memref<2x64x8xf32, #tpu.memory_space<vmem>>, vector<1x64x8xf32>
    %559 = vector.shape_cast %558 : vector<1x64x8xf32> to vector<64x8xf32>
    %cst_350 = arith.constant dense<0.000000e+00> : vector<1x8xf32>
    %560 = tpu.matmul %557, %559, %cst_350 {dimension_numbers = #tpu.dot_dimension_numbers<[1], [0], [0], [1], [0, 0, 1, 1], [], []>} : vector<1x64xf32>, vector<64x8xf32>, vector<1x8xf32> -> vector<1x8xf32>
    %cst_351 = arith.constant dense<0xFF800000> : vector<1xf32>
    %561 = vector.multi_reduction <maximumf>, %560, %cst_351 [1] : vector<1x8xf32> to vector<1xf32>
    %562 = vector.shape_cast %561 : vector<1xf32> to vector<1x1xf32>
    %563 = vector.broadcast %562 : vector<1x1xf32> to vector<1x8xf32>
    %564 = arith.subf %560, %563 : vector<1x8xf32>
    %565 = math.exp %564 : vector<1x8xf32>
    %cst_352 = arith.constant dense<0.000000e+00> : vector<1xf32>
    %566 = vector.multi_reduction <add>, %565, %cst_352 [1] : vector<1x8xf32> to vector<1xf32>
    %567 = vector.shape_cast %566 : vector<1xf32> to vector<1x1xf32>
    %568 = tpu.reciprocal %567 {approx = true} : vector<1x1xf32> -> vector<1x1xf32>
    %569 = vector.broadcast %568 : vector<1x1xf32> to vector<1x8xf32>
    %570 = arith.mulf %565, %569 : vector<1x8xf32>
    %c0_353 = arith.constant 0 : index
    %c0_354 = arith.constant 0 : index
    %c0_355 = arith.constant 0 : index
    %571 = vector.load %arg0[%c0_353, %c0_354, %c0_355] : memref<2x8x64xf32, #tpu.memory_space<vmem>>, vector<1x8x64xf32>
    %572 = vector.shape_cast %571 : vector<1x8x64xf32> to vector<8x64xf32>
    %cst_356 = arith.constant dense<0.000000e+00> : vector<1x64xf32>
    %573 = tpu.matmul %570, %572, %cst_356 {dimension_numbers = #tpu.dot_dimension_numbers<[1], [0], [0], [1], [0, 0, 1, 1], [], []>} : vector<1x8xf32>, vector<8x64xf32>, vector<1x64xf32> -> vector<1x64xf32>
    %c0_357 = arith.constant 0 : index
    %c0_358 = arith.constant 0 : index
    %574 = vector.load %arg16[%c0_357, %c0_358] : memref<2x64xf32, #tpu.memory_space<vmem>>, vector<1x64xf32>
    tpu.vector_store %arg16[%c0_357, %c0_358], %573 {strides = array<i32>} : memref<2x64xf32, #tpu.memory_space<vmem>>, vector<1x64xf32>,
    %c0_359 = arith.constant 0 : index
    %c0_360 = arith.constant 0 : index
    %c0_361 = arith.constant 0 : index
    %575 = vector.load %arg2[%c0_359, %c0_360, %c0_361] : memref<2x8x128xf32, #tpu.memory_space<vmem>>, vector<1x8x128xf32>
    %576 = vector.shape_cast %575 : vector<1x8x128xf32> to vector<8x128xf32>
    %cst_362 = arith.constant dense<0.000000e+00> : vector<1x128xf32>
    %577 = tpu.matmul %570, %576, %cst_362 {dimension_numbers = #tpu.dot_dimension_numbers<[1], [0], [0], [1], [0, 0, 1, 1], [], []>} : vector<1x8xf32>, vector<8x128xf32>, vector<1x128xf32> -> vector<1x128xf32>
    %c0_363 = arith.constant 0 : index
    %c0_364 = arith.constant 0 : index
    %578 = vector.load %arg17[%c0_363, %c0_364] : memref<2x128xf32, #tpu.memory_space<vmem>>, vector<1x128xf32>
    tpu.vector_store %arg17[%c0_363, %c0_364], %577 {strides = array<i32>} : memref<2x128xf32, #tpu.memory_space<vmem>>, vector<1x128xf32>,
    %579 = vector.extract_strided_slice %554 {offsets = [1, 0], sizes = [1, 64], strides = [1, 1]} : vector<2x64xf32> to vector<1x64xf32>
    %c1_365 = arith.constant 1 : index
    %c0_366 = arith.constant 0 : index
    %c0_367 = arith.constant 0 : index
    %580 = vector.load %arg1[%c1_365, %c0_366, %c0_367] : memref<2x64x8xf32, #tpu.memory_space<vmem>>, vector<1x64x8xf32>
    %581 = vector.shape_cast %580 : vector<1x64x8xf32> to vector<64x8xf32>
    %cst_368 = arith.constant dense<0.000000e+00> : vector<1x8xf32>
    %582 = tpu.matmul %579, %581, %cst_368 {dimension_numbers = #tpu.dot_dimension_numbers<[1], [0], [0], [1], [0, 0, 1, 1], [], []>} : vector<1x64xf32>, vector<64x8xf32>, vector<1x8xf32> -> vector<1x8xf32>
    %cst_369 = arith.constant dense<0xFF800000> : vector<1xf32>
    %583 = vector.multi_reduction <maximumf>, %582, %cst_369 [1] : vector<1x8xf32> to vector<1xf32>
    %584 = vector.shape_cast %583 : vector<1xf32> to vector<1x1xf32>
    %585 = vector.broadcast %584 : vector<1x1xf32> to vector<1x8xf32>
    %586 = arith.subf %582, %585 : vector<1x8xf32>
    %587 = math.exp %586 : vector<1x8xf32>
    %cst_370 = arith.constant dense<0.000000e+00> : vector<1xf32>
    %588 = vector.multi_reduction <add>, %587, %cst_370 [1] : vector<1x8xf32> to vector<1xf32>
    %589 = vector.shape_cast %588 : vector<1xf32> to vector<1x1xf32>
    %590 = tpu.reciprocal %589 {approx = true} : vector<1x1xf32> -> vector<1x1xf32>
    %591 = vector.broadcast %590 : vector<1x1xf32> to vector<1x8xf32>
    %592 = arith.mulf %587, %591 : vector<1x8xf32>
    %c1_371 = arith.constant 1 : index
    %c0_372 = arith.constant 0 : index
    %c0_373 = arith.constant 0 : index
    %593 = vector.load %arg0[%c1_371, %c0_372, %c0_373] : memref<2x8x64xf32, #tpu.memory_space<vmem>>, vector<1x8x64xf32>
    %594 = vector.shape_cast %593 : vector<1x8x64xf32> to vector<8x64xf32>
    %cst_374 = arith.constant dense<0.000000e+00> : vector<1x64xf32>
    %595 = tpu.matmul %592, %594, %cst_374 {dimension_numbers = #tpu.dot_dimension_numbers<[1], [0], [0], [1], [0, 0, 1, 1], [], []>} : vector<1x8xf32>, vector<8x64xf32>, vector<1x64xf32> -> vector<1x64xf32>
    %c1_375 = arith.constant 1 : index
    %c0_376 = arith.constant 0 : index
    %596 = vector.load %arg16[%c1_375, %c0_376] : memref<2x64xf32, #tpu.memory_space<vmem>>, vector<1x64xf32>
    tpu.vector_store %arg16[%c1_375, %c0_376], %595 {strides = array<i32>} : memref<2x64xf32, #tpu.memory_space<vmem>>, vector<1x64xf32>,
    %c1_377 = arith.constant 1 : index
    %c0_378 = arith.constant 0 : index
    %c0_379 = arith.constant 0 : index
    %597 = vector.load %arg2[%c1_377, %c0_378, %c0_379] : memref<2x8x128xf32, #tpu.memory_space<vmem>>, vector<1x8x128xf32>
    %598 = vector.shape_cast %597 : vector<1x8x128xf32> to vector<8x128xf32>
    %cst_380 = arith.constant dense<0.000000e+00> : vector<1x128xf32>
    %599 = tpu.matmul %592, %598, %cst_380 {dimension_numbers = #tpu.dot_dimension_numbers<[1], [0], [0], [1], [0, 0, 1, 1], [], []>} : vector<1x8xf32>, vector<8x128xf32>, vector<1x128xf32> -> vector<1x128xf32>
    %c1_381 = arith.constant 1 : index
    %c0_382 = arith.constant 0 : index
    %600 = vector.load %arg17[%c1_381, %c0_382] : memref<2x128xf32, #tpu.memory_space<vmem>>, vector<1x128xf32>
    tpu.vector_store %arg17[%c1_381, %c0_382], %599 {strides = array<i32>} : memref<2x128xf32, #tpu.memory_space<vmem>>, vector<1x128xf32>,
    %c0_383 = arith.constant 0 : index
    %c0_384 = arith.constant 0 : index
    %601 = vector.load %arg16[%c0_383, %c0_384] : memref<2x64xf32, #tpu.memory_space<vmem>>, vector<2x64xf32>
    %c0_385 = arith.constant 0 : index
    %c0_386 = arith.constant 0 : index
    %602 = vector.load %arg17[%c0_385, %c0_386] : memref<2x128xf32, #tpu.memory_space<vmem>>, vector<2x128xf32>
    %c0_387 = arith.constant 0 : index
    %c0_388 = arith.constant 0 : index
    %603 = vector.load %arg8[%c0_387, %c0_388] : memref<64x128xf32, #tpu.memory_space<vmem>>, vector<64x128xf32>
    %cst_389 = arith.constant dense<0.000000e+00> : vector<2x128xf32>
    %604 = tpu.matmul %554, %603, %cst_389 {dimension_numbers = #tpu.dot_dimension_numbers<[1], [0], [0], [1], [0, 0, 1, 1], [], []>} : vector<2x64xf32>, vector<64x128xf32>, vector<2x128xf32> -> vector<2x128xf32>
    %c0_390 = arith.constant 0 : index
    %c0_391 = arith.constant 0 : index
    %605 = vector.load %arg9[%c0_390, %c0_391] : memref<64x128xf32, #tpu.memory_space<vmem>>, vector<64x128xf32>
    %cst_392 = arith.constant dense<0.000000e+00> : vector<2x128xf32>
    %606 = tpu.matmul %601, %605, %cst_392 {dimension_numbers = #tpu.dot_dimension_numbers<[1], [0], [0], [1], [0, 0, 1, 1], [], []>} : vector<2x64xf32>, vector<64x128xf32>, vector<2x128xf32> -> vector<2x128xf32>
    %607 = arith.addf %604, %606 : vector<2x128xf32>
    %c0_393 = arith.constant 0 : index
    %c0_394 = arith.constant 0 : index
    %608 = vector.load %arg10[%c0_393, %c0_394] : memref<1x128xf32, #tpu.memory_space<vmem>>, vector<1x128xf32>
    %609 = vector.broadcast %608 : vector<1x128xf32> to vector<2x128xf32>
    %610 = arith.addf %607, %609 : vector<2x128xf32>
    %cst_395 = arith.constant dense<0xFF800000> : vector<2xf32>
    %611 = vector.multi_reduction <maximumf>, %610, %cst_395 [1] : vector<2x128xf32> to vector<2xf32>
    %612 = vector.shape_cast %611 : vector<2xf32> to vector<2x1xf32>
    %613 = vector.broadcast %612 : vector<2x1xf32> to vector<2x128xf32>
    %614 = arith.subf %610, %613 : vector<2x128xf32>
    %615 = math.exp %614 : vector<2x128xf32>
    %cst_396 = arith.constant dense<0.000000e+00> : vector<2xf32>
    %616 = vector.multi_reduction <add>, %615, %cst_396 [1] : vector<2x128xf32> to vector<2xf32>
    %617 = vector.shape_cast %616 : vector<2xf32> to vector<2x1xf32>
    %618 = tpu.reciprocal %617 {approx = true} : vector<2x1xf32> -> vector<2x1xf32>
    %619 = vector.broadcast %618 : vector<2x1xf32> to vector<2x128xf32>
    %620 = arith.mulf %615, %619 : vector<2x128xf32>
    %c0_397 = arith.constant 0 : index
    %c0_398 = arith.constant 0 : index
    %621 = vector.load %arg11[%c0_397, %c0_398] : memref<64x1xf32, #tpu.memory_space<vmem>>, vector<64x1xf32>
    %cst_399 = arith.constant dense<0.000000e+00> : vector<2x1xf32>
    %622 = tpu.matmul %601, %621, %cst_399 {dimension_numbers = #tpu.dot_dimension_numbers<[1], [0], [0], [1], [0, 0, 1, 1], [], []>} : vector<2x64xf32>, vector<64x1xf32>, vector<2x1xf32> -> vector<2x1xf32>
    %c0_400 = arith.constant 0 : index
    %c0_401 = arith.constant 0 : index
    %623 = vector.load %arg12[%c0_400, %c0_401] : memref<64x1xf32, #tpu.memory_space<vmem>>, vector<64x1xf32>
    %cst_402 = arith.constant dense<0.000000e+00> : vector<2x1xf32>
    %624 = tpu.matmul %554, %623, %cst_402 {dimension_numbers = #tpu.dot_dimension_numbers<[1], [0], [0], [1], [0, 0, 1, 1], [], []>} : vector<2x64xf32>, vector<64x1xf32>, vector<2x1xf32> -> vector<2x1xf32>
    %625 = arith.addf %622, %624 : vector<2x1xf32>
    %626 = arith.index_cast %521 : i32 to index
    %c0_403 = arith.constant 0 : index
    %c0_404 = arith.constant 0 : index
    %627 = vector.load %arg4[%626, %c0_403, %c0_404] : memref<8x2x1xf32, #tpu.memory_space<vmem>>, vector<1x2x1xf32>
    %628 = vector.shape_cast %627 : vector<1x2x1xf32> to vector<2x1xf32>
    %629 = arith.addf %625, %628 : vector<2x1xf32>
    %630 = arith.negf %629 : vector<2x1xf32>
    %631 = math.exp %630 : vector<2x1xf32>
    %cst_405 = arith.constant 1.000000e+00 : f32
    %632 = vector.broadcast %cst_405 : f32 to vector<2x1xf32>
    %633 = arith.addf %632, %631 : vector<2x1xf32>
    %634 = arith.divf %632, %633 : vector<2x1xf32>
    %635 = vector.broadcast %634 : vector<2x1xf32> to vector<2x128xf32>
    %636 = arith.mulf %635, %620 : vector<2x128xf32>
    %cst_406 = arith.constant 1.000000e+00 : f32
    %637 = vector.broadcast %cst_406 : f32 to vector<2x1xf32>
    %638 = arith.subf %637, %634 : vector<2x1xf32>
    %639 = vector.broadcast %638 : vector<2x1xf32> to vector<2x128xf32>
    %640 = arith.mulf %639, %602 : vector<2x128xf32>
    %641 = arith.addf %636, %640 : vector<2x128xf32>
    %cst_407 = arith.constant 1.000000e-10 : f32
    %642 = vector.broadcast %cst_407 : f32 to vector<2x128xf32>
    %643 = arith.addf %641, %642 : vector<2x128xf32>
    %644 = math.log %643 : vector<2x128xf32>
    %645 = arith.index_cast %521 : i32 to index
    %c0_408 = arith.constant 0 : index
    %c0_409 = arith.constant 0 : index
    %646 = vector.load %arg13[%645, %c0_408, %c0_409] : memref<8x2x128xf32, #tpu.memory_space<vmem>>, vector<1x2x128xf32>
    %647 = vector.shape_cast %646 : vector<1x2x128xf32> to vector<2x128xf32>
    %648 = vector.shape_cast %644 : vector<2x128xf32> to vector<1x2x128xf32>
    tpu.vector_store %arg13[%645, %c0_408, %c0_409], %648 {strides = array<i32>} : memref<8x2x128xf32, #tpu.memory_space<vmem>>, vector<1x2x128xf32>,
    %c5_i32 = arith.constant 5 : i32
    %c1_i32_410 = arith.constant 1 : i32
    %649 = arith.muli %c5_i32, %c1_i32_410 : i32
    %c0_i32_411 = arith.constant 0 : i32
    %650 = arith.addi %c0_i32_411, %649 : i32
    %651 = arith.index_cast %650 : i32 to index
    %c0_412 = arith.constant 0 : index
    %c0_413 = arith.constant 0 : index
    %652 = vector.load %arg3[%651, %c0_412, %c0_413] : memref<8x2x256xf32, #tpu.memory_space<vmem>>, vector<1x2x256xf32>
    %653 = vector.shape_cast %652 : vector<1x2x256xf32> to vector<2x256xf32>
    %c0_414 = arith.constant 0 : index
    %c0_415 = arith.constant 0 : index
    %654 = vector.load %arg14[%c0_414, %c0_415] : memref<2x64xf32, #tpu.memory_space<vmem>>, vector<2x64xf32>
    %c0_416 = arith.constant 0 : index
    %c0_417 = arith.constant 0 : index
    %655 = vector.load %arg7[%c0_416, %c0_417] : memref<64x256xf32, #tpu.memory_space<vmem>>, vector<64x256xf32>
    %cst_418 = arith.constant dense<0.000000e+00> : vector<2x256xf32>
    %656 = tpu.matmul %654, %655, %cst_418 {dimension_numbers = #tpu.dot_dimension_numbers<[1], [0], [0], [1], [0, 0, 1, 1], [], []>} : vector<2x64xf32>, vector<64x256xf32>, vector<2x256xf32> -> vector<2x256xf32>
    %657 = arith.addf %653, %656 : vector<2x256xf32>
    %658 = vector.extract_strided_slice %657 {offsets = [0, 0], sizes = [2, 64], strides = [1, 1]} : vector<2x256xf32> to vector<2x64xf32>
    %659 = arith.negf %658 : vector<2x64xf32>
    %660 = math.exp %659 : vector<2x64xf32>
    %cst_419 = arith.constant 1.000000e+00 : f32
    %661 = vector.broadcast %cst_419 : f32 to vector<2x64xf32>
    %662 = arith.addf %661, %660 : vector<2x64xf32>
    %663 = arith.divf %661, %662 : vector<2x64xf32>
    %664 = vector.extract_strided_slice %657 {offsets = [0, 64], sizes = [2, 64], strides = [1, 1]} : vector<2x256xf32> to vector<2x64xf32>
    %665 = arith.negf %664 : vector<2x64xf32>
    %666 = math.exp %665 : vector<2x64xf32>
    %cst_420 = arith.constant 1.000000e+00 : f32
    %667 = vector.broadcast %cst_420 : f32 to vector<2x64xf32>
    %668 = arith.addf %667, %666 : vector<2x64xf32>
    %669 = arith.divf %667, %668 : vector<2x64xf32>
    %670 = vector.extract_strided_slice %657 {offsets = [0, 128], sizes = [2, 64], strides = [1, 1]} : vector<2x256xf32> to vector<2x64xf32>
    %671 = math.tanh %670 : vector<2x64xf32>
    %672 = vector.extract_strided_slice %657 {offsets = [0, 192], sizes = [2, 64], strides = [1, 1]} : vector<2x256xf32> to vector<2x64xf32>
    %673 = arith.negf %672 : vector<2x64xf32>
    %674 = math.exp %673 : vector<2x64xf32>
    %cst_421 = arith.constant 1.000000e+00 : f32
    %675 = vector.broadcast %cst_421 : f32 to vector<2x64xf32>
    %676 = arith.addf %675, %674 : vector<2x64xf32>
    %677 = arith.divf %675, %676 : vector<2x64xf32>
    %c0_422 = arith.constant 0 : index
    %c0_423 = arith.constant 0 : index
    %678 = vector.load %arg15[%c0_422, %c0_423] : memref<2x64xf32, #tpu.memory_space<vmem>>, vector<2x64xf32>
    %679 = arith.mulf %669, %678 : vector<2x64xf32>
    %680 = arith.mulf %663, %671 : vector<2x64xf32>
    %681 = arith.addf %679, %680 : vector<2x64xf32>
    %682 = math.tanh %681 : vector<2x64xf32>
    %683 = arith.mulf %677, %682 : vector<2x64xf32>
    %c0_424 = arith.constant 0 : index
    %c0_425 = arith.constant 0 : index
    %684 = vector.load %arg14[%c0_424, %c0_425] : memref<2x64xf32, #tpu.memory_space<vmem>>, vector<2x64xf32>
    tpu.vector_store %arg14[%c0_424, %c0_425], %683 {strides = array<i32>} : memref<2x64xf32, #tpu.memory_space<vmem>>, vector<2x64xf32>,
    %c0_426 = arith.constant 0 : index
    %c0_427 = arith.constant 0 : index
    %685 = vector.load %arg15[%c0_426, %c0_427] : memref<2x64xf32, #tpu.memory_space<vmem>>, vector<2x64xf32>
    tpu.vector_store %arg15[%c0_426, %c0_427], %681 {strides = array<i32>} : memref<2x64xf32, #tpu.memory_space<vmem>>, vector<2x64xf32>,
    %686 = vector.extract_strided_slice %683 {offsets = [0, 0], sizes = [1, 64], strides = [1, 1]} : vector<2x64xf32> to vector<1x64xf32>
    %c0_428 = arith.constant 0 : index
    %c0_429 = arith.constant 0 : index
    %c0_430 = arith.constant 0 : index
    %687 = vector.load %arg1[%c0_428, %c0_429, %c0_430] : memref<2x64x8xf32, #tpu.memory_space<vmem>>, vector<1x64x8xf32>
    %688 = vector.shape_cast %687 : vector<1x64x8xf32> to vector<64x8xf32>
    %cst_431 = arith.constant dense<0.000000e+00> : vector<1x8xf32>
    %689 = tpu.matmul %686, %688, %cst_431 {dimension_numbers = #tpu.dot_dimension_numbers<[1], [0], [0], [1], [0, 0, 1, 1], [], []>} : vector<1x64xf32>, vector<64x8xf32>, vector<1x8xf32> -> vector<1x8xf32>
    %cst_432 = arith.constant dense<0xFF800000> : vector<1xf32>
    %690 = vector.multi_reduction <maximumf>, %689, %cst_432 [1] : vector<1x8xf32> to vector<1xf32>
    %691 = vector.shape_cast %690 : vector<1xf32> to vector<1x1xf32>
    %692 = vector.broadcast %691 : vector<1x1xf32> to vector<1x8xf32>
    %693 = arith.subf %689, %692 : vector<1x8xf32>
    %694 = math.exp %693 : vector<1x8xf32>
    %cst_433 = arith.constant dense<0.000000e+00> : vector<1xf32>
    %695 = vector.multi_reduction <add>, %694, %cst_433 [1] : vector<1x8xf32> to vector<1xf32>
    %696 = vector.shape_cast %695 : vector<1xf32> to vector<1x1xf32>
    %697 = tpu.reciprocal %696 {approx = true} : vector<1x1xf32> -> vector<1x1xf32>
    %698 = vector.broadcast %697 : vector<1x1xf32> to vector<1x8xf32>
    %699 = arith.mulf %694, %698 : vector<1x8xf32>
    %c0_434 = arith.constant 0 : index
    %c0_435 = arith.constant 0 : index
    %c0_436 = arith.constant 0 : index
    %700 = vector.load %arg0[%c0_434, %c0_435, %c0_436] : memref<2x8x64xf32, #tpu.memory_space<vmem>>, vector<1x8x64xf32>
    %701 = vector.shape_cast %700 : vector<1x8x64xf32> to vector<8x64xf32>
    %cst_437 = arith.constant dense<0.000000e+00> : vector<1x64xf32>
    %702 = tpu.matmul %699, %701, %cst_437 {dimension_numbers = #tpu.dot_dimension_numbers<[1], [0], [0], [1], [0, 0, 1, 1], [], []>} : vector<1x8xf32>, vector<8x64xf32>, vector<1x64xf32> -> vector<1x64xf32>
    %c0_438 = arith.constant 0 : index
    %c0_439 = arith.constant 0 : index
    %703 = vector.load %arg16[%c0_438, %c0_439] : memref<2x64xf32, #tpu.memory_space<vmem>>, vector<1x64xf32>
    tpu.vector_store %arg16[%c0_438, %c0_439], %702 {strides = array<i32>} : memref<2x64xf32, #tpu.memory_space<vmem>>, vector<1x64xf32>,
    %c0_440 = arith.constant 0 : index
    %c0_441 = arith.constant 0 : index
    %c0_442 = arith.constant 0 : index
    %704 = vector.load %arg2[%c0_440, %c0_441, %c0_442] : memref<2x8x128xf32, #tpu.memory_space<vmem>>, vector<1x8x128xf32>
    %705 = vector.shape_cast %704 : vector<1x8x128xf32> to vector<8x128xf32>
    %cst_443 = arith.constant dense<0.000000e+00> : vector<1x128xf32>
    %706 = tpu.matmul %699, %705, %cst_443 {dimension_numbers = #tpu.dot_dimension_numbers<[1], [0], [0], [1], [0, 0, 1, 1], [], []>} : vector<1x8xf32>, vector<8x128xf32>, vector<1x128xf32> -> vector<1x128xf32>
    %c0_444 = arith.constant 0 : index
    %c0_445 = arith.constant 0 : index
    %707 = vector.load %arg17[%c0_444, %c0_445] : memref<2x128xf32, #tpu.memory_space<vmem>>, vector<1x128xf32>
    tpu.vector_store %arg17[%c0_444, %c0_445], %706 {strides = array<i32>} : memref<2x128xf32, #tpu.memory_space<vmem>>, vector<1x128xf32>,
    %708 = vector.extract_strided_slice %683 {offsets = [1, 0], sizes = [1, 64], strides = [1, 1]} : vector<2x64xf32> to vector<1x64xf32>
    %c1_446 = arith.constant 1 : index
    %c0_447 = arith.constant 0 : index
    %c0_448 = arith.constant 0 : index
    %709 = vector.load %arg1[%c1_446, %c0_447, %c0_448] : memref<2x64x8xf32, #tpu.memory_space<vmem>>, vector<1x64x8xf32>
    %710 = vector.shape_cast %709 : vector<1x64x8xf32> to vector<64x8xf32>
    %cst_449 = arith.constant dense<0.000000e+00> : vector<1x8xf32>
    %711 = tpu.matmul %708, %710, %cst_449 {dimension_numbers = #tpu.dot_dimension_numbers<[1], [0], [0], [1], [0, 0, 1, 1], [], []>} : vector<1x64xf32>, vector<64x8xf32>, vector<1x8xf32> -> vector<1x8xf32>
    %cst_450 = arith.constant dense<0xFF800000> : vector<1xf32>
    %712 = vector.multi_reduction <maximumf>, %711, %cst_450 [1] : vector<1x8xf32> to vector<1xf32>
    %713 = vector.shape_cast %712 : vector<1xf32> to vector<1x1xf32>
    %714 = vector.broadcast %713 : vector<1x1xf32> to vector<1x8xf32>
    %715 = arith.subf %711, %714 : vector<1x8xf32>
    %716 = math.exp %715 : vector<1x8xf32>
    %cst_451 = arith.constant dense<0.000000e+00> : vector<1xf32>
    %717 = vector.multi_reduction <add>, %716, %cst_451 [1] : vector<1x8xf32> to vector<1xf32>
    %718 = vector.shape_cast %717 : vector<1xf32> to vector<1x1xf32>
    %719 = tpu.reciprocal %718 {approx = true} : vector<1x1xf32> -> vector<1x1xf32>
    %720 = vector.broadcast %719 : vector<1x1xf32> to vector<1x8xf32>
    %721 = arith.mulf %716, %720 : vector<1x8xf32>
    %c1_452 = arith.constant 1 : index
    %c0_453 = arith.constant 0 : index
    %c0_454 = arith.constant 0 : index
    %722 = vector.load %arg0[%c1_452, %c0_453, %c0_454] : memref<2x8x64xf32, #tpu.memory_space<vmem>>, vector<1x8x64xf32>
    %723 = vector.shape_cast %722 : vector<1x8x64xf32> to vector<8x64xf32>
    %cst_455 = arith.constant dense<0.000000e+00> : vector<1x64xf32>
    %724 = tpu.matmul %721, %723, %cst_455 {dimension_numbers = #tpu.dot_dimension_numbers<[1], [0], [0], [1], [0, 0, 1, 1], [], []>} : vector<1x8xf32>, vector<8x64xf32>, vector<1x64xf32> -> vector<1x64xf32>
    %c1_456 = arith.constant 1 : index
    %c0_457 = arith.constant 0 : index
    %725 = vector.load %arg16[%c1_456, %c0_457] : memref<2x64xf32, #tpu.memory_space<vmem>>, vector<1x64xf32>
    tpu.vector_store %arg16[%c1_456, %c0_457], %724 {strides = array<i32>} : memref<2x64xf32, #tpu.memory_space<vmem>>, vector<1x64xf32>,
    %c1_458 = arith.constant 1 : index
    %c0_459 = arith.constant 0 : index
    %c0_460 = arith.constant 0 : index
    %726 = vector.load %arg2[%c1_458, %c0_459, %c0_460] : memref<2x8x128xf32, #tpu.memory_space<vmem>>, vector<1x8x128xf32>
    %727 = vector.shape_cast %726 : vector<1x8x128xf32> to vector<8x128xf32>
    %cst_461 = arith.constant dense<0.000000e+00> : vector<1x128xf32>
    %728 = tpu.matmul %721, %727, %cst_461 {dimension_numbers = #tpu.dot_dimension_numbers<[1], [0], [0], [1], [0, 0, 1, 1], [], []>} : vector<1x8xf32>, vector<8x128xf32>, vector<1x128xf32> -> vector<1x128xf32>
    %c1_462 = arith.constant 1 : index
    %c0_463 = arith.constant 0 : index
    %729 = vector.load %arg17[%c1_462, %c0_463] : memref<2x128xf32, #tpu.memory_space<vmem>>, vector<1x128xf32>
    tpu.vector_store %arg17[%c1_462, %c0_463], %728 {strides = array<i32>} : memref<2x128xf32, #tpu.memory_space<vmem>>, vector<1x128xf32>,
    %c0_464 = arith.constant 0 : index
    %c0_465 = arith.constant 0 : index
    %730 = vector.load %arg16[%c0_464, %c0_465] : memref<2x64xf32, #tpu.memory_space<vmem>>, vector<2x64xf32>
    %c0_466 = arith.constant 0 : index
    %c0_467 = arith.constant 0 : index
    %731 = vector.load %arg17[%c0_466, %c0_467] : memref<2x128xf32, #tpu.memory_space<vmem>>, vector<2x128xf32>
    %c0_468 = arith.constant 0 : index
    %c0_469 = arith.constant 0 : index
    %732 = vector.load %arg8[%c0_468, %c0_469] : memref<64x128xf32, #tpu.memory_space<vmem>>, vector<64x128xf32>
    %cst_470 = arith.constant dense<0.000000e+00> : vector<2x128xf32>
    %733 = tpu.matmul %683, %732, %cst_470 {dimension_numbers = #tpu.dot_dimension_numbers<[1], [0], [0], [1], [0, 0, 1, 1], [], []>} : vector<2x64xf32>, vector<64x128xf32>, vector<2x128xf32> -> vector<2x128xf32>
    %c0_471 = arith.constant 0 : index
    %c0_472 = arith.constant 0 : index
    %734 = vector.load %arg9[%c0_471, %c0_472] : memref<64x128xf32, #tpu.memory_space<vmem>>, vector<64x128xf32>
    %cst_473 = arith.constant dense<0.000000e+00> : vector<2x128xf32>
    %735 = tpu.matmul %730, %734, %cst_473 {dimension_numbers = #tpu.dot_dimension_numbers<[1], [0], [0], [1], [0, 0, 1, 1], [], []>} : vector<2x64xf32>, vector<64x128xf32>, vector<2x128xf32> -> vector<2x128xf32>
    %736 = arith.addf %733, %735 : vector<2x128xf32>
    %c0_474 = arith.constant 0 : index
    %c0_475 = arith.constant 0 : index
    %737 = vector.load %arg10[%c0_474, %c0_475] : memref<1x128xf32, #tpu.memory_space<vmem>>, vector<1x128xf32>
    %738 = vector.broadcast %737 : vector<1x128xf32> to vector<2x128xf32>
    %739 = arith.addf %736, %738 : vector<2x128xf32>
    %cst_476 = arith.constant dense<0xFF800000> : vector<2xf32>
    %740 = vector.multi_reduction <maximumf>, %739, %cst_476 [1] : vector<2x128xf32> to vector<2xf32>
    %741 = vector.shape_cast %740 : vector<2xf32> to vector<2x1xf32>
    %742 = vector.broadcast %741 : vector<2x1xf32> to vector<2x128xf32>
    %743 = arith.subf %739, %742 : vector<2x128xf32>
    %744 = math.exp %743 : vector<2x128xf32>
    %cst_477 = arith.constant dense<0.000000e+00> : vector<2xf32>
    %745 = vector.multi_reduction <add>, %744, %cst_477 [1] : vector<2x128xf32> to vector<2xf32>
    %746 = vector.shape_cast %745 : vector<2xf32> to vector<2x1xf32>
    %747 = tpu.reciprocal %746 {approx = true} : vector<2x1xf32> -> vector<2x1xf32>
    %748 = vector.broadcast %747 : vector<2x1xf32> to vector<2x128xf32>
    %749 = arith.mulf %744, %748 : vector<2x128xf32>
    %c0_478 = arith.constant 0 : index
    %c0_479 = arith.constant 0 : index
    %750 = vector.load %arg11[%c0_478, %c0_479] : memref<64x1xf32, #tpu.memory_space<vmem>>, vector<64x1xf32>
    %cst_480 = arith.constant dense<0.000000e+00> : vector<2x1xf32>
    %751 = tpu.matmul %730, %750, %cst_480 {dimension_numbers = #tpu.dot_dimension_numbers<[1], [0], [0], [1], [0, 0, 1, 1], [], []>} : vector<2x64xf32>, vector<64x1xf32>, vector<2x1xf32> -> vector<2x1xf32>
    %c0_481 = arith.constant 0 : index
    %c0_482 = arith.constant 0 : index
    %752 = vector.load %arg12[%c0_481, %c0_482] : memref<64x1xf32, #tpu.memory_space<vmem>>, vector<64x1xf32>
    %cst_483 = arith.constant dense<0.000000e+00> : vector<2x1xf32>
    %753 = tpu.matmul %683, %752, %cst_483 {dimension_numbers = #tpu.dot_dimension_numbers<[1], [0], [0], [1], [0, 0, 1, 1], [], []>} : vector<2x64xf32>, vector<64x1xf32>, vector<2x1xf32> -> vector<2x1xf32>
    %754 = arith.addf %751, %753 : vector<2x1xf32>
    %755 = arith.index_cast %650 : i32 to index
    %c0_484 = arith.constant 0 : index
    %c0_485 = arith.constant 0 : index
    %756 = vector.load %arg4[%755, %c0_484, %c0_485] : memref<8x2x1xf32, #tpu.memory_space<vmem>>, vector<1x2x1xf32>
    %757 = vector.shape_cast %756 : vector<1x2x1xf32> to vector<2x1xf32>
    %758 = arith.addf %754, %757 : vector<2x1xf32>
    %759 = arith.negf %758 : vector<2x1xf32>
    %760 = math.exp %759 : vector<2x1xf32>
    %cst_486 = arith.constant 1.000000e+00 : f32
    %761 = vector.broadcast %cst_486 : f32 to vector<2x1xf32>
    %762 = arith.addf %761, %760 : vector<2x1xf32>
    %763 = arith.divf %761, %762 : vector<2x1xf32>
    %764 = vector.broadcast %763 : vector<2x1xf32> to vector<2x128xf32>
    %765 = arith.mulf %764, %749 : vector<2x128xf32>
    %cst_487 = arith.constant 1.000000e+00 : f32
    %766 = vector.broadcast %cst_487 : f32 to vector<2x1xf32>
    %767 = arith.subf %766, %763 : vector<2x1xf32>
    %768 = vector.broadcast %767 : vector<2x1xf32> to vector<2x128xf32>
    %769 = arith.mulf %768, %731 : vector<2x128xf32>
    %770 = arith.addf %765, %769 : vector<2x128xf32>
    %cst_488 = arith.constant 1.000000e-10 : f32
    %771 = vector.broadcast %cst_488 : f32 to vector<2x128xf32>
    %772 = arith.addf %770, %771 : vector<2x128xf32>
    %773 = math.log %772 : vector<2x128xf32>
    %774 = arith.index_cast %650 : i32 to index
    %c0_489 = arith.constant 0 : index
    %c0_490 = arith.constant 0 : index
    %775 = vector.load %arg13[%774, %c0_489, %c0_490] : memref<8x2x128xf32, #tpu.memory_space<vmem>>, vector<1x2x128xf32>
    %776 = vector.shape_cast %775 : vector<1x2x128xf32> to vector<2x128xf32>
    %777 = vector.shape_cast %773 : vector<2x128xf32> to vector<1x2x128xf32>
    tpu.vector_store %arg13[%774, %c0_489, %c0_490], %777 {strides = array<i32>} : memref<8x2x128xf32, #tpu.memory_space<vmem>>, vector<1x2x128xf32>,
    %c6_i32 = arith.constant 6 : i32
    %c1_i32_491 = arith.constant 1 : i32
    %778 = arith.muli %c6_i32, %c1_i32_491 : i32
    %c0_i32_492 = arith.constant 0 : i32
    %779 = arith.addi %c0_i32_492, %778 : i32
    %780 = arith.index_cast %779 : i32 to index
    %c0_493 = arith.constant 0 : index
    %c0_494 = arith.constant 0 : index
    %781 = vector.load %arg3[%780, %c0_493, %c0_494] : memref<8x2x256xf32, #tpu.memory_space<vmem>>, vector<1x2x256xf32>
    %782 = vector.shape_cast %781 : vector<1x2x256xf32> to vector<2x256xf32>
    %c0_495 = arith.constant 0 : index
    %c0_496 = arith.constant 0 : index
    %783 = vector.load %arg14[%c0_495, %c0_496] : memref<2x64xf32, #tpu.memory_space<vmem>>, vector<2x64xf32>
    %c0_497 = arith.constant 0 : index
    %c0_498 = arith.constant 0 : index
    %784 = vector.load %arg7[%c0_497, %c0_498] : memref<64x256xf32, #tpu.memory_space<vmem>>, vector<64x256xf32>
    %cst_499 = arith.constant dense<0.000000e+00> : vector<2x256xf32>
    %785 = tpu.matmul %783, %784, %cst_499 {dimension_numbers = #tpu.dot_dimension_numbers<[1], [0], [0], [1], [0, 0, 1, 1], [], []>} : vector<2x64xf32>, vector<64x256xf32>, vector<2x256xf32> -> vector<2x256xf32>
    %786 = arith.addf %782, %785 : vector<2x256xf32>
    %787 = vector.extract_strided_slice %786 {offsets = [0, 0], sizes = [2, 64], strides = [1, 1]} : vector<2x256xf32> to vector<2x64xf32>
    %788 = arith.negf %787 : vector<2x64xf32>
    %789 = math.exp %788 : vector<2x64xf32>
    %cst_500 = arith.constant 1.000000e+00 : f32
    %790 = vector.broadcast %cst_500 : f32 to vector<2x64xf32>
    %791 = arith.addf %790, %789 : vector<2x64xf32>
    %792 = arith.divf %790, %791 : vector<2x64xf32>
    %793 = vector.extract_strided_slice %786 {offsets = [0, 64], sizes = [2, 64], strides = [1, 1]} : vector<2x256xf32> to vector<2x64xf32>
    %794 = arith.negf %793 : vector<2x64xf32>
    %795 = math.exp %794 : vector<2x64xf32>
    %cst_501 = arith.constant 1.000000e+00 : f32
    %796 = vector.broadcast %cst_501 : f32 to vector<2x64xf32>
    %797 = arith.addf %796, %795 : vector<2x64xf32>
    %798 = arith.divf %796, %797 : vector<2x64xf32>
    %799 = vector.extract_strided_slice %786 {offsets = [0, 128], sizes = [2, 64], strides = [1, 1]} : vector<2x256xf32> to vector<2x64xf32>
    %800 = math.tanh %799 : vector<2x64xf32>
    %801 = vector.extract_strided_slice %786 {offsets = [0, 192], sizes = [2, 64], strides = [1, 1]} : vector<2x256xf32> to vector<2x64xf32>
    %802 = arith.negf %801 : vector<2x64xf32>
    %803 = math.exp %802 : vector<2x64xf32>
    %cst_502 = arith.constant 1.000000e+00 : f32
    %804 = vector.broadcast %cst_502 : f32 to vector<2x64xf32>
    %805 = arith.addf %804, %803 : vector<2x64xf32>
    %806 = arith.divf %804, %805 : vector<2x64xf32>
    %c0_503 = arith.constant 0 : index
    %c0_504 = arith.constant 0 : index
    %807 = vector.load %arg15[%c0_503, %c0_504] : memref<2x64xf32, #tpu.memory_space<vmem>>, vector<2x64xf32>
    %808 = arith.mulf %798, %807 : vector<2x64xf32>
    %809 = arith.mulf %792, %800 : vector<2x64xf32>
    %810 = arith.addf %808, %809 : vector<2x64xf32>
    %811 = math.tanh %810 : vector<2x64xf32>
    %812 = arith.mulf %806, %811 : vector<2x64xf32>
    %c0_505 = arith.constant 0 : index
    %c0_506 = arith.constant 0 : index
    %813 = vector.load %arg14[%c0_505, %c0_506] : memref<2x64xf32, #tpu.memory_space<vmem>>, vector<2x64xf32>
    tpu.vector_store %arg14[%c0_505, %c0_506], %812 {strides = array<i32>} : memref<2x64xf32, #tpu.memory_space<vmem>>, vector<2x64xf32>,
    %c0_507 = arith.constant 0 : index
    %c0_508 = arith.constant 0 : index
    %814 = vector.load %arg15[%c0_507, %c0_508] : memref<2x64xf32, #tpu.memory_space<vmem>>, vector<2x64xf32>
    tpu.vector_store %arg15[%c0_507, %c0_508], %810 {strides = array<i32>} : memref<2x64xf32, #tpu.memory_space<vmem>>, vector<2x64xf32>,
    %815 = vector.extract_strided_slice %812 {offsets = [0, 0], sizes = [1, 64], strides = [1, 1]} : vector<2x64xf32> to vector<1x64xf32>
    %c0_509 = arith.constant 0 : index
    %c0_510 = arith.constant 0 : index
    %c0_511 = arith.constant 0 : index
    %816 = vector.load %arg1[%c0_509, %c0_510, %c0_511] : memref<2x64x8xf32, #tpu.memory_space<vmem>>, vector<1x64x8xf32>
    %817 = vector.shape_cast %816 : vector<1x64x8xf32> to vector<64x8xf32>
    %cst_512 = arith.constant dense<0.000000e+00> : vector<1x8xf32>
    %818 = tpu.matmul %815, %817, %cst_512 {dimension_numbers = #tpu.dot_dimension_numbers<[1], [0], [0], [1], [0, 0, 1, 1], [], []>} : vector<1x64xf32>, vector<64x8xf32>, vector<1x8xf32> -> vector<1x8xf32>
    %cst_513 = arith.constant dense<0xFF800000> : vector<1xf32>
    %819 = vector.multi_reduction <maximumf>, %818, %cst_513 [1] : vector<1x8xf32> to vector<1xf32>
    %820 = vector.shape_cast %819 : vector<1xf32> to vector<1x1xf32>
    %821 = vector.broadcast %820 : vector<1x1xf32> to vector<1x8xf32>
    %822 = arith.subf %818, %821 : vector<1x8xf32>
    %823 = math.exp %822 : vector<1x8xf32>
    %cst_514 = arith.constant dense<0.000000e+00> : vector<1xf32>
    %824 = vector.multi_reduction <add>, %823, %cst_514 [1] : vector<1x8xf32> to vector<1xf32>
    %825 = vector.shape_cast %824 : vector<1xf32> to vector<1x1xf32>
    %826 = tpu.reciprocal %825 {approx = true} : vector<1x1xf32> -> vector<1x1xf32>
    %827 = vector.broadcast %826 : vector<1x1xf32> to vector<1x8xf32>
    %828 = arith.mulf %823, %827 : vector<1x8xf32>
    %c0_515 = arith.constant 0 : index
    %c0_516 = arith.constant 0 : index
    %c0_517 = arith.constant 0 : index
    %829 = vector.load %arg0[%c0_515, %c0_516, %c0_517] : memref<2x8x64xf32, #tpu.memory_space<vmem>>, vector<1x8x64xf32>
    %830 = vector.shape_cast %829 : vector<1x8x64xf32> to vector<8x64xf32>
    %cst_518 = arith.constant dense<0.000000e+00> : vector<1x64xf32>
    %831 = tpu.matmul %828, %830, %cst_518 {dimension_numbers = #tpu.dot_dimension_numbers<[1], [0], [0], [1], [0, 0, 1, 1], [], []>} : vector<1x8xf32>, vector<8x64xf32>, vector<1x64xf32> -> vector<1x64xf32>
    %c0_519 = arith.constant 0 : index
    %c0_520 = arith.constant 0 : index
    %832 = vector.load %arg16[%c0_519, %c0_520] : memref<2x64xf32, #tpu.memory_space<vmem>>, vector<1x64xf32>
    tpu.vector_store %arg16[%c0_519, %c0_520], %831 {strides = array<i32>} : memref<2x64xf32, #tpu.memory_space<vmem>>, vector<1x64xf32>,
    %c0_521 = arith.constant 0 : index
    %c0_522 = arith.constant 0 : index
    %c0_523 = arith.constant 0 : index
    %833 = vector.load %arg2[%c0_521, %c0_522, %c0_523] : memref<2x8x128xf32, #tpu.memory_space<vmem>>, vector<1x8x128xf32>
    %834 = vector.shape_cast %833 : vector<1x8x128xf32> to vector<8x128xf32>
    %cst_524 = arith.constant dense<0.000000e+00> : vector<1x128xf32>
    %835 = tpu.matmul %828, %834, %cst_524 {dimension_numbers = #tpu.dot_dimension_numbers<[1], [0], [0], [1], [0, 0, 1, 1], [], []>} : vector<1x8xf32>, vector<8x128xf32>, vector<1x128xf32> -> vector<1x128xf32>
    %c0_525 = arith.constant 0 : index
    %c0_526 = arith.constant 0 : index
    %836 = vector.load %arg17[%c0_525, %c0_526] : memref<2x128xf32, #tpu.memory_space<vmem>>, vector<1x128xf32>
    tpu.vector_store %arg17[%c0_525, %c0_526], %835 {strides = array<i32>} : memref<2x128xf32, #tpu.memory_space<vmem>>, vector<1x128xf32>,
    %837 = vector.extract_strided_slice %812 {offsets = [1, 0], sizes = [1, 64], strides = [1, 1]} : vector<2x64xf32> to vector<1x64xf32>
    %c1_527 = arith.constant 1 : index
    %c0_528 = arith.constant 0 : index
    %c0_529 = arith.constant 0 : index
    %838 = vector.load %arg1[%c1_527, %c0_528, %c0_529] : memref<2x64x8xf32, #tpu.memory_space<vmem>>, vector<1x64x8xf32>
    %839 = vector.shape_cast %838 : vector<1x64x8xf32> to vector<64x8xf32>
    %cst_530 = arith.constant dense<0.000000e+00> : vector<1x8xf32>
    %840 = tpu.matmul %837, %839, %cst_530 {dimension_numbers = #tpu.dot_dimension_numbers<[1], [0], [0], [1], [0, 0, 1, 1], [], []>} : vector<1x64xf32>, vector<64x8xf32>, vector<1x8xf32> -> vector<1x8xf32>
    %cst_531 = arith.constant dense<0xFF800000> : vector<1xf32>
    %841 = vector.multi_reduction <maximumf>, %840, %cst_531 [1] : vector<1x8xf32> to vector<1xf32>
    %842 = vector.shape_cast %841 : vector<1xf32> to vector<1x1xf32>
    %843 = vector.broadcast %842 : vector<1x1xf32> to vector<1x8xf32>
    %844 = arith.subf %840, %843 : vector<1x8xf32>
    %845 = math.exp %844 : vector<1x8xf32>
    %cst_532 = arith.constant dense<0.000000e+00> : vector<1xf32>
    %846 = vector.multi_reduction <add>, %845, %cst_532 [1] : vector<1x8xf32> to vector<1xf32>
    %847 = vector.shape_cast %846 : vector<1xf32> to vector<1x1xf32>
    %848 = tpu.reciprocal %847 {approx = true} : vector<1x1xf32> -> vector<1x1xf32>
    %849 = vector.broadcast %848 : vector<1x1xf32> to vector<1x8xf32>
    %850 = arith.mulf %845, %849 : vector<1x8xf32>
    %c1_533 = arith.constant 1 : index
    %c0_534 = arith.constant 0 : index
    %c0_535 = arith.constant 0 : index
    %851 = vector.load %arg0[%c1_533, %c0_534, %c0_535] : memref<2x8x64xf32, #tpu.memory_space<vmem>>, vector<1x8x64xf32>
    %852 = vector.shape_cast %851 : vector<1x8x64xf32> to vector<8x64xf32>
    %cst_536 = arith.constant dense<0.000000e+00> : vector<1x64xf32>
    %853 = tpu.matmul %850, %852, %cst_536 {dimension_numbers = #tpu.dot_dimension_numbers<[1], [0], [0], [1], [0, 0, 1, 1], [], []>} : vector<1x8xf32>, vector<8x64xf32>, vector<1x64xf32> -> vector<1x64xf32>
    %c1_537 = arith.constant 1 : index
    %c0_538 = arith.constant 0 : index
    %854 = vector.load %arg16[%c1_537, %c0_538] : memref<2x64xf32, #tpu.memory_space<vmem>>, vector<1x64xf32>
    tpu.vector_store %arg16[%c1_537, %c0_538], %853 {strides = array<i32>} : memref<2x64xf32, #tpu.memory_space<vmem>>, vector<1x64xf32>,
    %c1_539 = arith.constant 1 : index
    %c0_540 = arith.constant 0 : index
    %c0_541 = arith.constant 0 : index
    %855 = vector.load %arg2[%c1_539, %c0_540, %c0_541] : memref<2x8x128xf32, #tpu.memory_space<vmem>>, vector<1x8x128xf32>
    %856 = vector.shape_cast %855 : vector<1x8x128xf32> to vector<8x128xf32>
    %cst_542 = arith.constant dense<0.000000e+00> : vector<1x128xf32>
    %857 = tpu.matmul %850, %856, %cst_542 {dimension_numbers = #tpu.dot_dimension_numbers<[1], [0], [0], [1], [0, 0, 1, 1], [], []>} : vector<1x8xf32>, vector<8x128xf32>, vector<1x128xf32> -> vector<1x128xf32>
    %c1_543 = arith.constant 1 : index
    %c0_544 = arith.constant 0 : index
    %858 = vector.load %arg17[%c1_543, %c0_544] : memref<2x128xf32, #tpu.memory_space<vmem>>, vector<1x128xf32>
    tpu.vector_store %arg17[%c1_543, %c0_544], %857 {strides = array<i32>} : memref<2x128xf32, #tpu.memory_space<vmem>>, vector<1x128xf32>,
    %c0_545 = arith.constant 0 : index
    %c0_546 = arith.constant 0 : index
    %859 = vector.load %arg16[%c0_545, %c0_546] : memref<2x64xf32, #tpu.memory_space<vmem>>, vector<2x64xf32>
    %c0_547 = arith.constant 0 : index
    %c0_548 = arith.constant 0 : index
    %860 = vector.load %arg17[%c0_547, %c0_548] : memref<2x128xf32, #tpu.memory_space<vmem>>, vector<2x128xf32>
    %c0_549 = arith.constant 0 : index
    %c0_550 = arith.constant 0 : index
    %861 = vector.load %arg8[%c0_549, %c0_550] : memref<64x128xf32, #tpu.memory_space<vmem>>, vector<64x128xf32>
    %cst_551 = arith.constant dense<0.000000e+00> : vector<2x128xf32>
    %862 = tpu.matmul %812, %861, %cst_551 {dimension_numbers = #tpu.dot_dimension_numbers<[1], [0], [0], [1], [0, 0, 1, 1], [], []>} : vector<2x64xf32>, vector<64x128xf32>, vector<2x128xf32> -> vector<2x128xf32>
    %c0_552 = arith.constant 0 : index
    %c0_553 = arith.constant 0 : index
    %863 = vector.load %arg9[%c0_552, %c0_553] : memref<64x128xf32, #tpu.memory_space<vmem>>, vector<64x128xf32>
    %cst_554 = arith.constant dense<0.000000e+00> : vector<2x128xf32>
    %864 = tpu.matmul %859, %863, %cst_554 {dimension_numbers = #tpu.dot_dimension_numbers<[1], [0], [0], [1], [0, 0, 1, 1], [], []>} : vector<2x64xf32>, vector<64x128xf32>, vector<2x128xf32> -> vector<2x128xf32>
    %865 = arith.addf %862, %864 : vector<2x128xf32>
    %c0_555 = arith.constant 0 : index
    %c0_556 = arith.constant 0 : index
    %866 = vector.load %arg10[%c0_555, %c0_556] : memref<1x128xf32, #tpu.memory_space<vmem>>, vector<1x128xf32>
    %867 = vector.broadcast %866 : vector<1x128xf32> to vector<2x128xf32>
    %868 = arith.addf %865, %867 : vector<2x128xf32>
    %cst_557 = arith.constant dense<0xFF800000> : vector<2xf32>
    %869 = vector.multi_reduction <maximumf>, %868, %cst_557 [1] : vector<2x128xf32> to vector<2xf32>
    %870 = vector.shape_cast %869 : vector<2xf32> to vector<2x1xf32>
    %871 = vector.broadcast %870 : vector<2x1xf32> to vector<2x128xf32>
    %872 = arith.subf %868, %871 : vector<2x128xf32>
    %873 = math.exp %872 : vector<2x128xf32>
    %cst_558 = arith.constant dense<0.000000e+00> : vector<2xf32>
    %874 = vector.multi_reduction <add>, %873, %cst_558 [1] : vector<2x128xf32> to vector<2xf32>
    %875 = vector.shape_cast %874 : vector<2xf32> to vector<2x1xf32>
    %876 = tpu.reciprocal %875 {approx = true} : vector<2x1xf32> -> vector<2x1xf32>
    %877 = vector.broadcast %876 : vector<2x1xf32> to vector<2x128xf32>
    %878 = arith.mulf %873, %877 : vector<2x128xf32>
    %c0_559 = arith.constant 0 : index
    %c0_560 = arith.constant 0 : index
    %879 = vector.load %arg11[%c0_559, %c0_560] : memref<64x1xf32, #tpu.memory_space<vmem>>, vector<64x1xf32>
    %cst_561 = arith.constant dense<0.000000e+00> : vector<2x1xf32>
    %880 = tpu.matmul %859, %879, %cst_561 {dimension_numbers = #tpu.dot_dimension_numbers<[1], [0], [0], [1], [0, 0, 1, 1], [], []>} : vector<2x64xf32>, vector<64x1xf32>, vector<2x1xf32> -> vector<2x1xf32>
    %c0_562 = arith.constant 0 : index
    %c0_563 = arith.constant 0 : index
    %881 = vector.load %arg12[%c0_562, %c0_563] : memref<64x1xf32, #tpu.memory_space<vmem>>, vector<64x1xf32>
    %cst_564 = arith.constant dense<0.000000e+00> : vector<2x1xf32>
    %882 = tpu.matmul %812, %881, %cst_564 {dimension_numbers = #tpu.dot_dimension_numbers<[1], [0], [0], [1], [0, 0, 1, 1], [], []>} : vector<2x64xf32>, vector<64x1xf32>, vector<2x1xf32> -> vector<2x1xf32>
    %883 = arith.addf %880, %882 : vector<2x1xf32>
    %884 = arith.index_cast %779 : i32 to index
    %c0_565 = arith.constant 0 : index
    %c0_566 = arith.constant 0 : index
    %885 = vector.load %arg4[%884, %c0_565, %c0_566] : memref<8x2x1xf32, #tpu.memory_space<vmem>>, vector<1x2x1xf32>
    %886 = vector.shape_cast %885 : vector<1x2x1xf32> to vector<2x1xf32>
    %887 = arith.addf %883, %886 : vector<2x1xf32>
    %888 = arith.negf %887 : vector<2x1xf32>
    %889 = math.exp %888 : vector<2x1xf32>
    %cst_567 = arith.constant 1.000000e+00 : f32
    %890 = vector.broadcast %cst_567 : f32 to vector<2x1xf32>
    %891 = arith.addf %890, %889 : vector<2x1xf32>
    %892 = arith.divf %890, %891 : vector<2x1xf32>
    %893 = vector.broadcast %892 : vector<2x1xf32> to vector<2x128xf32>
    %894 = arith.mulf %893, %878 : vector<2x128xf32>
    %cst_568 = arith.constant 1.000000e+00 : f32
    %895 = vector.broadcast %cst_568 : f32 to vector<2x1xf32>
    %896 = arith.subf %895, %892 : vector<2x1xf32>
    %897 = vector.broadcast %896 : vector<2x1xf32> to vector<2x128xf32>
    %898 = arith.mulf %897, %860 : vector<2x128xf32>
    %899 = arith.addf %894, %898 : vector<2x128xf32>
    %cst_569 = arith.constant 1.000000e-10 : f32
    %900 = vector.broadcast %cst_569 : f32 to vector<2x128xf32>
    %901 = arith.addf %899, %900 : vector<2x128xf32>
    %902 = math.log %901 : vector<2x128xf32>
    %903 = arith.index_cast %779 : i32 to index
    %c0_570 = arith.constant 0 : index
    %c0_571 = arith.constant 0 : index
    %904 = vector.load %arg13[%903, %c0_570, %c0_571] : memref<8x2x128xf32, #tpu.memory_space<vmem>>, vector<1x2x128xf32>
    %905 = vector.shape_cast %904 : vector<1x2x128xf32> to vector<2x128xf32>
    %906 = vector.shape_cast %902 : vector<2x128xf32> to vector<1x2x128xf32>
    tpu.vector_store %arg13[%903, %c0_570, %c0_571], %906 {strides = array<i32>} : memref<8x2x128xf32, #tpu.memory_space<vmem>>, vector<1x2x128xf32>,
    %c7_i32 = arith.constant 7 : i32
    %c1_i32_572 = arith.constant 1 : i32
    %907 = arith.muli %c7_i32, %c1_i32_572 : i32
    %c0_i32_573 = arith.constant 0 : i32
    %908 = arith.addi %c0_i32_573, %907 : i32
    %909 = arith.index_cast %908 : i32 to index
    %c0_574 = arith.constant 0 : index
    %c0_575 = arith.constant 0 : index
    %910 = vector.load %arg3[%909, %c0_574, %c0_575] : memref<8x2x256xf32, #tpu.memory_space<vmem>>, vector<1x2x256xf32>
    %911 = vector.shape_cast %910 : vector<1x2x256xf32> to vector<2x256xf32>
    %c0_576 = arith.constant 0 : index
    %c0_577 = arith.constant 0 : index
    %912 = vector.load %arg14[%c0_576, %c0_577] : memref<2x64xf32, #tpu.memory_space<vmem>>, vector<2x64xf32>
    %c0_578 = arith.constant 0 : index
    %c0_579 = arith.constant 0 : index
    %913 = vector.load %arg7[%c0_578, %c0_579] : memref<64x256xf32, #tpu.memory_space<vmem>>, vector<64x256xf32>
    %cst_580 = arith.constant dense<0.000000e+00> : vector<2x256xf32>
    %914 = tpu.matmul %912, %913, %cst_580 {dimension_numbers = #tpu.dot_dimension_numbers<[1], [0], [0], [1], [0, 0, 1, 1], [], []>} : vector<2x64xf32>, vector<64x256xf32>, vector<2x256xf32> -> vector<2x256xf32>
    %915 = arith.addf %911, %914 : vector<2x256xf32>
    %916 = vector.extract_strided_slice %915 {offsets = [0, 0], sizes = [2, 64], strides = [1, 1]} : vector<2x256xf32> to vector<2x64xf32>
    %917 = arith.negf %916 : vector<2x64xf32>
    %918 = math.exp %917 : vector<2x64xf32>
    %cst_581 = arith.constant 1.000000e+00 : f32
    %919 = vector.broadcast %cst_581 : f32 to vector<2x64xf32>
    %920 = arith.addf %919, %918 : vector<2x64xf32>
    %921 = arith.divf %919, %920 : vector<2x64xf32>
    %922 = vector.extract_strided_slice %915 {offsets = [0, 64], sizes = [2, 64], strides = [1, 1]} : vector<2x256xf32> to vector<2x64xf32>
    %923 = arith.negf %922 : vector<2x64xf32>
    %924 = math.exp %923 : vector<2x64xf32>
    %cst_582 = arith.constant 1.000000e+00 : f32
    %925 = vector.broadcast %cst_582 : f32 to vector<2x64xf32>
    %926 = arith.addf %925, %924 : vector<2x64xf32>
    %927 = arith.divf %925, %926 : vector<2x64xf32>
    %928 = vector.extract_strided_slice %915 {offsets = [0, 128], sizes = [2, 64], strides = [1, 1]} : vector<2x256xf32> to vector<2x64xf32>
    %929 = math.tanh %928 : vector<2x64xf32>
    %930 = vector.extract_strided_slice %915 {offsets = [0, 192], sizes = [2, 64], strides = [1, 1]} : vector<2x256xf32> to vector<2x64xf32>
    %931 = arith.negf %930 : vector<2x64xf32>
    %932 = math.exp %931 : vector<2x64xf32>
    %cst_583 = arith.constant 1.000000e+00 : f32
    %933 = vector.broadcast %cst_583 : f32 to vector<2x64xf32>
    %934 = arith.addf %933, %932 : vector<2x64xf32>
    %935 = arith.divf %933, %934 : vector<2x64xf32>
    %c0_584 = arith.constant 0 : index
    %c0_585 = arith.constant 0 : index
    %936 = vector.load %arg15[%c0_584, %c0_585] : memref<2x64xf32, #tpu.memory_space<vmem>>, vector<2x64xf32>
    %937 = arith.mulf %927, %936 : vector<2x64xf32>
    %938 = arith.mulf %921, %929 : vector<2x64xf32>
    %939 = arith.addf %937, %938 : vector<2x64xf32>
    %940 = math.tanh %939 : vector<2x64xf32>
    %941 = arith.mulf %935, %940 : vector<2x64xf32>
    %c0_586 = arith.constant 0 : index
    %c0_587 = arith.constant 0 : index
    %942 = vector.load %arg14[%c0_586, %c0_587] : memref<2x64xf32, #tpu.memory_space<vmem>>, vector<2x64xf32>
    tpu.vector_store %arg14[%c0_586, %c0_587], %941 {strides = array<i32>} : memref<2x64xf32, #tpu.memory_space<vmem>>, vector<2x64xf32>,
    %c0_588 = arith.constant 0 : index
    %c0_589 = arith.constant 0 : index
    %943 = vector.load %arg15[%c0_588, %c0_589] : memref<2x64xf32, #tpu.memory_space<vmem>>, vector<2x64xf32>
    tpu.vector_store %arg15[%c0_588, %c0_589], %939 {strides = array<i32>} : memref<2x64xf32, #tpu.memory_space<vmem>>, vector<2x64xf32>,
    %944 = vector.extract_strided_slice %941 {offsets = [0, 0], sizes = [1, 64], strides = [1, 1]} : vector<2x64xf32> to vector<1x64xf32>
    %c0_590 = arith.constant 0 : index
    %c0_591 = arith.constant 0 : index
    %c0_592 = arith.constant 0 : index
    %945 = vector.load %arg1[%c0_590, %c0_591, %c0_592] : memref<2x64x8xf32, #tpu.memory_space<vmem>>, vector<1x64x8xf32>
    %946 = vector.shape_cast %945 : vector<1x64x8xf32> to vector<64x8xf32>
    %cst_593 = arith.constant dense<0.000000e+00> : vector<1x8xf32>
    %947 = tpu.matmul %944, %946, %cst_593 {dimension_numbers = #tpu.dot_dimension_numbers<[1], [0], [0], [1], [0, 0, 1, 1], [], []>} : vector<1x64xf32>, vector<64x8xf32>, vector<1x8xf32> -> vector<1x8xf32>
    %cst_594 = arith.constant dense<0xFF800000> : vector<1xf32>
    %948 = vector.multi_reduction <maximumf>, %947, %cst_594 [1] : vector<1x8xf32> to vector<1xf32>
    %949 = vector.shape_cast %948 : vector<1xf32> to vector<1x1xf32>
    %950 = vector.broadcast %949 : vector<1x1xf32> to vector<1x8xf32>
    %951 = arith.subf %947, %950 : vector<1x8xf32>
    %952 = math.exp %951 : vector<1x8xf32>
    %cst_595 = arith.constant dense<0.000000e+00> : vector<1xf32>
    %953 = vector.multi_reduction <add>, %952, %cst_595 [1] : vector<1x8xf32> to vector<1xf32>
    %954 = vector.shape_cast %953 : vector<1xf32> to vector<1x1xf32>
    %955 = tpu.reciprocal %954 {approx = true} : vector<1x1xf32> -> vector<1x1xf32>
    %956 = vector.broadcast %955 : vector<1x1xf32> to vector<1x8xf32>
    %957 = arith.mulf %952, %956 : vector<1x8xf32>
    %c0_596 = arith.constant 0 : index
    %c0_597 = arith.constant 0 : index
    %c0_598 = arith.constant 0 : index
    %958 = vector.load %arg0[%c0_596, %c0_597, %c0_598] : memref<2x8x64xf32, #tpu.memory_space<vmem>>, vector<1x8x64xf32>
    %959 = vector.shape_cast %958 : vector<1x8x64xf32> to vector<8x64xf32>
    %cst_599 = arith.constant dense<0.000000e+00> : vector<1x64xf32>
    %960 = tpu.matmul %957, %959, %cst_599 {dimension_numbers = #tpu.dot_dimension_numbers<[1], [0], [0], [1], [0, 0, 1, 1], [], []>} : vector<1x8xf32>, vector<8x64xf32>, vector<1x64xf32> -> vector<1x64xf32>
    %c0_600 = arith.constant 0 : index
    %c0_601 = arith.constant 0 : index
    %961 = vector.load %arg16[%c0_600, %c0_601] : memref<2x64xf32, #tpu.memory_space<vmem>>, vector<1x64xf32>
    tpu.vector_store %arg16[%c0_600, %c0_601], %960 {strides = array<i32>} : memref<2x64xf32, #tpu.memory_space<vmem>>, vector<1x64xf32>,
    %c0_602 = arith.constant 0 : index
    %c0_603 = arith.constant 0 : index
    %c0_604 = arith.constant 0 : index
    %962 = vector.load %arg2[%c0_602, %c0_603, %c0_604] : memref<2x8x128xf32, #tpu.memory_space<vmem>>, vector<1x8x128xf32>
    %963 = vector.shape_cast %962 : vector<1x8x128xf32> to vector<8x128xf32>
    %cst_605 = arith.constant dense<0.000000e+00> : vector<1x128xf32>
    %964 = tpu.matmul %957, %963, %cst_605 {dimension_numbers = #tpu.dot_dimension_numbers<[1], [0], [0], [1], [0, 0, 1, 1], [], []>} : vector<1x8xf32>, vector<8x128xf32>, vector<1x128xf32> -> vector<1x128xf32>
    %c0_606 = arith.constant 0 : index
    %c0_607 = arith.constant 0 : index
    %965 = vector.load %arg17[%c0_606, %c0_607] : memref<2x128xf32, #tpu.memory_space<vmem>>, vector<1x128xf32>
    tpu.vector_store %arg17[%c0_606, %c0_607], %964 {strides = array<i32>} : memref<2x128xf32, #tpu.memory_space<vmem>>, vector<1x128xf32>,
    %966 = vector.extract_strided_slice %941 {offsets = [1, 0], sizes = [1, 64], strides = [1, 1]} : vector<2x64xf32> to vector<1x64xf32>
    %c1_608 = arith.constant 1 : index
    %c0_609 = arith.constant 0 : index
    %c0_610 = arith.constant 0 : index
    %967 = vector.load %arg1[%c1_608, %c0_609, %c0_610] : memref<2x64x8xf32, #tpu.memory_space<vmem>>, vector<1x64x8xf32>
    %968 = vector.shape_cast %967 : vector<1x64x8xf32> to vector<64x8xf32>
    %cst_611 = arith.constant dense<0.000000e+00> : vector<1x8xf32>
    %969 = tpu.matmul %966, %968, %cst_611 {dimension_numbers = #tpu.dot_dimension_numbers<[1], [0], [0], [1], [0, 0, 1, 1], [], []>} : vector<1x64xf32>, vector<64x8xf32>, vector<1x8xf32> -> vector<1x8xf32>
    %cst_612 = arith.constant dense<0xFF800000> : vector<1xf32>
    %970 = vector.multi_reduction <maximumf>, %969, %cst_612 [1] : vector<1x8xf32> to vector<1xf32>
    %971 = vector.shape_cast %970 : vector<1xf32> to vector<1x1xf32>
    %972 = vector.broadcast %971 : vector<1x1xf32> to vector<1x8xf32>
    %973 = arith.subf %969, %972 : vector<1x8xf32>
    %974 = math.exp %973 : vector<1x8xf32>
    %cst_613 = arith.constant dense<0.000000e+00> : vector<1xf32>
    %975 = vector.multi_reduction <add>, %974, %cst_613 [1] : vector<1x8xf32> to vector<1xf32>
    %976 = vector.shape_cast %975 : vector<1xf32> to vector<1x1xf32>
    %977 = tpu.reciprocal %976 {approx = true} : vector<1x1xf32> -> vector<1x1xf32>
    %978 = vector.broadcast %977 : vector<1x1xf32> to vector<1x8xf32>
    %979 = arith.mulf %974, %978 : vector<1x8xf32>
    %c1_614 = arith.constant 1 : index
    %c0_615 = arith.constant 0 : index
    %c0_616 = arith.constant 0 : index
    %980 = vector.load %arg0[%c1_614, %c0_615, %c0_616] : memref<2x8x64xf32, #tpu.memory_space<vmem>>, vector<1x8x64xf32>
    %981 = vector.shape_cast %980 : vector<1x8x64xf32> to vector<8x64xf32>
    %cst_617 = arith.constant dense<0.000000e+00> : vector<1x64xf32>
    %982 = tpu.matmul %979, %981, %cst_617 {dimension_numbers = #tpu.dot_dimension_numbers<[1], [0], [0], [1], [0, 0, 1, 1], [], []>} : vector<1x8xf32>, vector<8x64xf32>, vector<1x64xf32> -> vector<1x64xf32>
    %c1_618 = arith.constant 1 : index
    %c0_619 = arith.constant 0 : index
    %983 = vector.load %arg16[%c1_618, %c0_619] : memref<2x64xf32, #tpu.memory_space<vmem>>, vector<1x64xf32>
    tpu.vector_store %arg16[%c1_618, %c0_619], %982 {strides = array<i32>} : memref<2x64xf32, #tpu.memory_space<vmem>>, vector<1x64xf32>,
    %c1_620 = arith.constant 1 : index
    %c0_621 = arith.constant 0 : index
    %c0_622 = arith.constant 0 : index
    %984 = vector.load %arg2[%c1_620, %c0_621, %c0_622] : memref<2x8x128xf32, #tpu.memory_space<vmem>>, vector<1x8x128xf32>
    %985 = vector.shape_cast %984 : vector<1x8x128xf32> to vector<8x128xf32>
    %cst_623 = arith.constant dense<0.000000e+00> : vector<1x128xf32>
    %986 = tpu.matmul %979, %985, %cst_623 {dimension_numbers = #tpu.dot_dimension_numbers<[1], [0], [0], [1], [0, 0, 1, 1], [], []>} : vector<1x8xf32>, vector<8x128xf32>, vector<1x128xf32> -> vector<1x128xf32>
    %c1_624 = arith.constant 1 : index
    %c0_625 = arith.constant 0 : index
    %987 = vector.load %arg17[%c1_624, %c0_625] : memref<2x128xf32, #tpu.memory_space<vmem>>, vector<1x128xf32>
    tpu.vector_store %arg17[%c1_624, %c0_625], %986 {strides = array<i32>} : memref<2x128xf32, #tpu.memory_space<vmem>>, vector<1x128xf32>,
    %c0_626 = arith.constant 0 : index
    %c0_627 = arith.constant 0 : index
    %988 = vector.load %arg16[%c0_626, %c0_627] : memref<2x64xf32, #tpu.memory_space<vmem>>, vector<2x64xf32>
    %c0_628 = arith.constant 0 : index
    %c0_629 = arith.constant 0 : index
    %989 = vector.load %arg17[%c0_628, %c0_629] : memref<2x128xf32, #tpu.memory_space<vmem>>, vector<2x128xf32>
    %c0_630 = arith.constant 0 : index
    %c0_631 = arith.constant 0 : index
    %990 = vector.load %arg8[%c0_630, %c0_631] : memref<64x128xf32, #tpu.memory_space<vmem>>, vector<64x128xf32>
    %cst_632 = arith.constant dense<0.000000e+00> : vector<2x128xf32>
    %991 = tpu.matmul %941, %990, %cst_632 {dimension_numbers = #tpu.dot_dimension_numbers<[1], [0], [0], [1], [0, 0, 1, 1], [], []>} : vector<2x64xf32>, vector<64x128xf32>, vector<2x128xf32> -> vector<2x128xf32>
    %c0_633 = arith.constant 0 : index
    %c0_634 = arith.constant 0 : index
    %992 = vector.load %arg9[%c0_633, %c0_634] : memref<64x128xf32, #tpu.memory_space<vmem>>, vector<64x128xf32>
    %cst_635 = arith.constant dense<0.000000e+00> : vector<2x128xf32>
    %993 = tpu.matmul %988, %992, %cst_635 {dimension_numbers = #tpu.dot_dimension_numbers<[1], [0], [0], [1], [0, 0, 1, 1], [], []>} : vector<2x64xf32>, vector<64x128xf32>, vector<2x128xf32> -> vector<2x128xf32>
    %994 = arith.addf %991, %993 : vector<2x128xf32>
    %c0_636 = arith.constant 0 : index
    %c0_637 = arith.constant 0 : index
    %995 = vector.load %arg10[%c0_636, %c0_637] : memref<1x128xf32, #tpu.memory_space<vmem>>, vector<1x128xf32>
    %996 = vector.broadcast %995 : vector<1x128xf32> to vector<2x128xf32>
    %997 = arith.addf %994, %996 : vector<2x128xf32>
    %cst_638 = arith.constant dense<0xFF800000> : vector<2xf32>
    %998 = vector.multi_reduction <maximumf>, %997, %cst_638 [1] : vector<2x128xf32> to vector<2xf32>
    %999 = vector.shape_cast %998 : vector<2xf32> to vector<2x1xf32>
    %1000 = vector.broadcast %999 : vector<2x1xf32> to vector<2x128xf32>
    %1001 = arith.subf %997, %1000 : vector<2x128xf32>
    %1002 = math.exp %1001 : vector<2x128xf32>
    %cst_639 = arith.constant dense<0.000000e+00> : vector<2xf32>
    %1003 = vector.multi_reduction <add>, %1002, %cst_639 [1] : vector<2x128xf32> to vector<2xf32>
    %1004 = vector.shape_cast %1003 : vector<2xf32> to vector<2x1xf32>
    %1005 = tpu.reciprocal %1004 {approx = true} : vector<2x1xf32> -> vector<2x1xf32>
    %1006 = vector.broadcast %1005 : vector<2x1xf32> to vector<2x128xf32>
    %1007 = arith.mulf %1002, %1006 : vector<2x128xf32>
    %c0_640 = arith.constant 0 : index
    %c0_641 = arith.constant 0 : index
    %1008 = vector.load %arg11[%c0_640, %c0_641] : memref<64x1xf32, #tpu.memory_space<vmem>>, vector<64x1xf32>
    %cst_642 = arith.constant dense<0.000000e+00> : vector<2x1xf32>
    %1009 = tpu.matmul %988, %1008, %cst_642 {dimension_numbers = #tpu.dot_dimension_numbers<[1], [0], [0], [1], [0, 0, 1, 1], [], []>} : vector<2x64xf32>, vector<64x1xf32>, vector<2x1xf32> -> vector<2x1xf32>
    %c0_643 = arith.constant 0 : index
    %c0_644 = arith.constant 0 : index
    %1010 = vector.load %arg12[%c0_643, %c0_644] : memref<64x1xf32, #tpu.memory_space<vmem>>, vector<64x1xf32>
    %cst_645 = arith.constant dense<0.000000e+00> : vector<2x1xf32>
    %1011 = tpu.matmul %941, %1010, %cst_645 {dimension_numbers = #tpu.dot_dimension_numbers<[1], [0], [0], [1], [0, 0, 1, 1], [], []>} : vector<2x64xf32>, vector<64x1xf32>, vector<2x1xf32> -> vector<2x1xf32>
    %1012 = arith.addf %1009, %1011 : vector<2x1xf32>
    %1013 = arith.index_cast %908 : i32 to index
    %c0_646 = arith.constant 0 : index
    %c0_647 = arith.constant 0 : index
    %1014 = vector.load %arg4[%1013, %c0_646, %c0_647] : memref<8x2x1xf32, #tpu.memory_space<vmem>>, vector<1x2x1xf32>
    %1015 = vector.shape_cast %1014 : vector<1x2x1xf32> to vector<2x1xf32>
    %1016 = arith.addf %1012, %1015 : vector<2x1xf32>
    %1017 = arith.negf %1016 : vector<2x1xf32>
    %1018 = math.exp %1017 : vector<2x1xf32>
    %cst_648 = arith.constant 1.000000e+00 : f32
    %1019 = vector.broadcast %cst_648 : f32 to vector<2x1xf32>
    %1020 = arith.addf %1019, %1018 : vector<2x1xf32>
    %1021 = arith.divf %1019, %1020 : vector<2x1xf32>
    %1022 = vector.broadcast %1021 : vector<2x1xf32> to vector<2x128xf32>
    %1023 = arith.mulf %1022, %1007 : vector<2x128xf32>
    %cst_649 = arith.constant 1.000000e+00 : f32
    %1024 = vector.broadcast %cst_649 : f32 to vector<2x1xf32>
    %1025 = arith.subf %1024, %1021 : vector<2x1xf32>
    %1026 = vector.broadcast %1025 : vector<2x1xf32> to vector<2x128xf32>
    %1027 = arith.mulf %1026, %989 : vector<2x128xf32>
    %1028 = arith.addf %1023, %1027 : vector<2x128xf32>
    %cst_650 = arith.constant 1.000000e-10 : f32
    %1029 = vector.broadcast %cst_650 : f32 to vector<2x128xf32>
    %1030 = arith.addf %1028, %1029 : vector<2x128xf32>
    %1031 = math.log %1030 : vector<2x128xf32>
    %1032 = arith.index_cast %908 : i32 to index
    %c0_651 = arith.constant 0 : index
    %c0_652 = arith.constant 0 : index
    %1033 = vector.load %arg13[%1032, %c0_651, %c0_652] : memref<8x2x128xf32, #tpu.memory_space<vmem>>, vector<1x2x128xf32>
    %1034 = vector.shape_cast %1033 : vector<1x2x128xf32> to vector<2x128xf32>
    %1035 = vector.shape_cast %1031 : vector<2x128xf32> to vector<1x2x128xf32>
    tpu.vector_store %arg13[%1032, %c0_651, %c0_652], %1035 {strides = array<i32>} : memref<8x2x128xf32, #tpu.memory_space<vmem>>, vector<1x2x128xf32>,
    %c8_i32 = arith.constant 8 : i32
    return
  }
}

</mosaic_0001>

<bundles_post_ra>
// kernel: pointer_generator_forward.2
= control target key start
LH: loop header
LB: loop body
LE: loop exit
PB: predicated region body
PF: predicated region fallthrough
CT: control target
= control target key end

     0   :  { %vm14_vm0 = vcmask 517120   ;;  %v1642_v3 = vmov 0.0   ;;  %s1643_s17 = smov 64   ;;  %vm35_vm1 = vcmask 523264   ;;  %v1644_v27 = vmov 1983009808   ;;  %s2028_s1 = inlined_call_operand.vmem [shape: f32[64,256], index: 1, kind: input, shape index: {}]   ;;  %s2029_s0 = inlined_call_operand.vmem [shape: f32[8,2,256], index: 0, kind: input, shape index: {}]   ;;  %s2030_s2 = inlined_call_operand.vmem [shape: f32[8,2,64], index: 2, kind: output, shape index: {0}]   ;;  %s2031_s4 = inlined_call_operand.vmem [shape: f32[2,64], index: 4, kind: output, shape index: {2}]   ;;  %s2032_s3 = inlined_call_operand.vmem [shape: f32[2,64], index: 3, kind: output, shape index: {1}]  }
   0x1   :  { %v20_v0 = vld [vmem:[%s2028_s1 + $0x8] sm:$0xff]  ;;  %v22_v1 = vld [vmem:[%s2028_s1 + $0x18] sm:$0xff]  ;;  %v19_v2 = vld [vmem:[%s2028_s1] sm:$0xff]  ;;  %15 = vst.msk [vmem:[#allocation2] sm:$0x3] %vm14_vm0, %v1642_v3  ;;  %103 = vmatprep.mubr.f32.mxu0 %v1642_v3  ;;  %271 = vmatprep.mubr.f32.mxu1 %v1642_v3  ;;  %v114_v28 = vunpack.c.l.s4 %v1644_v27  ;;  %v116_v29 = vlaneseq  ;;  %vm180_vm2 = vcmask 254976  }
   0x2   :  { %16 = vst.msk [vmem:[#allocation3] sm:$0x3] %vm14_vm0, %v1642_v3  ;;  %v1685_v4 = vpack.c.bf16 %v22_v1, %v20_v0  ;;  %v21_v5 = vld [vmem:[%s2028_s1 + $0x10] sm:$0xff]  ;;  %v24_v6 = vld [vmem:[%s2028_s1 + $0x28] sm:$0xff]  ;;  %v26_v7 = vld [vmem:[%s2028_s1 + $0x38] sm:$0xff]  ;;  %vm183_vm3 = vcmask 517376  }
   0x3   :  { %v1696_v8 = vpack.c.bf16 %v21_v5, %v19_v2  ;;  %v1698_v9 = vpack.c.bf16 %v26_v7, %v24_v6  ;;  %v23_v10 = vld [vmem:[%s2028_s1 + $0x20] sm:$0xff]  ;;  %v25_v11 = vld [vmem:[%s2028_s1 + $0x30] sm:$0xff]  ;;  %v28_v12 = vld [vmem:[%s2028_s1 + $0x48] sm:$0xff]  ;;  %v115_v30 = vunpack.c.0.s8 %v114_v28  ;;  %v117_v31 = vshrl.u32 %v116_v29, 7 }
   0x4   :  { %1416 = vmatprep.subr.bf16.mxu0 %v1685_v4  ;;  %v30_v13 = vld [vmem:[%s2028_s1 + $0x58] sm:$0xff]  ;;  %1432 = vmatprep.subr.bf16.mxu1 %v1685_v4  ;;  %v1715_v14 = vpack.c.bf16 %v25_v11, %v23_v10  ;;  %v27_v16 = vld [vmem:[%s2028_s1 + $0x40] sm:$0xff]  ;;  %v29_v17 = vld [vmem:[%s2028_s1 + $0x50] sm:$0xff] }
   0x5   :  { %1418 = vmatpush1.bf16.msra.mxu0 %v1696_v8  ;;  %1434 = vmatpush1.bf16.msra.mxu1 %v1696_v8  ;;  %v1719_v15 = vpack.c.bf16 %v30_v13, %v28_v12  ;;  %v32_v18 = vld [vmem:[%s2028_s1 + $0x68] sm:$0xff]  ;;  %v34_v19 = vld [vmem:[%s2028_s1 + $0x78] sm:$0xff]  ;;  %v1735_v21 = vpack.c.bf16 %v29_v17, %v27_v16  ;;  %v31_v23 = vld [vmem:[%s2028_s1 + $0x60] sm:$0xff]  ;;  %v1769_v33 = vsub.s32 %v115_v30, %v117_v31 }
   0x6   :  { %1420 = vmatprep.subr.bf16.mxu0 %v1698_v9  ;;  %1436 = vmatprep.subr.bf16.mxu1 %v1698_v9  ;;  %v1739_v22 = vpack.c.bf16 %v34_v19, %v32_v18  ;;  %v33_v24 = vld [vmem:[%s2028_s1 + $0x70] sm:$0xff]  ;;  %v17_v36 = vld [vmem:[%s2029_s0] sm:$0xf]  ;;  %v1367_v2 = vld [vmem:[%s2029_s0 + $0x4] sm:$0xf] }
   0x7   :  { %v1750_v25 = vpack.c.bf16 %v33_v24, %v31_v23 }
   0x8   :  { %v18_v26 = vld [vmem:[#allocation2] sm:$0x3] }
   0x9   :  { %v1365_v20 = vld.sshfl [vmem:[#allocation3] sm:$0x3 pattern:$0x76325410]  ;;  %1422 = vmatpush1.bf16.msra.mxu0 %v1715_v14  ;;  %1438 = vmatpush1.bf16.msra.mxu1 %v1715_v14 }
   0xa   :  { %151 = vrot.lane.b32.xlu0 %v1365_v20, %s1643_s17  ;;  %1424 = vmatprep.subr.bf16.mxu0 %v1719_v15 }
   0xb   :  { %1440 = vmatprep.subr.bf16.mxu1 %v1719_v15 }
   0xd   :  { %1426 = vmatpush1.bf16.msra.mxu0 %v1735_v21  ;;  %1442 = vmatpush1.bf16.msra.mxu1 %v1735_v21 }
   0xe   :  { %1428 = vmatprep.subr.bf16.mxu0 %v1739_v22  ;;  %1444 = vmatprep.subr.bf16.mxu1 %v1739_v22 }
  0x11   :  { %1430 = vmatpush1.bf16.msra.mxu0 %v1750_v25  ;;  %1446 = vmatpush1.bf16.msra.mxu1 %v1750_v25 }
  0x12   :  { %1448 = vmatprep.subr.bf16.mxu0 %v1685_v4  ;;  %1464 = vmatprep.subr.bf16.mxu1 %v1685_v4 }
  0x14   :  { %1362 = vmatmul.mubr.msk.f32.vlgmr.msra.gmra.mrb[0].mxu0 %vm35_vm1, %v18_v26 }
  0x15   :  { %1450 = vmatpush1.bf16.msra.mxu0 %v1696_v8  ;;  %438 = vmatprep.mubr.f32.mxu0 %v1642_v3 }
  0x16   :  { %1452 = vmatprep.subr.bf16.mxu0 %v1698_v9 }
  0x19   :  { %1454 = vmatpush1.bf16.msra.mxu0 %v1715_v14 }
  0x1a   :  { %1456 = vmatprep.subr.bf16.mxu0 %v1719_v15 }
  0x1d   :  { %1458 = vmatpush1.bf16.msra.mxu0 %v1735_v21 }
  0x1e   :  { %1460 = vmatprep.subr.bf16.mxu0 %v1739_v22 }
  0x21   :  { %1462 = vmatpush1.bf16.msra.mxu0 %v1750_v25 }
  0x22   :  { %1480 = vmatprep.subr.bf16.mxu0 %v1685_v4 }
  0x7c   :  { %v152_v46 = vpop.permute.xlu0 %151 }
  0xe7   :  { %v105_v32 = vpop.f32.mrb[0].mxu0 }
  0xe8   :  { %v107_v34 = vpop.f32.mrb[1].mxu0 }
  0xe9   :  { %v112_v35 = vcombine.low %v105_v32, %v107_v34 }
  0xeb   :  { %v119_v37 = vrot.slane %v112_v35, %v1769_v33 }
  0xed   :  { %v121_v38 = vadd.f32 %v119_v37, %v17_v36 }
  0xef   :  { %132 = vrot.lane.b32.xlu1 %v121_v38, %s1643_s17  ;;  %v1363_v39 = vmul.f32 -1.442695, %v121_v38  ;;  %v129_v40 = vrot.slane %v121_v38, 2 }
  0xf1   :  { %1546 = vpow2.f32 %v1363_v39 }
  0xf2   :  { %1548 = vtanh.f32 %v129_v40 }
  0xfb   :  { %v1547_v41 = vpop.eup %1546 }
  0xfc   :  { %v125_v42 = vadd.f32 1.0, %v1547_v41  ;;  %v1549_v43 = vpop.eup %1548 }
  0xfe   :  { %1550 = vrcp.f32 %v125_v42  ;;  %v1374_v42 = vld [vmem:[%s2029_s0 + $0x8] sm:$0xf] }
 0x108   :  { %v1551_v44 = vpop.eup %1550 }
 0x109   :  { %v155_v45 = vmul.f32 %v1551_v44, %v1549_v43  ;;  %v154_v47 = vmul.f32 %v1551_v44, %v152_v46 }
 0x10b   :  { %157 = vrot.lane.b32.xlu0 %v155_v45, %s1643_s17 }
 0x161   :  { %v133_v52 = vpop.permute.xlu1 %132 }
 0x162   :  { %v134_v53 = vrot.slane %v133_v52, 2 }
 0x164   :  { %v1364_v54 = vmul.f32 -1.442695, %v134_v53 }
 0x17d   :  { %v158_v48 = vpop.permute.xlu0 %157 }
 0x17e   :  { %v160_v49 = vadd.f32 %v158_v48, %v154_v47 }
 0x180   :  { %1552 = vtanh.f32 %v160_v49  ;;  %v175_v50 = vrot.slane %v160_v49, %v1769_v33 }
 0x181   :  { %1554 = vpow2.f32 %v1364_v54 }
 0x182   :  { %176 = vrot.lane.b32.xlu0 %v175_v50, %s1643_s17 }
 0x18a   :  { %v1553_v51 = vpop.eup %1552 }
 0x18b   :  { %163 = vrot.lane.b32.xlu1 %v1553_v51, %s1643_s17  ;;  %v1555_v55 = vpop.eup %1554 }
 0x18c   :  { %v139_v56 = vadd.f32 1.0, %v1555_v55 }
 0x18e   :  { %1556 = vrcp.f32 %v139_v56 }
 0x198   :  { %v1557_v59 = vpop.eup %1556 }
 0x1f4   :  { %v177_v57 = vpop.permute.xlu0 %176 }
 0x1f5   :  { %179 = vst.msk [vmem:[#allocation3] sm:$0x3] %vm14_vm0, %v177_v57 }
 0x1fc   :  { %v1371_v58 = vld.sshfl [vmem:[#allocation3] sm:$0x3 pattern:$0x76325410] }
 0x1fd   :  { %319 = vrot.lane.b32.xlu1 %v1371_v58, %s1643_s17  ;;  %v164_v60 = vpop.permute.xlu1 %163 }
 0x1fe   :  { %v166_v61 = vmul.f32 %v1557_v59, %v164_v60 }
 0x200   :  { %167 = vst.msk [vmem:[#allocation2] sm:$0x3] %vm14_vm0, %v166_v61 }
 0x201   :  { %181 = vst.msk [vmem:[%s2030_s2] sm:$0x3] %vm180_vm2, %v166_v61 }
 0x202   :  { %1366 = vst.msk [vmem:[%s2030_s2 + $0xe] sm:$0x3] %vm183_vm3, %v166_v61 }
 0x207   :  { %v187_v62 = vld [vmem:[#allocation2] sm:$0x3] }
 0x208   :  { %1368 = vmatmul.mubr.msk.f32.vlgmr.msra.gmra.mrb[0].mxu1 %vm35_vm1, %v187_v62 }
 0x209   :  { %1466 = vmatpush1.bf16.msra.mxu1 %v1696_v8  ;;  %605 = vmatprep.mubr.f32.mxu1 %v1642_v3 }
 0x20a   :  { %1468 = vmatprep.subr.bf16.mxu1 %v1698_v9 }
 0x20d   :  { %1470 = vmatpush1.bf16.msra.mxu1 %v1715_v14 }
 0x20e   :  { %1472 = vmatprep.subr.bf16.mxu1 %v1719_v15 }
 0x211   :  { %1474 = vmatpush1.bf16.msra.mxu1 %v1735_v21 }
 0x212   :  { %1476 = vmatprep.subr.bf16.mxu1 %v1739_v22 }
 0x215   :  { %1478 = vmatpush1.bf16.msra.mxu1 %v1750_v25 }
 0x216   :  { %1496 = vmatprep.subr.bf16.mxu1 %v1685_v4 }
 0x26f   :  { %v320_v18 = vpop.permute.xlu1 %319 }
 0x2db   :  { %v273_v63 = vpop.f32.mrb[0].mxu1 }
 0x2dc   :  { %v275_v0 = vpop.f32.mrb[1].mxu1 }
 0x2dd   :  { %v280_v1 = vcombine.low %v273_v63, %v275_v0 }
 0x2df   :  { %v287_v5 = vrot.slane %v280_v1, %v1769_v33 }
 0x2e1   :  { %v289_v6 = vadd.f32 %v1367_v2, %v287_v5 }
 0x2e3   :  { %300 = vrot.lane.b32.xlu1 %v289_v6, %s1643_s17  ;;  %v1369_v7 = vmul.f32 -1.442695, %v289_v6  ;;  %v297_v10 = vrot.slane %v289_v6, 2 }
 0x2e5   :  { %1558 = vpow2.f32 %v1369_v7 }
 0x2e6   :  { %1560 = vtanh.f32 %v297_v10 }
 0x2ef   :  { %v1559_v11 = vpop.eup %1558 }
 0x2f0   :  { %v293_v12 = vadd.f32 1.0, %v1559_v11  ;;  %v1561_v13 = vpop.eup %1560  ;;  %v1381_v11 = vld [vmem:[%s2029_s0 + $0xc] sm:$0xf] }
 0x2f2   :  { %1562 = vrcp.f32 %v293_v12 }
 0x2fc   :  { %v1563_v16 = vpop.eup %1562 }
 0x2fd   :  { %v323_v17 = vmul.f32 %v1563_v16, %v1561_v13  ;;  %v322_v19 = vmul.f32 %v1563_v16, %v320_v18 }
 0x2ff   :  { %325 = vrot.lane.b32.xlu0 %v323_v17, %s1643_s17 }
 0x355   :  { %v301_v27 = vpop.permute.xlu1 %300 }
 0x356   :  { %v302_v28 = vrot.slane %v301_v27, 2 }
 0x358   :  { %v1370_v29 = vmul.f32 -1.442695, %v302_v28 }
 0x371   :  { %v326_v20 = vpop.permute.xlu0 %325 }
 0x372   :  { %v328_v23 = vadd.f32 %v326_v20, %v322_v19 }
 0x374   :  { %1564 = vtanh.f32 %v328_v23  ;;  %v343_v24 = vrot.slane %v328_v23, %v1769_v33 }
 0x375   :  { %1566 = vpow2.f32 %v1370_v29 }
 0x376   :  { %344 = vrot.lane.b32.xlu1 %v343_v24, %s1643_s17 }
 0x37e   :  { %v1565_v26 = vpop.eup %1564 }
 0x37f   :  { %331 = vrot.lane.b32.xlu0 %v1565_v26, %s1643_s17  ;;  %v1567_v30 = vpop.eup %1566 }
 0x380   :  { %v307_v31 = vadd.f32 1.0, %v1567_v30 }
 0x382   :  { %1568 = vrcp.f32 %v307_v31 }
 0x38c   :  { %v1569_v35 = vpop.eup %1568 }
 0x3e8   :  { %v345_v32 = vpop.permute.xlu1 %344 }
 0x3e9   :  { %347 = vst.msk [vmem:[#allocation3] sm:$0x3] %vm14_vm0, %v345_v32 }
 0x3f0   :  { %v1378_v34 = vld.sshfl [vmem:[#allocation3] sm:$0x3 pattern:$0x76325410] }
 0x3f1   :  { %v332_v36 = vpop.permute.xlu0 %331  ;;  %486 = vrot.lane.b32.xlu0 %v1378_v34, %s1643_s17 }
 0x3f2   :  { %v334_v37 = vmul.f32 %v1569_v35, %v332_v36 }
 0x3f4   :  { %335 = vst.msk [vmem:[#allocation2] sm:$0x3] %vm14_vm0, %v334_v37 }
 0x3f5   :  { %1372 = vst.msk [vmem:[%s2030_s2 + $0x2] sm:$0x3] %vm180_vm2, %v334_v37 }
 0x3f6   :  { %1373 = vst.msk [vmem:[%s2030_s2 + $0xc] sm:$0x3] %vm183_vm3, %v334_v37 }
 0x3fb   :  { %v354_v38 = vld [vmem:[#allocation2] sm:$0x3] }
 0x3fc   :  { %1375 = vmatmul.mubr.msk.f32.vlgmr.msra.gmra.mrb[2].mxu0 %vm35_vm1, %v354_v38 }
 0x3fd   :  { %1482 = vmatpush1.bf16.msra.mxu0 %v1696_v8  ;;  %772 = vmatprep.mubr.f32.mxu0 %v1642_v3 }
 0x3fe   :  { %1484 = vmatprep.subr.bf16.mxu0 %v1698_v9 }
 0x401   :  { %1486 = vmatpush1.bf16.msra.mxu0 %v1715_v14 }
 0x402   :  { %1488 = vmatprep.subr.bf16.mxu0 %v1719_v15 }
 0x405   :  { %1490 = vmatpush1.bf16.msra.mxu0 %v1735_v21 }
 0x406   :  { %1492 = vmatprep.subr.bf16.mxu0 %v1739_v22 }
 0x409   :  { %1494 = vmatpush1.bf16.msra.mxu0 %v1750_v25 }
 0x40a   :  { %1512 = vmatprep.subr.bf16.mxu0 %v1685_v4 }
 0x463   :  { %v487_v51 = vpop.permute.xlu0 %486 }
 0x4cf   :  { %v440_v39 = vpop.f32.mrb[2].mxu0 }
 0x4d0   :  { %v442_v40 = vpop.f32.mrb[3].mxu0 }
 0x4d1   :  { %v447_v41 = vcombine.low %v440_v39, %v442_v40 }
 0x4d3   :  { %v454_v43 = vrot.slane %v447_v41, %v1769_v33 }
 0x4d5   :  { %v456_v44 = vadd.f32 %v1374_v42, %v454_v43 }
 0x4d7   :  { %v1376_v45 = vmul.f32 -1.442695, %v456_v44  ;;  %467 = vrot.lane.b32.xlu0 %v456_v44, %s1643_s17  ;;  %v464_v46 = vrot.slane %v456_v44, 2 }
 0x4d9   :  { %1570 = vpow2.f32 %v1376_v45 }
 0x4da   :  { %1572 = vtanh.f32 %v464_v46 }
 0x4e3   :  { %v1571_v47 = vpop.eup %1570 }
 0x4e4   :  { %v460_v48 = vadd.f32 1.0, %v1571_v47  ;;  %v1573_v4 = vpop.eup %1572 }
 0x4e6   :  { %1574 = vrcp.f32 %v460_v48 }
 0x4f0   :  { %v1575_v49 = vpop.eup %1574 }
 0x4f1   :  { %v490_v50 = vmul.f32 %v1575_v49, %v1573_v4  ;;  %v489_v52 = vmul.f32 %v1575_v49, %v487_v51 }
 0x4f3   :  { %492 = vrot.lane.b32.xlu1 %v490_v50, %s1643_s17 }
 0x549   :  { %v468_v57 = vpop.permute.xlu0 %467 }
 0x54a   :  { %v469_v58 = vrot.slane %v468_v57, 2 }
 0x54c   :  { %v1377_v59 = vmul.f32 -1.442695, %v469_v58 }
 0x565   :  { %v493_v53 = vpop.permute.xlu1 %492 }
 0x566   :  { %v495_v54 = vadd.f32 %v493_v53, %v489_v52 }
 0x568   :  { %1576 = vtanh.f32 %v495_v54  ;;  %v510_v55 = vrot.slane %v495_v54, %v1769_v33 }
 0x569   :  { %1578 = vpow2.f32 %v1377_v59 }
 0x56a   :  { %511 = vrot.lane.b32.xlu0 %v510_v55, %s1643_s17 }
 0x572   :  { %v1577_v56 = vpop.eup %1576 }
 0x573   :  { %498 = vrot.lane.b32.xlu1 %v1577_v56, %s1643_s17  ;;  %v1579_v60 = vpop.eup %1578 }
 0x574   :  { %v474_v61 = vadd.f32 1.0, %v1579_v60 }
 0x576   :  { %1580 = vrcp.f32 %v474_v61 }
 0x580   :  { %v1581_v0 = vpop.eup %1580 }
 0x5dc   :  { %v512_v62 = vpop.permute.xlu0 %511 }
 0x5dd   :  { %514 = vst.msk [vmem:[#allocation3] sm:$0x3] %vm14_vm0, %v512_v62 }
 0x5e4   :  { %v1385_v63 = vld.sshfl [vmem:[#allocation3] sm:$0x3 pattern:$0x76325410] }
 0x5e5   :  { %653 = vrot.lane.b32.xlu1 %v1385_v63, %s1643_s17  ;;  %v499_v1 = vpop.permute.xlu1 %498 }
 0x5e6   :  { %v501_v2 = vmul.f32 %v1581_v0, %v499_v1 }
 0x5e8   :  { %502 = vst.msk [vmem:[#allocation2] sm:$0x3] %vm14_vm0, %v501_v2 }
 0x5e9   :  { %1379 = vst.msk [vmem:[%s2030_s2 + $0x4] sm:$0x3] %vm180_vm2, %v501_v2 }
 0x5ea   :  { %1380 = vst.msk [vmem:[%s2030_s2 + $0xa] sm:$0x3] %vm183_vm3, %v501_v2 }
 0x5ef   :  { %v521_v5 = vld [vmem:[#allocation2] sm:$0x3] }
 0x5f0   :  { %1382 = vmatmul.mubr.msk.f32.vlgmr.msra.gmra.mrb[2].mxu1 %vm35_vm1, %v521_v5 }
 0x5f1   :  { %1498 = vmatpush1.bf16.msra.mxu1 %v1696_v8  ;;  %937 = vmatprep.mubr.f32.mxu1 %v1642_v3 }
 0x5f2   :  { %1500 = vmatprep.subr.bf16.mxu1 %v1698_v9 }
 0x5f5   :  { %1502 = vmatpush1.bf16.msra.mxu1 %v1715_v14 }
 0x5f6   :  { %1504 = vmatprep.subr.bf16.mxu1 %v1719_v15 }
 0x5f9   :  { %1506 = vmatpush1.bf16.msra.mxu1 %v1735_v21 }
 0x5fa   :  { %1508 = vmatprep.subr.bf16.mxu1 %v1739_v22 }
 0x5fd   :  { %1510 = vmatpush1.bf16.msra.mxu1 %v1750_v25 }
 0x657   :  { %v654_v26 = vpop.permute.xlu1 %653 }
 0x6c3   :  { %v607_v6 = vpop.f32.mrb[2].mxu1 }
 0x6c4   :  { %v609_v7 = vpop.f32.mrb[3].mxu1 }
 0x6c5   :  { %v614_v10 = vcombine.low %v607_v6, %v609_v7  ;;  %v1395_v7 = vld [vmem:[%s2029_s0 + $0x14] sm:$0xf] }
 0x6c7   :  { %v621_v12 = vrot.slane %v614_v10, %v1769_v33 }
 0x6c9   :  { %v623_v13 = vadd.f32 %v1381_v11, %v621_v12 }
 0x6cb   :  { %634 = vrot.lane.b32.xlu1 %v623_v13, %s1643_s17  ;;  %v1383_v16 = vmul.f32 -1.442695, %v623_v13  ;;  %v631_v17 = vrot.slane %v623_v13, 2 }
 0x6cd   :  { %1582 = vpow2.f32 %v1383_v16 }
 0x6ce   :  { %1584 = vtanh.f32 %v631_v17 }
 0x6d7   :  { %v1583_v18 = vpop.eup %1582 }
 0x6d8   :  { %v627_v19 = vadd.f32 1.0, %v1583_v18  ;;  %v1585_v20 = vpop.eup %1584 }
 0x6da   :  { %1586 = vrcp.f32 %v627_v19 }
 0x6e4   :  { %v1587_v23 = vpop.eup %1586 }
 0x6e5   :  { %v657_v24 = vmul.f32 %v1587_v23, %v1585_v20  ;;  %v656_v27 = vmul.f32 %v1587_v23, %v654_v26 }
 0x6e7   :  { %659 = vrot.lane.b32.xlu0 %v657_v24, %s1643_s17 }
 0x73d   :  { %v635_v32 = vpop.permute.xlu1 %634 }
 0x73e   :  { %v636_v34 = vrot.slane %v635_v32, 2 }
 0x740   :  { %v1384_v35 = vmul.f32 -1.442695, %v636_v34 }
 0x759   :  { %v660_v28 = vpop.permute.xlu0 %659 }
 0x75a   :  { %v662_v29 = vadd.f32 %v660_v28, %v656_v27 }
 0x75c   :  { %1588 = vtanh.f32 %v662_v29  ;;  %v677_v30 = vrot.slane %v662_v29, %v1769_v33 }
 0x75d   :  { %1590 = vpow2.f32 %v1384_v35 }
 0x75e   :  { %678 = vrot.lane.b32.xlu1 %v677_v30, %s1643_s17 }
 0x766   :  { %v1589_v31 = vpop.eup %1588 }
 0x767   :  { %665 = vrot.lane.b32.xlu0 %v1589_v31, %s1643_s17  ;;  %v1591_v36 = vpop.eup %1590 }
 0x768   :  { %v641_v37 = vadd.f32 1.0, %v1591_v36 }
 0x76a   :  { %1592 = vrcp.f32 %v641_v37 }
 0x774   :  { %v1593_v40 = vpop.eup %1592 }
 0x7d0   :  { %v679_v38 = vpop.permute.xlu1 %678 }
 0x7d1   :  { %681 = vst.msk [vmem:[#allocation3] sm:$0x3] %vm14_vm0, %v679_v38 }
 0x7d8   :  { %v1392_v39 = vld.sshfl [vmem:[#allocation3] sm:$0x3 pattern:$0x76325410] }
 0x7d9   :  { %v666_v41 = vpop.permute.xlu0 %665  ;;  %820 = vrot.lane.b32.xlu0 %v1392_v39, %s1643_s17 }
 0x7da   :  { %v668_v42 = vmul.f32 %v1593_v40, %v666_v41 }
 0x7dc   :  { %669 = vst.msk [vmem:[#allocation2] sm:$0x3] %vm14_vm0, %v668_v42 }
 0x7dd   :  { %1386 = vst.msk [vmem:[%s2030_s2 + $0x6] sm:$0x3] %vm180_vm2, %v668_v42 }
 0x7de   :  { %1387 = vst.msk [vmem:[%s2030_s2 + $0x8] sm:$0x3] %vm183_vm3, %v668_v42 }
 0x7e3   :  { %v688_v43 = vld [vmem:[#allocation2] sm:$0x3] }
 0x7e4   :  { %1389 = vmatmul.mubr.msk.f32.vlgmr.msra.gmra.mrb[4].mxu0 %vm35_vm1, %v688_v43 }
 0x7e5   :  { %1514 = vmatpush1.bf16.msra.mxu0 %v1696_v8  ;;  %1102 = vmatprep.mubr.f32.mxu0 %v1642_v3  ;;  %v1388_v8 = vld [vmem:[%s2029_s0 + $0x10] sm:$0xf] }
 0x7e6   :  { %1516 = vmatprep.subr.bf16.mxu0 %v1698_v9 }
 0x7e9   :  { %1518 = vmatpush1.bf16.msra.mxu0 %v1715_v14 }
 0x7ea   :  { %1520 = vmatprep.subr.bf16.mxu0 %v1719_v15 }
 0x7ed   :  { %1522 = vmatpush1.bf16.msra.mxu0 %v1735_v21 }
 0x7ee   :  { %1524 = vmatprep.subr.bf16.mxu0 %v1739_v22 }
 0x7f1   :  { %1526 = vmatpush1.bf16.msra.mxu0 %v1750_v25 }
 0x84b   :  { %v821_v49 = vpop.permute.xlu0 %820 }
 0x8b7   :  { %v774_v44 = vpop.f32.mrb[4].mxu0 }
 0x8b8   :  { %v776_v45 = vpop.f32.mrb[5].mxu0 }
 0x8b9   :  { %v781_v46 = vcombine.low %v774_v44, %v776_v45  ;;  %v1402_v44 = vld [vmem:[%s2029_s0 + $0x18] sm:$0xf] }
 0x8bb   :  { %v788_v47 = vrot.slane %v781_v46, %v1769_v33 }
 0x8bd   :  { %v790_v9 = vadd.f32 %v1388_v8, %v788_v47 }
 0x8bf   :  { %v1390_v48 = vmul.f32 -1.442695, %v790_v9  ;;  %801 = vrot.lane.b32.xlu0 %v790_v9, %s1643_s17  ;;  %v798_v14 = vrot.slane %v790_v9, 2 }
 0x8c1   :  { %1594 = vpow2.f32 %v1390_v48 }
 0x8c2   :  { %1596 = vtanh.f32 %v798_v14 }
 0x8cb   :  { %v1595_v15 = vpop.eup %1594 }
 0x8cc   :  { %v794_v21 = vadd.f32 1.0, %v1595_v15  ;;  %v1597_v22 = vpop.eup %1596 }
 0x8ce   :  { %1598 = vrcp.f32 %v794_v21 }
 0x8d8   :  { %v1599_v25 = vpop.eup %1598 }
 0x8d9   :  { %v824_v4 = vmul.f32 %v1599_v25, %v1597_v22  ;;  %v823_v50 = vmul.f32 %v1599_v25, %v821_v49  ;;  %v1185_v22 = vld [vmem:[%s2028_s1 + $0x8] sm:$0xff]  ;;  %v1187_v25 = vld [vmem:[%s2028_s1 + $0x18] sm:$0xff] }
 0x8da   :  { %v1527_v49 = vpack.c.bf16 %v1187_v25, %v1185_v22 }
 0x8db   :  { %826 = vrot.lane.b32.xlu1 %v824_v4, %s1643_s17  ;;  %v1184_v4 = vld [vmem:[%s2028_s1] sm:$0xff] }
 0x8dc   :  { %1528 = vmatprep.subr.bf16.mxu1 %v1527_v49 }
 0x931   :  { %v802_v55 = vpop.permute.xlu0 %801 }
 0x932   :  { %v803_v56 = vrot.slane %v802_v55, 2  ;;  %v1188_v55 = vld [vmem:[%s2028_s1 + $0x20] sm:$0xff] }
 0x934   :  { %v1391_v57 = vmul.f32 -1.442695, %v803_v56  ;;  %v1190_v56 = vld [vmem:[%s2028_s1 + $0x30] sm:$0xff] }
 0x94d   :  { %v827_v51 = vpop.permute.xlu1 %826 }
 0x94e   :  { %v829_v52 = vadd.f32 %v827_v51, %v823_v50  ;;  %v1186_v50 = vld [vmem:[%s2028_s1 + $0x10] sm:$0xff]  ;;  %v1189_v51 = vld [vmem:[%s2028_s1 + $0x28] sm:$0xff] }
 0x950   :  { %1600 = vtanh.f32 %v829_v52  ;;  %v844_v53 = vrot.slane %v829_v52, %v1769_v33  ;;  %v1191_v52 = vld [vmem:[%s2028_s1 + $0x38] sm:$0xff] }
 0x951   :  { %1602 = vpow2.f32 %v1391_v57  ;;  %v1533_v57 = vpack.c.bf16 %v1190_v56, %v1188_v55 }
 0x952   :  { %845 = vrot.lane.b32.xlu0 %v844_v53, %s1643_s17  ;;  %v1529_v53 = vpack.c.bf16 %v1186_v50, %v1184_v4 }
 0x95a   :  { %v1601_v54 = vpop.eup %1600 }
 0x95b   :  { %832 = vrot.lane.b32.xlu1 %v1601_v54, %s1643_s17  ;;  %v1603_v58 = vpop.eup %1602  ;;  %v1531_v54 = vpack.c.bf16 %v1191_v52, %v1189_v51 }
 0x95c   :  { %v808_v59 = vadd.f32 1.0, %v1603_v58 }
 0x95e   :  { %1604 = vrcp.f32 %v808_v59 }
 0x968   :  { %v1605_v62 = vpop.eup %1604 }
 0x9c4   :  { %v846_v60 = vpop.permute.xlu0 %845 }
 0x9c5   :  { %848 = vst.msk [vmem:[#allocation3] sm:$0x3] %vm14_vm0, %v846_v60 }
 0x9cc   :  { %v1399_v61 = vld.sshfl [vmem:[#allocation3] sm:$0x3 pattern:$0x76325410] }
 0x9cd   :  { %985 = vrot.lane.b32.xlu1 %v1399_v61, %s1643_s17  ;;  %v833_v63 = vpop.permute.xlu1 %832 }
 0x9ce   :  { %v835_v0 = vmul.f32 %v1605_v62, %v833_v63  ;;  %v1193_v62 = vld [vmem:[%s2028_s1 + $0x48] sm:$0xff]  ;;  %v1195_v63 = vld [vmem:[%s2028_s1 + $0x58] sm:$0xff] }
 0x9d0   :  { %836 = vst.msk [vmem:[#allocation2] sm:$0x3] %vm14_vm0, %v835_v0 }
 0x9d1   :  { %1393 = vst.msk [vmem:[%s2030_s2 + $0x8] sm:$0x3] %vm180_vm2, %v835_v0 }
 0x9d2   :  { %1394 = vst.msk [vmem:[%s2030_s2 + $0x6] sm:$0x3] %vm183_vm3, %v835_v0  ;;  %v1535_v0 = vpack.c.bf16 %v1195_v63, %v1193_v62 }
 0x9d7   :  { %v853_v1 = vld [vmem:[#allocation2] sm:$0x3] }
 0x9d8   :  { %1396 = vmatmul.mubr.msk.f32.vlgmr.msra.gmra.mrb[4].mxu1 %vm35_vm1, %v853_v1  ;;  %v1192_v1 = vld [vmem:[%s2028_s1 + $0x40] sm:$0xff] }
 0x9d9   :  { %1267 = vmatprep.mubr.f32.mxu1 %v1642_v3  ;;  %1530 = vmatpush1.bf16.msra.mxu1 %v1529_v53 }
 0x9da   :  { %1532 = vmatprep.subr.bf16.mxu1 %v1531_v54 }
 0x9dd   :  { %1534 = vmatpush1.bf16.msra.mxu1 %v1533_v57 }
 0x9de   :  { %1536 = vmatprep.subr.bf16.mxu1 %v1535_v0 }
 0xa3f   :  { %v986_v20 = vpop.permute.xlu1 %985 }
 0xaab   :  { %v939_v2 = vpop.f32.mrb[4].mxu1 }
 0xaac   :  { %v941_v5 = vpop.f32.mrb[5].mxu1 }
 0xaad   :  { %v946_v6 = vcombine.low %v939_v2, %v941_v5  ;;  %v1194_v2 = vld [vmem:[%s2028_s1 + $0x50] sm:$0xff] }
 0xaaf   :  { %v953_v10 = vrot.slane %v946_v6, %v1769_v33  ;;  %v1537_v6 = vpack.c.bf16 %v1194_v2, %v1192_v1 }
 0xab1   :  { %v955_v11 = vadd.f32 %v1395_v7, %v953_v10  ;;  %v1197_v7 = vld [vmem:[%s2028_s1 + $0x68] sm:$0xff]  ;;  %v1199_v10 = vld [vmem:[%s2028_s1 + $0x78] sm:$0xff]  ;;  %1538 = vmatpush1.bf16.msra.mxu1 %v1537_v6 }
 0xab3   :  { %966 = vrot.lane.b32.xlu1 %v955_v11, %s1643_s17  ;;  %v1397_v12 = vmul.f32 -1.442695, %v955_v11  ;;  %v963_v13 = vrot.slane %v955_v11, 2  ;;  %v1196_v11 = vld [vmem:[%s2028_s1 + $0x60] sm:$0xff] }
 0xab5   :  { %1606 = vpow2.f32 %v1397_v12  ;;  %v1539_v12 = vpack.c.bf16 %v1199_v10, %v1197_v7 }
 0xab6   :  { %1608 = vtanh.f32 %v963_v13  ;;  %v1198_v13 = vld [vmem:[%s2028_s1 + $0x70] sm:$0xff] }
 0xab7   :  { %1540 = vmatprep.subr.bf16.mxu1 %v1539_v12 }
 0xabf   :  { %v1607_v16 = vpop.eup %1606 }
 0xac0   :  { %v959_v17 = vadd.f32 1.0, %v1607_v16  ;;  %v1609_v3 = vpop.eup %1608  ;;  %v1541_v16 = vpack.c.bf16 %v1198_v13, %v1196_v11 }
 0xac2   :  { %1610 = vrcp.f32 %v959_v17  ;;  %1542 = vmatpush1.bf16.msra.mxu1 %v1541_v16 }
 0xacc   :  { %v1611_v18 = vpop.eup %1610 }
 0xacd   :  { %v989_v19 = vmul.f32 %v1611_v18, %v1609_v3  ;;  %v988_v23 = vmul.f32 %v1611_v18, %v986_v20 }
 0xacf   :  { %991 = vrot.lane.b32.xlu0 %v989_v19, %s1643_s17 }
 0xb25   :  { %v967_v29 = vpop.permute.xlu1 %966 }
 0xb26   :  { %v968_v30 = vrot.slane %v967_v29, 2 }
 0xb28   :  { %v1398_v31 = vmul.f32 -1.442695, %v968_v30 }
 0xb41   :  { %v992_v24 = vpop.permute.xlu0 %991 }
 0xb42   :  { %v994_v26 = vadd.f32 %v992_v24, %v988_v23 }
 0xb44   :  { %1612 = vtanh.f32 %v994_v26  ;;  %v1009_v27 = vrot.slane %v994_v26, %v1769_v33 }
 0xb45   :  { %1614 = vpow2.f32 %v1398_v31 }
 0xb46   :  { %1010 = vrot.lane.b32.xlu1 %v1009_v27, %s1643_s17 }
 0xb4e   :  { %v1613_v28 = vpop.eup %1612 }
 0xb4f   :  { %997 = vrot.lane.b32.xlu0 %v1613_v28, %s1643_s17  ;;  %v1615_v32 = vpop.eup %1614 }
 0xb50   :  { %v973_v34 = vadd.f32 1.0, %v1615_v32 }
 0xb52   :  { %1616 = vrcp.f32 %v973_v34 }
 0xb5c   :  { %v1617_v37 = vpop.eup %1616 }
 0xbb8   :  { %v1011_v35 = vpop.permute.xlu1 %1010 }
 0xbb9   :  { %1013 = vst.msk [vmem:[#allocation3] sm:$0x3] %vm14_vm0, %v1011_v35  ;;  %v1409_v35 = vld [vmem:[%s2029_s0 + $0x1c] sm:$0xf] }
 0xbc0   :  { %v1406_v36 = vld.sshfl [vmem:[#allocation3] sm:$0x3 pattern:$0x76325410] }
 0xbc1   :  { %v998_v38 = vpop.permute.xlu0 %997  ;;  %1150 = vrot.lane.b32.xlu0 %v1406_v36, %s1643_s17 }
 0xbc2   :  { %v1000_v39 = vmul.f32 %v1617_v37, %v998_v38 }
 0xbc4   :  { %1400 = vst.msk [vmem:[%s2030_s2 + $0xa] sm:$0x3] %vm180_vm2, %v1000_v39 }
 0xbc5   :  { %1401 = vst.msk [vmem:[%s2030_s2 + $0x4] sm:$0x3] %vm183_vm3, %v1000_v39 }
 0xbc6   :  { %1001 = vst.msk [vmem:[#allocation2] sm:$0x3] %vm14_vm0, %v1000_v39 }
 0xbcd   :  { %v1018_v40 = vld [vmem:[#allocation2] sm:$0x3] }
 0xbce   :  { %1403 = vmatmul.mubr.msk.f32.vlgmr.msra.gmra.mrb[6].mxu0 %vm35_vm1, %v1018_v40 }
 0xc33   :  { %v1151_v58 = vpop.permute.xlu0 %1150 }
 0xca1   :  { %v1104_v41 = vpop.f32.mrb[6].mxu0 }
 0xca2   :  { %v1106_v42 = vpop.f32.mrb[7].mxu0 }
 0xca3   :  { %v1111_v43 = vcombine.low %v1104_v41, %v1106_v42 }
 0xca5   :  { %v1118_v45 = vrot.slane %v1111_v43, %v1769_v33 }
 0xca7   :  { %v1120_v46 = vadd.f32 %v1402_v44, %v1118_v45 }
 0xca9   :  { %v1404_v8 = vmul.f32 -1.442695, %v1120_v46  ;;  %1131 = vrot.lane.b32.xlu0 %v1120_v46, %s1643_s17  ;;  %v1128_v47 = vrot.slane %v1120_v46, 2 }
 0xcab   :  { %1618 = vpow2.f32 %v1404_v8 }
 0xcac   :  { %1620 = vtanh.f32 %v1128_v47 }
 0xcb5   :  { %v1619_v9 = vpop.eup %1618 }
 0xcb6   :  { %v1124_v48 = vadd.f32 1.0, %v1619_v9  ;;  %v1621_v14 = vpop.eup %1620 }
 0xcb8   :  { %1622 = vrcp.f32 %v1124_v48 }
 0xcc2   :  { %v1623_v15 = vpop.eup %1622 }
 0xcc3   :  { %v1154_v21 = vmul.f32 %v1623_v15, %v1621_v14  ;;  %v1153_v59 = vmul.f32 %v1623_v15, %v1151_v58 }
 0xcc5   :  { %1156 = vrot.lane.b32.xlu1 %v1154_v21, %s1643_s17 }
 0xd1b   :  { %v1132_v3 = vpop.permute.xlu0 %1131 }
 0xd1c   :  { %v1133_v18 = vrot.slane %v1132_v3, 2 }
 0xd1e   :  { %v1405_v19 = vmul.f32 -1.442695, %v1133_v18 }
 0xd37   :  { %v1157_v60 = vpop.permute.xlu1 %1156 }
 0xd38   :  { %v1159_v61 = vadd.f32 %v1157_v60, %v1153_v59 }
 0xd3a   :  { %1624 = vtanh.f32 %v1159_v61  ;;  %v1174_v5 = vrot.slane %v1159_v61, %v1769_v33 }
 0xd3b   :  { %1626 = vpow2.f32 %v1405_v19 }
 0xd3c   :  { %1175 = vrot.lane.b32.xlu0 %v1174_v5, %s1643_s17 }
 0xd44   :  { %v1625_v17 = vpop.eup %1624 }
 0xd45   :  { %1162 = vrot.lane.b32.xlu1 %v1625_v17, %s1643_s17  ;;  %v1627_v20 = vpop.eup %1626 }
 0xd46   :  { %v1138_v23 = vadd.f32 1.0, %v1627_v20 }
 0xd48   :  { %1628 = vrcp.f32 %v1138_v23 }
 0xd52   :  { %v1629_v27 = vpop.eup %1628 }
 0xdae   :  { %v1176_v24 = vpop.permute.xlu0 %1175 }
 0xdaf   :  { %1178 = vst.msk [vmem:[#allocation3] sm:$0x3] %vm14_vm0, %v1176_v24 }
 0xdb6   :  { %v1413_v26 = vld.sshfl [vmem:[#allocation3] sm:$0x3 pattern:$0x76325410] }
 0xdb7   :  { %1315 = vrot.lane.b32.xlu1 %v1413_v26, %s1643_s17  ;;  %v1163_v28 = vpop.permute.xlu1 %1162 }
 0xdb8   :  { %v1165_v29 = vmul.f32 %v1629_v27, %v1163_v28 }
 0xdba   :  { %1407 = vst.msk [vmem:[%s2030_s2 + $0xc] sm:$0x3] %vm180_vm2, %v1165_v29 }
 0xdbb   :  { %1408 = vst.msk [vmem:[%s2030_s2 + $0x2] sm:$0x3] %vm183_vm3, %v1165_v29 }
 0xdbc   :  { %1166 = vst.msk [vmem:[#allocation2] sm:$0x3] %vm14_vm0, %v1165_v29 }
 0xdc3   :  { %v1183_v30 = vld [vmem:[#allocation2] sm:$0x3] }
 0xdc4   :  { %1410 = vmatmul.mubr.msk.f32.vlgmr.msra.gmra.mrb[6].mxu1 %vm35_vm1, %v1183_v30 }
 0xe29   :  { %v1316_v45 = vpop.permute.xlu1 %1315 }
 0xe97   :  { %v1269_v31 = vpop.f32.mrb[6].mxu1 }
 0xe98   :  { %v1271_v32 = vpop.f32.mrb[7].mxu1 }
 0xe99   :  { %v1276_v34 = vcombine.low %v1269_v31, %v1271_v32 }
 0xe9b   :  { %v1283_v36 = vrot.slane %v1276_v34, %v1769_v33 }
 0xe9d   :  { %v1285_v37 = vadd.f32 %v1409_v35, %v1283_v36 }
 0xe9f   :  { %1296 = vrot.lane.b32.xlu1 %v1285_v37, %s1643_s17  ;;  %v1411_v38 = vmul.f32 -1.442695, %v1285_v37  ;;  %v1293_v39 = vrot.slane %v1285_v37, 2 }
 0xea1   :  { %1630 = vpow2.f32 %v1411_v38 }
 0xea2   :  { %1632 = vtanh.f32 %v1293_v39 }
 0xeab   :  { %v1631_v40 = vpop.eup %1630 }
 0xeac   :  { %v1289_v41 = vadd.f32 1.0, %v1631_v40  ;;  %v1633_v42 = vpop.eup %1632 }
 0xeae   :  { %1634 = vrcp.f32 %v1289_v41 }
 0xeb8   :  { %v1635_v43 = vpop.eup %1634 }
 0xeb9   :  { %v1319_v44 = vmul.f32 %v1635_v43, %v1633_v42  ;;  %v1318_v46 = vmul.f32 %v1635_v43, %v1316_v45 }
 0xebb   :  { %1321 = vrot.lane.b32.xlu0 %v1319_v44, %s1643_s17 }
 0xf11   :  { %v1297_v14 = vpop.permute.xlu1 %1296 }
 0xf12   :  { %v1298_v15 = vrot.slane %v1297_v14, 2 }
 0xf14   :  { %v1412_v21 = vmul.f32 -1.442695, %v1298_v15 }
 0xf2d   :  { %v1322_v8 = vpop.permute.xlu0 %1321 }
 0xf2e   :  { %v1324_v47 = vadd.f32 %v1322_v8, %v1318_v46 }
 0xf30   :  { %1636 = vtanh.f32 %v1324_v47  ;;  %v1339_v9 = vrot.slane %v1324_v47, %v1769_v33 }
 0xf31   :  { %1638 = vpow2.f32 %v1412_v21 }
 0xf32   :  { %1340 = vrot.lane.b32.xlu1 %v1339_v9, %s1643_s17 }
 0xf3a   :  { %v1637_v48 = vpop.eup %1636 }
 0xf3b   :  { %1327 = vrot.lane.b32.xlu0 %v1637_v48, %s1643_s17  ;;  %v1639_v22 = vpop.eup %1638 }
 0xf3c   :  { %v1303_v25 = vadd.f32 1.0, %v1639_v22 }
 0xf3e   :  { %1640 = vrcp.f32 %v1303_v25 }
 0xf48   :  { %v1641_v50 = vpop.eup %1640 }
 0xfa4   :  { %v1341_v4 = vpop.permute.xlu1 %1340 }
 0xfa5   :  { %1343 = vst.msk [vmem:[#allocation3] sm:$0x3] %vm14_vm0, %v1341_v4 }
 0xfac   :  { %v1348_v49 = vld [vmem:[#allocation3] sm:$0x3] }
 0xfad   :  { %1349 = vst.msk [vmem:[%s2031_s4] sm:$0x3] %vm14_vm0, %v1348_v49  ;;  %v1328_v33 = vpop.permute.xlu0 %1327 }
 0xfae   :  { %v1330_v51 = vmul.f32 %v1641_v50, %v1328_v33 }
 0xfb0   :  { %1331 = vst.msk [vmem:[#allocation2] sm:$0x3] %vm14_vm0, %v1330_v51 }
 0xfb1   :  { %1414 = vst.msk [vmem:[%s2030_s2 + $0xe] sm:$0x3] %vm180_vm2, %v1330_v51 }
 0xfb2   :  { %1345 = vst.msk [vmem:[%s2030_s2] sm:$0x3] %vm183_vm3, %v1330_v51 }
 0xfb7   :  { %v1346_v52 = vld [vmem:[#allocation2] sm:$0x3] }
 0xfb8   :  { %1347 = vst.msk [vmem:[%s2032_s3] sm:$0x3] %vm14_vm0, %v1346_v52 }

// kernel: pointer_generator_forward.3
= control target key start
LH: loop header
LB: loop body
LE: loop exit
PB: predicated region body
PF: predicated region fallthrough
CT: control target
= control target key end

     0   :  { %v10871_v3 = vmov 0.0   ;;  %vm45_vm0 = vcmask 517120   ;;  %s10872_s25 = smov 64   ;;  %vm67_vm1 = vcmask 523264   ;;  %v10873_v29 = vmov 1983009808   ;;  %s13322_s7 = inlined_call_operand.vmem [shape: f32[64,256], index: 7, kind: input, shape index: {}]   ;;  %s13323_s5 = inlined_call_operand.vmem [shape: f32[2,64], index: 5, kind: input, shape index: {}]   ;;  %s13324_s6 = inlined_call_operand.vmem [shape: f32[2,64], index: 6, kind: input, shape index: {}]   ;;  %s13325_s3 = inlined_call_operand.vmem [shape: f32[8,2,256], index: 3, kind: input, shape index: {}]   ;;  %s13326_s1 = inlined_call_operand.vmem [shape: f32[2,64,8], index: 1, kind: input, shape index: {}]   ;;  %s13327_s8 = inlined_call_operand.vmem [shape: f32[64,128], index: 8, kind: input, shape index: {}]   ;;  %s13328_s0 = inlined_call_operand.vmem [shape: f32[2,8,64], index: 0, kind: input, shape index: {}]   ;;  %s13329_s2 = inlined_call_operand.vmem [shape: f32[2,8,128], index: 2, kind: input, shape index: {}]   ;;  %s13330_s9 = inlined_call_operand.vmem [shape: f32[64,128], index: 9, kind: input, shape index: {}]   ;;  %s13331_s11 = inlined_call_operand.vmem [shape: f32[64,1], index: 11, kind: input, shape index: {}]   ;;  %s13332_s12 = inlined_call_operand.vmem [shape: f32[64,1], index: 12, kind: input, shape index: {}]   ;;  %s13333_s10 = inlined_call_operand.vmem [shape: f32[1,128], index: 10, kind: input, shape index: {}]   ;;  %s13334_s4 = inlined_call_operand.vmem [shape: f32[8,2,1], index: 4, kind: input, shape index: {}]   ;;  %s13335_s13 = inlined_call_operand.vmem [shape: f32[8,2,128], index: 13, kind: output, shape index: {}]  }
   0x1   :  { %v52_v0 = vld [vmem:[%s13322_s7 + $0x8] sm:$0xff]  ;;  %v54_v1 = vld [vmem:[%s13322_s7 + $0x18] sm:$0xff]  ;;  %v51_v2 = vld [vmem:[%s13322_s7] sm:$0xff]  ;;  %135 = vmatprep.mubr.f32.mxu0 %v10871_v3  ;;  %v146_v30 = vunpack.c.l.s4 %v10873_v29  ;;  %v148_v31 = vlaneseq  ;;  %v13336_v48 = vmov 0.0|0.0   ;;  %vm10875_vm2 = vmmov 0  }
   0x2   :  { %v10957_v4 = vpack.c.bf16 %v54_v1, %v52_v0  ;;  %v53_v5 = vld [vmem:[%s13322_s7 + $0x10] sm:$0xff]  ;;  %v56_v6 = vld [vmem:[%s13322_s7 + $0x28] sm:$0xff]  ;;  %v58_v7 = vld [vmem:[%s13322_s7 + $0x38] sm:$0xff]  ;;  %9935 = vmatprep.subr.bf16.mxu1 %v13336_v48  ;;  %8863 = vmatprep.mubr.msk.f32.mxu1 %vm10875_vm2, %v10871_v3  ;;  %vm293_vm3 = vcmask 57344   ;;  %vm306_vm4 = vcmask 64512   ;;  %vm380_vm5 = vcmask 516096  }
   0x3   :  { %v10968_v8 = vpack.c.bf16 %v53_v5, %v51_v2  ;;  %v10970_v9 = vpack.c.bf16 %v58_v7, %v56_v6  ;;  %v55_v10 = vld [vmem:[%s13322_s7 + $0x20] sm:$0xff]  ;;  %v57_v11 = vld [vmem:[%s13322_s7 + $0x30] sm:$0xff]  ;;  %v60_v12 = vld [vmem:[%s13322_s7 + $0x48] sm:$0xff]  ;;  %v147_v32 = vunpack.c.0.s8 %v146_v30  ;;  %v11030_v33 = vshrl.u32 %v148_v31, 7 }
   0x4   :  { %9920 = vmatprep.subr.bf16.mxu0 %v10957_v4  ;;  %v62_v13 = vld [vmem:[%s13322_s7 + $0x58] sm:$0xff]  ;;  %v10986_v14 = vpack.c.bf16 %v57_v11, %v55_v10  ;;  %v59_v15 = vld [vmem:[%s13322_s7 + $0x40] sm:$0xff]  ;;  %v61_v17 = vld [vmem:[%s13322_s7 + $0x50] sm:$0xff]  ;;  %vm868_vm6 = vcmask 1041408  }
   0x5   :  { %9922 = vmatpush1.bf16.msra.mxu0 %v10968_v8  ;;  %v10992_v16 = vpack.c.bf16 %v62_v13, %v60_v12  ;;  %v44_v18 = vld [vmem:[%s13323_s5] sm:$0x3]  ;;  %v64_v20 = vld [vmem:[%s13322_s7 + $0x68] sm:$0xff]  ;;  %v66_v21 = vld [vmem:[%s13322_s7 + $0x78] sm:$0xff]  ;;  %v11012_v22 = vpack.c.bf16 %v61_v17, %v59_v15  ;;  %v11033_v35 = vsub.s32 %v147_v32, %v11030_v33 }
   0x6   :  { %9924 = vmatprep.subr.bf16.mxu0 %v10970_v9  ;;  %v47_v19 = vld [vmem:[%s13324_s6] sm:$0x3]  ;;  %46 = vst.msk [vmem:[#allocation2] sm:$0x3] %vm45_vm0, %v44_v18  ;;  %v11015_v23 = vpack.c.bf16 %v66_v21, %v64_v20  ;;  %v65_v25 = vld [vmem:[%s13322_s7 + $0x70] sm:$0xff]  ;;  %v213_v50 = vld [vmem:[%s13326_s1 + $0x8] sm:$0xff] }
   0x7   :  { %48 = vst.msk [vmem:[#allocation3] sm:$0x3] %vm45_vm0, %v47_v19  ;;  %v63_v24 = vld [vmem:[%s13322_s7 + $0x60] sm:$0xff]  ;;  %v8130_v53 = vld [vmem:[%s13326_s1 + $0x48] sm:$0xff]  ;;  %v214_v54 = vld [vmem:[%s13326_s1 + $0x10] sm:$0xff] }
   0x8   :  { %v11024_v26 = vpack.c.bf16 %v65_v25, %v63_v24  ;;  %v49_v38 = vld [vmem:[%s13325_s3] sm:$0xf]  ;;  %v215_v55 = vld [vmem:[%s13326_s1 + $0x18] sm:$0xff]  ;;  %v8131_v57 = vld [vmem:[%s13326_s1 + $0x50] sm:$0xff] }
   0x9   :  { %9926 = vmatpush1.bf16.msra.mxu0 %v10986_v14  ;;  %v212_v49 = vld [vmem:[%s13326_s1] sm:$0xff]  ;;  %v8132_v58 = vld [vmem:[%s13326_s1 + $0x58] sm:$0xff]  ;;  %v11072_v59 = vpack.c.bf16 %v215_v55, %v214_v54  ;;  %v217_v62 = vld [vmem:[%s13326_s1 + $0x28] sm:$0xff] }
   0xa   :  { %9928 = vmatprep.subr.bf16.mxu0 %v10992_v16  ;;  %v8129_v51 = vld [vmem:[%s13326_s1 + $0x40] sm:$0xff]  ;;  %v11052_v52 = vpack.c.bf16 %v213_v50, %v212_v49  ;;  %v11076_v60 = vpack.c.bf16 %v8132_v58, %v8131_v57  ;;  %v8134_v0 = vld [vmem:[%s13326_s1 + $0x68] sm:$0xff]  ;;  %v218_v6 = vld [vmem:[%s13326_s1 + $0x30] sm:$0xff] }
   0xb   :  { %v11063_v56 = vpack.c.bf16 %v8130_v53, %v8129_v51  ;;  %v216_v61 = vld [vmem:[%s13326_s1 + $0x20] sm:$0xff]  ;;  %v219_v7 = vld [vmem:[%s13326_s1 + $0x38] sm:$0xff]  ;;  %v8135_v12 = vld [vmem:[%s13326_s1 + $0x70] sm:$0xff] }
   0xc   :  { %9937 = vmatpush3.bf16.msra.mxu1 %v11052_v52  ;;  %v8133_v63 = vld [vmem:[%s13326_s1 + $0x60] sm:$0xff]  ;;  %v11092_v1 = vpack.c.bf16 %v217_v62, %v216_v61  ;;  %v11109_v11 = vpack.c.bf16 %v219_v7, %v218_v6  ;;  %v8136_v13 = vld [vmem:[%s13326_s1 + $0x78] sm:$0xff]  ;;  %v702_v30 = vld [vmem:[%s13327_s8 + $0x8] sm:$0xff] }
   0xd   :  { %9930 = vmatpush1.bf16.msra.mxu0 %v11012_v22  ;;  %v50_v28 = vld [vmem:[#allocation2] sm:$0x3]  ;;  %9938 = vmatprep.subr.bf16.mxu1 %v13336_v48  ;;  %v11096_v2 = vpack.c.bf16 %v8134_v0, %v8133_v63  ;;  %v11117_v17 = vpack.c.bf16 %v8136_v13, %v8135_v12 }
   0xe   :  { %9932 = vmatprep.subr.bf16.mxu0 %v11015_v23  ;;  %v8125_v27 = vld.sshfl [vmem:[#allocation3] sm:$0x3 pattern:$0x76325410] }
   0xf   :  { %183 = vrot.lane.b32.xlu0 %v8125_v27, %s10872_s25  ;;  %v701_v29 = vld [vmem:[%s13327_s8] sm:$0xff] }
  0x10   :  { %9940 = vmatpush3.bf16.msra.mxu1 %v11072_v59 }
  0x11   :  { %9934 = vmatpush1.bf16.msra.mxu0 %v11024_v26  ;;  %9941 = vmatprep.subr.bf16.mxu1 %v13336_v48 }
  0x12   :  { %9947 = vmatprep.subr.bf16.mxu0 %v13336_v48 }
  0x14   :  { %8122 = vmatmul.mubr.msk.f32.vlgmr.msra.gmra.mrb[0].mxu0 %vm67_vm1, %v50_v28  ;;  %9943 = vmatpush3.bf16.msra.mxu1 %v11092_v1  ;;  %v11132_v28 = vsub.s32 1, %v11030_v33 }
  0x15   :  { %9949 = vmatpush3.bf16.msra.mxu0 %v11063_v56  ;;  %9944 = vmatprep.subr.bf16.mxu1 %v13336_v48 }
  0x16   :  { %9950 = vmatprep.subr.bf16.mxu0 %v13336_v48  ;;  %8892 = vmatprep.mubr.msk.f32.mxu0 %vm10875_vm2, %v10871_v3 }
  0x18   :  { %9946 = vmatpush3.bf16.msra.mxu1 %v11109_v11 }
  0x19   :  { %9952 = vmatpush3.bf16.msra.mxu0 %v11076_v60  ;;  %8866 = vmatprep.subr.mxu1 %v10871_v3 }
  0x1a   :  { %9953 = vmatprep.subr.bf16.mxu0 %v13336_v48 }
  0x1d   :  { %9955 = vmatpush3.bf16.msra.mxu0 %v11096_v2 }
  0x1e   :  { %9956 = vmatprep.subr.bf16.mxu0 %v13336_v48 }
  0x21   :  { %9958 = vmatpush3.bf16.msra.mxu0 %v11117_v17 }
  0x22   :  { %9971 = vmatprep.subr.bf16.mxu0 %v13336_v48 }
  0x81   :  { %v184_v5 = vpop.permute.xlu0 %183 }
  0xe7   :  { %v137_v34 = vpop.f32.mrb[0].mxu0 }
  0xe8   :  { %v139_v36 = vpop.f32.mrb[1].mxu0 }
  0xe9   :  { %v144_v37 = vcombine.low %v137_v34, %v139_v36  ;;  %v11142_v36 = vpack.c.bf16 %v702_v30, %v701_v29 }
  0xeb   :  { %v151_v39 = vrot.slane %v144_v37, %v11033_v35  ;;  %v703_v37 = vld [vmem:[%s13327_s8 + $0x10] sm:$0xff] }
  0xed   :  { %v153_v40 = vadd.f32 %v151_v39, %v49_v38  ;;  %v704_v38 = vld [vmem:[%s13327_s8 + $0x18] sm:$0xff] }
  0xee   :  { %v11160_v39 = vpack.c.bf16 %v704_v38, %v703_v37  ;;  %v880_v38 = vld [vmem:[%s13331_s11] sm:$0xff] }
  0xef   :  { %164 = vrot.lane.b32.xlu1 %v153_v40, %s10872_s25  ;;  %v8123_v41 = vmul.f32 -1.442695, %v153_v40  ;;  %v161_v42 = vrot.slane %v153_v40, 2  ;;  %v705_v40 = vld [vmem:[%s13327_s8 + $0x20] sm:$0xff] }
  0xf1   :  { %10631 = vpow2.f32 %v8123_v41  ;;  %v706_v41 = vld [vmem:[%s13327_s8 + $0x28] sm:$0xff] }
  0xf2   :  { %10633 = vtanh.f32 %v161_v42  ;;  %v11172_v42 = vpack.c.bf16 %v706_v41, %v705_v40  ;;  %v881_v40 = vld [vmem:[%s13331_s11 + $0x8] sm:$0xff] }
  0xf3   :  { %v11256_v41 = vpack.c.bf16 %v881_v40, %v880_v38  ;;  %v891_v38 = vld [vmem:[%s13332_s12 + $0x18] sm:$0xff] }
  0xfb   :  { %v10632_v43 = vpop.eup %10631 }
  0xfc   :  { %v157_v44 = vadd.f32 1.0, %v10632_v43  ;;  %v10634_v45 = vpop.eup %10633  ;;  %v707_v43 = vld [vmem:[%s13327_s8 + $0x30] sm:$0xff] }
  0xfe   :  { %10635 = vrcp.f32 %v157_v44  ;;  %v708_v44 = vld [vmem:[%s13327_s8 + $0x38] sm:$0xff] }
 0x108   :  { %v10636_v46 = vpop.eup %10635 }
 0x109   :  { %v187_v47 = vmul.f32 %v10636_v46, %v10634_v45  ;;  %v186_v10 = vmul.f32 %v10636_v46, %v184_v5  ;;  %v11182_v45 = vpack.c.bf16 %v708_v44, %v707_v43  ;;  %v711_v43 = vld [vmem:[%s13330_s9 + $0x10] sm:$0xff]  ;;  %v712_v44 = vld [vmem:[%s13330_s9 + $0x18] sm:$0xff] }
 0x10b   :  { %189 = vrot.lane.b32.xlu0 %v187_v47, %s10872_s25 }
 0x161   :  { %v165_v20 = vpop.permute.xlu1 %164 }
 0x162   :  { %v166_v21 = vrot.slane %v165_v20, 2 }
 0x164   :  { %v8124_v24 = vmul.f32 -1.442695, %v166_v21 }
 0x17d   :  { %v190_v15 = vpop.permute.xlu0 %189 }
 0x17e   :  { %v11119_v18 = vadd.f32 %v190_v15, %v186_v10 }
 0x180   :  { %10637 = vtanh.f32 %v11119_v18  ;;  %v207_v55 = vrot.slane %v11119_v18, %v11033_v35  ;;  %v11205_v18 = vld [vmem:[%s13328_s0] sm:$0xff] }
 0x181   :  { %10639 = vpow2.f32 %v8124_v24 }
 0x18a   :  { %v10638_v19 = vpop.eup %10637 }
 0x18b   :  { %195 = vrot.lane.b32.xlu1 %v10638_v19, %s10872_s25  ;;  %v10640_v25 = vpop.eup %10639 }
 0x18c   :  { %v171_v27 = vadd.f32 1.0, %v10640_v25  ;;  %v11212_v25 = vld [vmem:[%s13329_s2] sm:$0xff] }
 0x18e   :  { %10641 = vrcp.f32 %v171_v27  ;;  %v11222_v27 = vld [vmem:[%s13328_s0 + $0x8] sm:$0xff] }
 0x198   :  { %v10642_v31 = vpop.eup %10641 }
 0x1fd   :  { %v196_v32 = vpop.permute.xlu1 %195 }
 0x1fe   :  { %v11140_v34 = vmul.f32 %v10642_v31, %v196_v32  ;;  %v11232_v31 = vld [vmem:[%s13329_s2 + $0x8] sm:$0xff]  ;;  %v709_v32 = vld [vmem:[%s13330_s9] sm:$0xff] }
 0x200   :  { %199 = vst.msk [vmem:[#allocation2] sm:$0x3] %vm45_vm0, %v11140_v34  ;;  %8864 = vmatmul.mubr.msk.f32.vlgmr.msra.gmra.mrb[0].mxu1 %vm67_vm1, %v11140_v34  ;;  %v466_v33 = vrot.slane %v11140_v34, %v11132_v28 }
 0x201   :  { %8868 = vmatprep.mubr.msk.f32.mxu1 %vm10875_vm2, %v10871_v3  ;;  %8867 = vmatpush3.msra.mxu1 %v11205_v18 }
 0x202   :  { %8893 = vmatmul.mubr.msk.f32.vlgmr.msra.gmra.mrb[2].mxu0 %vm67_vm1, %v466_v33  ;;  %8871 = vmatprep.subr.mxu1 %v10871_v3  ;;  %v710_v33 = vld [vmem:[%s13330_s9 + $0x8] sm:$0xff] }
 0x203   :  { %9973 = vmatpush3.bf16.msra.mxu0 %v11142_v36  ;;  %8940 = vmatprep.mubr.msk.f32.mxu0 %vm10875_vm2, %v10871_v3  ;;  %v11248_v37 = vpack.c.bf16 %v710_v33, %v709_v32  ;;  %v890_v33 = vld [vmem:[%s13332_s12 + $0x10] sm:$0xff] }
 0x204   :  { %9974 = vmatprep.subr.bf16.mxu0 %v13336_v48 }
 0x207   :  { %9976 = vmatpush3.bf16.msra.mxu0 %v11160_v39 }
 0x208   :  { %9977 = vmatprep.subr.bf16.mxu0 %v13336_v48 }
 0x20b   :  { %9979 = vmatpush3.bf16.msra.mxu0 %v11172_v42 }
 0x20c   :  { %9980 = vmatprep.subr.bf16.mxu0 %v13336_v48 }
 0x20f   :  { %9982 = vmatpush3.bf16.msra.mxu0 %v11182_v45 }
 0x210   :  { %9995 = vmatprep.subr.bf16.mxu0 %v13336_v48 }
 0x212   :  { %8941 = vmatmul.mubr.msk.f32.vlgmr.msra.gmra.mrb[4].mxu0 %vm67_vm1, %v11140_v34 }
 0x213   :  { %8978 = vmatprep.mubr.msk.f32.mxu0 %vm10875_vm2, %v10871_v3  ;;  %9997 = vmatpush3.bf16.msra.mxu0 %v11256_v41 }
 0x214   :  { %9998 = vmatprep.subr.bf16.mxu0 %v13336_v48 }
 0x2d3   :  { %v289_v46 = vpop.f32.mrb[0].mxu1 }
 0x2d4   :  { %v8865_v47 = vpop.f32.mrb[1].mxu1  ;;  %v294_v49 = vsel %vm293_vm3, %v289_v46, -inf }
 0x2d5   :  { %v535_v50 = vpop.f32.mrb[2].mxu0  ;;  %295 = vmax.xlane.f32.xlu0 %v294_v49  ;;  %v882_v47 = vld [vmem:[%s13331_s11 + $0x10] sm:$0xff]  ;;  %v883_v49 = vld [vmem:[%s13331_s11 + $0x18] sm:$0xff] }
 0x2d6   :  { %v8894_v51 = vpop.f32.mrb[3].mxu0  ;;  %v539_v53 = vsel %vm293_vm3, %v535_v50, -inf }
 0x2d7   :  { %540 = vmax.xlane.f32.xlu1 %v539_v53  ;;  %v713_v51 = vld [vmem:[%s13330_s9 + $0x20] sm:$0xff]  ;;  %v714_v53 = vld [vmem:[%s13330_s9 + $0x28] sm:$0xff] }
 0x2e5   :  { %v11193_v54 = vpop.f32.mrb[4].mxu0 }
 0x2e6   :  { %v8942_v57 = vpop.f32.mrb[5].mxu0 }
 0x2e7   :  { %v884_v57 = vld [vmem:[%s13331_s11 + $0x20] sm:$0xff] }
 0x2e8   :  { %208 = vrot.lane.b32.xlu1 %v207_v55, %s10872_s25  ;;  %v11287_v55 = vpack.c.bf16 %v714_v53, %v713_v51  ;;  %v894_v51 = vld [vmem:[%s13332_s12 + $0x30] sm:$0xff]  ;;  %v895_v53 = vld [vmem:[%s13332_s12 + $0x38] sm:$0xff] }
 0x362   :  { %v296_v58 = vpop.xlane.xlu0 %295 }
 0x363   :  { %v297_v61 = vsub.f32 %v289_v46, %v296_v58  ;;  %v11267_v46 = vpack.c.bf16 %v712_v44, %v711_v43  ;;  %v885_v58 = vld [vmem:[%s13331_s11 + $0x28] sm:$0xff]  ;;  %v11341_v43 = vpack.c.bf16 %v891_v38, %v890_v33  ;;  %v892_v44 = vld [vmem:[%s13332_s12 + $0x20] sm:$0xff] }
 0x364   :  { %v541_v62 = vpop.xlane.xlu1 %540 }
 0x365   :  { %v298_v63 = vmul.f32 1.442695, %v297_v61  ;;  %v542_v0 = vsub.f32 %v535_v50, %v541_v62  ;;  %v11276_v50 = vpack.c.bf16 %v883_v49, %v882_v47  ;;  %v11296_v61 = vpack.c.bf16 %v885_v58, %v884_v57  ;;  %v715_v62 = vld [vmem:[%s13330_s9 + $0x30] sm:$0xff]  ;;  %v893_v47 = vld [vmem:[%s13332_s12 + $0x28] sm:$0xff] }
 0x366   :  { %v11357_v49 = vpack.c.bf16 %v893_v47, %v892_v44 }
 0x367   :  { %10643 = vpow2.f32 %v298_v63  ;;  %v543_v5 = vmul.f32 1.442695, %v542_v0  ;;  %10000 = vmatpush3.bf16.msra.mxu0 %v11276_v50  ;;  %v716_v63 = vld [vmem:[%s13330_s9 + $0x38] sm:$0xff] }
 0x368   :  { %v209_v6 = vpop.permute.xlu1 %208  ;;  %10001 = vmatprep.subr.bf16.mxu0 %v13336_v48  ;;  %v11307_v0 = vpack.c.bf16 %v716_v63, %v715_v62 }
 0x369   :  { %10645 = vpow2.f32 %v543_v5  ;;  %211 = vst.msk [vmem:[#allocation3] sm:$0x3] %vm45_vm0, %v209_v6  ;;  %v886_v5 = vld [vmem:[%s13331_s11 + $0x30] sm:$0xff]  ;;  %v887_v6 = vld [vmem:[%s13331_s11 + $0x38] sm:$0xff] }
 0x36b   :  { %10003 = vmatpush3.bf16.msra.mxu0 %v11296_v61 }
 0x36c   :  { %10004 = vmatprep.subr.bf16.mxu0 %v13336_v48 }
 0x370   :  { %v8152_v15 = vld.sshfl [vmem:[#allocation3] sm:$0x3 pattern:$0x76325410] }
 0x371   :  { %v10644_v7 = vpop.eup %10643 }
 0x372   :  { %v300_v10 = vsel %vm293_vm3, %v10644_v7, 0.0 }
 0x373   :  { %v10646_v12 = vpop.eup %10645  ;;  %301 = vadd.xlane.f32.xlu0 %v300_v10 }
 0x374   :  { %v545_v13 = vsel %vm293_vm3, %v10646_v12, 0.0 }
 0x377   :  { %546 = vadd.xlane.f32.xlu0 %v545_v13 }
 0x38d   :  { %1196 = vrot.lane.b32.xlu0 %v8152_v15, %s10872_s25 }
 0x400   :  { %v302_v19 = vpop.xlane.xlu0 %301 }
 0x401   :  { %10647 = vrcp.f32 %v302_v19 }
 0x404   :  { %v547_v20 = vpop.xlane.xlu0 %546 }
 0x405   :  { %10649 = vrcp.f32 %v547_v20 }
 0x40b   :  { %v10648_v21 = vpop.eup %10647 }
 0x40c   :  { %v304_v24 = vmul.f32 %v10648_v21, %v10644_v7  ;;  %v11316_v7 = vpack.c.bf16 %v887_v6, %v886_v5  ;;  %v888_v21 = vld [vmem:[%s13332_s12] sm:$0xff] }
 0x40e   :  { %8869 = vmatmul.mubr.msk.f32.vlgmr.msra.gmra.mrb[2].mxu1 %vm306_vm4, %v304_v24  ;;  %10006 = vmatpush3.bf16.msra.mxu0 %v11316_v7 }
 0x40f   :  { %8872 = vmatpush3.msra.mxu1 %v11212_v25  ;;  %8873 = vmatprep.mubr.msk.f32.mxu1 %vm10875_vm2, %v10871_v3  ;;  %v10650_v29 = vpop.eup %10649 }
 0x410   :  { %8895 = vmatprep.subr.mxu1 %v10871_v3  ;;  %v549_v30 = vmul.f32 %v10650_v29, %v10646_v12  ;;  %10023 = vmatprep.subr.bf16.mxu0 %v13336_v48 }
 0x412   :  { %8874 = vmatmul.mubr.msk.f32.vlgmr.msra.gmra.mrb[4].mxu1 %vm306_vm4, %v304_v24  ;;  %v889_v24 = vld [vmem:[%s13332_s12 + $0x8] sm:$0xff] }
 0x413   :  { %8896 = vmatpush3.msra.mxu1 %v11222_v27  ;;  %8897 = vmatprep.mubr.msk.f32.mxu1 %vm10875_vm2, %v10871_v3  ;;  %v11330_v32 = vpack.c.bf16 %v889_v24, %v888_v21 }
 0x414   :  { %8900 = vmatprep.subr.mxu1 %v10871_v3 }
 0x416   :  { %8898 = vmatmul.mubr.msk.f32.vlgmr.msra.gmra.mrb[6].mxu1 %vm306_vm4, %v549_v30 }
 0x417   :  { %8901 = vmatpush3.msra.mxu1 %v11232_v31  ;;  %8902 = vmatprep.mubr.msk.f32.mxu1 %vm10875_vm2, %v10871_v3 }
 0x418   :  { %9959 = vmatprep.subr.bf16.mxu1 %v13336_v48 }
 0x41a   :  { %8903 = vmatmul.mubr.msk.f32.vlgmr.msra.gmra.mrb[8].mxu1 %vm306_vm4, %v549_v30 }
 0x41b   :  { %8921 = vmatprep.mubr.msk.f32.mxu1 %vm10875_vm2, %v10871_v3  ;;  %9961 = vmatpush3.bf16.msra.mxu1 %v11248_v37 }
 0x41c   :  { %9962 = vmatprep.subr.bf16.mxu1 %v13336_v48 }
 0x41f   :  { %9964 = vmatpush3.bf16.msra.mxu1 %v11267_v46 }
 0x420   :  { %9965 = vmatprep.subr.bf16.mxu1 %v13336_v48 }
 0x423   :  { %9967 = vmatpush3.bf16.msra.mxu1 %v11287_v55 }
 0x424   :  { %9968 = vmatprep.subr.bf16.mxu1 %v13336_v48 }
 0x427   :  { %9970 = vmatpush3.bf16.msra.mxu1 %v11307_v0 }
 0x428   :  { %9983 = vmatprep.subr.bf16.mxu1 %v13336_v48 }
 0x4e1   :  { %v376_v10 = vpop.f32.mrb[2].mxu1 }
 0x4e2   :  { %381 = vst.msk [vmem:[#allocation4] sm:$0x1] %vm380_vm5, %v376_v10  ;;  %v8870_v12 = vpop.f32.mrb[3].mxu1 }
 0x4e5   :  { %v449_v13 = vpop.f32.mrb[4].mxu1 }
 0x4e6   :  { %453 = vst [vmem:[#allocation5] sm:$0x1] %v449_v13  ;;  %v8875_v15 = vpop.f32.mrb[5].mxu1  ;;  %v1197_v13 = vpop.permute.xlu0 %1196 }
 0x4e9   :  { %v621_v19 = vpop.f32.mrb[6].mxu1 }
 0x4ea   :  { %625 = vst.msk [vmem:[#allocation4 + $0x1] sm:$0x1] %vm380_vm5, %v621_v19  ;;  %v8899_v20 = vpop.f32.mrb[7].mxu1 }
 0x4ed   :  { %v694_v29 = vpop.f32.mrb[8].mxu1 }
 0x4ee   :  { %698 = vst [vmem:[#allocation5 + $0x1] sm:$0x1] %v694_v29  ;;  %v8904_v30 = vpop.f32.mrb[9].mxu1 }
 0x4f1   :  { %v699_v40 = vld [vmem:[#allocation4] sm:$0x3] }
 0x4f2   :  { %8922 = vmatmul.mubr.msk.f32.vlgmr.msra.gmra.mrb[10].mxu1 %vm67_vm1, %v699_v40  ;;  %8979 = vmatmul.mubr.msk.f32.vlgmr.msra.gmra.mrb[6].mxu0 %vm67_vm1, %v699_v40 }
 0x4f3   :  { %9985 = vmatpush3.bf16.msra.mxu1 %v11330_v32  ;;  %8959 = vmatprep.mubr.msk.f32.mxu1 %vm10875_vm2, %v10871_v3 }
 0x4f4   :  { %9986 = vmatprep.subr.bf16.mxu1 %v13336_v48  ;;  %10025 = vmatpush3.bf16.msra.mxu0 %v11052_v52  ;;  %v11369_v52 = vpack.c.bf16 %v895_v53, %v894_v51 }
 0x4f5   :  { %10026 = vmatprep.subr.bf16.mxu0 %v13336_v48  ;;  %8997 = vmatprep.mubr.msk.f32.mxu0 %vm10875_vm2, %v10871_v3 }
 0x4f7   :  { %9988 = vmatpush3.bf16.msra.mxu1 %v11341_v43 }
 0x4f8   :  { %9989 = vmatprep.subr.bf16.mxu1 %v13336_v48  ;;  %10028 = vmatpush3.bf16.msra.mxu0 %v11072_v59 }
 0x4f9   :  { %10029 = vmatprep.subr.bf16.mxu0 %v13336_v48 }
 0x4fb   :  { %9991 = vmatpush3.bf16.msra.mxu1 %v11357_v49 }
 0x4fc   :  { %9992 = vmatprep.subr.bf16.mxu1 %v13336_v48  ;;  %10031 = vmatpush3.bf16.msra.mxu0 %v11092_v1 }
 0x4fd   :  { %10032 = vmatprep.subr.bf16.mxu0 %v13336_v48 }
 0x4ff   :  { %9994 = vmatpush3.bf16.msra.mxu1 %v11369_v52 }
 0x500   :  { %10008 = vmatprep.subr.bf16.mxu1 %v10957_v4  ;;  %10034 = vmatpush3.bf16.msra.mxu0 %v11109_v11  ;;  %v1064_v4 = vld [vmem:[#allocation2] sm:$0x3] }
 0x501   :  { %10035 = vmatprep.subr.bf16.mxu0 %v13336_v48 }
 0x502   :  { %8960 = vmatmul.mubr.msk.f32.vlgmr.msra.gmra.mrb[12].mxu1 %vm67_vm1, %v11140_v34 }
 0x503   :  { %10010 = vmatpush1.bf16.msra.mxu1 %v10968_v8  ;;  %1148 = vmatprep.mubr.f32.mxu1 %v10871_v3 }
 0x504   :  { %10012 = vmatprep.subr.bf16.mxu1 %v10970_v9 }
 0x507   :  { %10014 = vmatpush1.bf16.msra.mxu1 %v10986_v14 }
 0x508   :  { %10016 = vmatprep.subr.bf16.mxu1 %v10992_v16 }
 0x50b   :  { %10018 = vmatpush1.bf16.msra.mxu1 %v11012_v22 }
 0x50c   :  { %10020 = vmatprep.subr.bf16.mxu1 %v11015_v23 }
 0x50f   :  { %10022 = vmatpush1.bf16.msra.mxu1 %v11024_v26 }
 0x510   :  { %9000 = vmatprep.subr.mxu1 %v10871_v3 }
 0x512   :  { %8149 = vmatmul.mubr.msk.f32.vlgmr.msra.gmra.mrb[14].mxu1 %vm67_vm1, %v1064_v4 }
 0x513   :  { %9001 = vmatpush3.msra.mxu1 %v11205_v18  ;;  %9002 = vmatprep.mubr.msk.f32.mxu1 %vm10875_vm2, %v10871_v3  ;;  %v8148_v18 = vld [vmem:[%s13325_s3 + $0x4] sm:$0xf] }
 0x514   :  { %9005 = vmatprep.subr.mxu1 %v10871_v3 }
 0x5c5   :  { %v786_v8 = vpop.f32.mrb[10].mxu1  ;;  %v1032_v9 = vpop.f32.mrb[6].mxu0 }
 0x5c6   :  { %v11395_v14 = vadd.f32 %v11193_v54, %v786_v8  ;;  %v8923_v16 = vpop.f32.mrb[11].mxu1  ;;  %v8980_v22 = vpop.f32.mrb[7].mxu0 }
 0x5d5   :  { %v962_v23 = vpop.f32.mrb[12].mxu1 }
 0x5d6   :  { %v11397_v26 = vadd.f32 %v1032_v9, %v962_v23  ;;  %v8961_v59 = vpop.f32.mrb[13].mxu1 }
 0x5e5   :  { %v1150_v1 = vpop.f32.mrb[14].mxu1 }
 0x5e6   :  { %v1152_v11 = vpop.f32.mrb[15].mxu1 }
 0x5e7   :  { %v1157_v34 = vcombine.low %v1150_v1, %v1152_v11 }
 0x5e9   :  { %v1164_v57 = vrot.slane %v1157_v34, %v11033_v35 }
 0x5eb   :  { %v1166_v58 = vadd.f32 %v8148_v18, %v1164_v57 }
 0x5ed   :  { %v8150_v62 = vmul.f32 -1.442695, %v1166_v58  ;;  %v1174_v54 = vrot.slane %v1166_v58, 2 }
 0x5ef   :  { %10651 = vpow2.f32 %v8150_v62 }
 0x5f0   :  { %10653 = vtanh.f32 %v1174_v54 }
 0x5f9   :  { %v10652_v63 = vpop.eup %10651 }
 0x5fa   :  { %v1170_v5 = vadd.f32 1.0, %v10652_v63  ;;  %v10654_v6 = vpop.eup %10653 }
 0x5fc   :  { %10655 = vrcp.f32 %v1170_v5 }
 0x606   :  { %v10656_v10 = vpop.eup %10655 }
 0x607   :  { %v1200_v12 = vmul.f32 %v10656_v10, %v10654_v6  ;;  %v1199_v15 = vmul.f32 %v10656_v10, %v1197_v13  ;;  %v2078_v13 = vld [vmem:[%s13322_s7 + $0x28] sm:$0xff] }
 0x609   :  { %1202 = vrot.lane.b32.xlu1 %v1200_v12, %s10872_s25  ;;  %v2075_v12 = vld [vmem:[%s13322_s7 + $0x10] sm:$0xff] }
 0x60d   :  { %1177 = vrot.lane.b32.xlu1 %v1166_v58, %s10872_s25 }
 0x67b   :  { %v1203_v19 = vpop.permute.xlu1 %1202 }
 0x67c   :  { %v11405_v20 = vadd.f32 %v1203_v19, %v1199_v15 }
 0x67e   :  { %10657 = vtanh.f32 %v11405_v20  ;;  %v1220_v23 = vrot.slane %v11405_v20, %v11033_v35  ;;  %v2077_v20 = vld [vmem:[%s13322_s7 + $0x20] sm:$0xff] }
 0x67f   :  { %v1178_v24 = vpop.permute.xlu1 %1177 }
 0x680   :  { %v1179_v29 = vrot.slane %v1178_v24, 2  ;;  %v2082_v24 = vld [vmem:[%s13322_s7 + $0x48] sm:$0xff] }
 0x682   :  { %v8151_v30 = vmul.f32 -1.442695, %v1179_v29 }
 0x684   :  { %10659 = vpow2.f32 %v8151_v30 }
 0x688   :  { %v10658_v21 = vpop.eup %10657 }
 0x689   :  { %1208 = vrot.lane.b32.xlu0 %v10658_v21, %s10872_s25  ;;  %v2079_v21 = vld [vmem:[%s13322_s7 + $0x30] sm:$0xff] }
 0x68a   :  { %v11544_v29 = vpack.c.bf16 %v2079_v21, %v2077_v20 }
 0x68e   :  { %v10660_v33 = vpop.eup %10659 }
 0x68f   :  { %v1184_v38 = vadd.f32 1.0, %v10660_v33  ;;  %v2081_v33 = vld [vmem:[%s13322_s7 + $0x40] sm:$0xff] }
 0x691   :  { %10661 = vrcp.f32 %v1184_v38  ;;  %v2083_v38 = vld [vmem:[%s13322_s7 + $0x50] sm:$0xff] }
 0x69b   :  { %v10662_v40 = vpop.eup %10661 }
 0x6fb   :  { %v1209_v44 = vpop.permute.xlu0 %1208 }
 0x6fc   :  { %v11409_v47 = vmul.f32 %v10662_v40, %v1209_v44  ;;  %v2086_v40 = vld [vmem:[%s13322_s7 + $0x68] sm:$0xff]  ;;  %v2088_v44 = vld [vmem:[%s13322_s7 + $0x78] sm:$0xff] }
 0x6fe   :  { %1212 = vst.msk [vmem:[#allocation2] sm:$0x3] %vm45_vm0, %v11409_v47  ;;  %8998 = vmatmul.mubr.msk.f32.vlgmr.msra.gmra.mrb[8].mxu0 %vm67_vm1, %v11409_v47  ;;  %v1475_v51 = vrot.slane %v11409_v47, %v11132_v28 }
 0x6ff   :  { %10037 = vmatpush3.bf16.msra.mxu0 %v11063_v56  ;;  %9026 = vmatprep.mubr.msk.f32.mxu0 %vm10875_vm2, %v10871_v3 }
 0x700   :  { %10038 = vmatprep.subr.bf16.mxu0 %v13336_v48 }
 0x703   :  { %10040 = vmatpush3.bf16.msra.mxu0 %v11076_v60 }
 0x704   :  { %10041 = vmatprep.subr.bf16.mxu0 %v13336_v48 }
 0x707   :  { %10043 = vmatpush3.bf16.msra.mxu0 %v11096_v2 }
 0x708   :  { %10044 = vmatprep.subr.bf16.mxu0 %v13336_v48 }
 0x70b   :  { %10046 = vmatpush3.bf16.msra.mxu0 %v11117_v17 }
 0x70c   :  { %10059 = vmatprep.subr.bf16.mxu0 %v13336_v48 }
 0x70e   :  { %9027 = vmatmul.mubr.msk.f32.vlgmr.msra.gmra.mrb[10].mxu0 %vm67_vm1, %v1475_v51  ;;  %v11566_v51 = vpack.c.bf16 %v2088_v44, %v2086_v40  ;;  %v8186_v40 = vld [vmem:[%s13326_s1 + $0x48] sm:$0xff] }
 0x70f   :  { %10061 = vmatpush3.bf16.msra.mxu0 %v11142_v36  ;;  %9074 = vmatprep.mubr.msk.f32.mxu0 %vm10875_vm2, %v10871_v3 }
 0x710   :  { %10062 = vmatprep.subr.bf16.mxu0 %v13336_v48 }
 0x713   :  { %10064 = vmatpush3.bf16.msra.mxu0 %v11160_v39 }
 0x714   :  { %10065 = vmatprep.subr.bf16.mxu0 %v13336_v48 }
 0x717   :  { %10067 = vmatpush3.bf16.msra.mxu0 %v11172_v42 }
 0x718   :  { %10068 = vmatprep.subr.bf16.mxu0 %v13336_v48 }
 0x71b   :  { %10070 = vmatpush3.bf16.msra.mxu0 %v11182_v45 }
 0x71c   :  { %10083 = vmatprep.subr.bf16.mxu0 %v13336_v48 }
 0x71e   :  { %9075 = vmatmul.mubr.msk.f32.vlgmr.msra.gmra.mrb[12].mxu0 %vm67_vm1, %v11409_v47 }
 0x71f   :  { %10085 = vmatpush3.bf16.msra.mxu0 %v11256_v41  ;;  %9112 = vmatprep.mubr.msk.f32.mxu0 %vm10875_vm2, %v10871_v3 }
 0x720   :  { %10086 = vmatprep.subr.bf16.mxu0 %v13336_v48 }
 0x723   :  { %10088 = vmatpush3.bf16.msra.mxu0 %v11276_v50 }
 0x724   :  { %10089 = vmatprep.subr.bf16.mxu0 %v13336_v48 }
 0x727   :  { %10091 = vmatpush3.bf16.msra.mxu0 %v11296_v61 }
 0x728   :  { %10092 = vmatprep.subr.bf16.mxu0 %v13336_v48 }
 0x72b   :  { %10094 = vmatpush3.bf16.msra.mxu0 %v11316_v7 }
 0x72c   :  { %10111 = vmatprep.subr.bf16.mxu0 %v13336_v48 }
 0x7d1   :  { %v1302_v56 = vpop.f32.mrb[8].mxu0 }
 0x7d2   :  { %v8999_v60 = vpop.f32.mrb[9].mxu0  ;;  %v1306_v2 = vsel %vm293_vm3, %v1302_v56, -inf }
 0x7d3   :  { %1307 = vmax.xlane.f32.xlu1 %v1306_v2  ;;  %v2087_v60 = vld [vmem:[%s13322_s7 + $0x70] sm:$0xff] }
 0x7e1   :  { %v1544_v17 = vpop.f32.mrb[10].mxu0 }
 0x7e2   :  { %v9028_v36 = vpop.f32.mrb[11].mxu0  ;;  %v1548_v39 = vsel %vm293_vm3, %v1544_v17, -inf }
 0x7e3   :  { %1549 = vmax.xlane.f32.xlu0 %v1548_v39 }
 0x7f1   :  { %v11452_v42 = vpop.f32.mrb[12].mxu0 }
 0x7f2   :  { %v9076_v45 = vpop.f32.mrb[13].mxu0 }
 0x860   :  { %v1308_v41 = vpop.xlane.xlu1 %1307 }
 0x861   :  { %v1309_v50 = vsub.f32 %v1302_v56, %v1308_v41  ;;  %v2085_v56 = vld [vmem:[%s13322_s7 + $0x60] sm:$0xff] }
 0x862   :  { %v11575_v2 = vpack.c.bf16 %v2087_v60, %v2085_v56 }
 0x863   :  { %v1310_v61 = vmul.f32 1.442695, %v1309_v50 }
 0x865   :  { %10663 = vpow2.f32 %v1310_v61 }
 0x86f   :  { %v10664_v7 = vpop.eup %10663 }
 0x870   :  { %v1550_v53 = vpop.xlane.xlu0 %1549  ;;  %v1312_v4 = vsel %vm293_vm3, %v10664_v7, 0.0 }
 0x871   :  { %v1551_v8 = vsub.f32 %v1544_v17, %v1550_v53  ;;  %1313 = vadd.xlane.f32.xlu0 %v1312_v4  ;;  %v2072_v17 = vld [vmem:[#allocation2] sm:$0x3] }
 0x873   :  { %v1552_v9 = vmul.f32 1.442695, %v1551_v8 }
 0x875   :  { %10665 = vpow2.f32 %v1552_v9 }
 0x87f   :  { %v10666_v16 = vpop.eup %10665 }
 0x880   :  { %v1554_v22 = vsel %vm293_vm3, %v10666_v16, 0.0 }
 0x881   :  { %1555 = vadd.xlane.f32.xlu1 %v1554_v22 }
 0x887   :  { %1221 = vrot.lane.b32.xlu0 %v1220_v23, %s10872_s25 }
 0x8fe   :  { %v1314_v59 = vpop.xlane.xlu0 %1313 }
 0x8ff   :  { %10667 = vrcp.f32 %v1314_v59 }
 0x902   :  { %v1222_v1 = vpop.permute.xlu0 %1221 }
 0x903   :  { %1224 = vst.msk [vmem:[#allocation3] sm:$0x3] %vm45_vm0, %v1222_v1 }
 0x909   :  { %v10668_v11 = vpop.eup %10667 }
 0x90a   :  { %v1316_v34 = vmul.f32 %v10668_v11, %v10664_v7  ;;  %v8181_v18 = vld.sshfl [vmem:[#allocation3] sm:$0x3 pattern:$0x76325410] }
 0x90b   :  { %2204 = vrot.lane.b32.xlu1 %v8181_v18, %s10872_s25 }
 0x90c   :  { %9003 = vmatmul.mubr.msk.f32.vlgmr.msra.gmra.mrb[16].mxu1 %vm306_vm4, %v1316_v34 }
 0x90d   :  { %9006 = vmatpush3.msra.mxu1 %v11212_v25  ;;  %9007 = vmatprep.mubr.msk.f32.mxu1 %vm10875_vm2, %v10871_v3 }
 0x90e   :  { %v1556_v57 = vpop.xlane.xlu1 %1555  ;;  %9029 = vmatprep.subr.mxu1 %v10871_v3 }
 0x90f   :  { %10669 = vrcp.f32 %v1556_v57 }
 0x910   :  { %9008 = vmatmul.mubr.msk.f32.vlgmr.msra.gmra.mrb[18].mxu1 %vm306_vm4, %v1316_v34 }
 0x911   :  { %9030 = vmatpush3.msra.mxu1 %v11222_v27  ;;  %9031 = vmatprep.mubr.msk.f32.mxu1 %vm10875_vm2, %v10871_v3 }
 0x912   :  { %9034 = vmatprep.subr.mxu1 %v10871_v3 }
 0x919   :  { %v10670_v58 = vpop.eup %10669 }
 0x91a   :  { %v1558_v62 = vmul.f32 %v10670_v58, %v10666_v16  ;;  %v8177_v16 = vld [vmem:[%s13325_s3 + $0x8] sm:$0xf]  ;;  %v2233_v58 = vld [vmem:[%s13326_s1] sm:$0xff] }
 0x91c   :  { %9032 = vmatmul.mubr.msk.f32.vlgmr.msra.gmra.mrb[20].mxu1 %vm306_vm4, %v1558_v62 }
 0x91d   :  { %9035 = vmatpush3.msra.mxu1 %v11232_v31  ;;  %9036 = vmatprep.mubr.msk.f32.mxu1 %vm10875_vm2, %v10871_v3  ;;  %v11488_v31 = vld [vmem:[#allocation5] sm:$0x3] }
 0x91e   :  { %10047 = vmatprep.subr.bf16.mxu1 %v13336_v48 }
 0x920   :  { %9037 = vmatmul.mubr.msk.f32.vlgmr.msra.gmra.mrb[22].mxu1 %vm306_vm4, %v1558_v62  ;;  %v2234_v62 = vld [vmem:[%s13326_s1 + $0x8] sm:$0xff] }
 0x921   :  { %10049 = vmatpush3.bf16.msra.mxu1 %v11248_v37  ;;  %9055 = vmatprep.mubr.msk.f32.mxu1 %vm10875_vm2, %v10871_v3 }
 0x922   :  { %10050 = vmatprep.subr.bf16.mxu1 %v13336_v48 }
 0x925   :  { %10052 = vmatpush3.bf16.msra.mxu1 %v11267_v46 }
 0x926   :  { %10053 = vmatprep.subr.bf16.mxu1 %v13336_v48 }
 0x929   :  { %10055 = vmatpush3.bf16.msra.mxu1 %v11287_v55 }
 0x92a   :  { %10056 = vmatprep.subr.bf16.mxu1 %v13336_v48 }
 0x92d   :  { %10058 = vmatpush3.bf16.msra.mxu1 %v11307_v0  ;;  %v2074_v0 = vld [vmem:[%s13322_s7 + $0x8] sm:$0xff] }
 0x92e   :  { %10071 = vmatprep.subr.bf16.mxu1 %v13336_v48 }
 0x9df   :  { %v1387_v25 = vpop.f32.mrb[16].mxu1 }
 0x9e0   :  { %1391 = vst.msk [vmem:[#allocation4] sm:$0x1] %vm380_vm5, %v1387_v25  ;;  %v9004_v27 = vpop.f32.mrb[17].mxu1  ;;  %v2235_v25 = vld [vmem:[%s13326_s1 + $0x10] sm:$0xff] }
 0x9e1   :  { %v11603_v27 = vpack.c.bf16 %v2234_v62, %v2233_v58  ;;  %v2722_v58 = vld [vmem:[%s13327_s8 + $0x30] sm:$0xff]  ;;  %v2723_v62 = vld [vmem:[%s13327_s8 + $0x38] sm:$0xff] }
 0x9e3   :  { %v1459_v37 = vpop.f32.mrb[18].mxu1 }
 0x9e4   :  { %1463 = vst [vmem:[#allocation5] sm:$0x1] %v1459_v37  ;;  %v9009_v54 = vpop.f32.mrb[19].mxu1  ;;  %v2236_v37 = vld [vmem:[%s13326_s1 + $0x18] sm:$0xff] }
 0x9e5   :  { %v11609_v54 = vpack.c.bf16 %v2236_v37, %v2235_v25  ;;  %v11726_v25 = vpack.c.bf16 %v2723_v62, %v2722_v58  ;;  %v2725_v58 = vld [vmem:[%s13330_s9 + $0x8] sm:$0xff]  ;;  %v2894_v62 = vld [vmem:[%s13331_s11] sm:$0xff] }
 0x9ef   :  { %v1629_v46 = vpop.f32.mrb[20].mxu1 }
 0x9f0   :  { %1633 = vst.msk [vmem:[#allocation4 + $0x1] sm:$0x1] %vm380_vm5, %v1629_v46  ;;  %v9033_v63 = vpop.f32.mrb[21].mxu1  ;;  %v2237_v46 = vld [vmem:[%s13326_s1 + $0x20] sm:$0xff] }
 0x9f1   :  { %v2238_v63 = vld [vmem:[%s13326_s1 + $0x28] sm:$0xff] }
 0x9f3   :  { %v1701_v55 = vpop.f32.mrb[22].mxu1 }
 0x9f4   :  { %1705 = vst [vmem:[#allocation5 + $0x1] sm:$0x1] %v1701_v55  ;;  %v9038_v5 = vpop.f32.mrb[23].mxu1  ;;  %v11619_v55 = vpack.c.bf16 %v2238_v63, %v2237_v46 }
 0x9f5   :  { %v2239_v5 = vld [vmem:[%s13326_s1 + $0x30] sm:$0xff] }
 0x9f7   :  { %v1706_v6 = vld [vmem:[#allocation4] sm:$0x3] }
 0x9f8   :  { %9056 = vmatmul.mubr.msk.f32.vlgmr.msra.gmra.mrb[24].mxu1 %vm67_vm1, %v1706_v6  ;;  %9113 = vmatmul.mubr.msk.f32.vlgmr.msra.gmra.mrb[14].mxu0 %vm67_vm1, %v1706_v6  ;;  %v2240_v6 = vld [vmem:[%s13326_s1 + $0x38] sm:$0xff] }
 0x9f9   :  { %10073 = vmatpush3.bf16.msra.mxu1 %v11330_v32  ;;  %9093 = vmatprep.mubr.msk.f32.mxu1 %vm10875_vm2, %v10871_v3  ;;  %v2076_v32 = vld [vmem:[%s13322_s7 + $0x18] sm:$0xff] }
 0x9fa   :  { %10074 = vmatprep.subr.bf16.mxu1 %v13336_v48  ;;  %9131 = vmatprep.mubr.msk.f32.mxu0 %vm10875_vm2, %v10871_v3  ;;  %v11509_v10 = vpack.c.bf16 %v2076_v32, %v2074_v0  ;;  %v11629_v0 = vpack.c.bf16 %v2240_v6, %v2239_v5  ;;  %v2205_v32 = vpop.permute.xlu1 %2204 }
 0x9fb   :  { %10113 = vmatpush3.bf16.msra.mxu0 %v11603_v27 }
 0x9fc   :  { %10114 = vmatprep.subr.bf16.mxu0 %v13336_v48 }
 0x9fd   :  { %10076 = vmatpush3.bf16.msra.mxu1 %v11341_v43  ;;  %v2073_v43 = vld [vmem:[%s13322_s7] sm:$0xff] }
 0x9fe   :  { %10077 = vmatprep.subr.bf16.mxu1 %v13336_v48  ;;  %v11524_v15 = vpack.c.bf16 %v2075_v12, %v2073_v43 }
 0x9ff   :  { %10116 = vmatpush3.bf16.msra.mxu0 %v11609_v54 }
 0xa00   :  { %10117 = vmatprep.subr.bf16.mxu0 %v13336_v48 }
 0xa01   :  { %10079 = vmatpush3.bf16.msra.mxu1 %v11357_v49  ;;  %v2080_v49 = vld [vmem:[%s13322_s7 + $0x38] sm:$0xff] }
 0xa02   :  { %10080 = vmatprep.subr.bf16.mxu1 %v13336_v48  ;;  %v11527_v19 = vpack.c.bf16 %v2080_v49, %v2078_v13 }
 0xa03   :  { %10119 = vmatpush3.bf16.msra.mxu0 %v11619_v55 }
 0xa04   :  { %10120 = vmatprep.subr.bf16.mxu0 %v13336_v48 }
 0xa05   :  { %10082 = vmatpush3.bf16.msra.mxu1 %v11369_v52  ;;  %v2084_v52 = vld [vmem:[%s13322_s7 + $0x58] sm:$0xff] }
 0xa06   :  { %10096 = vmatprep.subr.bf16.mxu1 %v11509_v10  ;;  %v11548_v30 = vpack.c.bf16 %v2084_v52, %v2082_v24 }
 0xa07   :  { %10122 = vmatpush3.bf16.msra.mxu0 %v11629_v0 }
 0xa08   :  { %9094 = vmatmul.mubr.msk.f32.vlgmr.msra.gmra.mrb[26].mxu1 %vm67_vm1, %v11409_v47  ;;  %v11563_v47 = vpack.c.bf16 %v2083_v38, %v2081_v33  ;;  %10123 = vmatprep.subr.bf16.mxu0 %v13336_v48  ;;  %v8185_v38 = vld [vmem:[%s13326_s1 + $0x40] sm:$0xff] }
 0xa09   :  { %10098 = vmatpush1.bf16.msra.mxu1 %v11524_v15  ;;  %2156 = vmatprep.mubr.f32.mxu1 %v10871_v3  ;;  %v11644_v60 = vpack.c.bf16 %v8186_v40, %v8185_v38 }
 0xa0a   :  { %10100 = vmatprep.subr.bf16.mxu1 %v11527_v19 }
 0xa0d   :  { %10102 = vmatpush1.bf16.msra.mxu1 %v11544_v29 }
 0xa0e   :  { %10104 = vmatprep.subr.bf16.mxu1 %v11548_v30 }
 0xa11   :  { %10106 = vmatpush1.bf16.msra.mxu1 %v11563_v47 }
 0xa12   :  { %10108 = vmatprep.subr.bf16.mxu1 %v11566_v51 }
 0xa15   :  { %10110 = vmatpush1.bf16.msra.mxu1 %v11575_v2 }
 0xa16   :  { %9134 = vmatprep.subr.mxu1 %v10871_v3 }
 0xa18   :  { %8178 = vmatmul.mubr.msk.f32.vlgmr.msra.gmra.mrb[28].mxu1 %vm67_vm1, %v2072_v17 }
 0xa19   :  { %9136 = vmatprep.mubr.msk.f32.mxu1 %vm10875_vm2, %v10871_v3 }
 0xacb   :  { %v1793_v36 = vpop.f32.mrb[24].mxu1  ;;  %v2038_v39 = vpop.f32.mrb[14].mxu0 }
 0xacc   :  { %v11584_v45 = vadd.f32 %v11452_v42, %v1793_v36  ;;  %v9057_v41 = vpop.f32.mrb[25].mxu1  ;;  %v9114_v50 = vpop.f32.mrb[15].mxu0  ;;  %v8187_v36 = vld [vmem:[%s13326_s1 + $0x50] sm:$0xff] }
 0xacd   :  { %v8189_v50 = vld [vmem:[%s13326_s1 + $0x60] sm:$0xff] }
 0xadb   :  { %v1968_v61 = vpop.f32.mrb[26].mxu1 }
 0xadc   :  { %v11586_v7 = vadd.f32 %v2038_v39, %v1968_v61  ;;  %v9095_v53 = vpop.f32.mrb[27].mxu1  ;;  %v8188_v39 = vld [vmem:[%s13326_s1 + $0x58] sm:$0xff]  ;;  %v8190_v61 = vld [vmem:[%s13326_s1 + $0x68] sm:$0xff] }
 0xadd   :  { %v11659_v41 = vpack.c.bf16 %v8188_v39, %v8187_v36  ;;  %v11671_v53 = vpack.c.bf16 %v8190_v61, %v8189_v50  ;;  %v11748_v39 = vld [vmem:[%s13328_s0] sm:$0xff] }
 0xade   :  { %9135 = vmatpush3.msra.mxu1 %v11748_v39 }
 0xadf   :  { %9139 = vmatprep.subr.mxu1 %v10871_v3 }
 0xaeb   :  { %v2158_v4 = vpop.f32.mrb[28].mxu1 }
 0xaec   :  { %v2160_v8 = vpop.f32.mrb[29].mxu1 }
 0xaed   :  { %v2165_v9 = vcombine.low %v2158_v4, %v2160_v8  ;;  %v8191_v4 = vld [vmem:[%s13326_s1 + $0x70] sm:$0xff]  ;;  %v8192_v8 = vld [vmem:[%s13326_s1 + $0x78] sm:$0xff] }
 0xaef   :  { %v2172_v22 = vrot.slane %v2165_v9, %v11033_v35  ;;  %v11681_v9 = vpack.c.bf16 %v8192_v8, %v8191_v4 }
 0xaf1   :  { %v2174_v23 = vadd.f32 %v8177_v16, %v2172_v22  ;;  %v2716_v16 = vld [vmem:[%s13327_s8] sm:$0xff]  ;;  %v2717_v22 = vld [vmem:[%s13327_s8 + $0x8] sm:$0xff] }
 0xaf3   :  { %2185 = vrot.lane.b32.xlu0 %v2174_v23, %s10872_s25  ;;  %v8179_v42 = vmul.f32 -1.442695, %v2174_v23  ;;  %v2182_v59 = vrot.slane %v2174_v23, 2  ;;  %v11691_v23 = vpack.c.bf16 %v2717_v22, %v2716_v16  ;;  %v11756_v16 = vld [vmem:[%s13329_s2] sm:$0xff] }
 0xaf5   :  { %10671 = vpow2.f32 %v8179_v42 }
 0xaf6   :  { %10673 = vtanh.f32 %v2182_v59  ;;  %v2718_v59 = vld [vmem:[%s13327_s8 + $0x10] sm:$0xff] }
 0xaff   :  { %v10672_v1 = vpop.eup %10671 }
 0xb00   :  { %v2178_v11 = vadd.f32 1.0, %v10672_v1  ;;  %v10674_v34 = vpop.eup %10673  ;;  %v2719_v1 = vld [vmem:[%s13327_s8 + $0x18] sm:$0xff] }
 0xb02   :  { %10675 = vrcp.f32 %v2178_v11  ;;  %v11704_v11 = vpack.c.bf16 %v2719_v1, %v2718_v59 }
 0xb0c   :  { %v10676_v18 = vpop.eup %10675 }
 0xb0d   :  { %v2208_v57 = vmul.f32 %v10676_v18, %v10674_v34  ;;  %v2207_v43 = vmul.f32 %v10676_v18, %v2205_v32  ;;  %v2720_v34 = vld [vmem:[%s13327_s8 + $0x20] sm:$0xff]  ;;  %v2721_v18 = vld [vmem:[%s13327_s8 + $0x28] sm:$0xff] }
 0xb0f   :  { %2210 = vrot.lane.b32.xlu1 %v2208_v57, %s10872_s25  ;;  %v11716_v57 = vpack.c.bf16 %v2721_v18, %v2720_v34  ;;  %v11776_v34 = vld [vmem:[%s13329_s2 + $0x8] sm:$0xff]  ;;  %v2724_v18 = vld [vmem:[%s13330_s9] sm:$0xff] }
 0xb65   :  { %v2186_v20 = vpop.permute.xlu0 %2185 }
 0xb66   :  { %v2187_v21 = vrot.slane %v2186_v20, 2 }
 0xb68   :  { %v8180_v24 = vmul.f32 -1.442695, %v2187_v21 }
 0xb81   :  { %v2211_v12 = vpop.permute.xlu1 %2210 }
 0xb82   :  { %v11634_v13 = vadd.f32 %v2211_v12, %v2207_v43 }
 0xb84   :  { %10677 = vtanh.f32 %v11634_v13  ;;  %v2228_v12 = vrot.slane %v11634_v13, %v11033_v35 }
 0xb85   :  { %10679 = vpow2.f32 %v8180_v24 }
 0xb8e   :  { %v10678_v49 = vpop.eup %10677 }
 0xb8f   :  { %2216 = vrot.lane.b32.xlu1 %v10678_v49, %s10872_s25  ;;  %v10680_v52 = vpop.eup %10679 }
 0xb90   :  { %v2192_v33 = vadd.f32 1.0, %v10680_v52 }
 0xb92   :  { %10681 = vrcp.f32 %v2192_v33 }
 0xb9c   :  { %v10682_v44 = vpop.eup %10681 }
 0xc01   :  { %v2217_v56 = vpop.permute.xlu1 %2216 }
 0xc02   :  { %v11646_v17 = vmul.f32 %v10682_v44, %v2217_v56 }
 0xc04   :  { %2220 = vst.msk [vmem:[#allocation2] sm:$0x3] %vm45_vm0, %v11646_v17  ;;  %9132 = vmatmul.mubr.msk.f32.vlgmr.msra.gmra.mrb[16].mxu0 %vm67_vm1, %v11646_v17  ;;  %v2483_v42 = vrot.slane %v11646_v17, %v11132_v28 }
 0xc05   :  { %10125 = vmatpush3.bf16.msra.mxu0 %v11644_v60  ;;  %9160 = vmatprep.mubr.msk.f32.mxu0 %vm10875_vm2, %v10871_v3 }
 0xc06   :  { %10126 = vmatprep.subr.bf16.mxu0 %v13336_v48 }
 0xc09   :  { %10128 = vmatpush3.bf16.msra.mxu0 %v11659_v41 }
 0xc0a   :  { %10129 = vmatprep.subr.bf16.mxu0 %v13336_v48 }
 0xc0d   :  { %10131 = vmatpush3.bf16.msra.mxu0 %v11671_v53 }
 0xc0e   :  { %10132 = vmatprep.subr.bf16.mxu0 %v13336_v48 }
 0xc11   :  { %10134 = vmatpush3.bf16.msra.mxu0 %v11681_v9 }
 0xc12   :  { %10147 = vmatprep.subr.bf16.mxu0 %v13336_v48 }
 0xc14   :  { %9161 = vmatmul.mubr.msk.f32.vlgmr.msra.gmra.mrb[18].mxu0 %vm67_vm1, %v2483_v42  ;;  %v11766_v42 = vld [vmem:[%s13328_s0 + $0x8] sm:$0xff] }
 0xc15   :  { %10149 = vmatpush3.bf16.msra.mxu0 %v11691_v23  ;;  %9208 = vmatprep.mubr.msk.f32.mxu0 %vm10875_vm2, %v10871_v3 }
 0xc16   :  { %10150 = vmatprep.subr.bf16.mxu0 %v13336_v48 }
 0xc19   :  { %10152 = vmatpush3.bf16.msra.mxu0 %v11704_v11 }
 0xc1a   :  { %10153 = vmatprep.subr.bf16.mxu0 %v13336_v48 }
 0xc1d   :  { %10155 = vmatpush3.bf16.msra.mxu0 %v11716_v57 }
 0xc1e   :  { %10156 = vmatprep.subr.bf16.mxu0 %v13336_v48 }
 0xc21   :  { %10158 = vmatpush3.bf16.msra.mxu0 %v11726_v25 }
 0xc22   :  { %10171 = vmatprep.subr.bf16.mxu0 %v13336_v48 }
 0xc24   :  { %9209 = vmatmul.mubr.msk.f32.vlgmr.msra.gmra.mrb[20].mxu0 %vm67_vm1, %v11646_v17 }
 0xc25   :  { %9246 = vmatprep.mubr.msk.f32.mxu0 %vm10875_vm2, %v10871_v3 }
 0xcd7   :  { %v2310_v37 = vpop.f32.mrb[16].mxu0 }
 0xcd8   :  { %v9133_v46 = vpop.f32.mrb[17].mxu0  ;;  %v2314_v63 = vsel %vm293_vm3, %v2310_v37, -inf }
 0xcd9   :  { %2315 = vmax.xlane.f32.xlu0 %v2314_v63  ;;  %v2895_v46 = vld [vmem:[%s13331_s11 + $0x8] sm:$0xff]  ;;  %v2726_v63 = vld [vmem:[%s13330_s9 + $0x10] sm:$0xff] }
 0xce7   :  { %v2552_v5 = vpop.f32.mrb[18].mxu0 }
 0xce8   :  { %v9162_v6 = vpop.f32.mrb[19].mxu0  ;;  %v2556_v32 = vsel %vm293_vm3, %v2552_v5, -inf }
 0xce9   :  { %2557 = vmax.xlane.f32.xlu1 %v2556_v32  ;;  %v11806_v6 = vpack.c.bf16 %v2895_v46, %v2894_v62  ;;  %v2896_v32 = vld [vmem:[%s13331_s11 + $0x10] sm:$0xff]  ;;  %v2902_v62 = vld [vmem:[%s13332_s12] sm:$0xff]  ;;  %v2903_v46 = vld [vmem:[%s13332_s12 + $0x8] sm:$0xff] }
 0xceb   :  { %10173 = vmatpush3.bf16.msra.mxu0 %v11806_v6 }
 0xcec   :  { %10174 = vmatprep.subr.bf16.mxu0 %v13336_v48 }
 0xcf7   :  { %v11737_v43 = vpop.f32.mrb[20].mxu0 }
 0xcf8   :  { %v9210_v49 = vpop.f32.mrb[21].mxu0 }
 0xcfa   :  { %2229 = vrot.lane.b32.xlu1 %v2228_v12, %s10872_s25  ;;  %v2897_v12 = vld [vmem:[%s13331_s11 + $0x18] sm:$0xff] }
 0xd66   :  { %v2316_v20 = vpop.xlane.xlu0 %2315 }
 0xd67   :  { %v2317_v21 = vsub.f32 %v2310_v37, %v2316_v20  ;;  %v11795_v37 = vpack.c.bf16 %v2725_v58, %v2724_v18  ;;  %v11819_v20 = vpack.c.bf16 %v2897_v12, %v2896_v32  ;;  %v11876_v32 = vpack.c.bf16 %v2903_v46, %v2902_v62  ;;  %v2904_v12 = vld [vmem:[%s13332_s12 + $0x10] sm:$0xff] }
 0xd69   :  { %v2318_v24 = vmul.f32 1.442695, %v2317_v21  ;;  %10176 = vmatpush3.bf16.msra.mxu0 %v11819_v20  ;;  %v2728_v21 = vld [vmem:[%s13330_s9 + $0x20] sm:$0xff] }
 0xd6a   :  { %10177 = vmatprep.subr.bf16.mxu0 %v13336_v48 }
 0xd6b   :  { %10683 = vpow2.f32 %v2318_v24  ;;  %v2729_v24 = vld [vmem:[%s13330_s9 + $0x28] sm:$0xff] }
 0xd75   :  { %v10684_v52 = vpop.eup %10683 }
 0xd76   :  { %v2558_v33 = vpop.xlane.xlu1 %2557  ;;  %v2320_v38 = vsel %vm293_vm3, %v10684_v52, 0.0 }
 0xd77   :  { %v2559_v40 = vsub.f32 %v2552_v5, %v2558_v33  ;;  %2321 = vadd.xlane.f32.xlu0 %v2320_v38  ;;  %v2727_v5 = vld [vmem:[%s13330_s9 + $0x18] sm:$0xff]  ;;  %v2898_v33 = vld [vmem:[%s13331_s11 + $0x20] sm:$0xff]  ;;  %v2899_v38 = vld [vmem:[%s13331_s11 + $0x28] sm:$0xff] }
 0xd78   :  { %v11815_v49 = vpack.c.bf16 %v2727_v5, %v2726_v63 }
 0xd79   :  { %v2560_v44 = vmul.f32 1.442695, %v2559_v40  ;;  %v11840_v40 = vpack.c.bf16 %v2899_v38, %v2898_v33  ;;  %v2906_v38 = vld [vmem:[%s13332_s12 + $0x20] sm:$0xff] }
 0xd7a   :  { %v2230_v56 = vpop.permute.xlu1 %2229 }
 0xd7b   :  { %10685 = vpow2.f32 %v2560_v44  ;;  %2232 = vst.msk [vmem:[#allocation3] sm:$0x3] %vm45_vm0, %v2230_v56  ;;  %10179 = vmatpush3.bf16.msra.mxu0 %v11840_v40  ;;  %v2730_v44 = vld [vmem:[%s13330_s9 + $0x30] sm:$0xff]  ;;  %v2731_v56 = vld [vmem:[%s13330_s9 + $0x38] sm:$0xff] }
 0xd7c   :  { %10180 = vmatprep.subr.bf16.mxu0 %v13336_v48 }
 0xd82   :  { %v8210_v50 = vld.sshfl [vmem:[#allocation3] sm:$0x3 pattern:$0x76325410] }
 0xd85   :  { %v10686_v36 = vpop.eup %10685 }
 0xd86   :  { %v2562_v13 = vsel %vm293_vm3, %v10686_v36, 0.0 }
 0xd87   :  { %2563 = vadd.xlane.f32.xlu0 %v2562_v13  ;;  %v2900_v13 = vld [vmem:[%s13331_s11 + $0x30] sm:$0xff] }
 0xd9d   :  { %3212 = vrot.lane.b32.xlu0 %v8210_v50, %s10872_s25  ;;  %v2901_v50 = vld [vmem:[%s13331_s11 + $0x38] sm:$0xff] }
 0xe04   :  { %v2322_v61 = vpop.xlane.xlu0 %2321 }
 0xe05   :  { %10687 = vrcp.f32 %v2322_v61  ;;  %v11860_v61 = vpack.c.bf16 %v2901_v50, %v2900_v13  ;;  %v2908_v13 = vld [vmem:[%s13332_s12 + $0x30] sm:$0xff]  ;;  %v2909_v50 = vld [vmem:[%s13332_s12 + $0x38] sm:$0xff] }
 0xe07   :  { %10182 = vmatpush3.bf16.msra.mxu0 %v11860_v61 }
 0xe08   :  { %10199 = vmatprep.subr.bf16.mxu0 %v13336_v48 }
 0xe0f   :  { %v10688_v4 = vpop.eup %10687 }
 0xe10   :  { %v2324_v8 = vmul.f32 %v10688_v4, %v10684_v52  ;;  %v11832_v52 = vpack.c.bf16 %v2729_v24, %v2728_v21  ;;  %v2905_v21 = vld [vmem:[%s13332_s12 + $0x18] sm:$0xff] }
 0xe11   :  { %v11887_v33 = vpack.c.bf16 %v2905_v21, %v2904_v12 }
 0xe12   :  { %9137 = vmatmul.mubr.msk.f32.vlgmr.msra.gmra.mrb[30].mxu1 %vm306_vm4, %v2324_v8 }
 0xe13   :  { %9140 = vmatpush3.msra.mxu1 %v11756_v16  ;;  %9141 = vmatprep.mubr.msk.f32.mxu1 %vm10875_vm2, %v10871_v3 }
 0xe14   :  { %v2564_v22 = vpop.xlane.xlu0 %2563  ;;  %9163 = vmatprep.subr.mxu1 %v10871_v3 }
 0xe15   :  { %10689 = vrcp.f32 %v2564_v22  ;;  %v11867_v22 = vld [vmem:[#allocation5] sm:$0x3] }
 0xe16   :  { %9142 = vmatmul.mubr.msk.f32.vlgmr.msra.gmra.mrb[32].mxu1 %vm306_vm4, %v2324_v8 }
 0xe17   :  { %9164 = vmatpush3.msra.mxu1 %v11766_v42  ;;  %9165 = vmatprep.mubr.msk.f32.mxu1 %vm10875_vm2, %v10871_v3 }
 0xe18   :  { %9168 = vmatprep.subr.mxu1 %v10871_v3 }
 0xe1f   :  { %v10690_v59 = vpop.eup %10689 }
 0xe20   :  { %v2566_v1 = vmul.f32 %v10690_v59, %v10686_v36  ;;  %v11851_v36 = vpack.c.bf16 %v2731_v56, %v2730_v44  ;;  %v2907_v44 = vld [vmem:[%s13332_s12 + $0x28] sm:$0xff] }
 0xe21   :  { %v11903_v56 = vpack.c.bf16 %v2907_v44, %v2906_v38 }
 0xe22   :  { %9166 = vmatmul.mubr.msk.f32.vlgmr.msra.gmra.mrb[34].mxu1 %vm306_vm4, %v2566_v1 }
 0xe23   :  { %9169 = vmatpush3.msra.mxu1 %v11776_v34  ;;  %9170 = vmatprep.mubr.msk.f32.mxu1 %vm10875_vm2, %v10871_v3 }
 0xe24   :  { %10135 = vmatprep.subr.bf16.mxu1 %v13336_v48 }
 0xe26   :  { %9171 = vmatmul.mubr.msk.f32.vlgmr.msra.gmra.mrb[36].mxu1 %vm306_vm4, %v2566_v1 }
 0xe27   :  { %9189 = vmatprep.mubr.msk.f32.mxu1 %vm10875_vm2, %v10871_v3  ;;  %10137 = vmatpush3.bf16.msra.mxu1 %v11795_v37 }
 0xe28   :  { %10138 = vmatprep.subr.bf16.mxu1 %v13336_v48 }
 0xe2b   :  { %10140 = vmatpush3.bf16.msra.mxu1 %v11815_v49 }
 0xe2c   :  { %10141 = vmatprep.subr.bf16.mxu1 %v13336_v48 }
 0xe2f   :  { %10143 = vmatpush3.bf16.msra.mxu1 %v11832_v52 }
 0xe30   :  { %10144 = vmatprep.subr.bf16.mxu1 %v13336_v48 }
 0xe33   :  { %10146 = vmatpush3.bf16.msra.mxu1 %v11851_v36 }
 0xe34   :  { %10159 = vmatprep.subr.bf16.mxu1 %v13336_v48 }
 0xee5   :  { %v2395_v4 = vpop.f32.mrb[30].mxu1 }
 0xee6   :  { %2399 = vst.msk [vmem:[#allocation4] sm:$0x1] %vm380_vm5, %v2395_v4  ;;  %v9138_v8 = vpop.f32.mrb[31].mxu1 }
 0xee9   :  { %v2467_v59 = vpop.f32.mrb[32].mxu1 }
 0xeea   :  { %2471 = vst [vmem:[#allocation5] sm:$0x1] %v2467_v59  ;;  %v9143_v1 = vpop.f32.mrb[33].mxu1 }
 0xef5   :  { %v2637_v18 = vpop.f32.mrb[34].mxu1 }
 0xef6   :  { %2641 = vst.msk [vmem:[#allocation4 + $0x1] sm:$0x1] %vm380_vm5, %v2637_v18  ;;  %v9167_v58 = vpop.f32.mrb[35].mxu1 }
 0xef9   :  { %v2709_v63 = vpop.f32.mrb[36].mxu1 }
 0xefa   :  { %2713 = vst [vmem:[#allocation5 + $0x1] sm:$0x1] %v2709_v63  ;;  %v9172_v5 = vpop.f32.mrb[37].mxu1  ;;  %v3213_v63 = vpop.permute.xlu0 %3212 }
 0xefd   :  { %v2714_v24 = vld [vmem:[#allocation4] sm:$0x3] }
 0xefe   :  { %9190 = vmatmul.mubr.msk.f32.vlgmr.msra.gmra.mrb[38].mxu1 %vm67_vm1, %v2714_v24  ;;  %9247 = vmatmul.mubr.msk.f32.vlgmr.msra.gmra.mrb[22].mxu0 %vm67_vm1, %v2714_v24 }
 0xeff   :  { %10161 = vmatpush3.bf16.msra.mxu1 %v11876_v32  ;;  %9227 = vmatprep.mubr.msk.f32.mxu1 %vm10875_vm2, %v10871_v3 }
 0xf00   :  { %10162 = vmatprep.subr.bf16.mxu1 %v13336_v48  ;;  %10201 = vmatpush3.bf16.msra.mxu0 %v11603_v27  ;;  %v11915_v27 = vpack.c.bf16 %v2909_v50, %v2908_v13 }
 0xf01   :  { %10202 = vmatprep.subr.bf16.mxu0 %v13336_v48  ;;  %9265 = vmatprep.mubr.msk.f32.mxu0 %vm10875_vm2, %v10871_v3 }
 0xf03   :  { %10164 = vmatpush3.bf16.msra.mxu1 %v11887_v33 }
 0xf04   :  { %10165 = vmatprep.subr.bf16.mxu1 %v13336_v48  ;;  %10204 = vmatpush3.bf16.msra.mxu0 %v11609_v54 }
 0xf05   :  { %10205 = vmatprep.subr.bf16.mxu0 %v13336_v48 }
 0xf07   :  { %10167 = vmatpush3.bf16.msra.mxu1 %v11903_v56 }
 0xf08   :  { %10168 = vmatprep.subr.bf16.mxu1 %v13336_v48  ;;  %10207 = vmatpush3.bf16.msra.mxu0 %v11619_v55 }
 0xf09   :  { %10208 = vmatprep.subr.bf16.mxu0 %v13336_v48 }
 0xf0b   :  { %10170 = vmatpush3.bf16.msra.mxu1 %v11915_v27 }
 0xf0c   :  { %10184 = vmatprep.subr.bf16.mxu1 %v11509_v10  ;;  %10210 = vmatpush3.bf16.msra.mxu0 %v11629_v0  ;;  %v3080_v10 = vld [vmem:[#allocation2] sm:$0x3] }
 0xf0d   :  { %10211 = vmatprep.subr.bf16.mxu0 %v13336_v48 }
 0xf0e   :  { %9228 = vmatmul.mubr.msk.f32.vlgmr.msra.gmra.mrb[40].mxu1 %vm67_vm1, %v11646_v17 }
 0xf0f   :  { %10186 = vmatpush1.bf16.msra.mxu1 %v11524_v15  ;;  %3164 = vmatprep.mubr.f32.mxu1 %v10871_v3 }
 0xf10   :  { %10188 = vmatprep.subr.bf16.mxu1 %v11527_v19 }
 0xf13   :  { %10190 = vmatpush1.bf16.msra.mxu1 %v11544_v29 }
 0xf14   :  { %10192 = vmatprep.subr.bf16.mxu1 %v11548_v30 }
 0xf17   :  { %10194 = vmatpush1.bf16.msra.mxu1 %v11563_v47 }
 0xf18   :  { %10196 = vmatprep.subr.bf16.mxu1 %v11566_v51 }
 0xf1b   :  { %10198 = vmatpush1.bf16.msra.mxu1 %v11575_v2 }
 0xf1c   :  { %9268 = vmatprep.subr.mxu1 %v10871_v3 }
 0xf1e   :  { %8207 = vmatmul.mubr.msk.f32.vlgmr.msra.gmra.mrb[42].mxu1 %vm67_vm1, %v3080_v10 }
 0xf1f   :  { %9269 = vmatpush3.msra.mxu1 %v11748_v39  ;;  %9270 = vmatprep.mubr.msk.f32.mxu1 %vm10875_vm2, %v10871_v3  ;;  %v8206_v39 = vld [vmem:[%s13325_s3 + $0xc] sm:$0xf] }
 0xf20   :  { %9273 = vmatprep.subr.mxu1 %v10871_v3 }
 0xfd1   :  { %v2801_v15 = vpop.f32.mrb[38].mxu1  ;;  %v3046_v19 = vpop.f32.mrb[22].mxu0 }
 0xfd2   :  { %v11941_v29 = vadd.f32 %v11737_v43, %v2801_v15  ;;  %v9191_v30 = vpop.f32.mrb[39].mxu1  ;;  %v9248_v47 = vpop.f32.mrb[23].mxu0 }
 0xfe1   :  { %v2976_v51 = vpop.f32.mrb[40].mxu1 }
 0xfe2   :  { %v11943_v2 = vadd.f32 %v3046_v19, %v2976_v51  ;;  %v9229_v54 = vpop.f32.mrb[41].mxu1 }
 0xff1   :  { %v3166_v55 = vpop.f32.mrb[42].mxu1 }
 0xff2   :  { %v3168_v0 = vpop.f32.mrb[43].mxu1 }
 0xff3   :  { %v3173_v17 = vcombine.low %v3166_v55, %v3168_v0 }
 0xff5   :  { %v3180_v4 = vrot.slane %v3173_v17, %v11033_v35 }
 0xff7   :  { %v3182_v8 = vadd.f32 %v8206_v39, %v3180_v4 }
 0xff9   :  { %v8208_v59 = vmul.f32 -1.442695, %v3182_v8  ;;  %v3190_v43 = vrot.slane %v3182_v8, 2 }
 0xffb   :  { %10691 = vpow2.f32 %v8208_v59 }
 0xffc   :  { %10693 = vtanh.f32 %v3190_v43 }
0x1005   :  { %v10692_v1 = vpop.eup %10691 }
0x1006   :  { %v3186_v18 = vadd.f32 1.0, %v10692_v1  ;;  %v10694_v58 = vpop.eup %10693 }
0x1008   :  { %10695 = vrcp.f32 %v3186_v18 }
0x1012   :  { %v10696_v62 = vpop.eup %10695 }
0x1013   :  { %v3216_v46 = vmul.f32 %v10696_v62, %v10694_v58  ;;  %v3215_v5 = vmul.f32 %v10696_v62, %v3213_v63 }
0x1015   :  { %3218 = vrot.lane.b32.xlu1 %v3216_v46, %s10872_s25 }
0x1019   :  { %3193 = vrot.lane.b32.xlu1 %v3182_v8, %s10872_s25 }
0x1087   :  { %v3219_v12 = vpop.permute.xlu1 %3218 }
0x1088   :  { %v11951_v21 = vadd.f32 %v3219_v12, %v3215_v5 }
0x108a   :  { %10697 = vtanh.f32 %v11951_v21  ;;  %v3236_v4 = vrot.slane %v11951_v21, %v11033_v35 }
0x108b   :  { %v3194_v38 = vpop.permute.xlu1 %3193 }
0x108c   :  { %v3195_v44 = vrot.slane %v3194_v38, 2  ;;  %v4091_v38 = vld [vmem:[%s13322_s7 + $0x10] sm:$0xff] }
0x108e   :  { %v8209_v13 = vmul.f32 -1.442695, %v3195_v44  ;;  %v4094_v44 = vld [vmem:[%s13322_s7 + $0x28] sm:$0xff] }
0x1090   :  { %10699 = vpow2.f32 %v8209_v13 }
0x1094   :  { %v10698_v24 = vpop.eup %10697 }
0x1095   :  { %3224 = vrot.lane.b32.xlu0 %v10698_v24, %s10872_s25 }
0x109a   :  { %v10700_v50 = vpop.eup %10699 }
0x109b   :  { %v3200_v10 = vadd.f32 1.0, %v10700_v50 }
0x109d   :  { %10701 = vrcp.f32 %v3200_v10  ;;  %v4093_v10 = vld [vmem:[%s13322_s7 + $0x20] sm:$0xff] }
0x10a7   :  { %v10702_v15 = vpop.eup %10701 }
0x1107   :  { %v3225_v19 = vpop.permute.xlu0 %3224 }
0x1108   :  { %v11955_v30 = vmul.f32 %v10702_v15, %v3225_v19  ;;  %v4095_v15 = vld [vmem:[%s13322_s7 + $0x30] sm:$0xff]  ;;  %v4098_v19 = vld [vmem:[%s13322_s7 + $0x48] sm:$0xff] }
0x110a   :  { %3228 = vst.msk [vmem:[#allocation2] sm:$0x3] %vm45_vm0, %v11955_v30  ;;  %9266 = vmatmul.mubr.msk.f32.vlgmr.msra.gmra.mrb[24].mxu0 %vm67_vm1, %v11955_v30  ;;  %v3491_v47 = vrot.slane %v11955_v30, %v11132_v28 }
0x110b   :  { %10213 = vmatpush3.bf16.msra.mxu0 %v11644_v60  ;;  %9294 = vmatprep.mubr.msk.f32.mxu0 %vm10875_vm2, %v10871_v3 }
0x110c   :  { %10214 = vmatprep.subr.bf16.mxu0 %v13336_v48 }
0x110f   :  { %10216 = vmatpush3.bf16.msra.mxu0 %v11659_v41 }
0x1110   :  { %10217 = vmatprep.subr.bf16.mxu0 %v13336_v48 }
0x1113   :  { %10219 = vmatpush3.bf16.msra.mxu0 %v11671_v53 }
0x1114   :  { %10220 = vmatprep.subr.bf16.mxu0 %v13336_v48 }
0x1117   :  { %10222 = vmatpush3.bf16.msra.mxu0 %v11681_v9 }
0x1118   :  { %10235 = vmatprep.subr.bf16.mxu0 %v13336_v48 }
0x111a   :  { %9295 = vmatmul.mubr.msk.f32.vlgmr.msra.gmra.mrb[26].mxu0 %vm67_vm1, %v3491_v47  ;;  %v12090_v47 = vpack.c.bf16 %v4095_v15, %v4093_v10 }
0x111b   :  { %10237 = vmatpush3.bf16.msra.mxu0 %v11691_v23  ;;  %9342 = vmatprep.mubr.msk.f32.mxu0 %vm10875_vm2, %v10871_v3 }
0x111c   :  { %10238 = vmatprep.subr.bf16.mxu0 %v13336_v48 }
0x111f   :  { %10240 = vmatpush3.bf16.msra.mxu0 %v11704_v11 }
0x1120   :  { %10241 = vmatprep.subr.bf16.mxu0 %v13336_v48 }
0x1123   :  { %10243 = vmatpush3.bf16.msra.mxu0 %v11716_v57 }
0x1124   :  { %10244 = vmatprep.subr.bf16.mxu0 %v13336_v48 }
0x1127   :  { %10246 = vmatpush3.bf16.msra.mxu0 %v11726_v25 }
0x1128   :  { %10259 = vmatprep.subr.bf16.mxu0 %v13336_v48 }
0x112a   :  { %9343 = vmatmul.mubr.msk.f32.vlgmr.msra.gmra.mrb[28].mxu0 %vm67_vm1, %v11955_v30 }
0x112b   :  { %10261 = vmatpush3.bf16.msra.mxu0 %v11806_v6  ;;  %9380 = vmatprep.mubr.msk.f32.mxu0 %vm10875_vm2, %v10871_v3 }
0x112c   :  { %10262 = vmatprep.subr.bf16.mxu0 %v13336_v48 }
0x112f   :  { %10264 = vmatpush3.bf16.msra.mxu0 %v11819_v20 }
0x1130   :  { %10265 = vmatprep.subr.bf16.mxu0 %v13336_v48 }
0x1133   :  { %10267 = vmatpush3.bf16.msra.mxu0 %v11840_v40 }
0x1134   :  { %10268 = vmatprep.subr.bf16.mxu0 %v13336_v48 }
0x1137   :  { %10270 = vmatpush3.bf16.msra.mxu0 %v11860_v61 }
0x1138   :  { %10287 = vmatprep.subr.bf16.mxu0 %v13336_v48 }
0x11dd   :  { %v3318_v60 = vpop.f32.mrb[24].mxu0 }
0x11de   :  { %v9267_v41 = vpop.f32.mrb[25].mxu0  ;;  %v3322_v53 = vsel %vm293_vm3, %v3318_v60, -inf }
0x11df   :  { %3323 = vmax.xlane.f32.xlu1 %v3322_v53  ;;  %v4097_v41 = vld [vmem:[%s13322_s7 + $0x40] sm:$0xff]  ;;  %v4099_v53 = vld [vmem:[%s13322_s7 + $0x50] sm:$0xff] }
0x11ed   :  { %v3560_v9 = vpop.f32.mrb[26].mxu0 }
0x11ee   :  { %v9296_v23 = vpop.f32.mrb[27].mxu0  ;;  %v3564_v11 = vsel %vm293_vm3, %v3560_v9, -inf }
0x11ef   :  { %3565 = vmax.xlane.f32.xlu0 %v3564_v11  ;;  %v12109_v23 = vpack.c.bf16 %v4099_v53, %v4097_v41 }
0x11fd   :  { %v11998_v57 = vpop.f32.mrb[28].mxu0 }
0x11fe   :  { %v9344_v25 = vpop.f32.mrb[29].mxu0 }
0x11ff   :  { %v4101_v25 = vld [vmem:[%s13322_s7 + $0x60] sm:$0xff] }
0x126c   :  { %v3324_v6 = vpop.xlane.xlu1 %3323 }
0x126d   :  { %v3325_v20 = vsub.f32 %v3318_v60, %v3324_v6  ;;  %v4103_v6 = vld [vmem:[%s13322_s7 + $0x70] sm:$0xff] }
0x126f   :  { %v3326_v40 = vmul.f32 1.442695, %v3325_v20  ;;  %v12121_v20 = vpack.c.bf16 %v4103_v6, %v4101_v25 }
0x1271   :  { %10703 = vpow2.f32 %v3326_v40  ;;  %v4088_v40 = vld [vmem:[#allocation2] sm:$0x3] }
0x127b   :  { %v10704_v61 = vpop.eup %10703 }
0x127c   :  { %v3566_v51 = vpop.xlane.xlu0 %3565  ;;  %v3328_v54 = vsel %vm293_vm3, %v10704_v61, 0.0 }
0x127d   :  { %v3567_v55 = vsub.f32 %v3560_v9, %v3566_v51  ;;  %3329 = vadd.xlane.f32.xlu0 %v3328_v54  ;;  %v4104_v9 = vld [vmem:[%s13322_s7 + $0x78] sm:$0xff] }
0x127f   :  { %v3568_v0 = vmul.f32 1.442695, %v3567_v55 }
0x1281   :  { %10705 = vpow2.f32 %v3568_v0 }
0x128b   :  { %v10706_v17 = vpop.eup %10705 }
0x128c   :  { %v3570_v39 = vsel %vm293_vm3, %v10706_v17, 0.0 }
0x128d   :  { %3571 = vadd.xlane.f32.xlu1 %v3570_v39 }
0x1293   :  { %3237 = vrot.lane.b32.xlu0 %v3236_v4, %s10872_s25 }
0x130a   :  { %v3330_v8 = vpop.xlane.xlu0 %3329 }
0x130b   :  { %10707 = vrcp.f32 %v3330_v8 }
0x130e   :  { %v3238_v59 = vpop.permute.xlu0 %3237 }
0x130f   :  { %3240 = vst.msk [vmem:[#allocation3] sm:$0x3] %vm45_vm0, %v3238_v59 }
0x1315   :  { %v10708_v43 = vpop.eup %10707 }
0x1316   :  { %v3332_v1 = vmul.f32 %v10708_v43, %v10704_v61  ;;  %v8239_v18 = vld.sshfl [vmem:[#allocation3] sm:$0x3 pattern:$0x76325410] }
0x1317   :  { %4220 = vrot.lane.b32.xlu1 %v8239_v18, %s10872_s25 }
0x1318   :  { %9271 = vmatmul.mubr.msk.f32.vlgmr.msra.gmra.mrb[44].mxu1 %vm306_vm4, %v3332_v1 }
0x1319   :  { %9274 = vmatpush3.msra.mxu1 %v11756_v16  ;;  %9275 = vmatprep.mubr.msk.f32.mxu1 %vm10875_vm2, %v10871_v3 }
0x131a   :  { %v3572_v58 = vpop.xlane.xlu1 %3571  ;;  %9297 = vmatprep.subr.mxu1 %v10871_v3 }
0x131b   :  { %10709 = vrcp.f32 %v3572_v58 }
0x131c   :  { %9276 = vmatmul.mubr.msk.f32.vlgmr.msra.gmra.mrb[46].mxu1 %vm306_vm4, %v3332_v1  ;;  %v8235_v1 = vld [vmem:[%s13325_s3 + $0x10] sm:$0xf] }
0x131d   :  { %9298 = vmatpush3.msra.mxu1 %v11766_v42  ;;  %9299 = vmatprep.mubr.msk.f32.mxu1 %vm10875_vm2, %v10871_v3 }
0x131e   :  { %9302 = vmatprep.subr.mxu1 %v10871_v3 }
0x1325   :  { %v10710_v62 = vpop.eup %10709 }
0x1326   :  { %v3574_v46 = vmul.f32 %v10710_v62, %v10706_v17 }
0x1328   :  { %9300 = vmatmul.mubr.msk.f32.vlgmr.msra.gmra.mrb[48].mxu1 %vm306_vm4, %v3574_v46 }
0x1329   :  { %9303 = vmatpush3.msra.mxu1 %v11776_v34  ;;  %9304 = vmatprep.mubr.msk.f32.mxu1 %vm10875_vm2, %v10871_v3  ;;  %v12034_v34 = vld [vmem:[#allocation5] sm:$0x3] }
0x132a   :  { %10223 = vmatprep.subr.bf16.mxu1 %v13336_v48 }
0x132c   :  { %9305 = vmatmul.mubr.msk.f32.vlgmr.msra.gmra.mrb[50].mxu1 %vm306_vm4, %v3574_v46 }
0x132d   :  { %10225 = vmatpush3.bf16.msra.mxu1 %v11795_v37  ;;  %9323 = vmatprep.mubr.msk.f32.mxu1 %vm10875_vm2, %v10871_v3 }
0x132e   :  { %10226 = vmatprep.subr.bf16.mxu1 %v13336_v48 }
0x1331   :  { %10228 = vmatpush3.bf16.msra.mxu1 %v11815_v49 }
0x1332   :  { %10229 = vmatprep.subr.bf16.mxu1 %v13336_v48 }
0x1335   :  { %10231 = vmatpush3.bf16.msra.mxu1 %v11832_v52 }
0x1336   :  { %10232 = vmatprep.subr.bf16.mxu1 %v13336_v48 }
0x1339   :  { %10234 = vmatpush3.bf16.msra.mxu1 %v11851_v36  ;;  %v4090_v36 = vld [vmem:[%s13322_s7 + $0x8] sm:$0xff] }
0x133a   :  { %10247 = vmatprep.subr.bf16.mxu1 %v13336_v48 }
0x1389   :  { %v4221_v15 = vpop.permute.xlu1 %4220 }
0x13eb   :  { %v3403_v16 = vpop.f32.mrb[44].mxu1 }
0x13ec   :  { %3407 = vst.msk [vmem:[#allocation4] sm:$0x1] %vm380_vm5, %v3403_v16  ;;  %v9272_v42 = vpop.f32.mrb[45].mxu1 }
0x13ef   :  { %v3475_v37 = vpop.f32.mrb[46].mxu1 }
0x13f0   :  { %3479 = vst [vmem:[#allocation5] sm:$0x1] %v3475_v37  ;;  %v9277_v63 = vpop.f32.mrb[47].mxu1 }
0x13fb   :  { %v3645_v49 = vpop.f32.mrb[48].mxu1 }
0x13fc   :  { %3649 = vst.msk [vmem:[#allocation4 + $0x1] sm:$0x1] %vm380_vm5, %v3645_v49  ;;  %v9301_v5 = vpop.f32.mrb[49].mxu1  ;;  %v4249_v49 = vld [vmem:[%s13326_s1] sm:$0xff] }
0x13fd   :  { %v4250_v5 = vld [vmem:[%s13326_s1 + $0x8] sm:$0xff] }
0x13ff   :  { %v3717_v52 = vpop.f32.mrb[50].mxu1 }
0x1400   :  { %3721 = vst [vmem:[#allocation5 + $0x1] sm:$0x1] %v3717_v52  ;;  %v9306_v12 = vpop.f32.mrb[51].mxu1  ;;  %v4251_v52 = vld [vmem:[%s13326_s1 + $0x10] sm:$0xff] }
0x1401   :  { %v12149_v12 = vpack.c.bf16 %v4250_v5, %v4249_v49  ;;  %v4734_v49 = vld [vmem:[%s13327_s8 + $0x10] sm:$0xff]  ;;  %v4735_v5 = vld [vmem:[%s13327_s8 + $0x18] sm:$0xff] }
0x1403   :  { %v3722_v21 = vld [vmem:[#allocation4] sm:$0x3] }
0x1404   :  { %9324 = vmatmul.mubr.msk.f32.vlgmr.msra.gmra.mrb[52].mxu1 %vm67_vm1, %v3722_v21  ;;  %9381 = vmatmul.mubr.msk.f32.vlgmr.msra.gmra.mrb[30].mxu0 %vm67_vm1, %v3722_v21  ;;  %v4252_v21 = vld [vmem:[%s13326_s1 + $0x18] sm:$0xff] }
0x1405   :  { %10249 = vmatpush3.bf16.msra.mxu1 %v11876_v32  ;;  %9361 = vmatprep.mubr.msk.f32.mxu1 %vm10875_vm2, %v10871_v3  ;;  %v4092_v32 = vld [vmem:[%s13322_s7 + $0x18] sm:$0xff] }
0x1406   :  { %10250 = vmatprep.subr.bf16.mxu1 %v13336_v48  ;;  %9399 = vmatprep.mubr.msk.f32.mxu0 %vm10875_vm2, %v10871_v3  ;;  %v12055_v24 = vpack.c.bf16 %v4092_v32, %v4090_v36  ;;  %v12155_v36 = vpack.c.bf16 %v4252_v21, %v4251_v52  ;;  %v4253_v32 = vld [vmem:[%s13326_s1 + $0x20] sm:$0xff]  ;;  %v12250_v52 = vpack.c.bf16 %v4735_v5, %v4734_v49 }
0x1407   :  { %10289 = vmatpush3.bf16.msra.mxu0 %v12149_v12  ;;  %v4736_v21 = vld [vmem:[%s13327_s8 + $0x20] sm:$0xff] }
0x1408   :  { %10290 = vmatprep.subr.bf16.mxu0 %v13336_v48 }
0x1409   :  { %10252 = vmatpush3.bf16.msra.mxu1 %v11887_v33  ;;  %v4089_v33 = vld [vmem:[%s13322_s7] sm:$0xff] }
0x140a   :  { %10253 = vmatprep.subr.bf16.mxu1 %v13336_v48  ;;  %v12070_v13 = vpack.c.bf16 %v4091_v38, %v4089_v33  ;;  %v4254_v33 = vld [vmem:[%s13326_s1 + $0x28] sm:$0xff] }
0x140b   :  { %10292 = vmatpush3.bf16.msra.mxu0 %v12155_v36  ;;  %v12165_v38 = vpack.c.bf16 %v4254_v33, %v4253_v32  ;;  %v4737_v32 = vld [vmem:[%s13327_s8 + $0x28] sm:$0xff] }
0x140c   :  { %10293 = vmatprep.subr.bf16.mxu0 %v13336_v48  ;;  %v12262_v33 = vpack.c.bf16 %v4737_v32, %v4736_v21  ;;  %v12302_v32 = vld [vmem:[%s13329_s2] sm:$0xff] }
0x140d   :  { %10255 = vmatpush3.bf16.msra.mxu1 %v11903_v56  ;;  %v4096_v56 = vld [vmem:[%s13322_s7 + $0x38] sm:$0xff] }
0x140e   :  { %10256 = vmatprep.subr.bf16.mxu1 %v13336_v48  ;;  %v12073_v50 = vpack.c.bf16 %v4096_v56, %v4094_v44  ;;  %v4255_v44 = vld [vmem:[%s13326_s1 + $0x30] sm:$0xff]  ;;  %v4256_v56 = vld [vmem:[%s13326_s1 + $0x38] sm:$0xff] }
0x140f   :  { %10295 = vmatpush3.bf16.msra.mxu0 %v12165_v38  ;;  %v12175_v10 = vpack.c.bf16 %v4256_v56, %v4255_v44  ;;  %v4738_v44 = vld [vmem:[%s13327_s8 + $0x30] sm:$0xff]  ;;  %v4739_v56 = vld [vmem:[%s13327_s8 + $0x38] sm:$0xff] }
0x1410   :  { %10296 = vmatprep.subr.bf16.mxu0 %v13336_v48 }
0x1411   :  { %10258 = vmatpush3.bf16.msra.mxu1 %v11915_v27  ;;  %v4100_v27 = vld [vmem:[%s13322_s7 + $0x58] sm:$0xff] }
0x1412   :  { %10272 = vmatprep.subr.bf16.mxu1 %v12055_v24  ;;  %v12094_v60 = vpack.c.bf16 %v4100_v27, %v4098_v19 }
0x1413   :  { %10298 = vmatpush3.bf16.msra.mxu0 %v12175_v10 }
0x1414   :  { %9362 = vmatmul.mubr.msk.f32.vlgmr.msra.gmra.mrb[54].mxu1 %vm67_vm1, %v11955_v30  ;;  %v4102_v30 = vld [vmem:[%s13322_s7 + $0x68] sm:$0xff]  ;;  %10299 = vmatprep.subr.bf16.mxu0 %v13336_v48 }
0x1415   :  { %10274 = vmatpush1.bf16.msra.mxu1 %v12070_v13  ;;  %4172 = vmatprep.mubr.f32.mxu1 %v10871_v3  ;;  %v12112_v11 = vpack.c.bf16 %v4104_v9, %v4102_v30 }
0x1416   :  { %10276 = vmatprep.subr.bf16.mxu1 %v12073_v50 }
0x1419   :  { %10278 = vmatpush1.bf16.msra.mxu1 %v12090_v47 }
0x141a   :  { %10280 = vmatprep.subr.bf16.mxu1 %v12094_v60 }
0x141d   :  { %10282 = vmatpush1.bf16.msra.mxu1 %v12109_v23 }
0x141e   :  { %10284 = vmatprep.subr.bf16.mxu1 %v12112_v11 }
0x1421   :  { %10286 = vmatpush1.bf16.msra.mxu1 %v12121_v20 }
0x1422   :  { %9402 = vmatprep.subr.mxu1 %v10871_v3 }
0x1424   :  { %8236 = vmatmul.mubr.msk.f32.vlgmr.msra.gmra.mrb[56].mxu1 %vm67_vm1, %v4088_v40 }
0x1425   :  { %9404 = vmatprep.mubr.msk.f32.mxu1 %vm10875_vm2, %v10871_v3 }
0x14d7   :  { %v3809_v61 = vpop.f32.mrb[52].mxu1  ;;  %v4054_v51 = vpop.f32.mrb[30].mxu0 }
0x14d8   :  { %v12130_v54 = vadd.f32 %v11998_v57, %v3809_v61  ;;  %v9325_v55 = vpop.f32.mrb[53].mxu1  ;;  %v9382_v0 = vpop.f32.mrb[31].mxu0  ;;  %v8243_v61 = vld [vmem:[%s13326_s1 + $0x40] sm:$0xff] }
0x14e7   :  { %v3984_v17 = vpop.f32.mrb[54].mxu1 }
0x14e8   :  { %v12132_v39 = vadd.f32 %v4054_v51, %v3984_v17  ;;  %v9363_v4 = vpop.f32.mrb[55].mxu1  ;;  %v8244_v51 = vld [vmem:[%s13326_s1 + $0x48] sm:$0xff] }
0x14e9   :  { %v12190_v17 = vpack.c.bf16 %v8244_v51, %v8243_v61 }
0x14f7   :  { %v4174_v8 = vpop.f32.mrb[56].mxu1 }
0x14f8   :  { %v4176_v59 = vpop.f32.mrb[57].mxu1 }
0x14f9   :  { %v4181_v43 = vcombine.low %v4174_v8, %v4176_v59  ;;  %v8245_v8 = vld [vmem:[%s13326_s1 + $0x50] sm:$0xff]  ;;  %v8246_v59 = vld [vmem:[%s13326_s1 + $0x58] sm:$0xff] }
0x14fb   :  { %v4188_v18 = vrot.slane %v4181_v43, %v11033_v35  ;;  %v12205_v43 = vpack.c.bf16 %v8246_v59, %v8245_v8 }
0x14fd   :  { %v4190_v58 = vadd.f32 %v8235_v1, %v4188_v18  ;;  %v8247_v1 = vld [vmem:[%s13326_s1 + $0x60] sm:$0xff]  ;;  %v8248_v18 = vld [vmem:[%s13326_s1 + $0x68] sm:$0xff] }
0x14ff   :  { %4201 = vrot.lane.b32.xlu0 %v4190_v58, %s10872_s25  ;;  %v8237_v57 = vmul.f32 -1.442695, %v4190_v58  ;;  %v4198_v62 = vrot.slane %v4190_v58, 2  ;;  %v12217_v58 = vpack.c.bf16 %v8248_v18, %v8247_v1 }
0x1501   :  { %10711 = vpow2.f32 %v8237_v57  ;;  %v8249_v57 = vld [vmem:[%s13326_s1 + $0x70] sm:$0xff] }
0x1502   :  { %10713 = vtanh.f32 %v4198_v62  ;;  %v8250_v62 = vld [vmem:[%s13326_s1 + $0x78] sm:$0xff] }
0x150b   :  { %v10712_v46 = vpop.eup %10711 }
0x150c   :  { %v4194_v16 = vadd.f32 1.0, %v10712_v46  ;;  %v10714_v42 = vpop.eup %10713  ;;  %v12227_v46 = vpack.c.bf16 %v8250_v62, %v8249_v57 }
0x150e   :  { %10715 = vrcp.f32 %v4194_v16  ;;  %v4732_v16 = vld [vmem:[%s13327_s8] sm:$0xff] }
0x1518   :  { %v10716_v37 = vpop.eup %10715 }
0x1519   :  { %v4224_v63 = vmul.f32 %v10716_v37, %v10714_v42  ;;  %v4223_v19 = vmul.f32 %v10716_v37, %v4221_v15  ;;  %v4733_v42 = vld [vmem:[%s13327_s8 + $0x8] sm:$0xff]  ;;  %v12272_v15 = vpack.c.bf16 %v4739_v56, %v4738_v44 }
0x151a   :  { %v12237_v37 = vpack.c.bf16 %v4733_v42, %v4732_v16  ;;  %v12294_v42 = vld [vmem:[%s13328_s0] sm:$0xff]  ;;  %v12312_v56 = vld [vmem:[%s13328_s0 + $0x8] sm:$0xff] }
0x151b   :  { %4226 = vrot.lane.b32.xlu1 %v4224_v63, %s10872_s25  ;;  %9403 = vmatpush3.msra.mxu1 %v12294_v42 }
0x151c   :  { %9407 = vmatprep.subr.mxu1 %v10871_v3 }
0x1571   :  { %v4202_v30 = vpop.permute.xlu0 %4201 }
0x1572   :  { %v4203_v9 = vrot.slane %v4202_v30, 2 }
0x1574   :  { %v8238_v25 = vmul.f32 -1.442695, %v4203_v9 }
0x158d   :  { %v4227_v27 = vpop.permute.xlu1 %4226 }
0x158e   :  { %v12180_v41 = vadd.f32 %v4227_v27, %v4223_v19 }
0x1590   :  { %10717 = vtanh.f32 %v12180_v41 }
0x1591   :  { %10719 = vpow2.f32 %v8238_v25 }
0x159a   :  { %v10718_v53 = vpop.eup %10717 }
0x159b   :  { %4232 = vrot.lane.b32.xlu1 %v10718_v53, %s10872_s25  ;;  %v10720_v6 = vpop.eup %10719 }
0x159c   :  { %v4208_v40 = vadd.f32 1.0, %v10720_v6 }
0x159e   :  { %10721 = vrcp.f32 %v4208_v40  ;;  %v4244_v40 = vrot.slane %v12180_v41, %v11033_v35 }
0x15a8   :  { %v10722_v55 = vpop.eup %10721 }
0x160d   :  { %v4233_v0 = vpop.permute.xlu1 %4232 }
0x160e   :  { %v12192_v4 = vmul.f32 %v10722_v55, %v4233_v0 }
0x1610   :  { %4236 = vst.msk [vmem:[#allocation2] sm:$0x3] %vm45_vm0, %v12192_v4  ;;  %9400 = vmatmul.mubr.msk.f32.vlgmr.msra.gmra.mrb[32].mxu0 %vm67_vm1, %v12192_v4  ;;  %v4499_v63 = vrot.slane %v12192_v4, %v11132_v28 }
0x1611   :  { %10301 = vmatpush3.bf16.msra.mxu0 %v12190_v17  ;;  %9428 = vmatprep.mubr.msk.f32.mxu0 %vm10875_vm2, %v10871_v3 }
0x1612   :  { %10302 = vmatprep.subr.bf16.mxu0 %v13336_v48 }
0x1615   :  { %10304 = vmatpush3.bf16.msra.mxu0 %v12205_v43 }
0x1616   :  { %10305 = vmatprep.subr.bf16.mxu0 %v13336_v48 }
0x1619   :  { %10307 = vmatpush3.bf16.msra.mxu0 %v12217_v58 }
0x161a   :  { %10308 = vmatprep.subr.bf16.mxu0 %v13336_v48 }
0x161d   :  { %10310 = vmatpush3.bf16.msra.mxu0 %v12227_v46 }
0x161e   :  { %10323 = vmatprep.subr.bf16.mxu0 %v13336_v48 }
0x1620   :  { %9429 = vmatmul.mubr.msk.f32.vlgmr.msra.gmra.mrb[34].mxu0 %vm67_vm1, %v4499_v63 }
0x1621   :  { %10325 = vmatpush3.bf16.msra.mxu0 %v12237_v37  ;;  %9476 = vmatprep.mubr.msk.f32.mxu0 %vm10875_vm2, %v10871_v3 }
0x1622   :  { %10326 = vmatprep.subr.bf16.mxu0 %v13336_v48 }
0x1625   :  { %10328 = vmatpush3.bf16.msra.mxu0 %v12250_v52 }
0x1626   :  { %10329 = vmatprep.subr.bf16.mxu0 %v13336_v48 }
0x1629   :  { %10331 = vmatpush3.bf16.msra.mxu0 %v12262_v33 }
0x162a   :  { %10332 = vmatprep.subr.bf16.mxu0 %v13336_v48 }
0x162d   :  { %10334 = vmatpush3.bf16.msra.mxu0 %v12272_v15 }
0x162e   :  { %10347 = vmatprep.subr.bf16.mxu0 %v13336_v48 }
0x1630   :  { %9477 = vmatmul.mubr.msk.f32.vlgmr.msra.gmra.mrb[36].mxu0 %vm67_vm1, %v12192_v4 }
0x1631   :  { %9514 = vmatprep.mubr.msk.f32.mxu0 %vm10875_vm2, %v10871_v3 }
0x16e3   :  { %v4326_v19 = vpop.f32.mrb[32].mxu0 }
0x16e4   :  { %v9401_v27 = vpop.f32.mrb[33].mxu0  ;;  %v4330_v53 = vsel %vm293_vm3, %v4326_v19, -inf }
0x16e5   :  { %4331 = vmax.xlane.f32.xlu0 %v4330_v53  ;;  %v12322_v53 = vld [vmem:[%s13329_s2 + $0x8] sm:$0xff] }
0x16f3   :  { %v4568_v30 = vpop.f32.mrb[34].mxu0 }
0x16f4   :  { %v9430_v9 = vpop.f32.mrb[35].mxu0  ;;  %v4572_v25 = vsel %vm293_vm3, %v4568_v30, -inf }
0x16f5   :  { %4573 = vmax.xlane.f32.xlu1 %v4572_v25  ;;  %v4741_v9 = vld [vmem:[%s13330_s9 + $0x8] sm:$0xff]  ;;  %v4910_v25 = vld [vmem:[%s13331_s11] sm:$0xff] }
0x1703   :  { %v12283_v6 = vpop.f32.mrb[36].mxu0 }
0x1704   :  { %v9478_v61 = vpop.f32.mrb[37].mxu0 }
0x1705   :  { %v4911_v61 = vld [vmem:[%s13331_s11 + $0x8] sm:$0xff] }
0x1706   :  { %4245 = vrot.lane.b32.xlu1 %v4244_v40, %s10872_s25 }
0x1772   :  { %v4332_v51 = vpop.xlane.xlu0 %4331 }
0x1773   :  { %v4333_v55 = vsub.f32 %v4326_v19, %v4332_v51  ;;  %v4742_v51 = vld [vmem:[%s13330_s9 + $0x10] sm:$0xff] }
0x1775   :  { %v4334_v0 = vmul.f32 1.442695, %v4333_v55  ;;  %v4743_v55 = vld [vmem:[%s13330_s9 + $0x18] sm:$0xff] }
0x1777   :  { %10723 = vpow2.f32 %v4334_v0  ;;  %v12352_v0 = vpack.c.bf16 %v4911_v61, %v4910_v25  ;;  %v12413_v61 = vld [vmem:[#allocation5] sm:$0x3] }
0x1779   :  { %10349 = vmatpush3.bf16.msra.mxu0 %v12352_v0 }
0x177a   :  { %10350 = vmatprep.subr.bf16.mxu0 %v13336_v48 }
0x1781   :  { %v10724_v8 = vpop.eup %10723 }
0x1782   :  { %v4574_v59 = vpop.xlane.xlu1 %4573  ;;  %v4336_v1 = vsel %vm293_vm3, %v10724_v8, 0.0 }
0x1783   :  { %v4575_v18 = vsub.f32 %v4568_v30, %v4574_v59  ;;  %4337 = vadd.xlane.f32.xlu0 %v4336_v1  ;;  %v4740_v30 = vld [vmem:[%s13330_s9] sm:$0xff]  ;;  %v4913_v59 = vld [vmem:[%s13331_s11 + $0x18] sm:$0xff]  ;;  %v12361_v1 = vpack.c.bf16 %v4743_v55, %v4742_v51 }
0x1784   :  { %v12341_v40 = vpack.c.bf16 %v4741_v9, %v4740_v30 }
0x1785   :  { %v4576_v57 = vmul.f32 1.442695, %v4575_v18 }
0x1786   :  { %v4246_v62 = vpop.permute.xlu1 %4245 }
0x1787   :  { %10725 = vpow2.f32 %v4576_v57  ;;  %4248 = vst.msk [vmem:[#allocation3] sm:$0x3] %vm45_vm0, %v4246_v62  ;;  %v4744_v57 = vld [vmem:[%s13330_s9 + $0x20] sm:$0xff]  ;;  %v4745_v62 = vld [vmem:[%s13330_s9 + $0x28] sm:$0xff] }
0x178e   :  { %v8268_v63 = vld.sshfl [vmem:[#allocation3] sm:$0x3 pattern:$0x76325410] }
0x1791   :  { %v10726_v16 = vpop.eup %10725 }
0x1792   :  { %v4578_v41 = vsel %vm293_vm3, %v10726_v16, 0.0 }
0x1793   :  { %4579 = vadd.xlane.f32.xlu0 %v4578_v41  ;;  %v4914_v41 = vld [vmem:[%s13331_s11 + $0x20] sm:$0xff] }
0x17a9   :  { %5228 = vrot.lane.b32.xlu0 %v8268_v63, %s10872_s25  ;;  %v4915_v63 = vld [vmem:[%s13331_s11 + $0x28] sm:$0xff] }
0x1810   :  { %v4338_v49 = vpop.xlane.xlu0 %4337 }
0x1811   :  { %10727 = vrcp.f32 %v4338_v49  ;;  %v12386_v49 = vpack.c.bf16 %v4915_v63, %v4914_v41 }
0x181b   :  { %v10728_v5 = vpop.eup %10727 }
0x181c   :  { %v4340_v21 = vmul.f32 %v10728_v5, %v10724_v8  ;;  %v4912_v8 = vld [vmem:[%s13331_s11 + $0x10] sm:$0xff] }
0x181d   :  { %v12365_v18 = vpack.c.bf16 %v4913_v59, %v4912_v8  ;;  %v4746_v5 = vld [vmem:[%s13330_s9 + $0x30] sm:$0xff] }
0x181e   :  { %9405 = vmatmul.mubr.msk.f32.vlgmr.msra.gmra.mrb[58].mxu1 %vm306_vm4, %v4340_v21 }
0x181f   :  { %9408 = vmatpush3.msra.mxu1 %v12302_v32  ;;  %9409 = vmatprep.mubr.msk.f32.mxu1 %vm10875_vm2, %v10871_v3 }
0x1820   :  { %v4580_v44 = vpop.xlane.xlu0 %4579  ;;  %9431 = vmatprep.subr.mxu1 %v10871_v3  ;;  %10352 = vmatpush3.bf16.msra.mxu0 %v12365_v18 }
0x1821   :  { %10729 = vrcp.f32 %v4580_v44  ;;  %10353 = vmatprep.subr.bf16.mxu0 %v13336_v48 }
0x1822   :  { %9410 = vmatmul.mubr.msk.f32.vlgmr.msra.gmra.mrb[60].mxu1 %vm306_vm4, %v4340_v21  ;;  %v4747_v21 = vld [vmem:[%s13330_s9 + $0x38] sm:$0xff] }
0x1823   :  { %9432 = vmatpush3.msra.mxu1 %v12312_v56  ;;  %9433 = vmatprep.mubr.msk.f32.mxu1 %vm10875_vm2, %v10871_v3  ;;  %v12397_v44 = vpack.c.bf16 %v4747_v21, %v4746_v5  ;;  %v4920_v21 = vld [vmem:[%s13332_s12 + $0x10] sm:$0xff] }
0x1824   :  { %9436 = vmatprep.subr.mxu1 %v10871_v3  ;;  %10355 = vmatpush3.bf16.msra.mxu0 %v12386_v49 }
0x1825   :  { %10356 = vmatprep.subr.bf16.mxu0 %v13336_v48 }
0x182b   :  { %v10730_v19 = vpop.eup %10729 }
0x182c   :  { %v4582_v27 = vmul.f32 %v10730_v19, %v10726_v16  ;;  %v12378_v16 = vpack.c.bf16 %v4745_v62, %v4744_v57  ;;  %v4916_v19 = vld [vmem:[%s13331_s11 + $0x30] sm:$0xff]  ;;  %v4918_v57 = vld [vmem:[%s13332_s12] sm:$0xff]  ;;  %v4919_v62 = vld [vmem:[%s13332_s12 + $0x8] sm:$0xff] }
0x182d   :  { %v12422_v5 = vpack.c.bf16 %v4919_v62, %v4918_v57 }
0x182e   :  { %9434 = vmatmul.mubr.msk.f32.vlgmr.msra.gmra.mrb[62].mxu1 %vm306_vm4, %v4582_v27 }
0x182f   :  { %9437 = vmatpush3.msra.mxu1 %v12322_v53  ;;  %9438 = vmatprep.mubr.msk.f32.mxu1 %vm10875_vm2, %v10871_v3 }
0x1830   :  { %10311 = vmatprep.subr.bf16.mxu1 %v13336_v48 }
0x1832   :  { %9439 = vmatmul.mubr.msk.f32.vlgmr.msra.gmra.mrb[64].mxu1 %vm306_vm4, %v4582_v27  ;;  %v4917_v27 = vld [vmem:[%s13331_s11 + $0x38] sm:$0xff] }
0x1833   :  { %9457 = vmatprep.mubr.msk.f32.mxu1 %vm10875_vm2, %v10871_v3  ;;  %10313 = vmatpush3.bf16.msra.mxu1 %v12341_v40  ;;  %v12406_v30 = vpack.c.bf16 %v4917_v27, %v4916_v19  ;;  %v4921_v19 = vld [vmem:[%s13332_s12 + $0x18] sm:$0xff] }
0x1834   :  { %10314 = vmatprep.subr.bf16.mxu1 %v13336_v48 }
0x1835   :  { %10358 = vmatpush3.bf16.msra.mxu0 %v12406_v30 }
0x1836   :  { %10375 = vmatprep.subr.bf16.mxu0 %v13336_v48 }
0x1837   :  { %10316 = vmatpush3.bf16.msra.mxu1 %v12361_v1 }
0x1838   :  { %10317 = vmatprep.subr.bf16.mxu1 %v13336_v48 }
0x183b   :  { %10319 = vmatpush3.bf16.msra.mxu1 %v12378_v16 }
0x183c   :  { %10320 = vmatprep.subr.bf16.mxu1 %v13336_v48 }
0x183f   :  { %10322 = vmatpush3.bf16.msra.mxu1 %v12397_v44 }
0x1840   :  { %10335 = vmatprep.subr.bf16.mxu1 %v13336_v48 }
0x18f1   :  { %v4411_v9 = vpop.f32.mrb[58].mxu1 }
0x18f2   :  { %4415 = vst.msk [vmem:[#allocation4] sm:$0x1] %vm380_vm5, %v4411_v9  ;;  %v9406_v25 = vpop.f32.mrb[59].mxu1  ;;  %v12433_v9 = vpack.c.bf16 %v4921_v19, %v4920_v21 }
0x18f3   :  { %v4922_v25 = vld [vmem:[%s13332_s12 + $0x20] sm:$0xff] }
0x18f5   :  { %v4483_v51 = vpop.f32.mrb[60].mxu1 }
0x18f6   :  { %4487 = vst [vmem:[#allocation5] sm:$0x1] %v4483_v51  ;;  %v9411_v55 = vpop.f32.mrb[61].mxu1  ;;  %v4923_v51 = vld [vmem:[%s13332_s12 + $0x28] sm:$0xff] }
0x18f7   :  { %v12449_v55 = vpack.c.bf16 %v4923_v51, %v4922_v25  ;;  %v5229_v51 = vpop.permute.xlu0 %5228 }
0x1901   :  { %v4653_v8 = vpop.f32.mrb[62].mxu1 }
0x1902   :  { %4657 = vst.msk [vmem:[#allocation4 + $0x1] sm:$0x1] %vm380_vm5, %v4653_v8  ;;  %v9435_v59 = vpop.f32.mrb[63].mxu1  ;;  %v4924_v8 = vld [vmem:[%s13332_s12 + $0x30] sm:$0xff] }
0x1903   :  { %v4925_v59 = vld [vmem:[%s13332_s12 + $0x38] sm:$0xff] }
0x1905   :  { %v4725_v41 = vpop.f32.mrb[64].mxu1 }
0x1906   :  { %4729 = vst [vmem:[#allocation5 + $0x1] sm:$0x1] %v4725_v41  ;;  %v9440_v63 = vpop.f32.mrb[65].mxu1 }
0x1909   :  { %v4730_v27 = vld [vmem:[#allocation4] sm:$0x3] }
0x190a   :  { %9458 = vmatmul.mubr.msk.f32.vlgmr.msra.gmra.mrb[66].mxu1 %vm67_vm1, %v4730_v27  ;;  %9515 = vmatmul.mubr.msk.f32.vlgmr.msra.gmra.mrb[38].mxu0 %vm67_vm1, %v4730_v27 }
0x190b   :  { %10337 = vmatpush3.bf16.msra.mxu1 %v12422_v5  ;;  %9495 = vmatprep.mubr.msk.f32.mxu1 %vm10875_vm2, %v10871_v3 }
0x190c   :  { %10338 = vmatprep.subr.bf16.mxu1 %v13336_v48  ;;  %10377 = vmatpush3.bf16.msra.mxu0 %v12149_v12  ;;  %v12461_v12 = vpack.c.bf16 %v4925_v59, %v4924_v8 }
0x190d   :  { %10378 = vmatprep.subr.bf16.mxu0 %v13336_v48  ;;  %9533 = vmatprep.mubr.msk.f32.mxu0 %vm10875_vm2, %v10871_v3 }
0x190f   :  { %10340 = vmatpush3.bf16.msra.mxu1 %v12433_v9 }
0x1910   :  { %10341 = vmatprep.subr.bf16.mxu1 %v13336_v48  ;;  %10380 = vmatpush3.bf16.msra.mxu0 %v12155_v36 }
0x1911   :  { %10381 = vmatprep.subr.bf16.mxu0 %v13336_v48 }
0x1913   :  { %10343 = vmatpush3.bf16.msra.mxu1 %v12449_v55 }
0x1914   :  { %10344 = vmatprep.subr.bf16.mxu1 %v13336_v48  ;;  %10383 = vmatpush3.bf16.msra.mxu0 %v12165_v38 }
0x1915   :  { %10384 = vmatprep.subr.bf16.mxu0 %v13336_v48 }
0x1917   :  { %10346 = vmatpush3.bf16.msra.mxu1 %v12461_v12 }
0x1918   :  { %10360 = vmatprep.subr.bf16.mxu1 %v12055_v24  ;;  %10386 = vmatpush3.bf16.msra.mxu0 %v12175_v10  ;;  %v5096_v24 = vld [vmem:[#allocation2] sm:$0x3] }
0x1919   :  { %10387 = vmatprep.subr.bf16.mxu0 %v13336_v48 }
0x191a   :  { %9496 = vmatmul.mubr.msk.f32.vlgmr.msra.gmra.mrb[68].mxu1 %vm67_vm1, %v12192_v4 }
0x191b   :  { %10362 = vmatpush1.bf16.msra.mxu1 %v12070_v13  ;;  %5180 = vmatprep.mubr.f32.mxu1 %v10871_v3 }
0x191c   :  { %10364 = vmatprep.subr.bf16.mxu1 %v12073_v50 }
0x191f   :  { %10366 = vmatpush1.bf16.msra.mxu1 %v12090_v47 }
0x1920   :  { %10368 = vmatprep.subr.bf16.mxu1 %v12094_v60 }
0x1923   :  { %10370 = vmatpush1.bf16.msra.mxu1 %v12109_v23 }
0x1924   :  { %10372 = vmatprep.subr.bf16.mxu1 %v12112_v11 }
0x1927   :  { %10374 = vmatpush1.bf16.msra.mxu1 %v12121_v20 }
0x1928   :  { %9536 = vmatprep.subr.mxu1 %v10871_v3 }
0x192a   :  { %8265 = vmatmul.mubr.msk.f32.vlgmr.msra.gmra.mrb[70].mxu1 %vm67_vm1, %v5096_v24 }
0x192b   :  { %9537 = vmatpush3.msra.mxu1 %v12294_v42  ;;  %9538 = vmatprep.mubr.msk.f32.mxu1 %vm10875_vm2, %v10871_v3  ;;  %v8264_v42 = vld [vmem:[%s13325_s3 + $0x14] sm:$0xf] }
0x192c   :  { %9541 = vmatprep.subr.mxu1 %v10871_v3 }
0x19dd   :  { %v4817_v13 = vpop.f32.mrb[66].mxu1  ;;  %v5062_v50 = vpop.f32.mrb[38].mxu0 }
0x19de   :  { %v12487_v47 = vadd.f32 %v12283_v6, %v4817_v13  ;;  %v9459_v60 = vpop.f32.mrb[67].mxu1  ;;  %v9516_v23 = vpop.f32.mrb[39].mxu0 }
0x19ed   :  { %v4992_v11 = vpop.f32.mrb[68].mxu1 }
0x19ee   :  { %v12489_v20 = vadd.f32 %v5062_v50, %v4992_v11  ;;  %v9497_v36 = vpop.f32.mrb[69].mxu1 }
0x19fd   :  { %v5182_v38 = vpop.f32.mrb[70].mxu1 }
0x19fe   :  { %v5184_v10 = vpop.f32.mrb[71].mxu1 }
0x19ff   :  { %v5189_v4 = vcombine.low %v5182_v38, %v5184_v10 }
0x1a01   :  { %v5196_v57 = vrot.slane %v5189_v4, %v11033_v35 }
0x1a03   :  { %v5198_v62 = vadd.f32 %v8264_v42, %v5196_v57 }
0x1a05   :  { %v8266_v41 = vmul.f32 -1.442695, %v5198_v62  ;;  %v5206_v6 = vrot.slane %v5198_v62, 2 }
0x1a07   :  { %10731 = vpow2.f32 %v8266_v41 }
0x1a08   :  { %10733 = vtanh.f32 %v5206_v6 }
0x1a11   :  { %v10732_v63 = vpop.eup %10731 }
0x1a12   :  { %v5202_v21 = vadd.f32 1.0, %v10732_v63  ;;  %v10734_v19 = vpop.eup %10733 }
0x1a14   :  { %10735 = vrcp.f32 %v5202_v21 }
0x1a1e   :  { %v10736_v27 = vpop.eup %10735 }
0x1a1f   :  { %v5232_v25 = vmul.f32 %v10736_v27, %v10734_v19  ;;  %v5231_v8 = vmul.f32 %v10736_v27, %v5229_v51 }
0x1a21   :  { %5234 = vrot.lane.b32.xlu1 %v5232_v25, %s10872_s25 }
0x1a25   :  { %5209 = vrot.lane.b32.xlu1 %v5198_v62, %s10872_s25 }
0x1a93   :  { %v5235_v59 = vpop.permute.xlu1 %5234 }
0x1a94   :  { %v12497_v24 = vadd.f32 %v5235_v59, %v5231_v8 }
0x1a96   :  { %10737 = vtanh.f32 %v12497_v24  ;;  %v5252_v19 = vrot.slane %v12497_v24, %v11033_v35 }
0x1a97   :  { %v5210_v50 = vpop.permute.xlu1 %5209 }
0x1a98   :  { %v5211_v60 = vrot.slane %v5210_v50, 2 }
0x1a9a   :  { %v8267_v23 = vmul.f32 -1.442695, %v5211_v60 }
0x1a9c   :  { %10739 = vpow2.f32 %v8267_v23 }
0x1aa0   :  { %v10738_v13 = vpop.eup %10737 }
0x1aa1   :  { %5240 = vrot.lane.b32.xlu0 %v10738_v13, %s10872_s25 }
0x1aa6   :  { %v10740_v11 = vpop.eup %10739 }
0x1aa7   :  { %v5216_v36 = vadd.f32 1.0, %v10740_v11 }
0x1aa9   :  { %10741 = vrcp.f32 %v5216_v36 }
0x1ab3   :  { %v10742_v38 = vpop.eup %10741 }
0x1b13   :  { %v5241_v10 = vpop.permute.xlu0 %5240 }
0x1b14   :  { %v12501_v4 = vmul.f32 %v10742_v38, %v5241_v10  ;;  %v6107_v10 = vld [vmem:[%s13322_s7 + $0x10] sm:$0xff] }
0x1b16   :  { %5244 = vst.msk [vmem:[#allocation2] sm:$0x3] %vm45_vm0, %v12501_v4  ;;  %9534 = vmatmul.mubr.msk.f32.vlgmr.msra.gmra.mrb[40].mxu0 %vm67_vm1, %v12501_v4  ;;  %v5507_v42 = vrot.slane %v12501_v4, %v11132_v28 }
0x1b17   :  { %10389 = vmatpush3.bf16.msra.mxu0 %v12190_v17  ;;  %9562 = vmatprep.mubr.msk.f32.mxu0 %vm10875_vm2, %v10871_v3 }
0x1b18   :  { %10390 = vmatprep.subr.bf16.mxu0 %v13336_v48 }
0x1b1b   :  { %10392 = vmatpush3.bf16.msra.mxu0 %v12205_v43 }
0x1b1c   :  { %10393 = vmatprep.subr.bf16.mxu0 %v13336_v48 }
0x1b1f   :  { %10395 = vmatpush3.bf16.msra.mxu0 %v12217_v58 }
0x1b20   :  { %10396 = vmatprep.subr.bf16.mxu0 %v13336_v48 }
0x1b23   :  { %10398 = vmatpush3.bf16.msra.mxu0 %v12227_v46 }
0x1b24   :  { %10411 = vmatprep.subr.bf16.mxu0 %v13336_v48 }
0x1b26   :  { %9563 = vmatmul.mubr.msk.f32.vlgmr.msra.gmra.mrb[42].mxu0 %vm67_vm1, %v5507_v42  ;;  %v6110_v42 = vld [vmem:[%s13322_s7 + $0x28] sm:$0xff] }
0x1b27   :  { %10413 = vmatpush3.bf16.msra.mxu0 %v12237_v37  ;;  %9610 = vmatprep.mubr.msk.f32.mxu0 %vm10875_vm2, %v10871_v3 }
0x1b28   :  { %10414 = vmatprep.subr.bf16.mxu0 %v13336_v48 }
0x1b2b   :  { %10416 = vmatpush3.bf16.msra.mxu0 %v12250_v52 }
0x1b2c   :  { %10417 = vmatprep.subr.bf16.mxu0 %v13336_v48 }
0x1b2f   :  { %10419 = vmatpush3.bf16.msra.mxu0 %v12262_v33 }
0x1b30   :  { %10420 = vmatprep.subr.bf16.mxu0 %v13336_v48 }
0x1b33   :  { %10422 = vmatpush3.bf16.msra.mxu0 %v12272_v15 }
0x1b34   :  { %10435 = vmatprep.subr.bf16.mxu0 %v13336_v48 }
0x1b36   :  { %9611 = vmatmul.mubr.msk.f32.vlgmr.msra.gmra.mrb[44].mxu0 %vm67_vm1, %v12501_v4 }
0x1b37   :  { %10437 = vmatpush3.bf16.msra.mxu0 %v12352_v0  ;;  %9648 = vmatprep.mubr.msk.f32.mxu0 %vm10875_vm2, %v10871_v3 }
0x1b38   :  { %10438 = vmatprep.subr.bf16.mxu0 %v13336_v48 }
0x1b3b   :  { %10440 = vmatpush3.bf16.msra.mxu0 %v12365_v18 }
0x1b3c   :  { %10441 = vmatprep.subr.bf16.mxu0 %v13336_v48 }
0x1b3f   :  { %10443 = vmatpush3.bf16.msra.mxu0 %v12386_v49 }
0x1b40   :  { %10444 = vmatprep.subr.bf16.mxu0 %v13336_v48 }
0x1b43   :  { %10446 = vmatpush3.bf16.msra.mxu0 %v12406_v30 }
0x1b44   :  { %10463 = vmatprep.subr.bf16.mxu0 %v13336_v48 }
0x1be9   :  { %v5334_v17 = vpop.f32.mrb[40].mxu0 }
0x1bea   :  { %v9535_v43 = vpop.f32.mrb[41].mxu0  ;;  %v5338_v58 = vsel %vm293_vm3, %v5334_v17, -inf }
0x1beb   :  { %5339 = vmax.xlane.f32.xlu1 %v5338_v58  ;;  %v6109_v58 = vld [vmem:[%s13322_s7 + $0x20] sm:$0xff] }
0x1bf9   :  { %v5576_v46 = vpop.f32.mrb[42].mxu0 }
0x1bfa   :  { %v9564_v37 = vpop.f32.mrb[43].mxu0  ;;  %v5580_v52 = vsel %vm293_vm3, %v5576_v46, -inf }
0x1bfb   :  { %5581 = vmax.xlane.f32.xlu0 %v5580_v52  ;;  %v6114_v37 = vld [vmem:[%s13322_s7 + $0x48] sm:$0xff] }
0x1c09   :  { %v12544_v33 = vpop.f32.mrb[44].mxu0 }
0x1c0a   :  { %v9612_v15 = vpop.f32.mrb[45].mxu0 }
0x1c78   :  { %v5340_v0 = vpop.xlane.xlu1 %5339 }
0x1c79   :  { %v5341_v18 = vsub.f32 %v5334_v17, %v5340_v0  ;;  %v6113_v0 = vld [vmem:[%s13322_s7 + $0x40] sm:$0xff] }
0x1c7b   :  { %v5342_v49 = vmul.f32 1.442695, %v5341_v18  ;;  %v6115_v18 = vld [vmem:[%s13322_s7 + $0x50] sm:$0xff] }
0x1c7d   :  { %10743 = vpow2.f32 %v5342_v49  ;;  %v6120_v49 = vld [vmem:[%s13322_s7 + $0x78] sm:$0xff] }
0x1c87   :  { %v10744_v30 = vpop.eup %10743 }
0x1c88   :  { %v5582_v57 = vpop.xlane.xlu0 %5581  ;;  %v5344_v62 = vsel %vm293_vm3, %v10744_v30, 0.0 }
0x1c89   :  { %v5583_v41 = vsub.f32 %v5576_v46, %v5582_v57  ;;  %5345 = vadd.xlane.f32.xlu0 %v5344_v62  ;;  %v6111_v46 = vld [vmem:[%s13322_s7 + $0x30] sm:$0xff]  ;;  %v6117_v62 = vld [vmem:[%s13322_s7 + $0x60] sm:$0xff] }
0x1c8a   :  { %v12636_v52 = vpack.c.bf16 %v6111_v46, %v6109_v58  ;;  %v6269_v46 = vld [vmem:[%s13326_s1 + $0x20] sm:$0xff] }
0x1c8b   :  { %v5584_v6 = vmul.f32 1.442695, %v5583_v41  ;;  %v6119_v41 = vld [vmem:[%s13322_s7 + $0x70] sm:$0xff] }
0x1c8d   :  { %10745 = vpow2.f32 %v5584_v6  ;;  %v12667_v6 = vpack.c.bf16 %v6119_v41, %v6117_v62 }
0x1c97   :  { %v10746_v63 = vpop.eup %10745 }
0x1c98   :  { %v5586_v21 = vsel %vm293_vm3, %v10746_v63, 0.0 }
0x1c99   :  { %5587 = vadd.xlane.f32.xlu1 %v5586_v21 }
0x1c9f   :  { %5253 = vrot.lane.b32.xlu0 %v5252_v19, %s10872_s25 }
0x1d16   :  { %v5346_v27 = vpop.xlane.xlu0 %5345 }
0x1d17   :  { %10747 = vrcp.f32 %v5346_v27 }
0x1d1a   :  { %v5254_v25 = vpop.permute.xlu0 %5253 }
0x1d1b   :  { %5256 = vst.msk [vmem:[#allocation3] sm:$0x3] %vm45_vm0, %v5254_v25 }
0x1d21   :  { %v10748_v51 = vpop.eup %10747 }
0x1d22   :  { %v5348_v8 = vmul.f32 %v10748_v51, %v10744_v30  ;;  %v8297_v59 = vld.sshfl [vmem:[#allocation3] sm:$0x3 pattern:$0x76325410]  ;;  %v12655_v30 = vpack.c.bf16 %v6115_v18, %v6113_v0  ;;  %v6271_v0 = vld [vmem:[%s13326_s1 + $0x30] sm:$0xff]  ;;  %v6272_v18 = vld [vmem:[%s13326_s1 + $0x38] sm:$0xff] }
0x1d23   :  { %6236 = vrot.lane.b32.xlu1 %v8297_v59, %s10872_s25 }
0x1d24   :  { %9539 = vmatmul.mubr.msk.f32.vlgmr.msra.gmra.mrb[72].mxu1 %vm306_vm4, %v5348_v8 }
0x1d25   :  { %9542 = vmatpush3.msra.mxu1 %v12302_v32  ;;  %9543 = vmatprep.mubr.msk.f32.mxu1 %vm10875_vm2, %v10871_v3 }
0x1d26   :  { %v5588_v24 = vpop.xlane.xlu1 %5587  ;;  %9565 = vmatprep.subr.mxu1 %v10871_v3 }
0x1d27   :  { %10749 = vrcp.f32 %v5588_v24 }
0x1d28   :  { %9544 = vmatmul.mubr.msk.f32.vlgmr.msra.gmra.mrb[74].mxu1 %vm306_vm4, %v5348_v8 }
0x1d29   :  { %9566 = vmatpush3.msra.mxu1 %v12312_v56  ;;  %9567 = vmatprep.mubr.msk.f32.mxu1 %vm10875_vm2, %v10871_v3 }
0x1d2a   :  { %9570 = vmatprep.subr.mxu1 %v10871_v3 }
0x1d31   :  { %v10750_v13 = vpop.eup %10749 }
0x1d32   :  { %v5590_v50 = vmul.f32 %v10750_v13, %v10746_v63  ;;  %v6104_v63 = vld [vmem:[#allocation2] sm:$0x3] }
0x1d34   :  { %9568 = vmatmul.mubr.msk.f32.vlgmr.msra.gmra.mrb[76].mxu1 %vm306_vm4, %v5590_v50 }
0x1d35   :  { %9571 = vmatpush3.msra.mxu1 %v12322_v53  ;;  %9572 = vmatprep.mubr.msk.f32.mxu1 %vm10875_vm2, %v10871_v3  ;;  %v12580_v53 = vld [vmem:[#allocation5] sm:$0x3] }
0x1d36   :  { %10399 = vmatprep.subr.bf16.mxu1 %v13336_v48 }
0x1d38   :  { %9573 = vmatmul.mubr.msk.f32.vlgmr.msra.gmra.mrb[78].mxu1 %vm306_vm4, %v5590_v50 }
0x1d39   :  { %10401 = vmatpush3.bf16.msra.mxu1 %v12341_v40  ;;  %9591 = vmatprep.mubr.msk.f32.mxu1 %vm10875_vm2, %v10871_v3 }
0x1d3a   :  { %10402 = vmatprep.subr.bf16.mxu1 %v13336_v48 }
0x1d3d   :  { %10404 = vmatpush3.bf16.msra.mxu1 %v12361_v1 }
0x1d3e   :  { %10405 = vmatprep.subr.bf16.mxu1 %v13336_v48 }
0x1d41   :  { %10407 = vmatpush3.bf16.msra.mxu1 %v12378_v16 }
0x1d42   :  { %10408 = vmatprep.subr.bf16.mxu1 %v13336_v48 }
0x1d45   :  { %10410 = vmatpush3.bf16.msra.mxu1 %v12397_v44  ;;  %v6106_v44 = vld [vmem:[%s13322_s7 + $0x8] sm:$0xff] }
0x1d46   :  { %10423 = vmatprep.subr.bf16.mxu1 %v13336_v48 }
0x1df7   :  { %v5419_v32 = vpop.f32.mrb[72].mxu1 }
0x1df8   :  { %5423 = vst.msk [vmem:[#allocation4] sm:$0x1] %vm380_vm5, %v5419_v32  ;;  %v9540_v56 = vpop.f32.mrb[73].mxu1 }
0x1df9   :  { %v8293_v56 = vld [vmem:[%s13325_s3 + $0x18] sm:$0xf] }
0x1dfb   :  { %v5491_v40 = vpop.f32.mrb[74].mxu1 }
0x1dfc   :  { %5495 = vst [vmem:[#allocation5] sm:$0x1] %v5491_v40  ;;  %v9545_v60 = vpop.f32.mrb[75].mxu1 }
0x1e07   :  { %v5661_v1 = vpop.f32.mrb[76].mxu1 }
0x1e08   :  { %5665 = vst.msk [vmem:[#allocation4 + $0x1] sm:$0x1] %vm380_vm5, %v5661_v1  ;;  %v9569_v23 = vpop.f32.mrb[77].mxu1 }
0x1e0b   :  { %v5733_v16 = vpop.f32.mrb[78].mxu1 }
0x1e0c   :  { %5737 = vst [vmem:[#allocation5 + $0x1] sm:$0x1] %v5733_v16  ;;  %v9574_v11 = vpop.f32.mrb[79].mxu1 }
0x1e0f   :  { %v5738_v36 = vld [vmem:[#allocation4] sm:$0x3] }
0x1e10   :  { %9592 = vmatmul.mubr.msk.f32.vlgmr.msra.gmra.mrb[80].mxu1 %vm67_vm1, %v5738_v36  ;;  %9649 = vmatmul.mubr.msk.f32.vlgmr.msra.gmra.mrb[46].mxu0 %vm67_vm1, %v5738_v36 }
0x1e11   :  { %10425 = vmatpush3.bf16.msra.mxu1 %v12422_v5  ;;  %9629 = vmatprep.mubr.msk.f32.mxu1 %vm10875_vm2, %v10871_v3  ;;  %v6108_v5 = vld [vmem:[%s13322_s7 + $0x18] sm:$0xff] }
0x1e12   :  { %10426 = vmatprep.subr.bf16.mxu1 %v13336_v48  ;;  %9667 = vmatprep.mubr.msk.f32.mxu0 %vm10875_vm2, %v10871_v3  ;;  %v12601_v38 = vpack.c.bf16 %v6108_v5, %v6106_v44  ;;  %v6265_v5 = vld [vmem:[%s13326_s1] sm:$0xff] }
0x1e15   :  { %10428 = vmatpush3.bf16.msra.mxu1 %v12433_v9  ;;  %v6105_v9 = vld [vmem:[%s13322_s7] sm:$0xff] }
0x1e16   :  { %10429 = vmatprep.subr.bf16.mxu1 %v13336_v48  ;;  %v12616_v17 = vpack.c.bf16 %v6107_v10, %v6105_v9  ;;  %v6266_v9 = vld [vmem:[%s13326_s1 + $0x8] sm:$0xff]  ;;  %v6267_v10 = vld [vmem:[%s13326_s1 + $0x10] sm:$0xff] }
0x1e19   :  { %10431 = vmatpush3.bf16.msra.mxu1 %v12449_v55  ;;  %v6112_v55 = vld [vmem:[%s13322_s7 + $0x38] sm:$0xff] }
0x1e1a   :  { %10432 = vmatprep.subr.bf16.mxu1 %v13336_v48  ;;  %v12619_v43 = vpack.c.bf16 %v6112_v55, %v6110_v42  ;;  %v12695_v42 = vpack.c.bf16 %v6266_v9, %v6265_v5  ;;  %v6268_v55 = vld [vmem:[%s13326_s1 + $0x18] sm:$0xff] }
0x1e1b   :  { %v12701_v58 = vpack.c.bf16 %v6268_v55, %v6267_v10  ;;  %v8308_v5 = vld [vmem:[%s13326_s1 + $0x78] sm:$0xff]  ;;  %v6748_v10 = vld [vmem:[%s13327_s8] sm:$0xff]  ;;  %v6749_v55 = vld [vmem:[%s13327_s8 + $0x8] sm:$0xff] }
0x1e1c   :  { %10465 = vmatpush3.bf16.msra.mxu0 %v12695_v42 }
0x1e1d   :  { %10434 = vmatpush3.bf16.msra.mxu1 %v12461_v12  ;;  %v6116_v12 = vld [vmem:[%s13322_s7 + $0x58] sm:$0xff]  ;;  %10466 = vmatprep.subr.bf16.mxu0 %v13336_v48 }
0x1e1e   :  { %10448 = vmatprep.subr.bf16.mxu1 %v12601_v38  ;;  %v12640_v15 = vpack.c.bf16 %v6116_v12, %v6114_v37  ;;  %v6270_v37 = vld [vmem:[%s13326_s1 + $0x28] sm:$0xff] }
0x1e1f   :  { %v12711_v12 = vpack.c.bf16 %v6270_v37, %v6269_v46  ;;  %v12783_v46 = vpack.c.bf16 %v6749_v55, %v6748_v10 }
0x1e20   :  { %9630 = vmatmul.mubr.msk.f32.vlgmr.msra.gmra.mrb[82].mxu1 %vm67_vm1, %v12501_v4  ;;  %v6118_v4 = vld [vmem:[%s13322_s7 + $0x68] sm:$0xff]  ;;  %10468 = vmatpush3.bf16.msra.mxu0 %v12701_v58 }
0x1e21   :  { %10450 = vmatpush1.bf16.msra.mxu1 %v12616_v17  ;;  %6188 = vmatprep.mubr.f32.mxu1 %v10871_v3  ;;  %v12658_v57 = vpack.c.bf16 %v6120_v49, %v6118_v4  ;;  %v12721_v4 = vpack.c.bf16 %v6272_v18, %v6271_v0  ;;  %v6237_v49 = vpop.permute.xlu1 %6236  ;;  %v6750_v0 = vld [vmem:[%s13327_s8 + $0x10] sm:$0xff]  ;;  %v6751_v18 = vld [vmem:[%s13327_s8 + $0x18] sm:$0xff] }
0x1e22   :  { %10452 = vmatprep.subr.bf16.mxu1 %v12619_v43  ;;  %10469 = vmatprep.subr.bf16.mxu0 %v13336_v48 }
0x1e24   :  { %10471 = vmatpush3.bf16.msra.mxu0 %v12711_v12 }
0x1e25   :  { %10454 = vmatpush1.bf16.msra.mxu1 %v12636_v52  ;;  %10472 = vmatprep.subr.bf16.mxu0 %v13336_v48 }
0x1e26   :  { %10456 = vmatprep.subr.bf16.mxu1 %v12640_v15 }
0x1e28   :  { %10474 = vmatpush3.bf16.msra.mxu0 %v12721_v4 }
0x1e29   :  { %10458 = vmatpush1.bf16.msra.mxu1 %v12655_v30  ;;  %10475 = vmatprep.subr.bf16.mxu0 %v13336_v48 }
0x1e2a   :  { %10460 = vmatprep.subr.bf16.mxu1 %v12658_v57 }
0x1e2d   :  { %10462 = vmatpush1.bf16.msra.mxu1 %v12667_v6 }
0x1e2e   :  { %9670 = vmatprep.subr.mxu1 %v10871_v3 }
0x1e30   :  { %8294 = vmatmul.mubr.msk.f32.vlgmr.msra.gmra.mrb[84].mxu1 %vm67_vm1, %v6104_v63 }
0x1e31   :  { %9672 = vmatprep.mubr.msk.f32.mxu1 %vm10875_vm2, %v10871_v3 }
0x1ee3   :  { %v5825_v21 = vpop.f32.mrb[80].mxu1  ;;  %v6070_v19 = vpop.f32.mrb[46].mxu0 }
0x1ee4   :  { %v12676_v27 = vadd.f32 %v12544_v33, %v5825_v21  ;;  %v9593_v25 = vpop.f32.mrb[81].mxu1  ;;  %v9650_v51 = vpop.f32.mrb[47].mxu0 }
0x1ef3   :  { %v6000_v8 = vpop.f32.mrb[82].mxu1 }
0x1ef4   :  { %v12678_v59 = vadd.f32 %v6070_v19, %v6000_v8  ;;  %v9631_v24 = vpop.f32.mrb[83].mxu1 }
0x1f03   :  { %v6190_v13 = vpop.f32.mrb[84].mxu1 }
0x1f04   :  { %v6192_v50 = vpop.f32.mrb[85].mxu1 }
0x1f05   :  { %v6197_v32 = vcombine.low %v6190_v13, %v6192_v50  ;;  %v8301_v13 = vld [vmem:[%s13326_s1 + $0x40] sm:$0xff]  ;;  %v8302_v50 = vld [vmem:[%s13326_s1 + $0x48] sm:$0xff] }
0x1f07   :  { %v6204_v40 = vrot.slane %v6197_v32, %v11033_v35 }
0x1f09   :  { %v6206_v60 = vadd.f32 %v8293_v56, %v6204_v40  ;;  %v12736_v40 = vpack.c.bf16 %v8302_v50, %v8301_v13 }
0x1f0b   :  { %6217 = vrot.lane.b32.xlu0 %v6206_v60, %s10872_s25  ;;  %v8295_v33 = vmul.f32 -1.442695, %v6206_v60  ;;  %v6214_v1 = vrot.slane %v6206_v60, 2 }
0x1f0d   :  { %10751 = vpow2.f32 %v8295_v33  ;;  %v8303_v33 = vld [vmem:[%s13326_s1 + $0x50] sm:$0xff] }
0x1f0e   :  { %10753 = vtanh.f32 %v6214_v1  ;;  %v8304_v1 = vld [vmem:[%s13326_s1 + $0x58] sm:$0xff] }
0x1f17   :  { %v10752_v23 = vpop.eup %10751 }
0x1f18   :  { %v6210_v16 = vadd.f32 1.0, %v10752_v23  ;;  %v10754_v11 = vpop.eup %10753  ;;  %v12751_v23 = vpack.c.bf16 %v8304_v1, %v8303_v33 }
0x1f1a   :  { %10755 = vrcp.f32 %v6210_v16  ;;  %v8305_v16 = vld [vmem:[%s13326_s1 + $0x60] sm:$0xff] }
0x1f24   :  { %v10756_v36 = vpop.eup %10755 }
0x1f25   :  { %v6240_v44 = vmul.f32 %v10756_v36, %v10754_v11  ;;  %v6239_v62 = vmul.f32 %v10756_v36, %v6237_v49  ;;  %v8306_v11 = vld [vmem:[%s13326_s1 + $0x68] sm:$0xff]  ;;  %v12796_v49 = vpack.c.bf16 %v6751_v18, %v6750_v0 }
0x1f26   :  { %v12763_v36 = vpack.c.bf16 %v8306_v11, %v8305_v16 }
0x1f27   :  { %6242 = vrot.lane.b32.xlu1 %v6240_v44, %s10872_s25  ;;  %v8307_v44 = vld [vmem:[%s13326_s1 + $0x70] sm:$0xff] }
0x1f28   :  { %v12773_v9 = vpack.c.bf16 %v8308_v5, %v8307_v44 }
0x1f7d   :  { %v6218_v19 = vpop.permute.xlu0 %6217 }
0x1f7e   :  { %v6219_v25 = vrot.slane %v6218_v19, 2  ;;  %v6754_v19 = vld [vmem:[%s13327_s8 + $0x30] sm:$0xff] }
0x1f80   :  { %v8296_v51 = vmul.f32 -1.442695, %v6219_v25  ;;  %v6755_v25 = vld [vmem:[%s13327_s8 + $0x38] sm:$0xff] }
0x1f99   :  { %v6243_v41 = vpop.permute.xlu1 %6242 }
0x1f9a   :  { %v12726_v63 = vadd.f32 %v6243_v41, %v6239_v62  ;;  %v6752_v62 = vld [vmem:[%s13327_s8 + $0x20] sm:$0xff]  ;;  %v6753_v41 = vld [vmem:[%s13327_s8 + $0x28] sm:$0xff] }
0x1f9c   :  { %10757 = vtanh.f32 %v12726_v63  ;;  %v6260_v1 = vrot.slane %v12726_v63, %v11033_v35 }
0x1f9d   :  { %10759 = vpow2.f32 %v8296_v51  ;;  %v12818_v51 = vpack.c.bf16 %v6755_v25, %v6754_v19  ;;  %v12840_v19 = vld [vmem:[%s13328_s0] sm:$0xff] }
0x1f9e   :  { %9671 = vmatpush3.msra.mxu1 %v12840_v19 }
0x1f9f   :  { %9675 = vmatprep.subr.mxu1 %v10871_v3 }
0x1fa6   :  { %v10758_v21 = vpop.eup %10757 }
0x1fa7   :  { %6248 = vrot.lane.b32.xlu1 %v10758_v21, %s10872_s25  ;;  %v10760_v8 = vpop.eup %10759  ;;  %v12808_v21 = vpack.c.bf16 %v6753_v41, %v6752_v62 }
0x1fa8   :  { %v6224_v24 = vadd.f32 1.0, %v10760_v8 }
0x1faa   :  { %10761 = vrcp.f32 %v6224_v24 }
0x1fb4   :  { %v10762_v32 = vpop.eup %10761 }
0x2019   :  { %v6249_v56 = vpop.permute.xlu1 %6248 }
0x201a   :  { %v12738_v60 = vmul.f32 %v10762_v32, %v6249_v56 }
0x201c   :  { %6252 = vst.msk [vmem:[#allocation2] sm:$0x3] %vm45_vm0, %v12738_v60  ;;  %9668 = vmatmul.mubr.msk.f32.vlgmr.msra.gmra.mrb[48].mxu0 %vm67_vm1, %v12738_v60  ;;  %v6515_v37 = vrot.slane %v12738_v60, %v11132_v28 }
0x201d   :  { %10477 = vmatpush3.bf16.msra.mxu0 %v12736_v40  ;;  %9696 = vmatprep.mubr.msk.f32.mxu0 %vm10875_vm2, %v10871_v3 }
0x201e   :  { %10478 = vmatprep.subr.bf16.mxu0 %v13336_v48 }
0x2021   :  { %10480 = vmatpush3.bf16.msra.mxu0 %v12751_v23 }
0x2022   :  { %10481 = vmatprep.subr.bf16.mxu0 %v13336_v48 }
0x2025   :  { %10483 = vmatpush3.bf16.msra.mxu0 %v12763_v36 }
0x2026   :  { %10484 = vmatprep.subr.bf16.mxu0 %v13336_v48 }
0x2029   :  { %10486 = vmatpush3.bf16.msra.mxu0 %v12773_v9 }
0x202a   :  { %10499 = vmatprep.subr.bf16.mxu0 %v13336_v48 }
0x202c   :  { %9697 = vmatmul.mubr.msk.f32.vlgmr.msra.gmra.mrb[50].mxu0 %vm67_vm1, %v6515_v37 }
0x202d   :  { %10501 = vmatpush3.bf16.msra.mxu0 %v12783_v46  ;;  %9744 = vmatprep.mubr.msk.f32.mxu0 %vm10875_vm2, %v10871_v3 }
0x202e   :  { %10502 = vmatprep.subr.bf16.mxu0 %v13336_v48 }
0x2031   :  { %10504 = vmatpush3.bf16.msra.mxu0 %v12796_v49 }
0x2032   :  { %10505 = vmatprep.subr.bf16.mxu0 %v13336_v48 }
0x2035   :  { %10507 = vmatpush3.bf16.msra.mxu0 %v12808_v21 }
0x2036   :  { %10508 = vmatprep.subr.bf16.mxu0 %v13336_v48 }
0x2039   :  { %10510 = vmatpush3.bf16.msra.mxu0 %v12818_v51 }
0x203a   :  { %10523 = vmatprep.subr.bf16.mxu0 %v13336_v48 }
0x203c   :  { %9745 = vmatmul.mubr.msk.f32.vlgmr.msra.gmra.mrb[52].mxu0 %vm67_vm1, %v12738_v60 }
0x203d   :  { %9782 = vmatprep.mubr.msk.f32.mxu0 %vm10875_vm2, %v10871_v3 }
0x20ef   :  { %v6342_v8 = vpop.f32.mrb[48].mxu0 }
0x20f0   :  { %v9669_v24 = vpop.f32.mrb[49].mxu0  ;;  %v6346_v13 = vsel %vm293_vm3, %v6342_v8, -inf }
0x20f1   :  { %6347 = vmax.xlane.f32.xlu0 %v6346_v13 }
0x20ff   :  { %v6584_v50 = vpop.f32.mrb[50].mxu0 }
0x2100   :  { %v9698_v32 = vpop.f32.mrb[51].mxu0  ;;  %v6588_v56 = vsel %vm293_vm3, %v6584_v50, -inf }
0x2101   :  { %6589 = vmax.xlane.f32.xlu1 %v6588_v56  ;;  %v12858_v56 = vld [vmem:[%s13328_s0 + $0x8] sm:$0xff] }
0x210f   :  { %v12829_v33 = vpop.f32.mrb[52].mxu0 }
0x2110   :  { %v9746_v16 = vpop.f32.mrb[53].mxu0 }
0x2112   :  { %6261 = vrot.lane.b32.xlu1 %v6260_v1, %s10872_s25 }
0x217e   :  { %v6348_v11 = vpop.xlane.xlu0 %6347 }
0x217f   :  { %v6349_v44 = vsub.f32 %v6342_v8, %v6348_v11  ;;  %v12868_v11 = vld [vmem:[%s13329_s2 + $0x8] sm:$0xff] }
0x2181   :  { %v6350_v5 = vmul.f32 1.442695, %v6349_v44  ;;  %v6756_v44 = vld [vmem:[%s13330_s9] sm:$0xff] }
0x2183   :  { %10763 = vpow2.f32 %v6350_v5  ;;  %v6757_v5 = vld [vmem:[%s13330_s9 + $0x8] sm:$0xff] }
0x218d   :  { %v10764_v10 = vpop.eup %10763 }
0x218e   :  { %v6590_v55 = vpop.xlane.xlu1 %6589  ;;  %v6352_v37 = vsel %vm293_vm3, %v10764_v10, 0.0 }
0x218f   :  { %v6591_v0 = vsub.f32 %v6584_v50, %v6590_v55  ;;  %6353 = vadd.xlane.f32.xlu0 %v6352_v37  ;;  %v12848_v50 = vld [vmem:[%s13329_s2] sm:$0xff]  ;;  %v12887_v55 = vpack.c.bf16 %v6757_v5, %v6756_v44  ;;  %v6927_v37 = vld [vmem:[%s13331_s11 + $0x8] sm:$0xff]  ;;  %v6762_v5 = vld [vmem:[%s13330_s9 + $0x30] sm:$0xff] }
0x2191   :  { %v6592_v18 = vmul.f32 1.442695, %v6591_v0  ;;  %v6758_v0 = vld [vmem:[%s13330_s9 + $0x10] sm:$0xff] }
0x2192   :  { %v6262_v62 = vpop.permute.xlu1 %6261 }
0x2193   :  { %10765 = vpow2.f32 %v6592_v18  ;;  %6264 = vst.msk [vmem:[#allocation3] sm:$0x3] %vm45_vm0, %v6262_v62  ;;  %v6759_v18 = vld [vmem:[%s13330_s9 + $0x18] sm:$0xff] }
0x219a   :  { %v8326_v25 = vld.sshfl [vmem:[#allocation3] sm:$0x3 pattern:$0x76325410] }
0x219d   :  { %v10766_v41 = vpop.eup %10765 }
0x219e   :  { %v6594_v63 = vsel %vm293_vm3, %v10766_v41, 0.0 }
0x219f   :  { %6595 = vadd.xlane.f32.xlu0 %v6594_v63  ;;  %v6929_v63 = vld [vmem:[%s13331_s11 + $0x18] sm:$0xff] }
0x21b5   :  { %7244 = vrot.lane.b32.xlu0 %v8326_v25, %s10872_s25  ;;  %v12907_v25 = vpack.c.bf16 %v6759_v18, %v6758_v0  ;;  %v6932_v0 = vld [vmem:[%s13331_s11 + $0x30] sm:$0xff]  ;;  %v6933_v18 = vld [vmem:[%s13331_s11 + $0x38] sm:$0xff] }
0x221c   :  { %v6354_v8 = vpop.xlane.xlu0 %6353 }
0x221d   :  { %10767 = vrcp.f32 %v6354_v8 }
0x2227   :  { %v10768_v24 = vpop.eup %10767 }
0x2228   :  { %v6356_v13 = vmul.f32 %v10768_v24, %v10764_v10  ;;  %v6926_v10 = vld [vmem:[%s13331_s11] sm:$0xff] }
0x2229   :  { %v12898_v62 = vpack.c.bf16 %v6927_v37, %v6926_v10  ;;  %v6760_v24 = vld [vmem:[%s13330_s9 + $0x20] sm:$0xff]  ;;  %v6763_v10 = vld [vmem:[%s13330_s9 + $0x38] sm:$0xff] }
0x222a   :  { %9673 = vmatmul.mubr.msk.f32.vlgmr.msra.gmra.mrb[86].mxu1 %vm306_vm4, %v6356_v13  ;;  %v12943_v37 = vpack.c.bf16 %v6763_v10, %v6762_v5 }
0x222b   :  { %9676 = vmatpush3.msra.mxu1 %v12848_v50  ;;  %9677 = vmatprep.mubr.msk.f32.mxu1 %vm10875_vm2, %v10871_v3 }
0x222c   :  { %v6596_v32 = vpop.xlane.xlu0 %6595  ;;  %9699 = vmatprep.subr.mxu1 %v10871_v3  ;;  %10525 = vmatpush3.bf16.msra.mxu0 %v12898_v62 }
0x222d   :  { %10769 = vrcp.f32 %v6596_v32  ;;  %10526 = vmatprep.subr.bf16.mxu0 %v13336_v48 }
0x222e   :  { %9678 = vmatmul.mubr.msk.f32.vlgmr.msra.gmra.mrb[88].mxu1 %vm306_vm4, %v6356_v13  ;;  %v6761_v13 = vld [vmem:[%s13330_s9 + $0x28] sm:$0xff] }
0x222f   :  { %9700 = vmatpush3.msra.mxu1 %v12858_v56  ;;  %9701 = vmatprep.mubr.msk.f32.mxu1 %vm10875_vm2, %v10871_v3  ;;  %v12924_v32 = vpack.c.bf16 %v6761_v13, %v6760_v24 }
0x2230   :  { %9704 = vmatprep.subr.mxu1 %v10871_v3 }
0x2237   :  { %v10770_v1 = vpop.eup %10769 }
0x2238   :  { %v6598_v16 = vmul.f32 %v10770_v1, %v10766_v41  ;;  %v6928_v41 = vld [vmem:[%s13331_s11 + $0x10] sm:$0xff]  ;;  %v6930_v1 = vld [vmem:[%s13331_s11 + $0x20] sm:$0xff] }
0x2239   :  { %v12911_v8 = vpack.c.bf16 %v6929_v63, %v6928_v41  ;;  %v12952_v41 = vpack.c.bf16 %v6933_v18, %v6932_v0  ;;  %v6934_v0 = vld [vmem:[%s13332_s12] sm:$0xff]  ;;  %v6935_v18 = vld [vmem:[%s13332_s12 + $0x8] sm:$0xff] }
0x223a   :  { %9702 = vmatmul.mubr.msk.f32.vlgmr.msra.gmra.mrb[90].mxu1 %vm306_vm4, %v6598_v16 }
0x223b   :  { %9705 = vmatpush3.msra.mxu1 %v12868_v11  ;;  %9706 = vmatprep.mubr.msk.f32.mxu1 %vm10875_vm2, %v10871_v3 }
0x223c   :  { %10487 = vmatprep.subr.bf16.mxu1 %v13336_v48  ;;  %10528 = vmatpush3.bf16.msra.mxu0 %v12911_v8 }
0x223d   :  { %10529 = vmatprep.subr.bf16.mxu0 %v13336_v48 }
0x223e   :  { %9707 = vmatmul.mubr.msk.f32.vlgmr.msra.gmra.mrb[92].mxu1 %vm306_vm4, %v6598_v16  ;;  %v6931_v16 = vld [vmem:[%s13331_s11 + $0x28] sm:$0xff] }
0x223f   :  { %9725 = vmatprep.mubr.msk.f32.mxu1 %vm10875_vm2, %v10871_v3  ;;  %10489 = vmatpush3.bf16.msra.mxu1 %v12887_v55  ;;  %v12932_v44 = vpack.c.bf16 %v6931_v16, %v6930_v1  ;;  %v12959_v1 = vld [vmem:[#allocation5] sm:$0x3] }
0x2240   :  { %10490 = vmatprep.subr.bf16.mxu1 %v13336_v48 }
0x2241   :  { %10531 = vmatpush3.bf16.msra.mxu0 %v12932_v44 }
0x2242   :  { %10532 = vmatprep.subr.bf16.mxu0 %v13336_v48 }
0x2243   :  { %10492 = vmatpush3.bf16.msra.mxu1 %v12907_v25 }
0x2244   :  { %10493 = vmatprep.subr.bf16.mxu1 %v13336_v48 }
0x2245   :  { %10534 = vmatpush3.bf16.msra.mxu0 %v12952_v41 }
0x2246   :  { %10551 = vmatprep.subr.bf16.mxu0 %v13336_v48 }
0x2247   :  { %10495 = vmatpush3.bf16.msra.mxu1 %v12924_v32 }
0x2248   :  { %10496 = vmatprep.subr.bf16.mxu1 %v13336_v48 }
0x224b   :  { %10498 = vmatpush3.bf16.msra.mxu1 %v12943_v37 }
0x224c   :  { %10511 = vmatprep.subr.bf16.mxu1 %v13336_v48 }
0x22fd   :  { %v6427_v63 = vpop.f32.mrb[86].mxu1 }
0x22fe   :  { %6431 = vst.msk [vmem:[#allocation4] sm:$0x1] %vm380_vm5, %v6427_v63  ;;  %v9674_v24 = vpop.f32.mrb[87].mxu1 }
0x22ff   :  { %v12968_v24 = vpack.c.bf16 %v6935_v18, %v6934_v0  ;;  %v6938_v0 = vld [vmem:[%s13332_s12 + $0x20] sm:$0xff]  ;;  %v6939_v18 = vld [vmem:[%s13332_s12 + $0x28] sm:$0xff] }
0x2301   :  { %v6499_v13 = vpop.f32.mrb[88].mxu1 }
0x2302   :  { %v9679_v16 = vpop.f32.mrb[89].mxu1  ;;  %6503 = vst [vmem:[#allocation5] sm:$0x1] %v6499_v13  ;;  %v6936_v13 = vld [vmem:[%s13332_s12 + $0x10] sm:$0xff] }
0x2303   :  { %v6937_v16 = vld [vmem:[%s13332_s12 + $0x18] sm:$0xff] }
0x230d   :  { %v6669_v5 = vpop.f32.mrb[90].mxu1 }
0x230e   :  { %6673 = vst.msk [vmem:[#allocation4 + $0x1] sm:$0x1] %vm380_vm5, %v6669_v5  ;;  %v9703_v10 = vpop.f32.mrb[91].mxu1 }
0x230f   :  { %v12979_v10 = vpack.c.bf16 %v6937_v16, %v6936_v13  ;;  %v6940_v13 = vld [vmem:[%s13332_s12 + $0x30] sm:$0xff]  ;;  %v6941_v16 = vld [vmem:[%s13332_s12 + $0x38] sm:$0xff] }
0x2311   :  { %v6741_v48 = vpop.f32.mrb[92].mxu1 }
0x2312   :  { %v9708_v63 = vpop.f32.mrb[93].mxu1  ;;  %6745 = vst [vmem:[#allocation5 + $0x1] sm:$0x1] %v6741_v48  ;;  %v13338_v48 = vmov 0.0|0.0  }
0x2313   :  { %v12995_v63 = vpack.c.bf16 %v6939_v18, %v6938_v0 }
0x2315   :  { %v6746_v5 = vld [vmem:[#allocation4] sm:$0x3] }
0x2316   :  { %9726 = vmatmul.mubr.msk.f32.vlgmr.msra.gmra.mrb[94].mxu1 %vm67_vm1, %v6746_v5  ;;  %9783 = vmatmul.mubr.msk.f32.vlgmr.msra.gmra.mrb[54].mxu0 %vm67_vm1, %v6746_v5 }
0x2317   :  { %10513 = vmatpush3.bf16.msra.mxu1 %v12968_v24  ;;  %9763 = vmatprep.mubr.msk.f32.mxu1 %vm10875_vm2, %v10871_v3 }
0x2318   :  { %10514 = vmatprep.subr.bf16.mxu1 %v13338_v48  ;;  %10553 = vmatpush3.bf16.msra.mxu0 %v12695_v42  ;;  %v13007_v42 = vpack.c.bf16 %v6941_v16, %v6940_v13 }
0x2319   :  { %10554 = vmatprep.subr.bf16.mxu0 %v13338_v48  ;;  %9801 = vmatprep.mubr.msk.f32.mxu0 %vm10875_vm2, %v10871_v3 }
0x231b   :  { %10516 = vmatpush3.bf16.msra.mxu1 %v12979_v10 }
0x231c   :  { %10517 = vmatprep.subr.bf16.mxu1 %v13338_v48  ;;  %10556 = vmatpush3.bf16.msra.mxu0 %v12701_v58 }
0x231d   :  { %10557 = vmatprep.subr.bf16.mxu0 %v13338_v48 }
0x231f   :  { %10519 = vmatpush3.bf16.msra.mxu1 %v12995_v63 }
0x2320   :  { %10520 = vmatprep.subr.bf16.mxu1 %v13338_v48  ;;  %10559 = vmatpush3.bf16.msra.mxu0 %v12711_v12 }
0x2321   :  { %10560 = vmatprep.subr.bf16.mxu0 %v13338_v48 }
0x2323   :  { %10522 = vmatpush3.bf16.msra.mxu1 %v13007_v42 }
0x2324   :  { %10536 = vmatprep.subr.bf16.mxu1 %v12601_v38  ;;  %10562 = vmatpush3.bf16.msra.mxu0 %v12721_v4  ;;  %v7112_v38 = vld [vmem:[#allocation2] sm:$0x3] }
0x2325   :  { %10563 = vmatprep.subr.bf16.mxu0 %v13338_v48 }
0x2326   :  { %9764 = vmatmul.mubr.msk.f32.vlgmr.msra.gmra.mrb[96].mxu1 %vm67_vm1, %v12738_v60 }
0x2327   :  { %10538 = vmatpush1.bf16.msra.mxu1 %v12616_v17  ;;  %7196 = vmatprep.mubr.f32.mxu1 %v10871_v3 }
0x2328   :  { %10540 = vmatprep.subr.bf16.mxu1 %v12619_v43 }
0x232b   :  { %10542 = vmatpush1.bf16.msra.mxu1 %v12636_v52 }
0x232c   :  { %10544 = vmatprep.subr.bf16.mxu1 %v12640_v15 }
0x232f   :  { %10546 = vmatpush1.bf16.msra.mxu1 %v12655_v30 }
0x2330   :  { %10548 = vmatprep.subr.bf16.mxu1 %v12658_v57 }
0x2333   :  { %10550 = vmatpush1.bf16.msra.mxu1 %v12667_v6 }
0x2334   :  { %9804 = vmatprep.subr.mxu1 %v10871_v3 }
0x2336   :  { %8323 = vmatmul.mubr.msk.f32.vlgmr.msra.gmra.mrb[98].mxu1 %vm67_vm1, %v7112_v38 }
0x2337   :  { %9805 = vmatpush3.msra.mxu1 %v12840_v19  ;;  %9806 = vmatprep.mubr.msk.f32.mxu1 %vm10875_vm2, %v10871_v3  ;;  %v8322_v19 = vld [vmem:[%s13325_s3 + $0x1c] sm:$0xf] }
0x2338   :  { %9809 = vmatprep.subr.mxu1 %v10871_v3 }
0x23e9   :  { %v6833_v17 = vpop.f32.mrb[94].mxu1  ;;  %v7078_v43 = vpop.f32.mrb[54].mxu0 }
0x23ea   :  { %v13033_v52 = vadd.f32 %v12829_v33, %v6833_v17  ;;  %v9727_v15 = vpop.f32.mrb[95].mxu1  ;;  %v9784_v30 = vpop.f32.mrb[55].mxu0 }
0x23eb   :  { %v7245_v15 = vpop.permute.xlu0 %7244 }
0x23f9   :  { %v7008_v57 = vpop.f32.mrb[96].mxu1 }
0x23fa   :  { %v13035_v6 = vadd.f32 %v7078_v43, %v7008_v57  ;;  %v9765_v58 = vpop.f32.mrb[97].mxu1 }
0x2409   :  { %v7198_v12 = vpop.f32.mrb[98].mxu1 }
0x240a   :  { %v7200_v4 = vpop.f32.mrb[99].mxu1 }
0x240b   :  { %v7205_v60 = vcombine.low %v7198_v12, %v7200_v4 }
0x240d   :  { %v7212_v5 = vrot.slane %v7205_v60, %v11033_v35 }
0x240f   :  { %v7214_v0 = vadd.f32 %v8322_v19, %v7212_v5 }
0x2411   :  { %v8324_v18 = vmul.f32 -1.442695, %v7214_v0  ;;  %v7222_v33 = vrot.slane %v7214_v0, 2 }
0x2413   :  { %10771 = vpow2.f32 %v8324_v18 }
0x2414   :  { %10773 = vtanh.f32 %v7222_v33 }
0x241d   :  { %v10772_v13 = vpop.eup %10771 }
0x241e   :  { %v7218_v16 = vadd.f32 1.0, %v10772_v13  ;;  %v10774_v38 = vpop.eup %10773 }
0x2420   :  { %10775 = vrcp.f32 %v7218_v16 }
0x242a   :  { %v10776_v17 = vpop.eup %10775 }
0x242b   :  { %v7248_v43 = vmul.f32 %v10776_v17, %v10774_v38  ;;  %v7247_v30 = vmul.f32 %v10776_v17, %v7245_v15 }
0x242d   :  { %7250 = vrot.lane.b32.xlu1 %v7248_v43, %s10872_s25 }
0x2431   :  { %7225 = vrot.lane.b32.xlu1 %v7214_v0, %s10872_s25 }
0x249f   :  { %v7251_v57 = vpop.permute.xlu1 %7250 }
0x24a0   :  { %v13043_v58 = vadd.f32 %v7251_v57, %v7247_v30 }
0x24a2   :  { %10777 = vtanh.f32 %v13043_v58 }
0x24a3   :  { %v7226_v4 = vpop.permute.xlu1 %7225 }
0x24a4   :  { %v7227_v60 = vrot.slane %v7226_v4, 2 }
0x24a6   :  { %v8325_v19 = vmul.f32 -1.442695, %v7227_v60 }
0x24a8   :  { %10779 = vpow2.f32 %v8325_v19 }
0x24ac   :  { %v10778_v12 = vpop.eup %10777 }
0x24ad   :  { %7256 = vrot.lane.b32.xlu0 %v10778_v12, %s10872_s25 }
0x24b2   :  { %v10780_v5 = vpop.eup %10779 }
0x24b3   :  { %v7232_v18 = vadd.f32 1.0, %v10780_v5 }
0x24b5   :  { %10781 = vrcp.f32 %v7232_v18 }
0x24bf   :  { %v10782_v33 = vpop.eup %10781 }
0x251f   :  { %v7257_v13 = vpop.permute.xlu0 %7256 }
0x2520   :  { %v13047_v0 = vmul.f32 %v10782_v33, %v7257_v13 }
0x2522   :  { %7260 = vst.msk [vmem:[#allocation2] sm:$0x3] %vm45_vm0, %v13047_v0  ;;  %9802 = vmatmul.mubr.msk.f32.vlgmr.msra.gmra.mrb[56].mxu0 %vm67_vm1, %v13047_v0  ;;  %v7523_v16 = vrot.slane %v13047_v0, %v11132_v28 }
0x2523   :  { %10565 = vmatpush3.bf16.msra.mxu0 %v12736_v40  ;;  %9830 = vmatprep.mubr.msk.f32.mxu0 %vm10875_vm2, %v10871_v3 }
0x2524   :  { %10566 = vmatprep.subr.bf16.mxu0 %v13338_v48 }
0x2527   :  { %10568 = vmatpush3.bf16.msra.mxu0 %v12751_v23 }
0x2528   :  { %10569 = vmatprep.subr.bf16.mxu0 %v13338_v48 }
0x252b   :  { %10571 = vmatpush3.bf16.msra.mxu0 %v12763_v36 }
0x252c   :  { %10572 = vmatprep.subr.bf16.mxu0 %v13338_v48 }
0x252f   :  { %10574 = vmatpush3.bf16.msra.mxu0 %v12773_v9 }
0x2530   :  { %10587 = vmatprep.subr.bf16.mxu0 %v13338_v48 }
0x2532   :  { %9831 = vmatmul.mubr.msk.f32.vlgmr.msra.gmra.mrb[58].mxu0 %vm67_vm1, %v7523_v16 }
0x2533   :  { %10589 = vmatpush3.bf16.msra.mxu0 %v12783_v46  ;;  %9878 = vmatprep.mubr.msk.f32.mxu0 %vm10875_vm2, %v10871_v3 }
0x2534   :  { %10590 = vmatprep.subr.bf16.mxu0 %v13338_v48 }
0x2537   :  { %10592 = vmatpush3.bf16.msra.mxu0 %v12796_v49 }
0x2538   :  { %10593 = vmatprep.subr.bf16.mxu0 %v13338_v48 }
0x253b   :  { %10595 = vmatpush3.bf16.msra.mxu0 %v12808_v21 }
0x253c   :  { %10596 = vmatprep.subr.bf16.mxu0 %v13338_v48 }
0x253f   :  { %10598 = vmatpush3.bf16.msra.mxu0 %v12818_v51 }
0x2540   :  { %10611 = vmatprep.subr.bf16.mxu0 %v13338_v48 }
0x2542   :  { %9879 = vmatmul.mubr.msk.f32.vlgmr.msra.gmra.mrb[60].mxu0 %vm67_vm1, %v13047_v0 }
0x2543   :  { %10613 = vmatpush3.bf16.msra.mxu0 %v12898_v62  ;;  %9916 = vmatprep.mubr.msk.f32.mxu0 %vm10875_vm2, %v10871_v3 }
0x2544   :  { %10614 = vmatprep.subr.bf16.mxu0 %v13338_v48 }
0x2547   :  { %10616 = vmatpush3.bf16.msra.mxu0 %v12911_v8 }
0x2548   :  { %10617 = vmatprep.subr.bf16.mxu0 %v13338_v48 }
0x254b   :  { %10619 = vmatpush3.bf16.msra.mxu0 %v12932_v44  ;;  %v13094_v44 = vld [vmem:[%s13333_s10] ss:$0 sm:$0xff] }
0x254c   :  { %10620 = vmatprep.subr.bf16.mxu0 %v13338_v48  ;;  %v867_v43 = vadd.f32 %v13094_v44, %v11395_v14  ;;  %v2882_v12 = vadd.f32 %v13094_v44, %v11941_v29  ;;  %v13105_v60 = vadd.f32 %v13094_v44, %v12487_v47  ;;  %v13111_v19 = vadd.f32 %v13094_v44, %v13033_v52 }
0x254d   :  { %v1874_v47 = vadd.f32 %v13094_v44, %v11584_v45  ;;  %v13124_v52 = vadd.f32 %v13094_v44, %v12130_v54  ;;  %v13130_v16 = vadd.f32 %v13094_v44, %v12676_v27  ;;  %v1036_v54 = vld [vmem:[%s13334_s4] sm:$0x3] }
0x254e   :  { %v869_v57 = vsel %vm868_vm6, %v867_v43, -inf  ;;  %v2883_v4 = vsel %vm868_vm6, %v2882_v12, -inf  ;;  %v4899_v14 = vsel %vm868_vm6, %v13105_v60, -inf  ;;  %v6915_v18 = vsel %vm868_vm6, %v13111_v19, -inf }
0x254f   :  { %10622 = vmatpush3.bf16.msra.mxu0 %v12952_v41  ;;  %v1875_v33 = vsel %vm868_vm6, %v1874_v47, -inf  ;;  %v3891_v13 = vsel %vm868_vm6, %v13124_v52, -inf  ;;  %v5907_v45 = vsel %vm868_vm6, %v13130_v16, -inf }
0x25f5   :  { %v7350_v28 = vpop.f32.mrb[56].mxu0 }
0x25f6   :  { %v9803_v40 = vpop.f32.mrb[57].mxu0  ;;  %v7354_v23 = vsel %vm293_vm3, %v7350_v28, -inf }
0x25f7   :  { %7355 = vmax.xlane.f32.xlu1 %v7354_v23 }
0x2605   :  { %v7592_v36 = vpop.f32.mrb[58].mxu0 }
0x2606   :  { %v9832_v9 = vpop.f32.mrb[59].mxu0  ;;  %v7596_v46 = vsel %vm293_vm3, %v7592_v36, -inf }
0x2607   :  { %7597 = vmax.xlane.f32.xlu0 %v7596_v46  ;;  %v1037_v9 = vadd.f32 %v1036_v54, %v11397_v26  ;;  %v8203_v26 = vld [vmem:[%s13334_s4 + $0x4] sm:$0x3] }
0x2615   :  { %v13089_v49 = vpop.f32.mrb[60].mxu0 }
0x2616   :  { %v9880_v21 = vpop.f32.mrb[61].mxu0 }
0x2684   :  { %v7356_v51 = vpop.xlane.xlu1 %7355 }
0x2685   :  { %v7357_v62 = vsub.f32 %v7350_v28, %v7356_v51  ;;  %v10876_v28 = vmov 0  }
0x2686   :  { %10629 = vset.pattern.permute.xlu0 %v10876_v28  ;;  %10630 = vset.pattern.permute.xlu1 %v10876_v28 }
0x2687   :  { %v7358_v8 = vmul.f32 1.442695, %v7357_v62  ;;  %v8147_v62 = vmul.f32 -1.442695, %v1037_v9 }
0x2689   :  { %10783 = vpow2.f32 %v7358_v8 }
0x2693   :  { %v10784_v41 = vpop.eup %10783 }
0x2694   :  { %v7598_v38 = vpop.xlane.xlu0 %7597  ;;  %v7360_v17 = vsel %vm293_vm3, %v10784_v41, 0.0 }
0x2695   :  { %v7599_v15 = vsub.f32 %v7592_v36, %v7598_v38  ;;  %7361 = vadd.xlane.f32.xlu0 %v7360_v17  ;;  %v8174_v38 = vld [vmem:[%s13334_s4 + $0x2] sm:$0x3] }
0x2697   :  { %v7600_v30 = vmul.f32 1.442695, %v7599_v15  ;;  %v8261_v15 = vld [vmem:[%s13334_s4 + $0x8] sm:$0x3] }
0x2699   :  { %10785 = vpow2.f32 %v7600_v30  ;;  %870 = vmax.xlane.f32.xlu0 %v869_v57  ;;  %v3052_v30 = vadd.f32 %v8203_v26, %v11943_v2 }
0x269d   :  { %2884 = vmax.xlane.f32.xlu0 %v2883_v4 }
0x26a1   :  { %4900 = vmax.xlane.f32.xlu0 %v4899_v14 }
0x26a3   :  { %v13113_v5 = vpop.eup %10785 }
0x26a4   :  { %v7602_v29 = vsel %vm293_vm3, %v13113_v5, 0.0 }
0x26a5   :  { %7603 = vadd.xlane.f32.xlu1 %v7602_v29  ;;  %6916 = vmax.xlane.f32.xlu0 %v6915_v18  ;;  %v8204_v18 = vmul.f32 -1.442695, %v3052_v30 }
0x26a9   :  { %1876 = vmax.xlane.f32.xlu1 %v1875_v33 }
0x26ad   :  { %3892 = vmax.xlane.f32.xlu1 %v3891_v13 }
0x26b1   :  { %5908 = vmax.xlane.f32.xlu1 %v5907_v45 }
0x2722   :  { %v7362_v40 = vpop.xlane.xlu0 %7361 }
0x2723   :  { %10787 = vrcp.f32 %v7362_v40 }
0x2726   :  { %v871_v23 = vpop.xlane.xlu0 %870 }
0x2727   :  { %v872_v36 = vsub.f32 %v867_v43, %v871_v23  ;;  %v2044_v43 = vadd.f32 %v8174_v38, %v11586_v7 }
0x2729   :  { %v873_v27 = vmul.f32 1.442695, %v872_v36  ;;  %v8175_v57 = vmul.f32 -1.442695, %v2044_v43 }
0x272a   :  { %v2885_v46 = vpop.xlane.xlu0 %2884 }
0x272b   :  { %10789 = vpow2.f32 %v873_v27  ;;  %v2886_v21 = vsub.f32 %v2882_v12, %v2885_v46  ;;  %v8290_v12 = vld [vmem:[%s13334_s4 + $0xa] sm:$0x3] }
0x272d   :  { %v10788_v51 = vpop.eup %10787  ;;  %v2887_v8 = vmul.f32 1.442695, %v2886_v21 }
0x272e   :  { %v7364_v17 = vmul.f32 %v10788_v51, %v10784_v41  ;;  %v4901_v4 = vpop.xlane.xlu0 %4900 }
0x272f   :  { %10791 = vpow2.f32 %v2887_v8  ;;  %v4902_v45 = vsub.f32 %v13105_v60, %v4901_v4 }
0x2730   :  { %9807 = vmatmul.mubr.msk.f32.vlgmr.msra.gmra.mrb[100].mxu1 %vm306_vm4, %v7364_v17  ;;  %10793 = vpow2.f32 %v8147_v62 }
0x2731   :  { %9810 = vmatpush3.msra.mxu1 %v12848_v50  ;;  %9811 = vmatprep.mubr.msk.f32.mxu1 %vm10875_vm2, %v10871_v3  ;;  %v5068_v50 = vadd.f32 %v8261_v15, %v12489_v20  ;;  %v6076_v20 = vadd.f32 %v8290_v12, %v12678_v59  ;;  %v4903_v9 = vmul.f32 1.442695, %v4902_v45 }
0x2732   :  { %v7604_v41 = vpop.xlane.xlu1 %7603  ;;  %9833 = vmatprep.subr.mxu1 %v10871_v3  ;;  %v6917_v60 = vpop.xlane.xlu0 %6916 }
0x2733   :  { %10795 = vrcp.f32 %v7604_v41  ;;  %v8262_v13 = vmul.f32 -1.442695, %v5068_v50  ;;  %v8291_v59 = vmul.f32 -1.442695, %v6076_v20 }
0x2734   :  { %9812 = vmatmul.mubr.msk.f32.vlgmr.msra.gmra.mrb[102].mxu1 %vm306_vm4, %v7364_v17  ;;  %10797 = vpow2.f32 %v8175_v57 }
0x2735   :  { %v13155_v7 = vpop.eup %10789  ;;  %9834 = vmatpush3.msra.mxu1 %v12858_v56  ;;  %9835 = vmatprep.mubr.msk.f32.mxu1 %vm10875_vm2, %v10871_v3  ;;  %v8319_v56 = vld [vmem:[%s13334_s4 + $0xc] sm:$0x3] }
0x2736   :  { %v1877_v14 = vpop.xlane.xlu1 %1876  ;;  %v875_v2 = vsel %vm868_vm6, %v13155_v7, 0.0  ;;  %9838 = vmatprep.subr.mxu1 %v10871_v3  ;;  %v7084_v36 = vadd.f32 %v8319_v56, %v13035_v6 }
0x2737   :  { %v1878_v29 = vsub.f32 %v1874_v47, %v1877_v14  ;;  %876 = vadd.xlane.f32.xlu0 %v875_v2 }
0x2738   :  { %v8320_v38 = vmul.f32 -1.442695, %v7084_v36 }
0x2739   :  { %v13168_v33 = vpop.eup %10791  ;;  %v1879_v28 = vmul.f32 1.442695, %v1878_v29 }
0x273a   :  { %v3893_v40 = vpop.xlane.xlu1 %3892  ;;  %v2889_v54 = vsel %vm868_vm6, %v13168_v33, 0.0  ;;  %v10794_v47 = vpop.eup %10793 }
0x273b   :  { %10799 = vpow2.f32 %v1879_v28  ;;  %v3894_v23 = vsub.f32 %v13124_v52, %v3893_v40  ;;  %2890 = vadd.xlane.f32.xlu0 %v2889_v54  ;;  %v1041_v21 = vadd.f32 1.0, %v10794_v47  ;;  %v6918_v52 = vsub.f32 %v13111_v19, %v6917_v60 }
0x273c   :  { %10801 = vpow2.f32 %v8204_v18 }
0x273d   :  { %10803 = vpow2.f32 %v8262_v13  ;;  %v3895_v27 = vmul.f32 1.442695, %v3894_v23  ;;  %v10796_v46 = vpop.eup %10795 }
0x273e   :  { %v5909_v51 = vpop.xlane.xlu1 %5908  ;;  %v7606_v62 = vmul.f32 %v10796_v46, %v13113_v5  ;;  %v10798_v6 = vpop.eup %10797 }
0x273f   :  { %10805 = vpow2.f32 %v3895_v27  ;;  %v5910_v8 = vsub.f32 %v13130_v16, %v5909_v51  ;;  %v6919_v16 = vmul.f32 1.442695, %v6918_v52  ;;  %v2048_v43 = vadd.f32 1.0, %v10798_v6 }
0x2740   :  { %10807 = vpow2.f32 %v8291_v59  ;;  %9836 = vmatmul.mubr.msk.f32.vlgmr.msra.gmra.mrb[104].mxu1 %vm306_vm4, %v7606_v62 }
0x2741   :  { %10809 = vpow2.f32 %v4903_v9  ;;  %v5911_v17 = vmul.f32 1.442695, %v5910_v8  ;;  %9839 = vmatpush3.msra.mxu1 %v12868_v11  ;;  %9840 = vmatprep.mubr.msk.f32.mxu1 %vm10875_vm2, %v10871_v3 }
0x2742   :  { %10811 = vrcp.f32 %v1041_v21  ;;  %10575 = vmatprep.subr.bf16.mxu1 %v13338_v48 }
0x2743   :  { %10813 = vpow2.f32 %v8320_v38 }
0x2744   :  { %10815 = vpow2.f32 %v5911_v17  ;;  %9841 = vmatmul.mubr.msk.f32.vlgmr.msra.gmra.mrb[106].mxu1 %vm306_vm4, %v7606_v62 }
0x2745   :  { %v13186_v5 = vpop.eup %10799  ;;  %10577 = vmatpush3.bf16.msra.mxu1 %v12887_v55  ;;  %9859 = vmatprep.mubr.msk.f32.mxu1 %vm10875_vm2, %v10871_v3  ;;  %10817 = vpow2.f32 %v6919_v16 }
0x2746   :  { %v10802_v19 = vpop.eup %10801  ;;  %v1881_v26 = vsel %vm868_vm6, %v13186_v5, 0.0  ;;  %10578 = vmatprep.subr.bf16.mxu1 %v13338_v48  ;;  %10819 = vrcp.f32 %v2048_v43 }
0x2747   :  { %v10804_v11 = vpop.eup %10803  ;;  %1882 = vadd.xlane.f32.xlu1 %v1881_v26  ;;  %v3056_v41 = vadd.f32 1.0, %v10802_v19 }
0x2748   :  { %v5072_v57 = vadd.f32 1.0, %v10804_v11 }
0x2749   :  { %v13195_v15 = vpop.eup %10805  ;;  %10580 = vmatpush3.bf16.msra.mxu1 %v12907_v25  ;;  %10821 = vrcp.f32 %v3056_v41 }
0x274a   :  { %v10808_v30 = vpop.eup %10807  ;;  %v3897_v50 = vsel %vm868_vm6, %v13195_v15, 0.0  ;;  %10581 = vmatprep.subr.bf16.mxu1 %v13338_v48  ;;  %10823 = vrcp.f32 %v5072_v57 }
0x274b   :  { %v13200_v55 = vpop.eup %10809  ;;  %3898 = vadd.xlane.f32.xlu1 %v3897_v50  ;;  %v6080_v14 = vadd.f32 1.0, %v10808_v30 }
0x274c   :  { %v10812_v12 = vpop.eup %10811  ;;  %v4905_v2 = vsel %vm868_vm6, %v13200_v55, 0.0 }
0x274d   :  { %v10814_v4 = vpop.eup %10813  ;;  %10583 = vmatpush3.bf16.msra.mxu1 %v12924_v32  ;;  %v1050_v18 = vsub.f32 1.0, %v10812_v12  ;;  %10825 = vrcp.f32 %v6080_v14 }
0x274e   :  { %v13206_v29 = vpop.eup %10815  ;;  %10584 = vmatprep.subr.bf16.mxu1 %v13338_v48  ;;  %v7088_v25 = vadd.f32 1.0, %v10814_v4 }
0x274f   :  { %4906 = vadd.xlane.f32.xlu1 %v4905_v2  ;;  %v5913_v20 = vsel %vm868_vm6, %v13206_v29, 0.0  ;;  %v13212_v13 = vpop.eup %10817  ;;  %v13250_v2 = vld [vmem:[#allocation5] sm:$0x3] }
0x2750   :  { %v10820_v32 = vpop.eup %10819  ;;  %10827 = vrcp.f32 %v7088_v25  ;;  %v6921_v56 = vsel %vm868_vm6, %v13212_v13, 0.0 }
0x2751   :  { %1053 = vperm.xlu0 %10629, %v1050_v18   ;;  %10586 = vmatpush3.bf16.msra.mxu1 %v12943_v37  ;;  %v2057_v59 = vsub.f32 1.0, %v10820_v32 }
0x2752   :  { %10599 = vmatprep.subr.bf16.mxu1 %v13338_v48 }
0x2753   :  { %5914 = vadd.xlane.f32.xlu1 %v5913_v20  ;;  %v13217_v45 = vpop.eup %10821 }
0x2754   :  { %v13219_v28 = vpop.eup %10823 }
0x2755   :  { %2053 = vperm.xlu0 %10629, %v10820_v32   ;;  %v5081_v37 = vsub.f32 1.0, %v13219_v28 }
0x2757   :  { %6922 = vadd.xlane.f32.xlu1 %v6921_v56  ;;  %v13223_v40 = vpop.eup %10825 }
0x2758   :  { %v6089_v54 = vsub.f32 1.0, %v13223_v40 }
0x2759   :  { %3061 = vperm.xlu0 %10629, %v13217_v45  }
0x275a   :  { %v13226_v47 = vpop.eup %10827 }
0x275b   :  { %v7097_v23 = vsub.f32 1.0, %v13226_v47 }
0x275d   :  { %5084 = vperm.xlu0 %10629, %v5081_v37  }
0x2761   :  { %6092 = vperm.xlu0 %10629, %v6089_v54  }
0x2765   :  { %7100 = vperm.xlu0 %10629, %v7097_v23  }
0x2768   :  { %1046 = vperm.xlu1 %10630, %v10812_v12  }
0x276c   :  { %2060 = vperm.xlu1 %10630, %v2057_v59  }
0x27c4   :  { %v877_v9 = vpop.xlane.xlu0 %876 }
0x27c5   :  { %10829 = vrcp.f32 %v877_v9 }
0x27c8   :  { %v13235_v60 = vpop.xlane.xlu0 %2890 }
0x27cf   :  { %v10830_v51 = vpop.eup %10829 }
0x27d0   :  { %v1054_v38 = vpop.permute.xlu0 %1053  ;;  %v879_v52 = vmul.f32 %v10830_v51, %v13155_v7 }
0x27d1   :  { %v1056_v6 = vmul.f32 %v1054_v38, %v11488_v31 }
0x27d4   :  { %v1883_v36 = vpop.xlane.xlu1 %1882  ;;  %v2054_v26 = vpop.permute.xlu0 %2053 }
0x27d5   :  { %10831 = vrcp.f32 %v1883_v36 }
0x27d8   :  { %v13229_v27 = vpop.xlane.xlu1 %3898 }
0x27dc   :  { %v13231_v46 = vpop.xlane.xlu1 %4906 }
0x27df   :  { %v10832_v8 = vpop.eup %10831 }
0x27e0   :  { %v13233_v21 = vpop.xlane.xlu1 %5914  ;;  %v1885_v16 = vmul.f32 %v10832_v8, %v13186_v5 }
0x27e2   :  { %v2056_v41 = vmul.f32 %v2054_v26, %v1885_v16 }
0x27e4   :  { %v13237_v62 = vpop.xlane.xlu1 %6922 }
0x27e8   :  { %v1047_v17 = vpop.permute.xlu1 %1046 }
0x27e9   :  { %v1049_v19 = vmul.f32 %v1047_v17, %v879_v52 }
0x27eb   :  { %v1057_v43 = vadd.f32 %v1056_v6, %v1049_v19 }
0x27ec   :  { %v2061_v11 = vpop.permute.xlu1 %2060 }
0x27ed   :  { %v1058_v30 = vadd.f32 1e-10, %v1057_v43  ;;  %v2063_v57 = vmul.f32 %v2061_v11, %v11867_v22 }
0x27ef   :  { %10833 = vlog2.f32 %v1058_v30  ;;  %v2064_v50 = vadd.f32 %v2063_v57, %v2056_v41  ;;  %v3062_v57 = vpop.permute.xlu0 %3061 }
0x27f1   :  { %v2065_v12 = vadd.f32 1e-10, %v2064_v50 }
0x27f3   :  { %10835 = vlog2.f32 %v2065_v12 }
0x27f9   :  { %v10834_v4 = vpop.eup %10833 }
0x27fa   :  { %v1060_v14 = vmul.f32 0.6931472, %v10834_v4 }
0x27fc   :  { %1061 = vst [vmem:[%s13335_s13] sm:$0x3] %v1060_v14 }
0x27fd   :  { %v10836_v31 = vpop.eup %10835 }
0x27fe   :  { %v2067_v7 = vmul.f32 0.6931472, %v10836_v31  ;;  %v5085_v31 = vpop.permute.xlu0 %5084 }
0x2800   :  { %8176 = vst [vmem:[%s13335_s13 + $0x2] sm:$0x3] %v2067_v7 }
0x2803   :  { %v7435_v5 = vpop.f32.mrb[100].mxu1 }
0x2804   :  { %7439 = vst.msk [vmem:[#allocation4] sm:$0x1] %vm380_vm5, %v7435_v5  ;;  %v9808_v22 = vpop.f32.mrb[101].mxu1 }
0x2807   :  { %v7507_v18 = vpop.f32.mrb[102].mxu1 }
0x2808   :  { %7511 = vst [vmem:[#allocation5] sm:$0x1] %v7507_v18  ;;  %v9813_v25 = vpop.f32.mrb[103].mxu1 }
0x2813   :  { %v7677_v20 = vpop.f32.mrb[104].mxu1 }
0x2814   :  { %7681 = vst.msk [vmem:[#allocation4 + $0x1] sm:$0x1] %vm380_vm5, %v7677_v20  ;;  %v9837_v32 = vpop.f32.mrb[105].mxu1  ;;  %v6093_v20 = vpop.permute.xlu0 %6092 }
0x2817   :  { %v7749_v56 = vpop.f32.mrb[106].mxu1 }
0x2818   :  { %7753 = vst [vmem:[#allocation5 + $0x1] sm:$0x1] %v7749_v56  ;;  %v9842_v37 = vpop.f32.mrb[107].mxu1 }
0x2819   :  { %v5087_v37 = vmul.f32 %v5085_v31, %v12580_v53 }
0x281b   :  { %v7754_v54 = vld [vmem:[#allocation4] sm:$0x3] }
0x281c   :  { %9860 = vmatmul.mubr.msk.f32.vlgmr.msra.gmra.mrb[108].mxu1 %vm67_vm1, %v7754_v54  ;;  %9917 = vmatmul.mubr.msk.f32.vlgmr.msra.gmra.mrb[62].mxu0 %vm67_vm1, %v7754_v54 }
0x281d   :  { %10601 = vmatpush3.bf16.msra.mxu1 %v12968_v24  ;;  %9897 = vmatprep.mubr.msk.f32.mxu1 %vm10875_vm2, %v10871_v3  ;;  %v8232_v24 = vld [vmem:[%s13334_s4 + $0x6] sm:$0x3] }
0x281e   :  { %10602 = vmatprep.subr.bf16.mxu1 %v13338_v48  ;;  %v4060_v3 = vadd.f32 %v8232_v24, %v12132_v39  ;;  %v8348_v39 = vld [vmem:[%s13334_s4 + $0xe] sm:$0x3] }
0x2820   :  { %v8233_v23 = vmul.f32 -1.442695, %v4060_v3 }
0x2821   :  { %10604 = vmatpush3.bf16.msra.mxu1 %v12979_v10 }
0x2822   :  { %10605 = vmatprep.subr.bf16.mxu1 %v13338_v48  ;;  %10837 = vpow2.f32 %v8233_v23 }
0x2825   :  { %10607 = vmatpush3.bf16.msra.mxu1 %v12995_v63 }
0x2826   :  { %10608 = vmatprep.subr.bf16.mxu1 %v13338_v48 }
0x2829   :  { %10610 = vmatpush3.bf16.msra.mxu1 %v13007_v42 }
0x282c   :  { %9898 = vmatmul.mubr.msk.f32.vlgmr.msra.gmra.mrb[110].mxu1 %vm67_vm1, %v13047_v0  ;;  %v10838_v0 = vpop.eup %10837 }
0x282d   :  { %v4064_v51 = vadd.f32 1.0, %v10838_v0 }
0x282f   :  { %10839 = vrcp.f32 %v4064_v51 }
0x28ef   :  { %v7841_v10 = vpop.f32.mrb[108].mxu1  ;;  %v8086_v59 = vpop.f32.mrb[62].mxu0 }
0x28f0   :  { %v7912_v36 = vadd.f32 %v13089_v49, %v7841_v10  ;;  %v9861_v63 = vpop.f32.mrb[109].mxu1  ;;  %v9918_v9 = vpop.f32.mrb[63].mxu0  ;;  %v3065_v49 = vsub.f32 1.0, %v13217_v45  ;;  %v6095_v10 = vmul.f32 %v6093_v20, %v12959_v1 }
0x28f2   :  { %v7922_v48 = vadd.f32 %v13094_v44, %v7912_v36  ;;  %v10840_v44 = vpop.eup %10839  ;;  %v7101_v36 = vpop.permute.xlu0 %7100 }
0x28f3   :  { %v4073_v16 = vsub.f32 1.0, %v10840_v44 }
0x28f4   :  { %v7923_v42 = vsel %vm868_vm6, %v7922_v48, -inf }
0x28f5   :  { %7924 = vmax.xlane.f32.xlu1 %v7923_v42 }
0x28ff   :  { %v8016_v8 = vpop.f32.mrb[110].mxu1 }
0x2900   :  { %v8087_v38 = vadd.f32 %v8086_v59, %v8016_v8  ;;  %v9899_v52 = vpop.f32.mrb[111].mxu1 }
0x2901   :  { %v7268_v52 = vrot.slane %v13043_v58, %v11033_v35 }
0x2902   :  { %v8092_v17 = vadd.f32 %v8348_v39, %v8087_v38 }
0x2904   :  { %v8349_v6 = vmul.f32 -1.442695, %v8092_v17 }
0x2906   :  { %10841 = vpow2.f32 %v8349_v6  ;;  %3068 = vperm.xlu1 %10630, %v3065_v49  }
0x290a   :  { %4069 = vperm.xlu1 %10630, %v10840_v44  }
0x290e   :  { %4076 = vperm.xlu1 %10630, %v4073_v16  }
0x2910   :  { %v10842_v19 = vpop.eup %10841 }
0x2911   :  { %v8096_v43 = vadd.f32 1.0, %v10842_v19 }
0x2912   :  { %5077 = vperm.xlu1 %10630, %v13219_v28  }
0x2913   :  { %10843 = vrcp.f32 %v8096_v43 }
0x2914   :  { %10845 = vrcp.f32 %v13235_v60 }
0x2915   :  { %10847 = vrcp.f32 %v13229_v27 }
0x2916   :  { %6085 = vperm.xlu1 %10630, %v13223_v40   ;;  %10849 = vrcp.f32 %v13231_v46 }
0x291a   :  { %7093 = vperm.xlu1 %10630, %v13226_v47  }
0x291d   :  { %v13280_v26 = vpop.eup %10843 }
0x291e   :  { %v8105_v11 = vsub.f32 1.0, %v13280_v26  ;;  %v10846_v45 = vpop.eup %10845 }
0x291f   :  { %v2893_v28 = vmul.f32 %v10846_v45, %v13168_v33  ;;  %v10848_v60 = vpop.eup %10847 }
0x2920   :  { %8108 = vperm.xlu0 %10629, %v8105_v11   ;;  %v3901_v46 = vmul.f32 %v10848_v60, %v13195_v15  ;;  %v10850_v7 = vpop.eup %10849 }
0x2921   :  { %v3064_v47 = vmul.f32 %v3062_v57, %v2893_v28 }
0x2982   :  { %v7925_v41 = vpop.xlane.xlu1 %7924 }
0x2983   :  { %v7926_v30 = vsub.f32 %v7922_v48, %v7925_v41 }
0x2985   :  { %v7927_v40 = vmul.f32 1.442695, %v7926_v30 }
0x2986   :  { %v3069_v50 = vpop.permute.xlu1 %3068 }
0x2987   :  { %10851 = vpow2.f32 %v7927_v40  ;;  %v3071_v12 = vmul.f32 %v3069_v50, %v12034_v34  ;;  %v4909_v34 = vmul.f32 %v10850_v7, %v13200_v55 }
0x2988   :  { %10853 = vrcp.f32 %v13233_v21 }
0x2989   :  { %v3072_v4 = vadd.f32 %v3071_v12, %v3064_v47  ;;  %10855 = vrcp.f32 %v13237_v62 }
0x298a   :  { %v4070_v14 = vpop.permute.xlu1 %4069 }
0x298b   :  { %v3073_v27 = vadd.f32 1e-10, %v3072_v4  ;;  %v4072_v5 = vmul.f32 %v4070_v14, %v3901_v46 }
0x298d   :  { %10857 = vlog2.f32 %v3073_v27 }
0x298e   :  { %v4077_v33 = vpop.permute.xlu1 %4076 }
0x298f   :  { %v4079_v22 = vmul.f32 %v4077_v33, %v12413_v61 }
0x2991   :  { %v10852_v18 = vpop.eup %10851  ;;  %v4080_v25 = vadd.f32 %v4079_v22, %v4072_v5 }
0x2992   :  { %v10854_v21 = vpop.eup %10853  ;;  %v5078_v32 = vpop.permute.xlu1 %5077  ;;  %v7929_v56 = vsel %vm868_vm6, %v10852_v18, 0.0 }
0x2993   :  { %v4081_v62 = vadd.f32 1e-10, %v4080_v25  ;;  %v5080_v54 = vmul.f32 %v5078_v32, %v4909_v34  ;;  %7930 = vadd.xlane.f32.xlu1 %v7929_v56  ;;  %v5917_v24 = vmul.f32 %v10854_v21, %v13206_v29  ;;  %v10856_v3 = vpop.eup %10855  ;;  %v7103_v29 = vmul.f32 %v7101_v36, %v13250_v2 }
0x2994   :  { %v6925_v53 = vmul.f32 %v10856_v3, %v13212_v13 }
0x2995   :  { %10859 = vlog2.f32 %v4081_v62  ;;  %v5088_v15 = vadd.f32 %v5087_v37, %v5080_v54 }
0x2996   :  { %v6086_v61 = vpop.permute.xlu1 %6085 }
0x2997   :  { %v10858_v23 = vpop.eup %10857  ;;  %v5089_v55 = vadd.f32 1e-10, %v5088_v15  ;;  %v6088_v59 = vmul.f32 %v6086_v61, %v5917_v24 }
0x2998   :  { %v3075_v63 = vmul.f32 0.6931472, %v10858_v23 }
0x2999   :  { %10861 = vlog2.f32 %v5089_v55  ;;  %v6096_v9 = vadd.f32 %v6095_v10, %v6088_v59 }
0x299a   :  { %8205 = vst [vmem:[%s13335_s13 + $0x4] sm:$0x3] %v3075_v63  ;;  %v7094_v48 = vpop.permute.xlu1 %7093 }
0x299b   :  { %v6097_v42 = vadd.f32 1e-10, %v6096_v9  ;;  %v7096_v0 = vmul.f32 %v7094_v48, %v6925_v53 }
0x299d   :  { %10863 = vlog2.f32 %v6097_v42  ;;  %v7104_v51 = vadd.f32 %v7103_v29, %v7096_v0 }
0x299f   :  { %v10860_v1 = vpop.eup %10859  ;;  %v7105_v8 = vadd.f32 1e-10, %v7104_v51  ;;  %v8109_v19 = vpop.permute.xlu0 %8108 }
0x29a0   :  { %v4083_v39 = vmul.f32 0.6931472, %v10860_v1 }
0x29a1   :  { %10865 = vlog2.f32 %v7105_v8 }
0x29a2   :  { %8234 = vst [vmem:[%s13335_s13 + $0x6] sm:$0x3] %v4083_v39 }
0x29a3   :  { %v10862_v13 = vpop.eup %10861 }
0x29a4   :  { %v5091_v38 = vmul.f32 0.6931472, %v10862_v13  ;;  %8101 = vperm.xlu1 %10630, %v13280_v26   ;;  %v7755_v26 = vld [vmem:[#allocation5] sm:$0x3] }
0x29a5   :  { %v8111_v11 = vmul.f32 %v8109_v19, %v7755_v26 }
0x29a6   :  { %8263 = vst [vmem:[%s13335_s13 + $0x8] sm:$0x3] %v5091_v38 }
0x29a7   :  { %v10864_v2 = vpop.eup %10863 }
0x29a8   :  { %v6099_v17 = vmul.f32 0.6931472, %v10864_v2  ;;  %7269 = vrot.lane.b32.xlu1 %v7268_v52, %s10872_s25 }
0x29aa   :  { %8292 = vst [vmem:[%s13335_s13 + $0xa] sm:$0x3] %v6099_v17 }
0x29ab   :  { %v10866_v6 = vpop.eup %10865 }
0x29ac   :  { %v7107_v49 = vmul.f32 0.6931472, %v10866_v6 }
0x29ae   :  { %8321 = vst [vmem:[%s13335_s13 + $0xc] sm:$0x3] %v7107_v49 }
0x2a20   :  { %v7931_v44 = vpop.xlane.xlu1 %7930 }
0x2a21   :  { %10867 = vrcp.f32 %v7931_v44 }
0x2a24   :  { %v8102_v35 = vpop.permute.xlu1 %8101 }
0x2a28   :  { %v7270_v58 = vpop.permute.xlu1 %7269 }
0x2a29   :  { %7272 = vst.msk [vmem:[#allocation3] sm:$0x3] %vm45_vm0, %v7270_v58 }
0x2a2b   :  { %v10868_v16 = vpop.eup %10867 }
0x2a2c   :  { %v7933_v43 = vmul.f32 %v10868_v16, %v10852_v18 }
0x2a2e   :  { %v8104_v45 = vmul.f32 %v8102_v35, %v7933_v43 }
0x2a30   :  { %v8112_v41 = vadd.f32 %v8111_v11, %v8104_v45 }
0x2a32   :  { %v8113_v30 = vadd.f32 1e-10, %v8112_v41 }
0x2a34   :  { %10869 = vlog2.f32 %v8113_v30 }
0x2a3e   :  { %v10870_v57 = vpop.eup %10869 }
0x2a3f   :  { %v8115_v28 = vmul.f32 0.6931472, %v10870_v57 }
0x2a41   :  { %8350 = vst [vmem:[%s13335_s13 + $0xe] sm:$0x3] %v8115_v28 }

</bundles_post_ra>
